<compile_context>
chip_gen: v7x
topology: tpu7x:2x2x1
jax: 0.10.0
libtpu: 0.0.40
codegen_flags: <defaults>
</compile_context>

<pallas_src>
import functools

import numpy as np
import jax
import jax.numpy as jnp
from jax.experimental import pallas as pl
from jax.experimental.pallas import tpu as pltpu

# Layer geometry: (Cin, Cout, Hin, Win, stride); all convs are 3x3, padding=1.
# Linear(in_features = 2*16*32 = 1024) implies 1x28x28 inputs.
_CONV_LAYERS = [
    (1, 32, 28, 28, 2),   # -> 32 x 14 x 14
    (32, 32, 14, 14, 1),  # -> 32 x 14 x 14
    (32, 64, 14, 14, 2),  # -> 64 x  7 x  7
    (64, 64, 7, 7, 1),    # -> 64 x  7 x  7
    (64, 64, 7, 7, 2),    # -> 64 x  4 x  4
]
_FC_H = 4          # spatial size feeding the Linear layer
_FC_C = 64         # channels feeding the Linear layer
_MAX_TILE_B = 32   # images per grid step (multiple of 16)


def _out_hw(h, stride):  # k=3, pad=1
    return (h - 1) // stride + 1


def _pick_tile_b(batch):
    """Images per grid step: a multiple of 16 (bf16 sublane packing alignment
    for the row-group slices), capped at 32, and small enough that
    ceil(B/tile) >= 2 when the batch allows it (v7x megacore)."""
    t = ((batch + 1) // 2 + 15) // 16 * 16
    return int(max(16, min(_MAX_TILE_B, t)))


# ---------------------------------------------------------------------------
# Fused kernel: whole encoder for one batch tile; activations stay in VMEM.
# Activation layout: 2-D [H*tb, W*C] with row = y*tb + b, col = x*C + c.
# ---------------------------------------------------------------------------
def _encoder_kernel(x_ref, *refs, tile_b):
    """refs = 4 per conv layer (W_dy0, W_dy1, W_dy2, bias) + (W_fc, b_fc) + out."""
    out_ref = refs[-1]
    wrefs = refs[:-1]
    tb = tile_b

    a = x_ref[0]                                    # [Hin*tb, Win] bf16
    idx = 0
    for (cin, cout, hi, wi, stride) in _CONV_LAYERS:
        ho, wo = _out_hw(hi, stride), _out_hw(wi, stride)
        w_mats = [wrefs[idx + d][...] for d in range(3)]   # bf16 [wi*cin, wo*cout]
        bias = wrefs[idx + 3][...]                         # f32  [1, wo*cout]
        idx += 4
        zrow = jnp.zeros((tb, wi * cin), dtype=a.dtype)

        if stride == 1:
            # Vertical taps are contiguous row-block slices of the zero-padded
            # activation (yi = yo + dy - 1).
            a_pad = jnp.concatenate([zrow, a, zrow], axis=0)
            taps = [a_pad[d * tb:(d + ho) * tb, :] for d in range(3)]
        else:
            # stride 2: yi = 2*yo + dy - 1.
            # Even input rows yi = 0, 2, ..., 2*ho-2 (all in range) -> tap dy=1.
            even = jnp.concatenate(
                [a[(2 * yo) * tb:(2 * yo + 1) * tb, :] for yo in range(ho)],
                axis=0)
            # Odd rows bracketing them: yi = -1, 1, ..., 2*ho-1 (zeros when OOB).
            odd_pieces = [zrow]
            for yo in range(ho):
                yi = 2 * yo + 1
                odd_pieces.append(a[yi * tb:(yi + 1) * tb, :] if yi < hi else zrow)
            odd = jnp.concatenate(odd_pieces, axis=0)        # [(ho+1)*tb, wi*cin]
            taps = [odd[:ho * tb, :], even, odd[tb:, :]]

        # Only the weight matmuls touch the MXU; accumulate in f32.
        acc = jnp.dot(taps[0], w_mats[0], preferred_element_type=jnp.float32)
        acc = acc + jnp.dot(taps[1], w_mats[1], preferred_element_type=jnp.float32)
        acc = acc + jnp.dot(taps[2], w_mats[2], preferred_element_type=jnp.float32)
        # f32 bias + ReLU epilogue, bf16 inter-layer activation.
        a = jnp.maximum(acc + bias, 0.0).astype(jnp.bfloat16)  # [ho*tb, wo*cout]

    # Linear(1024 -> z_dim): concat the 4 y row-groups along lanes (256 each,
    # lane-aligned) -> one [tb, 1024] @ [1024, z_dim] matmul.
    a_fc = jnp.concatenate(
        [a[y * tb:(y + 1) * tb, :] for y in range(_FC_H)], axis=1)
    w_fc = wrefs[idx][...]                                   # bf16 [1024, z_dim]
    b_fc = wrefs[idx + 1][...]                               # f32  [1, z_dim]
    out_ref[...] = jnp.dot(a_fc, w_fc, preferred_element_type=jnp.float32) + b_fc


# ---------------------------------------------------------------------------
# Parameters (PyTorch-shaped) and host-side packing into kernel operands.
# ---------------------------------------------------------------------------
def init_params(key, z_dim):
    """Conv2d weights [Cout,Cin,3,3], biases [Cout]; Linear [out,in], [out]."""
    params = {}
    keys = jax.random.split(key, 2 * len(_CONV_LAYERS) + 2)
    for i, (cin, cout, _, _, _) in enumerate(_CONV_LAYERS):
        scale = 1.0 / np.sqrt(cin * 9.0)
        params[f"conv{i}_w"] = scale * jax.random.normal(
            keys[2 * i], (cout, cin, 3, 3), jnp.float32)
        params[f"conv{i}_b"] = scale * jax.random.normal(
            keys[2 * i + 1], (cout,), jnp.float32)
    in_feat = _FC_C * _FC_H * _FC_H  # 1024
    scale = 1.0 / np.sqrt(float(in_feat))
    params["fc_w"] = scale * jax.random.normal(keys[-2], (z_dim, in_feat),
                                               jnp.float32)
    params["fc_b"] = scale * jax.random.normal(keys[-1], (z_dim,), jnp.float32)
    return params


def pack_params(params, z_dim):
    """Per conv layer: 3 W_dy matrices [Wi*Cin, Wo*Cout] (horizontal taps,
    stride and x-padding baked in) + bias row; then FC weight/bias.
    All matmul operands bf16, biases f32.  TILE_B-independent."""
    ops = []
    for l, (cin, cout, hi, wi, s) in enumerate(_CONV_LAYERS):
        ho, wo = _out_hw(hi, s), _out_hw(wi, s)
        w = np.asarray(params[f"conv{l}_w"], np.float32)     # [cout,cin,3,3]
        b = np.asarray(params[f"conv{l}_b"], np.float32)
        for dy in range(3):
            W = np.zeros((wi * cin, wo * cout), np.float32)
            for xo in range(wo):
                for dx in range(3):
                    xi = s * xo + dx - 1
                    if 0 <= xi < wi:                          # x zero padding
                        W[xi * cin:(xi + 1) * cin,
                          xo * cout:(xo + 1) * cout] = w[:, :, dy, dx].T
            ops.append(jnp.asarray(W, jnp.bfloat16))
        ops.append(jnp.asarray(np.tile(b, wo)[None, :], jnp.float32))

    # Linear; PyTorch nn.Flatten on NCHW flattens as (C, H, W).
    fw = np.asarray(params["fc_w"], np.float32)               # [z_dim, 1024]
    fb = np.asarray(params["fc_b"], np.float32)
    yy, xx, cc = np.meshgrid(np.arange(_FC_H), np.arange(_FC_H),
                             np.arange(_FC_C), indexing="ij")
    # Kernel-side FC input column = y*(H*C) + x*C + c ; PyTorch col = c*H*H + y*H + x.
    flat = (cc * _FC_H * _FC_H + yy * _FC_H + xx).reshape(-1)
    ops.append(jnp.asarray(fw[:, flat].T, jnp.bfloat16))      # [1024, z_dim]
    ops.append(jnp.asarray(fb[None, :], jnp.float32))
    return ops


def _cost_estimate(tile_b, z_dim, n_tiles):
    flops = 0
    w_bytes = 0
    for (cin, cout, hi, wi, s) in _CONV_LAYERS:
        ho, wo = _out_hw(hi, s), _out_hw(wi, s)
        flops += 3 * 2 * (ho * tile_b) * (wi * cin) * (wo * cout)
        w_bytes += 3 * (wi * cin) * (wo * cout) * 2 + wo * cout * 4
    flops += 2 * tile_b * (_FC_H * _FC_H * _FC_C) * z_dim
    w_bytes += (_FC_H * _FC_H * _FC_C) * z_dim * 2 + z_dim * 4
    hin, win = _CONV_LAYERS[0][2], _CONV_LAYERS[0][3]
    io_bytes = n_tiles * tile_b * (hin * win * 2 + z_dim * 4)
    return pl.CostEstimate(flops=int(flops * n_tiles), transcendentals=0,
                           bytes_accessed=int(io_bytes + w_bytes))


# ---------------------------------------------------------------------------
# Forward: single pallas_call, grid over batch tiles.
# ---------------------------------------------------------------------------
def conv_encoder_forward(packed, x_nchw, z_dim):
    """x: [B,1,28,28] (NCHW, like PyTorch) -> z: [B, z_dim]."""
    B = x_nchw.shape[0]
    hin, win = _CONV_LAYERS[0][2], _CONV_LAYERS[0][3]
    tile_b = _pick_tile_b(B)
    n_tiles = -(-B // tile_b)
    Bp = n_tiles * tile_b

    x = x_nchw.reshape(B, hin, win).astype(jnp.bfloat16)
    if Bp != B:
        x = jnp.pad(x, ((0, Bp - B), (0, 0), (0, 0)))
    # y-major layout per tile: [n_tiles, Hin*tile_b, Win], row = y*tile_b + b.
    a0 = x.reshape(n_tiles, tile_b, hin, win).transpose(0, 2, 1, 3).reshape(
        n_tiles, hin * tile_b, win)

    in_specs = [pl.BlockSpec((1, hin * tile_b, win), lambda i: (i, 0, 0))]
    # Weights: full-array blocks, constant index_map -> fetched once and kept
    # VMEM resident across the whole grid.
    in_specs += [pl.BlockSpec(op.shape, lambda i: (0, 0)) for op in packed]
    out_spec = pl.BlockSpec((tile_b, z_dim), lambda i: (i, 0))

    kernel = functools.partial(_encoder_kernel, tile_b=tile_b)
    out = pl.pallas_call(
        kernel,
        out_shape=jax.ShapeDtypeStruct((Bp, z_dim), jnp.float32),
        grid=(n_tiles,),
        in_specs=in_specs,
        out_specs=out_spec,
        compiler_params=pltpu.CompilerParams(
            dimension_semantics=("parallel",),        # shard tiles across TCs
            vmem_limit_bytes=32 * 1024 * 1024),
        cost_estimate=_cost_estimate(tile_b, z_dim, n_tiles),
    )(a0, *packed)
    return out[:B]
    # TODO(synk): for latency-critical tiny batches, cross-call weight prefetch
    # (P10) would hide the ~4.4 MB weight DMA; amortized away for real batches.


# ---------------------------------------------------------------------------
# Pure-JAX reference (sanity check only; not a Pallas kernel).
# ---------------------------------------------------------------------------
def reference_forward(params, x_nchw):
    x = x_nchw.astype(jnp.float32)
    for i, (_, _, _, _, s) in enumerate(_CONV_LAYERS):
        x = jax.lax.conv_general_dilated(
            x, params[f"conv{i}_w"], window_strides=(s, s),
            padding=((1, 1), (1, 1)),
            dimension_numbers=("NCHW", "OIHW", "NCHW"))
        x = jnp.maximum(x + params[f"conv{i}_b"][None, :, None, None], 0.0)
    flat = x.reshape(x.shape[0], -1)
    return flat @ params["fc_w"].T + params["fc_b"]


if __name__ == "__main__":
    z_dim = 32
    key = jax.random.PRNGKey(0)
    pkey, xkey = jax.random.split(key)
    params = init_params(pkey, z_dim)
    packed = pack_params(params, z_dim)

    # 1x28x28 inputs are implied by Linear(in_features = 2*16*32).
    x = jax.random.normal(xkey, (2, 1, 28, 28), jnp.float32)

    fwd = jax.jit(functools.partial(conv_encoder_forward, z_dim=z_dim))
    z = fwd(packed, x)
    jax.block_until_ready(z)
    assert z.shape == (2, z_dim), z.shape

    # Sanity check vs plain-JAX reference (loose tol: bf16 weights/activations).
    z_ref = reference_forward(params, x)
    err = float(jnp.max(jnp.abs(z - z_ref)))
    scale = float(jnp.max(jnp.abs(z_ref))) + 1e-6
    assert err <= 0.1 * scale + 0.05, (err, scale)
    print("KERNEL_OK")
</pallas_src>

<mosaic_0001>
module attributes {stable_mosaic.version = 11 : i64} {
  func.func @_encoder_kernel(%arg0: i32, %arg1: memref<1x448x28xbf16, #tpu.memory_space<vmem>>, %arg2: memref<28x448xbf16, #tpu.memory_space<vmem>>, %arg3: memref<28x448xbf16, #tpu.memory_space<vmem>>, %arg4: memref<28x448xbf16, #tpu.memory_space<vmem>>, %arg5: memref<1x448xf32, #tpu.memory_space<vmem>>, %arg6: memref<448x448xbf16, #tpu.memory_space<vmem>>, %arg7: memref<448x448xbf16, #tpu.memory_space<vmem>>, %arg8: memref<448x448xbf16, #tpu.memory_space<vmem>>, %arg9: memref<1x448xf32, #tpu.memory_space<vmem>>, %arg10: memref<448x448xbf16, #tpu.memory_space<vmem>>, %arg11: memref<448x448xbf16, #tpu.memory_space<vmem>>, %arg12: memref<448x448xbf16, #tpu.memory_space<vmem>>, %arg13: memref<1x448xf32, #tpu.memory_space<vmem>>, %arg14: memref<448x448xbf16, #tpu.memory_space<vmem>>, %arg15: memref<448x448xbf16, #tpu.memory_space<vmem>>, %arg16: memref<448x448xbf16, #tpu.memory_space<vmem>>, %arg17: memref<1x448xf32, #tpu.memory_space<vmem>>, %arg18: memref<448x256xbf16, #tpu.memory_space<vmem>>, %arg19: memref<448x256xbf16, #tpu.memory_space<vmem>>, %arg20: memref<448x256xbf16, #tpu.memory_space<vmem>>, %arg21: memref<1x256xf32, #tpu.memory_space<vmem>>, %arg22: memref<1024x32xbf16, #tpu.memory_space<vmem>>, %arg23: memref<1x32xf32, #tpu.memory_space<vmem>>, %arg24: memref<16x32xf32, #tpu.memory_space<vmem>>) attributes {dimension_semantics = [#tpu.dimension_semantics<parallel>], iteration_bounds = array<i64: 1>, scalar_prefetch = 0 : i64, scratch_operands = 0 : i64, tpu.core_type = #tpu.core_type<tc>, window_params = [{transform_indices = @transform_0, window_bounds = array<i64: 1, 448, 28>}, {pipeline_mode = #tpu.pipeline_mode<synchronous>, transform_indices = @transform_1, window_bounds = array<i64: 28, 448>}, {pipeline_mode = #tpu.pipeline_mode<synchronous>, transform_indices = @transform_2, window_bounds = array<i64: 28, 448>}, {pipeline_mode = #tpu.pipeline_mode<synchronous>, transform_indices = @transform_3, window_bounds = array<i64: 28, 448>}, {pipeline_mode = #tpu.pipeline_mode<synchronous>, transform_indices = @transform_4, window_bounds = array<i64: 1, 448>}, {pipeline_mode = #tpu.pipeline_mode<synchronous>, transform_indices = @transform_5, window_bounds = array<i64: 448, 448>}, {pipeline_mode = #tpu.pipeline_mode<synchronous>, transform_indices = @transform_6, window_bounds = array<i64: 448, 448>}, {pipeline_mode = #tpu.pipeline_mode<synchronous>, transform_indices = @transform_7, window_bounds = array<i64: 448, 448>}, {pipeline_mode = #tpu.pipeline_mode<synchronous>, transform_indices = @transform_8, window_bounds = array<i64: 1, 448>}, {pipeline_mode = #tpu.pipeline_mode<synchronous>, transform_indices = @transform_9, window_bounds = array<i64: 448, 448>}, {pipeline_mode = #tpu.pipeline_mode<synchronous>, transform_indices = @transform_10, window_bounds = array<i64: 448, 448>}, {pipeline_mode = #tpu.pipeline_mode<synchronous>, transform_indices = @transform_11, window_bounds = array<i64: 448, 448>}, {pipeline_mode = #tpu.pipeline_mode<synchronous>, transform_indices = @transform_12, window_bounds = array<i64: 1, 448>}, {pipeline_mode = #tpu.pipeline_mode<synchronous>, transform_indices = @transform_13, window_bounds = array<i64: 448, 448>}, {pipeline_mode = #tpu.pipeline_mode<synchronous>, transform_indices = @transform_14, window_bounds = array<i64: 448, 448>}, {pipeline_mode = #tpu.pipeline_mode<synchronous>, transform_indices = @transform_15, window_bounds = array<i64: 448, 448>}, {pipeline_mode = #tpu.pipeline_mode<synchronous>, transform_indices = @transform_16, window_bounds = array<i64: 1, 448>}, {pipeline_mode = #tpu.pipeline_mode<synchronous>, transform_indices = @transform_17, window_bounds = array<i64: 448, 256>}, {pipeline_mode = #tpu.pipeline_mode<synchronous>, transform_indices = @transform_18, window_bounds = array<i64: 448, 256>}, {pipeline_mode = #tpu.pipeline_mode<synchronous>, transform_indices = @transform_19, window_bounds = array<i64: 448, 256>}, {pipeline_mode = #tpu.pipeline_mode<synchronous>, transform_indices = @transform_20, window_bounds = array<i64: 1, 256>}, {pipeline_mode = #tpu.pipeline_mode<synchronous>, transform_indices = @transform_21, window_bounds = array<i64: 1024, 32>}, {pipeline_mode = #tpu.pipeline_mode<synchronous>, transform_indices = @transform_22, window_bounds = array<i64: 1, 32>}, {transform_indices = @transform_23, window_bounds = array<i64: 16, 32>}]} {
    %c0 = arith.constant 0 : index
    %c0_0 = arith.constant 0 : index
    %c0_1 = arith.constant 0 : index
    %0 = vector.load %arg1[%c0, %c0_0, %c0_1] : memref<1x448x28xbf16, #tpu.memory_space<vmem>>, vector<1x448x28xbf16>
    %1 = vector.shape_cast %0 : vector<1x448x28xbf16> to vector<448x28xbf16>
    %c0_2 = arith.constant 0 : index
    %c0_3 = arith.constant 0 : index
    %2 = vector.load %arg2[%c0_2, %c0_3] : memref<28x448xbf16, #tpu.memory_space<vmem>>, vector<28x448xbf16>
    %c0_4 = arith.constant 0 : index
    %c0_5 = arith.constant 0 : index
    %3 = vector.load %arg3[%c0_4, %c0_5] : memref<28x448xbf16, #tpu.memory_space<vmem>>, vector<28x448xbf16>
    %c0_6 = arith.constant 0 : index
    %c0_7 = arith.constant 0 : index
    %4 = vector.load %arg4[%c0_6, %c0_7] : memref<28x448xbf16, #tpu.memory_space<vmem>>, vector<28x448xbf16>
    %c0_8 = arith.constant 0 : index
    %c0_9 = arith.constant 0 : index
    %5 = vector.load %arg5[%c0_8, %c0_9] : memref<1x448xf32, #tpu.memory_space<vmem>>, vector<1x448xf32>
    %cst = arith.constant 0.000000e+00 : bf16
    %6 = vector.broadcast %cst : bf16 to vector<16x28xbf16>
    %7 = vector.extract_strided_slice %1 {offsets = [0, 0], sizes = [16, 28], strides = [1, 1]} : vector<448x28xbf16> to vector<16x28xbf16>
    %8 = vector.extract_strided_slice %1 {offsets = [32, 0], sizes = [16, 28], strides = [1, 1]} : vector<448x28xbf16> to vector<16x28xbf16>
    %9 = vector.extract_strided_slice %1 {offsets = [64, 0], sizes = [16, 28], strides = [1, 1]} : vector<448x28xbf16> to vector<16x28xbf16>
    %10 = vector.extract_strided_slice %1 {offsets = [96, 0], sizes = [16, 28], strides = [1, 1]} : vector<448x28xbf16> to vector<16x28xbf16>
    %11 = vector.extract_strided_slice %1 {offsets = [128, 0], sizes = [16, 28], strides = [1, 1]} : vector<448x28xbf16> to vector<16x28xbf16>
    %12 = vector.extract_strided_slice %1 {offsets = [160, 0], sizes = [16, 28], strides = [1, 1]} : vector<448x28xbf16> to vector<16x28xbf16>
    %13 = vector.extract_strided_slice %1 {offsets = [192, 0], sizes = [16, 28], strides = [1, 1]} : vector<448x28xbf16> to vector<16x28xbf16>
    %14 = vector.extract_strided_slice %1 {offsets = [224, 0], sizes = [16, 28], strides = [1, 1]} : vector<448x28xbf16> to vector<16x28xbf16>
    %15 = vector.extract_strided_slice %1 {offsets = [256, 0], sizes = [16, 28], strides = [1, 1]} : vector<448x28xbf16> to vector<16x28xbf16>
    %16 = vector.extract_strided_slice %1 {offsets = [288, 0], sizes = [16, 28], strides = [1, 1]} : vector<448x28xbf16> to vector<16x28xbf16>
    %17 = vector.extract_strided_slice %1 {offsets = [320, 0], sizes = [16, 28], strides = [1, 1]} : vector<448x28xbf16> to vector<16x28xbf16>
    %18 = vector.extract_strided_slice %1 {offsets = [352, 0], sizes = [16, 28], strides = [1, 1]} : vector<448x28xbf16> to vector<16x28xbf16>
    %19 = vector.extract_strided_slice %1 {offsets = [384, 0], sizes = [16, 28], strides = [1, 1]} : vector<448x28xbf16> to vector<16x28xbf16>
    %20 = vector.extract_strided_slice %1 {offsets = [416, 0], sizes = [16, 28], strides = [1, 1]} : vector<448x28xbf16> to vector<16x28xbf16>
    %21 = tpu.concatenate %7, %8, %9, %10, %11, %12, %13, %14, %15, %16, %17, %18, %19, %20 in 0 : vector<16x28xbf16>, vector<16x28xbf16>, vector<16x28xbf16>, vector<16x28xbf16>, vector<16x28xbf16>, vector<16x28xbf16>, vector<16x28xbf16>, vector<16x28xbf16>, vector<16x28xbf16>, vector<16x28xbf16>, vector<16x28xbf16>, vector<16x28xbf16>, vector<16x28xbf16>, vector<16x28xbf16> -> vector<224x28xbf16>
    %22 = vector.extract_strided_slice %1 {offsets = [16, 0], sizes = [16, 28], strides = [1, 1]} : vector<448x28xbf16> to vector<16x28xbf16>
    %23 = vector.extract_strided_slice %1 {offsets = [48, 0], sizes = [16, 28], strides = [1, 1]} : vector<448x28xbf16> to vector<16x28xbf16>
    %24 = vector.extract_strided_slice %1 {offsets = [80, 0], sizes = [16, 28], strides = [1, 1]} : vector<448x28xbf16> to vector<16x28xbf16>
    %25 = vector.extract_strided_slice %1 {offsets = [112, 0], sizes = [16, 28], strides = [1, 1]} : vector<448x28xbf16> to vector<16x28xbf16>
    %26 = vector.extract_strided_slice %1 {offsets = [144, 0], sizes = [16, 28], strides = [1, 1]} : vector<448x28xbf16> to vector<16x28xbf16>
    %27 = vector.extract_strided_slice %1 {offsets = [176, 0], sizes = [16, 28], strides = [1, 1]} : vector<448x28xbf16> to vector<16x28xbf16>
    %28 = vector.extract_strided_slice %1 {offsets = [208, 0], sizes = [16, 28], strides = [1, 1]} : vector<448x28xbf16> to vector<16x28xbf16>
    %29 = vector.extract_strided_slice %1 {offsets = [240, 0], sizes = [16, 28], strides = [1, 1]} : vector<448x28xbf16> to vector<16x28xbf16>
    %30 = vector.extract_strided_slice %1 {offsets = [272, 0], sizes = [16, 28], strides = [1, 1]} : vector<448x28xbf16> to vector<16x28xbf16>
    %31 = vector.extract_strided_slice %1 {offsets = [304, 0], sizes = [16, 28], strides = [1, 1]} : vector<448x28xbf16> to vector<16x28xbf16>
    %32 = vector.extract_strided_slice %1 {offsets = [336, 0], sizes = [16, 28], strides = [1, 1]} : vector<448x28xbf16> to vector<16x28xbf16>
    %33 = vector.extract_strided_slice %1 {offsets = [368, 0], sizes = [16, 28], strides = [1, 1]} : vector<448x28xbf16> to vector<16x28xbf16>
    %34 = vector.extract_strided_slice %1 {offsets = [400, 0], sizes = [16, 28], strides = [1, 1]} : vector<448x28xbf16> to vector<16x28xbf16>
    %35 = vector.extract_strided_slice %1 {offsets = [432, 0], sizes = [16, 28], strides = [1, 1]} : vector<448x28xbf16> to vector<16x28xbf16>
    %36 = tpu.concatenate %6, %22, %23, %24, %25, %26, %27, %28, %29, %30, %31, %32, %33, %34, %35 in 0 : vector<16x28xbf16>, vector<16x28xbf16>, vector<16x28xbf16>, vector<16x28xbf16>, vector<16x28xbf16>, vector<16x28xbf16>, vector<16x28xbf16>, vector<16x28xbf16>, vector<16x28xbf16>, vector<16x28xbf16>, vector<16x28xbf16>, vector<16x28xbf16>, vector<16x28xbf16>, vector<16x28xbf16>, vector<16x28xbf16> -> vector<240x28xbf16>
    %37 = vector.extract_strided_slice %36 {offsets = [0, 0], sizes = [224, 28], strides = [1, 1]} : vector<240x28xbf16> to vector<224x28xbf16>
    %38 = vector.extract_strided_slice %36 {offsets = [16, 0], sizes = [224, 28], strides = [1, 1]} : vector<240x28xbf16> to vector<224x28xbf16>
    %cst_10 = arith.constant dense<0.000000e+00> : vector<224x448xf32>
    %39 = tpu.matmul %37, %2, %cst_10 {dimension_numbers = #tpu.dot_dimension_numbers<[1], [0], [0], [1], [0, 0, 1, 1], [], []>} : vector<224x28xbf16>, vector<28x448xbf16>, vector<224x448xf32> -> vector<224x448xf32>
    %cst_11 = arith.constant dense<0.000000e+00> : vector<224x448xf32>
    %40 = tpu.matmul %21, %3, %cst_11 {dimension_numbers = #tpu.dot_dimension_numbers<[1], [0], [0], [1], [0, 0, 1, 1], [], []>} : vector<224x28xbf16>, vector<28x448xbf16>, vector<224x448xf32> -> vector<224x448xf32>
    %41 = arith.addf %39, %40 : vector<224x448xf32>
    %cst_12 = arith.constant dense<0.000000e+00> : vector<224x448xf32>
    %42 = tpu.matmul %38, %4, %cst_12 {dimension_numbers = #tpu.dot_dimension_numbers<[1], [0], [0], [1], [0, 0, 1, 1], [], []>} : vector<224x28xbf16>, vector<28x448xbf16>, vector<224x448xf32> -> vector<224x448xf32>
    %43 = arith.addf %41, %42 : vector<224x448xf32>
    %44 = vector.broadcast %5 : vector<1x448xf32> to vector<224x448xf32>
    %45 = arith.addf %43, %44 : vector<224x448xf32>
    %cst_13 = arith.constant 0.000000e+00 : f32
    %46 = vector.broadcast %cst_13 : f32 to vector<224x448xf32>
    %47 = arith.maximumf %45, %46 : vector<224x448xf32>
    %48 = arith.truncf %47 : vector<224x448xf32> to vector<224x448xbf16>
    %c0_14 = arith.constant 0 : index
    %c0_15 = arith.constant 0 : index
    %49 = vector.load %arg6[%c0_14, %c0_15] : memref<448x448xbf16, #tpu.memory_space<vmem>>, vector<448x448xbf16>
    %c0_16 = arith.constant 0 : index
    %c0_17 = arith.constant 0 : index
    %50 = vector.load %arg7[%c0_16, %c0_17] : memref<448x448xbf16, #tpu.memory_space<vmem>>, vector<448x448xbf16>
    %c0_18 = arith.constant 0 : index
    %c0_19 = arith.constant 0 : index
    %51 = vector.load %arg8[%c0_18, %c0_19] : memref<448x448xbf16, #tpu.memory_space<vmem>>, vector<448x448xbf16>
    %c0_20 = arith.constant 0 : index
    %c0_21 = arith.constant 0 : index
    %52 = vector.load %arg9[%c0_20, %c0_21] : memref<1x448xf32, #tpu.memory_space<vmem>>, vector<1x448xf32>
    %cst_22 = arith.constant 0.000000e+00 : bf16
    %53 = vector.broadcast %cst_22 : bf16 to vector<16x448xbf16>
    %54 = tpu.concatenate %53, %48, %53 in 0 : vector<16x448xbf16>, vector<224x448xbf16>, vector<16x448xbf16> -> vector<256x448xbf16>
    %55 = vector.extract_strided_slice %54 {offsets = [0, 0], sizes = [224, 448], strides = [1, 1]} : vector<256x448xbf16> to vector<224x448xbf16>
    %56 = vector.extract_strided_slice %54 {offsets = [16, 0], sizes = [224, 448], strides = [1, 1]} : vector<256x448xbf16> to vector<224x448xbf16>
    %57 = vector.extract_strided_slice %54 {offsets = [32, 0], sizes = [224, 448], strides = [1, 1]} : vector<256x448xbf16> to vector<224x448xbf16>
    %cst_23 = arith.constant dense<0.000000e+00> : vector<224x448xf32>
    %58 = tpu.matmul %55, %49, %cst_23 {dimension_numbers = #tpu.dot_dimension_numbers<[1], [0], [0], [1], [0, 0, 1, 1], [], []>} : vector<224x448xbf16>, vector<448x448xbf16>, vector<224x448xf32> -> vector<224x448xf32>
    %cst_24 = arith.constant dense<0.000000e+00> : vector<224x448xf32>
    %59 = tpu.matmul %56, %50, %cst_24 {dimension_numbers = #tpu.dot_dimension_numbers<[1], [0], [0], [1], [0, 0, 1, 1], [], []>} : vector<224x448xbf16>, vector<448x448xbf16>, vector<224x448xf32> -> vector<224x448xf32>
    %60 = arith.addf %58, %59 : vector<224x448xf32>
    %cst_25 = arith.constant dense<0.000000e+00> : vector<224x448xf32>
    %61 = tpu.matmul %57, %51, %cst_25 {dimension_numbers = #tpu.dot_dimension_numbers<[1], [0], [0], [1], [0, 0, 1, 1], [], []>} : vector<224x448xbf16>, vector<448x448xbf16>, vector<224x448xf32> -> vector<224x448xf32>
    %62 = arith.addf %60, %61 : vector<224x448xf32>
    %63 = vector.broadcast %52 : vector<1x448xf32> to vector<224x448xf32>
    %64 = arith.addf %62, %63 : vector<224x448xf32>
    %cst_26 = arith.constant 0.000000e+00 : f32
    %65 = vector.broadcast %cst_26 : f32 to vector<224x448xf32>
    %66 = arith.maximumf %64, %65 : vector<224x448xf32>
    %67 = arith.truncf %66 : vector<224x448xf32> to vector<224x448xbf16>
    %c0_27 = arith.constant 0 : index
    %c0_28 = arith.constant 0 : index
    %68 = vector.load %arg10[%c0_27, %c0_28] : memref<448x448xbf16, #tpu.memory_space<vmem>>, vector<448x448xbf16>
    %c0_29 = arith.constant 0 : index
    %c0_30 = arith.constant 0 : index
    %69 = vector.load %arg11[%c0_29, %c0_30] : memref<448x448xbf16, #tpu.memory_space<vmem>>, vector<448x448xbf16>
    %c0_31 = arith.constant 0 : index
    %c0_32 = arith.constant 0 : index
    %70 = vector.load %arg12[%c0_31, %c0_32] : memref<448x448xbf16, #tpu.memory_space<vmem>>, vector<448x448xbf16>
    %c0_33 = arith.constant 0 : index
    %c0_34 = arith.constant 0 : index
    %71 = vector.load %arg13[%c0_33, %c0_34] : memref<1x448xf32, #tpu.memory_space<vmem>>, vector<1x448xf32>
    %cst_35 = arith.constant 0.000000e+00 : bf16
    %72 = vector.broadcast %cst_35 : bf16 to vector<16x448xbf16>
    %73 = vector.extract_strided_slice %67 {offsets = [0, 0], sizes = [16, 448], strides = [1, 1]} : vector<224x448xbf16> to vector<16x448xbf16>
    %74 = vector.extract_strided_slice %67 {offsets = [32, 0], sizes = [16, 448], strides = [1, 1]} : vector<224x448xbf16> to vector<16x448xbf16>
    %75 = vector.extract_strided_slice %67 {offsets = [64, 0], sizes = [16, 448], strides = [1, 1]} : vector<224x448xbf16> to vector<16x448xbf16>
    %76 = vector.extract_strided_slice %67 {offsets = [96, 0], sizes = [16, 448], strides = [1, 1]} : vector<224x448xbf16> to vector<16x448xbf16>
    %77 = vector.extract_strided_slice %67 {offsets = [128, 0], sizes = [16, 448], strides = [1, 1]} : vector<224x448xbf16> to vector<16x448xbf16>
    %78 = vector.extract_strided_slice %67 {offsets = [160, 0], sizes = [16, 448], strides = [1, 1]} : vector<224x448xbf16> to vector<16x448xbf16>
    %79 = vector.extract_strided_slice %67 {offsets = [192, 0], sizes = [16, 448], strides = [1, 1]} : vector<224x448xbf16> to vector<16x448xbf16>
    %80 = tpu.concatenate %73, %74, %75, %76, %77, %78, %79 in 0 : vector<16x448xbf16>, vector<16x448xbf16>, vector<16x448xbf16>, vector<16x448xbf16>, vector<16x448xbf16>, vector<16x448xbf16>, vector<16x448xbf16> -> vector<112x448xbf16>
    %81 = vector.extract_strided_slice %67 {offsets = [16, 0], sizes = [16, 448], strides = [1, 1]} : vector<224x448xbf16> to vector<16x448xbf16>
    %82 = vector.extract_strided_slice %67 {offsets = [48, 0], sizes = [16, 448], strides = [1, 1]} : vector<224x448xbf16> to vector<16x448xbf16>
    %83 = vector.extract_strided_slice %67 {offsets = [80, 0], sizes = [16, 448], strides = [1, 1]} : vector<224x448xbf16> to vector<16x448xbf16>
    %84 = vector.extract_strided_slice %67 {offsets = [112, 0], sizes = [16, 448], strides = [1, 1]} : vector<224x448xbf16> to vector<16x448xbf16>
    %85 = vector.extract_strided_slice %67 {offsets = [144, 0], sizes = [16, 448], strides = [1, 1]} : vector<224x448xbf16> to vector<16x448xbf16>
    %86 = vector.extract_strided_slice %67 {offsets = [176, 0], sizes = [16, 448], strides = [1, 1]} : vector<224x448xbf16> to vector<16x448xbf16>
    %87 = vector.extract_strided_slice %67 {offsets = [208, 0], sizes = [16, 448], strides = [1, 1]} : vector<224x448xbf16> to vector<16x448xbf16>
    %88 = tpu.concatenate %72, %81, %82, %83, %84, %85, %86, %87 in 0 : vector<16x448xbf16>, vector<16x448xbf16>, vector<16x448xbf16>, vector<16x448xbf16>, vector<16x448xbf16>, vector<16x448xbf16>, vector<16x448xbf16>, vector<16x448xbf16> -> vector<128x448xbf16>
    %89 = vector.extract_strided_slice %88 {offsets = [0, 0], sizes = [112, 448], strides = [1, 1]} : vector<128x448xbf16> to vector<112x448xbf16>
    %90 = vector.extract_strided_slice %88 {offsets = [16, 0], sizes = [112, 448], strides = [1, 1]} : vector<128x448xbf16> to vector<112x448xbf16>
    %cst_36 = arith.constant dense<0.000000e+00> : vector<112x448xf32>
    %91 = tpu.matmul %89, %68, %cst_36 {dimension_numbers = #tpu.dot_dimension_numbers<[1], [0], [0], [1], [0, 0, 1, 1], [], []>} : vector<112x448xbf16>, vector<448x448xbf16>, vector<112x448xf32> -> vector<112x448xf32>
    %cst_37 = arith.constant dense<0.000000e+00> : vector<112x448xf32>
    %92 = tpu.matmul %80, %69, %cst_37 {dimension_numbers = #tpu.dot_dimension_numbers<[1], [0], [0], [1], [0, 0, 1, 1], [], []>} : vector<112x448xbf16>, vector<448x448xbf16>, vector<112x448xf32> -> vector<112x448xf32>
    %93 = arith.addf %91, %92 : vector<112x448xf32>
    %cst_38 = arith.constant dense<0.000000e+00> : vector<112x448xf32>
    %94 = tpu.matmul %90, %70, %cst_38 {dimension_numbers = #tpu.dot_dimension_numbers<[1], [0], [0], [1], [0, 0, 1, 1], [], []>} : vector<112x448xbf16>, vector<448x448xbf16>, vector<112x448xf32> -> vector<112x448xf32>
    %95 = arith.addf %93, %94 : vector<112x448xf32>
    %96 = vector.broadcast %71 : vector<1x448xf32> to vector<112x448xf32>
    %97 = arith.addf %95, %96 : vector<112x448xf32>
    %cst_39 = arith.constant 0.000000e+00 : f32
    %98 = vector.broadcast %cst_39 : f32 to vector<112x448xf32>
    %99 = arith.maximumf %97, %98 : vector<112x448xf32>
    %100 = arith.truncf %99 : vector<112x448xf32> to vector<112x448xbf16>
    %c0_40 = arith.constant 0 : index
    %c0_41 = arith.constant 0 : index
    %101 = vector.load %arg14[%c0_40, %c0_41] : memref<448x448xbf16, #tpu.memory_space<vmem>>, vector<448x448xbf16>
    %c0_42 = arith.constant 0 : index
    %c0_43 = arith.constant 0 : index
    %102 = vector.load %arg15[%c0_42, %c0_43] : memref<448x448xbf16, #tpu.memory_space<vmem>>, vector<448x448xbf16>
    %c0_44 = arith.constant 0 : index
    %c0_45 = arith.constant 0 : index
    %103 = vector.load %arg16[%c0_44, %c0_45] : memref<448x448xbf16, #tpu.memory_space<vmem>>, vector<448x448xbf16>
    %c0_46 = arith.constant 0 : index
    %c0_47 = arith.constant 0 : index
    %104 = vector.load %arg17[%c0_46, %c0_47] : memref<1x448xf32, #tpu.memory_space<vmem>>, vector<1x448xf32>
    %cst_48 = arith.constant 0.000000e+00 : bf16
    %105 = vector.broadcast %cst_48 : bf16 to vector<16x448xbf16>
    %106 = tpu.concatenate %105, %100, %105 in 0 : vector<16x448xbf16>, vector<112x448xbf16>, vector<16x448xbf16> -> vector<144x448xbf16>
    %107 = vector.extract_strided_slice %106 {offsets = [0, 0], sizes = [112, 448], strides = [1, 1]} : vector<144x448xbf16> to vector<112x448xbf16>
    %108 = vector.extract_strided_slice %106 {offsets = [16, 0], sizes = [112, 448], strides = [1, 1]} : vector<144x448xbf16> to vector<112x448xbf16>
    %109 = vector.extract_strided_slice %106 {offsets = [32, 0], sizes = [112, 448], strides = [1, 1]} : vector<144x448xbf16> to vector<112x448xbf16>
    %cst_49 = arith.constant dense<0.000000e+00> : vector<112x448xf32>
    %110 = tpu.matmul %107, %101, %cst_49 {dimension_numbers = #tpu.dot_dimension_numbers<[1], [0], [0], [1], [0, 0, 1, 1], [], []>} : vector<112x448xbf16>, vector<448x448xbf16>, vector<112x448xf32> -> vector<112x448xf32>
    %cst_50 = arith.constant dense<0.000000e+00> : vector<112x448xf32>
    %111 = tpu.matmul %108, %102, %cst_50 {dimension_numbers = #tpu.dot_dimension_numbers<[1], [0], [0], [1], [0, 0, 1, 1], [], []>} : vector<112x448xbf16>, vector<448x448xbf16>, vector<112x448xf32> -> vector<112x448xf32>
    %112 = arith.addf %110, %111 : vector<112x448xf32>
    %cst_51 = arith.constant dense<0.000000e+00> : vector<112x448xf32>
    %113 = tpu.matmul %109, %103, %cst_51 {dimension_numbers = #tpu.dot_dimension_numbers<[1], [0], [0], [1], [0, 0, 1, 1], [], []>} : vector<112x448xbf16>, vector<448x448xbf16>, vector<112x448xf32> -> vector<112x448xf32>
    %114 = arith.addf %112, %113 : vector<112x448xf32>
    %115 = vector.broadcast %104 : vector<1x448xf32> to vector<112x448xf32>
    %116 = arith.addf %114, %115 : vector<112x448xf32>
    %cst_52 = arith.constant 0.000000e+00 : f32
    %117 = vector.broadcast %cst_52 : f32 to vector<112x448xf32>
    %118 = arith.maximumf %116, %117 : vector<112x448xf32>
    %119 = arith.truncf %118 : vector<112x448xf32> to vector<112x448xbf16>
    %c0_53 = arith.constant 0 : index
    %c0_54 = arith.constant 0 : index
    %120 = vector.load %arg18[%c0_53, %c0_54] : memref<448x256xbf16, #tpu.memory_space<vmem>>, vector<448x256xbf16>
    %c0_55 = arith.constant 0 : index
    %c0_56 = arith.constant 0 : index
    %121 = vector.load %arg19[%c0_55, %c0_56] : memref<448x256xbf16, #tpu.memory_space<vmem>>, vector<448x256xbf16>
    %c0_57 = arith.constant 0 : index
    %c0_58 = arith.constant 0 : index
    %122 = vector.load %arg20[%c0_57, %c0_58] : memref<448x256xbf16, #tpu.memory_space<vmem>>, vector<448x256xbf16>
    %c0_59 = arith.constant 0 : index
    %c0_60 = arith.constant 0 : index
    %123 = vector.load %arg21[%c0_59, %c0_60] : memref<1x256xf32, #tpu.memory_space<vmem>>, vector<1x256xf32>
    %cst_61 = arith.constant 0.000000e+00 : bf16
    %124 = vector.broadcast %cst_61 : bf16 to vector<16x448xbf16>
    %125 = vector.extract_strided_slice %119 {offsets = [0, 0], sizes = [16, 448], strides = [1, 1]} : vector<112x448xbf16> to vector<16x448xbf16>
    %126 = vector.extract_strided_slice %119 {offsets = [32, 0], sizes = [16, 448], strides = [1, 1]} : vector<112x448xbf16> to vector<16x448xbf16>
    %127 = vector.extract_strided_slice %119 {offsets = [64, 0], sizes = [16, 448], strides = [1, 1]} : vector<112x448xbf16> to vector<16x448xbf16>
    %128 = vector.extract_strided_slice %119 {offsets = [96, 0], sizes = [16, 448], strides = [1, 1]} : vector<112x448xbf16> to vector<16x448xbf16>
    %129 = tpu.concatenate %125, %126, %127, %128 in 0 : vector<16x448xbf16>, vector<16x448xbf16>, vector<16x448xbf16>, vector<16x448xbf16> -> vector<64x448xbf16>
    %130 = vector.extract_strided_slice %119 {offsets = [16, 0], sizes = [16, 448], strides = [1, 1]} : vector<112x448xbf16> to vector<16x448xbf16>
    %131 = vector.extract_strided_slice %119 {offsets = [48, 0], sizes = [16, 448], strides = [1, 1]} : vector<112x448xbf16> to vector<16x448xbf16>
    %132 = vector.extract_strided_slice %119 {offsets = [80, 0], sizes = [16, 448], strides = [1, 1]} : vector<112x448xbf16> to vector<16x448xbf16>
    %133 = tpu.concatenate %124, %130, %131, %132, %124 in 0 : vector<16x448xbf16>, vector<16x448xbf16>, vector<16x448xbf16>, vector<16x448xbf16>, vector<16x448xbf16> -> vector<80x448xbf16>
    %134 = vector.extract_strided_slice %133 {offsets = [0, 0], sizes = [64, 448], strides = [1, 1]} : vector<80x448xbf16> to vector<64x448xbf16>
    %135 = vector.extract_strided_slice %133 {offsets = [16, 0], sizes = [64, 448], strides = [1, 1]} : vector<80x448xbf16> to vector<64x448xbf16>
    %cst_62 = arith.constant dense<0.000000e+00> : vector<64x256xf32>
    %136 = tpu.matmul %134, %120, %cst_62 {dimension_numbers = #tpu.dot_dimension_numbers<[1], [0], [0], [1], [0, 0, 1, 1], [], []>} : vector<64x448xbf16>, vector<448x256xbf16>, vector<64x256xf32> -> vector<64x256xf32>
    %cst_63 = arith.constant dense<0.000000e+00> : vector<64x256xf32>
    %137 = tpu.matmul %129, %121, %cst_63 {dimension_numbers = #tpu.dot_dimension_numbers<[1], [0], [0], [1], [0, 0, 1, 1], [], []>} : vector<64x448xbf16>, vector<448x256xbf16>, vector<64x256xf32> -> vector<64x256xf32>
    %138 = arith.addf %136, %137 : vector<64x256xf32>
    %cst_64 = arith.constant dense<0.000000e+00> : vector<64x256xf32>
    %139 = tpu.matmul %135, %122, %cst_64 {dimension_numbers = #tpu.dot_dimension_numbers<[1], [0], [0], [1], [0, 0, 1, 1], [], []>} : vector<64x448xbf16>, vector<448x256xbf16>, vector<64x256xf32> -> vector<64x256xf32>
    %140 = arith.addf %138, %139 : vector<64x256xf32>
    %141 = vector.broadcast %123 : vector<1x256xf32> to vector<64x256xf32>
    %142 = arith.addf %140, %141 : vector<64x256xf32>
    %cst_65 = arith.constant 0.000000e+00 : f32
    %143 = vector.broadcast %cst_65 : f32 to vector<64x256xf32>
    %144 = arith.maximumf %142, %143 : vector<64x256xf32>
    %145 = arith.truncf %144 : vector<64x256xf32> to vector<64x256xbf16>
    %146 = vector.extract_strided_slice %145 {offsets = [0, 0], sizes = [16, 256], strides = [1, 1]} : vector<64x256xbf16> to vector<16x256xbf16>
    %147 = vector.extract_strided_slice %145 {offsets = [16, 0], sizes = [16, 256], strides = [1, 1]} : vector<64x256xbf16> to vector<16x256xbf16>
    %148 = vector.extract_strided_slice %145 {offsets = [32, 0], sizes = [16, 256], strides = [1, 1]} : vector<64x256xbf16> to vector<16x256xbf16>
    %149 = vector.extract_strided_slice %145 {offsets = [48, 0], sizes = [16, 256], strides = [1, 1]} : vector<64x256xbf16> to vector<16x256xbf16>
    %150 = tpu.concatenate %146, %147, %148, %149 in 1 : vector<16x256xbf16>, vector<16x256xbf16>, vector<16x256xbf16>, vector<16x256xbf16> -> vector<16x1024xbf16>
    %c0_66 = arith.constant 0 : index
    %c0_67 = arith.constant 0 : index
    %151 = vector.load %arg22[%c0_66, %c0_67] : memref<1024x32xbf16, #tpu.memory_space<vmem>>, vector<1024x32xbf16>
    %c0_68 = arith.constant 0 : index
    %c0_69 = arith.constant 0 : index
    %152 = vector.load %arg23[%c0_68, %c0_69] : memref<1x32xf32, #tpu.memory_space<vmem>>, vector<1x32xf32>
    %cst_70 = arith.constant dense<0.000000e+00> : vector<16x32xf32>
    %153 = tpu.matmul %150, %151, %cst_70 {dimension_numbers = #tpu.dot_dimension_numbers<[1], [0], [0], [1], [0, 0, 1, 1], [], []>} : vector<16x1024xbf16>, vector<1024x32xbf16>, vector<16x32xf32> -> vector<16x32xf32>
    %154 = vector.broadcast %152 : vector<1x32xf32> to vector<16x32xf32>
    %155 = arith.addf %153, %154 : vector<16x32xf32>
    %c0_71 = arith.constant 0 : index
    %c0_72 = arith.constant 0 : index
    %156 = vector.load %arg24[%c0_71, %c0_72] : memref<16x32xf32, #tpu.memory_space<vmem>>, vector<16x32xf32>
    tpu.vector_store %arg24[%c0_71, %c0_72], %155 {strides = array<i32>} : memref<16x32xf32, #tpu.memory_space<vmem>>, vector<16x32xf32>,
    return
  }
  func.func @transform_0(%arg0: i32) -> (i32, i32, i32) {
    %c0_i32 = arith.constant 0 : i32
    %c0_i32_0 = arith.constant 0 : i32
    %c0_i32_1 = arith.constant 0 : i32
    return %arg0, %c0_i32, %c0_i32_0 : i32, i32, i32
  }
  func.func @transform_1(%arg0: i32) -> (i32, i32) {
    %c0_i32 = arith.constant 0 : i32
    %c0_i32_0 = arith.constant 0 : i32
    %c0_i32_1 = arith.constant 0 : i32
    return %c0_i32, %c0_i32_0 : i32, i32
  }
  func.func @transform_2(%arg0: i32) -> (i32, i32) {
    %c0_i32 = arith.constant 0 : i32
    %c0_i32_0 = arith.constant 0 : i32
    %c0_i32_1 = arith.constant 0 : i32
    return %c0_i32, %c0_i32_0 : i32, i32
  }
  func.func @transform_3(%arg0: i32) -> (i32, i32) {
    %c0_i32 = arith.constant 0 : i32
    %c0_i32_0 = arith.constant 0 : i32
    %c0_i32_1 = arith.constant 0 : i32
    return %c0_i32, %c0_i32_0 : i32, i32
  }
  func.func @transform_4(%arg0: i32) -> (i32, i32) {
    %c0_i32 = arith.constant 0 : i32
    %c0_i32_0 = arith.constant 0 : i32
    %c0_i32_1 = arith.constant 0 : i32
    return %c0_i32, %c0_i32_0 : i32, i32
  }
  func.func @transform_5(%arg0: i32) -> (i32, i32) {
    %c0_i32 = arith.constant 0 : i32
    %c0_i32_0 = arith.constant 0 : i32
    %c0_i32_1 = arith.constant 0 : i32
    return %c0_i32, %c0_i32_0 : i32, i32
  }
  func.func @transform_6(%arg0: i32) -> (i32, i32) {
    %c0_i32 = arith.constant 0 : i32
    %c0_i32_0 = arith.constant 0 : i32
    %c0_i32_1 = arith.constant 0 : i32
    return %c0_i32, %c0_i32_0 : i32, i32
  }
  func.func @transform_7(%arg0: i32) -> (i32, i32) {
    %c0_i32 = arith.constant 0 : i32
    %c0_i32_0 = arith.constant 0 : i32
    %c0_i32_1 = arith.constant 0 : i32
    return %c0_i32, %c0_i32_0 : i32, i32
  }
  func.func @transform_8(%arg0: i32) -> (i32, i32) {
    %c0_i32 = arith.constant 0 : i32
    %c0_i32_0 = arith.constant 0 : i32
    %c0_i32_1 = arith.constant 0 : i32
    return %c0_i32, %c0_i32_0 : i32, i32
  }
  func.func @transform_9(%arg0: i32) -> (i32, i32) {
    %c0_i32 = arith.constant 0 : i32
    %c0_i32_0 = arith.constant 0 : i32
    %c0_i32_1 = arith.constant 0 : i32
    return %c0_i32, %c0_i32_0 : i32, i32
  }
  func.func @transform_10(%arg0: i32) -> (i32, i32) {
    %c0_i32 = arith.constant 0 : i32
    %c0_i32_0 = arith.constant 0 : i32
    %c0_i32_1 = arith.constant 0 : i32
    return %c0_i32, %c0_i32_0 : i32, i32
  }
  func.func @transform_11(%arg0: i32) -> (i32, i32) {
    %c0_i32 = arith.constant 0 : i32
    %c0_i32_0 = arith.constant 0 : i32
    %c0_i32_1 = arith.constant 0 : i32
    return %c0_i32, %c0_i32_0 : i32, i32
  }
  func.func @transform_12(%arg0: i32) -> (i32, i32) {
    %c0_i32 = arith.constant 0 : i32
    %c0_i32_0 = arith.constant 0 : i32
    %c0_i32_1 = arith.constant 0 : i32
    return %c0_i32, %c0_i32_0 : i32, i32
  }
  func.func @transform_13(%arg0: i32) -> (i32, i32) {
    %c0_i32 = arith.constant 0 : i32
    %c0_i32_0 = arith.constant 0 : i32
    %c0_i32_1 = arith.constant 0 : i32
    return %c0_i32, %c0_i32_0 : i32, i32
  }
  func.func @transform_14(%arg0: i32) -> (i32, i32) {
    %c0_i32 = arith.constant 0 : i32
    %c0_i32_0 = arith.constant 0 : i32
    %c0_i32_1 = arith.constant 0 : i32
    return %c0_i32, %c0_i32_0 : i32, i32
  }
  func.func @transform_15(%arg0: i32) -> (i32, i32) {
    %c0_i32 = arith.constant 0 : i32
    %c0_i32_0 = arith.constant 0 : i32
    %c0_i32_1 = arith.constant 0 : i32
    return %c0_i32, %c0_i32_0 : i32, i32
  }
  func.func @transform_16(%arg0: i32) -> (i32, i32) {
    %c0_i32 = arith.constant 0 : i32
    %c0_i32_0 = arith.constant 0 : i32
    %c0_i32_1 = arith.constant 0 : i32
    return %c0_i32, %c0_i32_0 : i32, i32
  }
  func.func @transform_17(%arg0: i32) -> (i32, i32) {
    %c0_i32 = arith.constant 0 : i32
    %c0_i32_0 = arith.constant 0 : i32
    %c0_i32_1 = arith.constant 0 : i32
    return %c0_i32, %c0_i32_0 : i32, i32
  }
  func.func @transform_18(%arg0: i32) -> (i32, i32) {
    %c0_i32 = arith.constant 0 : i32
    %c0_i32_0 = arith.constant 0 : i32
    %c0_i32_1 = arith.constant 0 : i32
    return %c0_i32, %c0_i32_0 : i32, i32
  }
  func.func @transform_19(%arg0: i32) -> (i32, i32) {
    %c0_i32 = arith.constant 0 : i32
    %c0_i32_0 = arith.constant 0 : i32
    %c0_i32_1 = arith.constant 0 : i32
    return %c0_i32, %c0_i32_0 : i32, i32
  }
  func.func @transform_20(%arg0: i32) -> (i32, i32) {
    %c0_i32 = arith.constant 0 : i32
    %c0_i32_0 = arith.constant 0 : i32
    %c0_i32_1 = arith.constant 0 : i32
    return %c0_i32, %c0_i32_0 : i32, i32
  }
  func.func @transform_21(%arg0: i32) -> (i32, i32) {
    %c0_i32 = arith.constant 0 : i32
    %c0_i32_0 = arith.constant 0 : i32
    %c0_i32_1 = arith.constant 0 : i32
    return %c0_i32, %c0_i32_0 : i32, i32
  }
  func.func @transform_22(%arg0: i32) -> (i32, i32) {
    %c0_i32 = arith.constant 0 : i32
    %c0_i32_0 = arith.constant 0 : i32
    %c0_i32_1 = arith.constant 0 : i32
    return %c0_i32, %c0_i32_0 : i32, i32
  }
  func.func @transform_23(%arg0: i32) -> (i32, i32) {
    %c0_i32 = arith.constant 0 : i32
    %c0_i32_0 = arith.constant 0 : i32
    return %arg0, %c0_i32 : i32, i32
  }
}

</mosaic_0001>

<bundles_post_ra>
// kernel: conv_encoder_forward.1
= control target key start
LH: loop header
LB: loop body
LE: loop exit
PB: predicated region body
PF: predicated region fallthrough
CT: control target
= control target key end

     0   :  { %s24345_s0 = inlined_call_operand.vmem [shape: bf16[1,448,28], index: 0, kind: input, shape index: {}]   ;;  %s24346_s1 = inlined_call_operand.vmem [shape: bf16[28,448], index: 1, kind: input, shape index: {}]   ;;  %s24347_s2 = inlined_call_operand.hbm [shape: bf16[28,448], index: 2, kind: input, shape index: {}]   ;;  %s24348_s3 = inlined_call_operand.hbm [shape: bf16[28,448], index: 3, kind: input, shape index: {}]   ;;  %s24349_s4 = inlined_call_operand.vmem [shape: f32[1,448], index: 4, kind: input, shape index: {}]   ;;  %s24350_s5 = inlined_call_operand.vmem [shape: bf16[448,448], index: 5, kind: input, shape index: {}]   ;;  %s24351_s6 = inlined_call_operand.hbm [shape: bf16[448,448], index: 6, kind: input, shape index: {}]   ;;  %s24352_s7 = inlined_call_operand.hbm [shape: bf16[448,448], index: 7, kind: input, shape index: {}]   ;;  %s24353_s8 = inlined_call_operand.vmem [shape: f32[1,448], index: 8, kind: input, shape index: {}]   ;;  %s24354_s9 = inlined_call_operand.hbm [shape: bf16[448,448], index: 9, kind: input, shape index: {}]   ;;  %s24355_s10 = inlined_call_operand.hbm [shape: bf16[448,448], index: 10, kind: input, shape index: {}]   ;;  %s24356_s11 = inlined_call_operand.hbm [shape: bf16[448,448], index: 11, kind: input, shape index: {}]   ;;  %s24357_s12 = inlined_call_operand.vmem [shape: f32[1,448], index: 12, kind: input, shape index: {}]   ;;  %s24358_s13 = inlined_call_operand.hbm [shape: bf16[448,448], index: 13, kind: input, shape index: {}]   ;;  %s24359_s14 = inlined_call_operand.hbm [shape: bf16[448,448], index: 14, kind: input, shape index: {}]   ;;  %s24360_s15 = inlined_call_operand.hbm [shape: bf16[448,448], index: 15, kind: input, shape index: {}]   ;;  %s24361_s16 = inlined_call_operand.vmem [shape: f32[1,448], index: 16, kind: input, shape index: {}]   ;;  %s24362_s17 = inlined_call_operand.hbm [shape: bf16[448,256], index: 17, kind: input, shape index: {}]   ;;  %s24363_s18 = inlined_call_operand.hbm [shape: bf16[448,256], index: 18, kind: input, shape index: {}]   ;;  %s24364_s19 = inlined_call_operand.hbm [shape: bf16[448,256], index: 19, kind: input, shape index: {}]   ;;  %s24365_s20 = inlined_call_operand.vmem [shape: f32[1,256], index: 20, kind: input, shape index: {}]   ;;  %s24366_s21 = inlined_call_operand.vmem [shape: bf16[1024,32], index: 21, kind: input, shape index: {}]   ;;  %s24367_s22 = inlined_call_operand.vmem [shape: f32[1,32], index: 22, kind: input, shape index: {}]   ;;  %s24368_s23 = inlined_call_operand.vmem [shape: f32[16,32], index: 23, kind: output, shape index: {}]  }
   0x1   :  { %24406 = sst [smem:[#allocation48_spill]] %s24345_s0 }
   0x2   :  { %24407 = sst [smem:[#allocation49_spill]] %s24346_s1 }
   0x3   :  { %24408 = sst [smem:[#allocation50_spill]] %s24347_s2 }
   0x4   :  { %24409 = sst [smem:[#allocation51_spill]] %s24348_s3 }
   0x5   :  { %24410 = sst [smem:[#allocation52_spill]] %s24349_s4 }
   0x6   :  { %24411 = sst [smem:[#allocation53_spill]] %s24350_s5 }
   0x7   :  { %24412 = sst [smem:[#allocation54_spill]] %s24351_s6 }
   0x8   :  { %24413 = sst [smem:[#allocation55_spill]] %s24352_s7 }
   0x9   :  { %24414 = sst [smem:[#allocation56_spill]] %s24367_s22 }
   0xa   :  { %24415 = sst [smem:[#allocation57_spill]] %s24368_s23 }
   0xb   :  { %28 = vsyncpa [#allocation3], 0 }
   0xc   :  { %29 = vsyncpa [#allocation5], 0 }
   0xd   :  { %30 = vsyncpa [#allocation8], 0 }
   0xe   :  { %31 = vsyncpa [#allocation11], 0 }
   0xf   :  { %32 = vsyncpa [#allocation14], 0 }
  0x10   :  { %33 = vsyncpa [#allocation17], 0 }
  0x11   :  { %34 = vsyncpa [#allocation20], 0  ;;  %s21238_s4 = smov [#allocation4]   ;;  %s21239_s24 = smov [#allocation7]  }
  0x12   :  { %s56_s30 = sshll.u32 %s21238_s4, 4  ;;  %s84_s25 = sshll.u32 %s21239_s24, 4  ;;  %s57_s30 = int_to_ptr.vmem [resolvable:$true] %s56_s30  ;;  %s21376_s25 = int_to_ptr.vmem [resolvable:$true] %s84_s25 }
  0x13   :  { %s24416_s26 = sld [smem:[#allocation51_spill]] }
  0x19   :  { %s20938_s2 = scalar_lea.hbm %s24416_s26, 1024 }
  0x1a   :  { %p20939_p0 = scmp.ne.s32.totalorder %s24416_s26, %s20938_s2  ;;  %p20942_p1 = scmp.lt.u32.totalorder %s20938_s2, %s24416_s26 }
  0x1c   :  { %p20944_p2 = pnand %p20942_p1, %p20939_p0 }
  0x1e   :  { %20947 = shalt.err (!%p20944_p2)
}
  0x1f   :  { %s20948_s29 = scalar_lea.vmem %s57_s30, 1024  ;;  %p20953_p4 = scmp.lt.s32.totalorder %s57_s30, %s57_s30 }
  0x20   :  { %p20949_p3 = scmp.ne.s32.totalorder %s57_s30, %s20948_s29  ;;  %p20954_p5 = scmp.lt.s32.totalorder %s20948_s29, %s20948_s29 }
  0x22   :  { %p20955_p6 = por %p20954_p5, %p20953_p4 }
  0x24   :  { %p20956_p7 = pnand %p20955_p6, %p20949_p3 }
  0x26   :  { %20959 = shalt.err (!%p20956_p7)
}
  0x27   :  { %s21240_s3 = smov 256   ;;  %s21241_s0 = smov 16  }
  0x28   :  { %62 = dma.hbm_to_vmem [thread:$0]  %s24416_s26, 1024, %s57_s30, [#allocation5], %s21240_s3, %s21240_s3, %s21241_s0  }
  0x29   :  { %s24417_s2 = sld [smem:[#allocation55_spill]] }
  0x2f   :  { %s20960_s6 = scalar_lea.hbm %s24417_s2, 14336 }
  0x30   :  { %p20961_p8 = scmp.ne.s32.totalorder %s24417_s2, %s20960_s6  ;;  %p20964_p9 = scmp.lt.u32.totalorder %s20960_s6, %s24417_s2 }
  0x32   :  { %p20966_p10 = pnand %p20964_p9, %p20961_p8 }
  0x34   :  { %20969 = shalt.err (!%p20966_p10)
}
  0x35   :  { %s20970_s23 = scalar_lea.vmem %s21376_s25, 14336  ;;  %p20975_p12 = scmp.lt.s32.totalorder %s21376_s25, %s21376_s25 }
  0x36   :  { %p20971_p11 = scmp.ne.s32.totalorder %s21376_s25, %s20970_s23  ;;  %p20976_p13 = scmp.lt.s32.totalorder %s20970_s23, %s20970_s23 }
  0x38   :  { %p20977_p0 = por %p20976_p13, %p20975_p12 }
  0x3a   :  { %p20978_p1 = pnand %p20977_p0, %p20971_p11 }
  0x3c   :  { %20981 = shalt.err (!%p20978_p1)
}
  0x3d   :  { %90 = dma.hbm_to_vmem [thread:$0]  %s24417_s2, 14336, %s21376_s25, [#allocation8], %s21240_s3, %s21240_s3, %s21241_s0  }
  0x3e   :  { %s21242_s4 = smov [#allocation10]   ;;  %s21243_s5 = smov [#allocation13]  }
  0x3f   :  { %s110_s24 = sshll.u32 %s21242_s4, 4  ;;  %s136_s1 = sshll.u32 %s21243_s5, 4  ;;  %s111_s24 = int_to_ptr.vmem [resolvable:$true] %s110_s24  ;;  %s21413_s1 = int_to_ptr.vmem [resolvable:$true] %s136_s1 }
  0x40   :  { %s20982_s27 = scalar_lea.hbm %s24355_s10, 14336 }
  0x41   :  { %p20983_p2 = scmp.ne.s32.totalorder %s24355_s10, %s20982_s27  ;;  %p20986_p3 = scmp.lt.u32.totalorder %s20982_s27, %s24355_s10 }
  0x43   :  { %p20988_p4 = pnand %p20986_p3, %p20983_p2 }
  0x45   :  { %20991 = shalt.err (!%p20988_p4)
}
  0x46   :  { %s20992_s25 = scalar_lea.vmem %s111_s24, 14336  ;;  %p20997_p6 = scmp.lt.s32.totalorder %s111_s24, %s111_s24 }
  0x47   :  { %p20993_p5 = scmp.ne.s32.totalorder %s111_s24, %s20992_s25  ;;  %p20998_p7 = scmp.lt.s32.totalorder %s20992_s25, %s20992_s25 }
  0x49   :  { %p20999_p8 = por %p20998_p7, %p20997_p6 }
  0x4b   :  { %p21000_p9 = pnand %p20999_p8, %p20993_p5 }
  0x4d   :  { %21003 = shalt.err (!%p21000_p9)
}
  0x4e   :  { %116 = dma.hbm_to_vmem [thread:$0]  %s24355_s10, 14336, %s111_s24, [#allocation11], %s21240_s3, %s21240_s3, %s21241_s0  }
  0x4f   :  { %s21004_s22 = scalar_lea.hbm %s24358_s13, 14336 }
  0x50   :  { %p21005_p10 = scmp.ne.s32.totalorder %s24358_s13, %s21004_s22  ;;  %p21008_p11 = scmp.lt.u32.totalorder %s21004_s22, %s24358_s13 }
  0x52   :  { %p21010_p12 = pnand %p21008_p11, %p21005_p10 }
  0x54   :  { %21013 = shalt.err (!%p21010_p12)
}
  0x55   :  { %s21014_s7 = scalar_lea.vmem %s21413_s1, 14336  ;;  %p21019_p0 = scmp.lt.s32.totalorder %s21413_s1, %s21413_s1 }
  0x56   :  { %p21015_p13 = scmp.ne.s32.totalorder %s21413_s1, %s21014_s7  ;;  %p21020_p1 = scmp.lt.s32.totalorder %s21014_s7, %s21014_s7 }
  0x58   :  { %p21021_p2 = por %p21020_p1, %p21019_p0 }
  0x5a   :  { %p21022_p3 = pnand %p21021_p2, %p21015_p13 }
  0x5c   :  { %21025 = shalt.err (!%p21022_p3)
}
  0x5d   :  { %142 = dma.hbm_to_vmem [thread:$0]  %s24358_s13, 14336, %s21413_s1, [#allocation14], %s21240_s3, %s21240_s3, %s21241_s0  }
  0x5e   :  { %s21244_s28 = smov [#allocation16]   ;;  %s21026_s30 = scalar_lea.hbm %s24360_s15, 14336 }
  0x5f   :  { %s160_s29 = sshll.u32 %s21244_s28, 4  ;;  %p21027_p4 = scmp.ne.s32.totalorder %s24360_s15, %s21026_s30  ;;  %s161_s29 = int_to_ptr.vmem [resolvable:$true] %s160_s29 }
  0x60   :  { %p21030_p5 = scmp.lt.u32.totalorder %s21026_s30, %s24360_s15 }
  0x62   :  { %p21032_p6 = pnand %p21030_p5, %p21027_p4 }
  0x64   :  { %21035 = shalt.err (!%p21032_p6)
}
  0x65   :  { %s21036_s6 = scalar_lea.vmem %s161_s29, 14336  ;;  %p21041_p8 = scmp.lt.s32.totalorder %s161_s29, %s161_s29 }
  0x66   :  { %p21037_p7 = scmp.ne.s32.totalorder %s161_s29, %s21036_s6  ;;  %p21042_p9 = scmp.lt.s32.totalorder %s21036_s6, %s21036_s6 }
  0x68   :  { %p21043_p10 = por %p21042_p9, %p21041_p8 }
  0x6a   :  { %p21044_p11 = pnand %p21043_p10, %p21037_p7 }
  0x6c   :  { %21047 = shalt.err (!%p21044_p11)
}
  0x6d   :  { %166 = dma.hbm_to_vmem [thread:$0]  %s24360_s15, 14336, %s161_s29, [#allocation17], %s21240_s3, %s21240_s3, %s21241_s0  }
  0x6e   :  { %s21245_s23 = smov [#allocation19]   ;;  %s21246_s7 = smov [#allocation2]  }
  0x6f   :  { %s186_s27 = sshll.u32 %s21245_s23, 4  ;;  %s44_s10 = sshll.u32 %s21246_s7, 4  ;;  %s187_s27 = int_to_ptr.vmem [resolvable:$true] %s186_s27  ;;  %s45_s10 = int_to_ptr.vmem [resolvable:$true] %s44_s10 }
  0x70   :  { %s21048_s25 = scalar_lea.hbm %s24363_s18, 7168 }
  0x71   :  { %p21049_p12 = scmp.ne.s32.totalorder %s24363_s18, %s21048_s25  ;;  %p21052_p13 = scmp.lt.u32.totalorder %s21048_s25, %s24363_s18 }
  0x73   :  { %p21054_p0 = pnand %p21052_p13, %p21049_p12 }
  0x75   :  { %21057 = shalt.err (!%p21054_p0)
}
  0x76   :  { %s21058_s15 = scalar_lea.vmem %s187_s27, 7168  ;;  %p21063_p2 = scmp.lt.s32.totalorder %s187_s27, %s187_s27 }
  0x77   :  { %p21059_p1 = scmp.ne.s32.totalorder %s187_s27, %s21058_s15  ;;  %p21064_p3 = scmp.lt.s32.totalorder %s21058_s15, %s21058_s15 }
  0x79   :  { %p21065_p4 = por %p21064_p3, %p21063_p2 }
  0x7b   :  { %p21066_p5 = pnand %p21065_p4, %p21059_p1 }
  0x7d   :  { %21069 = shalt.err (!%p21066_p5)
}
  0x7e   :  { %s21247_s29 = smov 128   ;;  %s21248_s22 = smov 8  }
  0x7f   :  { %192 = dma.hbm_to_vmem [thread:$0]  %s24363_s18, 7168, %s187_s27, [#allocation20], %s21247_s29, %s21247_s29, %s21248_s22  }
  0x80   :  { %s24418_s23 = sld [smem:[#allocation50_spill]] }
  0x86   :  { %s21070_s7 = scalar_lea.hbm %s24418_s23, 1024 }
  0x87   :  { %p21071_p6 = scmp.ne.s32.totalorder %s24418_s23, %s21070_s7  ;;  %p21074_p7 = scmp.lt.u32.totalorder %s21070_s7, %s24418_s23 }
  0x89   :  { %p21076_p8 = pnand %p21074_p7, %p21071_p6 }
  0x8b   :  { %21079 = shalt.err (!%p21076_p8)
}
  0x8c   :  { %s21080_s30 = scalar_lea.vmem %s45_s10, 1024  ;;  %p21085_p10 = scmp.lt.s32.totalorder %s45_s10, %s45_s10 }
  0x8d   :  { %p21081_p9 = scmp.ne.s32.totalorder %s45_s10, %s21080_s30  ;;  %p21086_p11 = scmp.lt.s32.totalorder %s21080_s30, %s21080_s30 }
  0x8f   :  { %p21087_p12 = por %p21086_p11, %p21085_p10 }
  0x91   :  { %p21088_p13 = pnand %p21087_p12, %p21081_p9 }
  0x93   :  { %21091 = shalt.err (!%p21088_p13)
}
  0x94   :  { %50 = dma.hbm_to_vmem [thread:$0]  %s24418_s23, 1024, %s45_s10, [#allocation3], %s21240_s3, %s21240_s3, %s21241_s0  }
  0x95   :  { %s21249_s26 = smov [#allocation6]   ;;  %s21250_s15 = smov [#allocation9]  }
  0x96   :  { %s72_s4 = sshll.u32 %s21249_s26, 4  ;;  %s98_s5 = sshll.u32 %s21250_s15, 4  ;;  %s73_s4 = int_to_ptr.vmem [resolvable:$true] %s72_s4  ;;  %s99_s5 = int_to_ptr.vmem [resolvable:$true] %s98_s5 }
  0x97   :  { %s24419_s1 = sld [smem:[#allocation54_spill]] }
  0x9d   :  { %s21092_s7 = scalar_lea.hbm %s24419_s1, 14336 }
  0x9e   :  { %p21093_p0 = scmp.ne.s32.totalorder %s24419_s1, %s21092_s7  ;;  %p21096_p1 = scmp.lt.u32.totalorder %s21092_s7, %s24419_s1 }
  0xa0   :  { %p21098_p2 = pnand %p21096_p1, %p21093_p0 }
  0xa2   :  { %21101 = shalt.err (!%p21098_p2)
}
  0xa3   :  { %s21102_s10 = scalar_lea.vmem %s73_s4, 14336  ;;  %p21107_p4 = scmp.lt.s32.totalorder %s73_s4, %s73_s4 }
  0xa4   :  { %p21103_p3 = scmp.ne.s32.totalorder %s73_s4, %s21102_s10  ;;  %p21108_p5 = scmp.lt.s32.totalorder %s21102_s10, %s21102_s10 }
  0xa6   :  { %p21109_p6 = por %p21108_p5, %p21107_p4 }
  0xa8   :  { %p21110_p7 = pnand %p21109_p6, %p21103_p3 }
  0xaa   :  { %21113 = shalt.err (!%p21110_p7)
}
  0xab   :  { %78 = dma.hbm_to_vmem [thread:$0]  %s24419_s1, 14336, %s73_s4, [#allocation5], %s21240_s3, %s21240_s3, %s21241_s0  }
  0xac   :  { %s21114_s26 = scalar_lea.hbm %s24354_s9, 14336 }
  0xad   :  { %p21115_p8 = scmp.ne.s32.totalorder %s24354_s9, %s21114_s26  ;;  %p21118_p9 = scmp.lt.u32.totalorder %s21114_s26, %s24354_s9 }
  0xaf   :  { %p21120_p10 = pnand %p21118_p9, %p21115_p8 }
  0xb1   :  { %21123 = shalt.err (!%p21120_p10)
}
  0xb2   :  { %s21124_s24 = scalar_lea.vmem %s99_s5, 14336  ;;  %p21129_p12 = scmp.lt.s32.totalorder %s99_s5, %s99_s5 }
  0xb3   :  { %p21125_p11 = scmp.ne.s32.totalorder %s99_s5, %s21124_s24  ;;  %p21130_p13 = scmp.lt.s32.totalorder %s21124_s24, %s21124_s24 }
  0xb5   :  { %p21131_p0 = por %p21130_p13, %p21129_p12 }
  0xb7   :  { %p21132_p1 = pnand %p21131_p0, %p21125_p11 }
  0xb9   :  { %21135 = shalt.err (!%p21132_p1)
}
  0xba   :  { %104 = dma.hbm_to_vmem [thread:$0]  %s24354_s9, 14336, %s99_s5, [#allocation8], %s21240_s3, %s21240_s3, %s21241_s0  }
  0xbb   :  { %s21251_s28 = smov [#allocation12]   ;;  %s21252_s2 = smov [#allocation15]  }
  0xbc   :  { %s122_s25 = sshll.u32 %s21251_s28, 4  ;;  %s148_s10 = sshll.u32 %s21252_s2, 4  ;;  %s123_s25 = int_to_ptr.vmem [resolvable:$true] %s122_s25  ;;  %s149_s10 = int_to_ptr.vmem [resolvable:$true] %s148_s10 }
  0xbd   :  { %s21136_s18 = scalar_lea.hbm %s24356_s11, 14336 }
  0xbe   :  { %p21137_p2 = scmp.ne.s32.totalorder %s24356_s11, %s21136_s18  ;;  %p21140_p3 = scmp.lt.u32.totalorder %s21136_s18, %s24356_s11 }
  0xc0   :  { %p21142_p4 = pnand %p21140_p3, %p21137_p2 }
  0xc2   :  { %21145 = shalt.err (!%p21142_p4)
}
  0xc3   :  { %s21146_s9 = scalar_lea.vmem %s123_s25, 14336  ;;  %p21151_p6 = scmp.lt.s32.totalorder %s123_s25, %s123_s25 }
  0xc4   :  { %p21147_p5 = scmp.ne.s32.totalorder %s123_s25, %s21146_s9  ;;  %p21152_p7 = scmp.lt.s32.totalorder %s21146_s9, %s21146_s9 }
  0xc6   :  { %p21153_p8 = por %p21152_p7, %p21151_p6 }
  0xc8   :  { %p21154_p9 = pnand %p21153_p8, %p21147_p5 }
  0xca   :  { %21157 = shalt.err (!%p21154_p9)
}
  0xcb   :  { %128 = dma.hbm_to_vmem [thread:$0]  %s24356_s11, 14336, %s123_s25, [#allocation11], %s21240_s3, %s21240_s3, %s21241_s0  }
  0xcc   :  { %s21158_s4 = scalar_lea.hbm %s24359_s14, 14336 }
  0xcd   :  { %p21159_p10 = scmp.ne.s32.totalorder %s24359_s14, %s21158_s4  ;;  %p21162_p11 = scmp.lt.u32.totalorder %s21158_s4, %s24359_s14 }
  0xcf   :  { %p21164_p12 = pnand %p21162_p11, %p21159_p10 }
  0xd1   :  { %21167 = shalt.err (!%p21164_p12)
}
  0xd2   :  { %s21168_s30 = scalar_lea.vmem %s149_s10, 14336  ;;  %p21173_p0 = scmp.lt.s32.totalorder %s149_s10, %s149_s10 }
  0xd3   :  { %p21169_p13 = scmp.ne.s32.totalorder %s149_s10, %s21168_s30  ;;  %p21174_p1 = scmp.lt.s32.totalorder %s21168_s30, %s21168_s30 }
  0xd5   :  { %p21175_p2 = por %p21174_p1, %p21173_p0 }
  0xd7   :  { %p21176_p3 = pnand %p21175_p2, %p21169_p13 }
  0xd9   :  { %21179 = shalt.err (!%p21176_p3)
}
  0xda   :  { %154 = dma.hbm_to_vmem [thread:$0]  %s24359_s14, 14336, %s149_s10, [#allocation14], %s21240_s3, %s21240_s3, %s21241_s0  }
  0xdb   :  { %s21253_s18 = smov [#allocation18]   ;;  %s21254_s26 = smov [#allocation21]  }
  0xdc   :  { %s174_s27 = sshll.u32 %s21253_s18, 4  ;;  %s198_s15 = sshll.u32 %s21254_s26, 4  ;;  %s175_s27 = int_to_ptr.vmem [resolvable:$true] %s174_s27  ;;  %s199_s15 = int_to_ptr.vmem [resolvable:$true] %s198_s15 }
  0xdd   :  { %s21180_s5 = scalar_lea.hbm %s24362_s17, 7168 }
  0xde   :  { %p21181_p4 = scmp.ne.s32.totalorder %s24362_s17, %s21180_s5  ;;  %p21184_p5 = scmp.lt.u32.totalorder %s21180_s5, %s24362_s17 }
  0xe0   :  { %p21186_p6 = pnand %p21184_p5, %p21181_p4 }
  0xe2   :  { %21189 = shalt.err (!%p21186_p6)
}
  0xe3   :  { %s21190_s14 = scalar_lea.vmem %s175_s27, 7168  ;;  %p21195_p8 = scmp.lt.s32.totalorder %s175_s27, %s175_s27 }
  0xe4   :  { %p21191_p7 = scmp.ne.s32.totalorder %s175_s27, %s21190_s14  ;;  %p21196_p9 = scmp.lt.s32.totalorder %s21190_s14, %s21190_s14 }
  0xe6   :  { %p21197_p10 = por %p21196_p9, %p21195_p8 }
  0xe8   :  { %p21198_p11 = pnand %p21197_p10, %p21191_p7 }
  0xea   :  { %21201 = shalt.err (!%p21198_p11)
}
  0xeb   :  { %180 = dma.hbm_to_vmem [thread:$0]  %s24362_s17, 7168, %s175_s27, [#allocation17], %s21247_s29, %s21247_s29, %s21248_s22  }
  0xec   :  { %s21202_s28 = scalar_lea.hbm %s24364_s19, 7168 }
  0xed   :  { %p21203_p12 = scmp.ne.s32.totalorder %s24364_s19, %s21202_s28  ;;  %p21206_p13 = scmp.lt.u32.totalorder %s21202_s28, %s24364_s19 }
  0xef   :  { %p21208_p0 = pnand %p21206_p13, %p21203_p12 }
  0xf1   :  { %21211 = shalt.err (!%p21208_p0)
}
  0xf2   :  { %s21212_s25 = scalar_lea.vmem %s199_s15, 7168  ;;  %p21217_p2 = scmp.lt.s32.totalorder %s199_s15, %s199_s15 }
  0xf3   :  { %p21213_p1 = scmp.ne.s32.totalorder %s199_s15, %s21212_s25  ;;  %p21218_p3 = scmp.lt.s32.totalorder %s21212_s25, %s21212_s25 }
  0xf5   :  { %p21219_p4 = por %p21218_p3, %p21217_p2 }
  0xf7   :  { %p21220_p5 = pnand %p21219_p4, %p21213_p1 }
  0xf9   :  { %21223 = shalt.err (!%p21220_p5)
}
  0xfa   :  { %204 = dma.hbm_to_vmem [thread:$0]  %s24364_s19, 7168, %s199_s15, [#allocation20], %s21247_s29, %s21247_s29, %s21248_s22  }
  0xfb   :  { %21224 = dma.done.wait [#allocation3], 1024  }
  0xfc   :  { %21225 = vsyncadd [#allocation3], 4294966272 }
  0xfd   :  { %21226 = dma.done.wait [#allocation5], 15360  }
  0xfe   :  { %21227 = vsyncadd [#allocation5], 4294951936 }
  0xff   :  { %21228 = dma.done.wait [#allocation8], 28672  }
 0x100   :  { %21229 = vsyncadd [#allocation8], 4294938624 }
 0x101   :  { %21230 = dma.done.wait [#allocation11], 28672  }
 0x102   :  { %21231 = vsyncadd [#allocation11], 4294938624 }
 0x103   :  { %21232 = dma.done.wait [#allocation14], 28672  }
 0x104   :  { %21233 = vsyncadd [#allocation14], 4294938624 }
 0x105   :  { %21234 = dma.done.wait [#allocation17], 21504  }
 0x106   :  { %21235 = vsyncadd [#allocation17], 4294945792 }
 0x107   :  { %21236 = dma.done.wait [#allocation20], 14336  }
 0x108   :  { %21237 = vsyncadd [#allocation20], 4294952960  ;;  %v24384_v0 = vmov 0   ;;  %v19025_v1 = vld [vmem:[#allocation2 + $0x4] ss:$16 sps:$4 sm:$0xff]   ;;  %vm551_vm0 = vcmask 1045504  }
 0x109   :  { %596 = vmatprep.mubr.bf16.mxu0 %v24384_v0  ;;  %606 = vmatprep.mubr.bf16.mxu1 %v24384_v0  ;;  %v19027_v2 = vld [vmem:[#allocation2] ss:$16 sps:$4 sm:$0xff]   ;;  %v19028_v3 = vld [vmem:[#allocation2 + $0x24] ss:$16 sps:$4 sm:$0x3f]   ;;  %s24420_s22 = sld [smem:[#allocation48_spill]] }
 0x10a   :  { %564 = vmatprep.subr.bf16.mxu0 %v19025_v1  ;;  %17579 = vmatprep.subr.bf16.mxu1 %v19025_v1  ;;  %v19030_v4 = vld [vmem:[#allocation2 + $0x20] ss:$16 sps:$4 sm:$0x3f]   ;;  %v19033_v8 = vld [vmem:[#allocation2 + $0x8] ss:$16 sps:$4 sm:$0xff]   ;;  %vm508_vm1 = vcmask 228352  }
 0x10b   :  { %565 = vmatpush1.bf16.msra.mxu0 %v19027_v2  ;;  %17581 = vmatpush1.bf16.msra.mxu1 %v19027_v2  ;;  %v553_v5 = vsel %vm551_vm0, %v19030_v4, 0  ;;  %v19035_v9 = vld [vmem:[#allocation2 + $0xc] ss:$16 sps:$4 sm:$0xff]   ;;  %s24421_s9 = sld [smem:[#allocation49_spill]]  ;;  %v19068_v23 = vld [vmem:[#allocation4] ss:$16 sps:$4 sm:$0xff]  }
 0x10c   :  { %15978 = vmatprep.subr.msk.bf16.mxu0 %vm551_vm0, %v19028_v3  ;;  %17580 = vmatprep.subr.msk.bf16.mxu1 %vm551_vm0, %v19028_v3  ;;  %v19052_v16 = vld [vmem:[#allocation2 + $0x2c] ss:$16 sps:$4 sm:$0x3f]   ;;  %v19055_v18 = vld [vmem:[#allocation2 + $0x28] ss:$16 sps:$4 sm:$0x3f]  }
 0x10d   :  { %v559_v19 = vsel %vm551_vm0, %v19055_v18, 0  ;;  %v19070_v24 = vld [vmem:[#allocation4 + $0x4] ss:$16 sps:$4 sm:$0xff]   ;;  %v19078_v28 = vld [vmem:[#allocation4 + $0x20] ss:$16 sps:$4 sm:$0x3f]  }
 0x10e   :  { %v19076_v27 = vld [vmem:[#allocation4 + $0x24] ss:$16 sps:$4 sm:$0x3f]   ;;  %v1386_v29 = vsel %vm551_vm0, %v19078_v28, 0  ;;  %v19084_v51 = vld [vmem:[#allocation4 + $0xc] ss:$16 sps:$4 sm:$0xff]  }
 0x10f   :  { %v21593_v6 = vld [vmem:[%s24420_s22] sm:$0xff]   ;;  %v21598_v7 = vld [vmem:[%s24420_s22 + $0x10] sm:$0xff]   ;;  %567 = vmatpush1.bf16.msra.mxu0 %v553_v5  ;;  %17582 = vmatpush1.bf16.msra.mxu1 %v553_v5  ;;  %v21642_v20 = vld [vmem:[%s24420_s22 + $0x8] sm:$0xff]   ;;  %s24438_s27 = sld [smem:[#allocation52_spill]]  ;;  %s24450_s2 = sld [smem:[#allocation53_spill]]  ;;  %vm3053_vm2 = vcmask 523264  }
 0x110   :  { %737 = vmatprep.subr.bf16.mxu1 %v19035_v9  ;;  %v21623_v15 = vld [vmem:[%s24420_s22 + $0x20] sm:$0xff]   ;;  %v21631_v17 = vld [vmem:[%s24420_s22 + $0x30] sm:$0xff]   ;;  %v21656_v22 = vld [vmem:[%s24420_s22 + $0x18] sm:$0xff]   ;;  %s24485_s13 = sld [smem:[#allocation56_spill]]  ;;  %vm15928_vm3 = vcmask 261120   ;;  %s24486_s24 = sld [smem:[#allocation57_spill]] }
 0x111   :  { %v19036_v10 = vld [vmem:[%s24421_s9] ss:$16 sps:$4 sm:$0xff]   ;;  %v19038_v11 = vld [vmem:[%s24421_s9 + $0x4] ss:$16 sps:$4 sm:$0xff]   ;;  %v19073_v25 = vld [vmem:[%s24421_s9 + $0xc] ss:$16 sps:$4 sm:$0xff]  }
 0x112   :  { %1000 = vmatprep.subr.bf16.mxu0 %v19038_v11  ;;  %v19040_v12 = vld [vmem:[%s24421_s9 + $0x24] ss:$16 sps:$4 sm:$0x3f]   ;;  %15979 = vmatmul.mubr.msk.bf16.vlgmr.msra.gmra.mrb[0].mxu0 %vm508_vm1, %v21593_v6  ;;  %v19042_v13 = vld [vmem:[%s24421_s9 + $0x20] ss:$16 sps:$4 sm:$0x3f]  }
 0x113   :  { %15980 = vmatmul.mubr.msk.bf16.vlgmr.msra.gmra.mrb[0].mxu1 %vm508_vm1, %v21598_v7  ;;  %1001 = vmatpush1.bf16.msra.mxu0 %v19036_v10  ;;  %v989_v14 = vsel %vm551_vm0, %v19042_v13, 0  ;;  %v21650_v21 = vld [vmem:[%s24420_s22 + $0x40] sm:$0xff]   ;;  %v21667_v26 = vld [vmem:[%s24420_s22 + $0x50] sm:$0xff]   ;;  %v21679_v30 = vld [vmem:[%s24420_s22 + $0x28] sm:$0xff]  }
 0x114   :  { %738 = vmatpush1.bf16.msra.mxu1 %v19033_v8  ;;  %616 = vmatprep.mubr.bf16.mxu1 %v24384_v0  ;;  %v21685_v31 = vld [vmem:[%s24420_s22 + $0x60] sm:$0xff]   ;;  %v21693_v32 = vld [vmem:[%s24420_s22 + $0x38] sm:$0xff]   ;;  %v21701_v33 = vld [vmem:[%s24420_s22 + $0x70] sm:$0xff]  }
 0x115   :  { %16016 = vmatprep.subr.msk.bf16.mxu0 %vm551_vm0, %v19040_v12  ;;  %1032 = vmatprep.mubr.bf16.mxu0 %v24384_v0  ;;  %v21709_v34 = vld [vmem:[%s24420_s22 + $0x48] sm:$0xff]   ;;  %v21717_v35 = vld [vmem:[%s24420_s22 + $0x80] sm:$0xff]   ;;  %v21725_v36 = vld [vmem:[%s24420_s22 + $0x58] sm:$0xff]  }
 0x116   :  { %15993 = vmatprep.subr.msk.bf16.mxu1 %vm551_vm0, %v19052_v16  ;;  %v21733_v37 = vld [vmem:[%s24420_s22 + $0x90] sm:$0xff]   ;;  %v21741_v38 = vld [vmem:[%s24420_s22 + $0x68] sm:$0xff]   ;;  %v21749_v39 = vld [vmem:[%s24420_s22 + $0xa0] sm:$0xff]  }
 0x117   :  { %1003 = vmatpush1.bf16.msra.mxu0 %v989_v14  ;;  %v21757_v40 = vld [vmem:[%s24420_s22 + $0x78] sm:$0xff]   ;;  %v21765_v41 = vld [vmem:[%s24420_s22 + $0xb0] sm:$0xff]   ;;  %v21773_v42 = vld [vmem:[%s24420_s22 + $0x88] sm:$0xff]  }
 0x118   :  { %740 = vmatpush1.bf16.msra.mxu1 %v559_v19  ;;  %1397 = vmatprep.subr.bf16.mxu0 %v19070_v24  ;;  %v21781_v43 = vld [vmem:[%s24420_s22 + $0xc0] sm:$0xff]   ;;  %v21791_v44 = vld [vmem:[%s24420_s22 + $0x98] sm:$0xff]   ;;  %v21797_v45 = vld [vmem:[%s24420_s22 + $0xd0] sm:$0xff]  }
 0x119   :  { %1173 = vmatprep.subr.bf16.mxu1 %v19073_v25  ;;  %v21805_v46 = vld [vmem:[%s24420_s22 + $0xa8] sm:$0xff]   ;;  %v21825_v50 = vld [vmem:[%s24420_s22 + $0xb8] sm:$0xff]   ;;  %v19089_v54 = vld [vmem:[#allocation6] ss:$16 sps:$4 sm:$0xff]  }
 0x11a   :  { %v19071_v47 = vld [vmem:[%s24421_s9 + $0x8] ss:$16 sps:$4 sm:$0xff]   ;;  %v19079_v48 = vld [vmem:[%s24421_s9 + $0x2c] ss:$16 sps:$4 sm:$0x3f]  }
 0x11b   :  { %15981 = vmatmul.mubr.msk.bf16.gmra.mrb[4].mxu1 %vm508_vm1, %v21623_v15  ;;  %v19081_v49 = vld [vmem:[%s24421_s9 + $0x28] ss:$16 sps:$4 sm:$0x3f]   ;;  %v19091_v55 = vld [vmem:[#allocation6 + $0x4] ss:$16 sps:$4 sm:$0xff]  }
 0x11c   :  { %626 = vmatprep.mubr.bf16.mxu1 %v24384_v0  ;;  %v995_v52 = vsel %vm551_vm0, %v19081_v49, 0  ;;  %v21838_v53 = vld [vmem:[%s24420_s22 + $0xc8] sm:$0xff]   ;;  %v19094_v56 = vld [vmem:[#allocation6 + $0x24] ss:$16 sps:$4 sm:$0xff]   ;;  %v19092_v57 = vld [vmem:[#allocation6 + $0x20] ss:$16 sps:$4 sm:$0xff]  }
 0x11d   :  { %v19095_v58 = vld [vmem:[#allocation6 + $0x40] ss:$16 sps:$4 sm:$0xff]   ;;  %v19097_v59 = vld [vmem:[#allocation6 + $0x44] ss:$16 sps:$4 sm:$0xff]  }
 0x11e   :  { %1033 = vmatmul.mubr.bf16.vlgmr.msra.gmra.mrb[0].mxu0 %v24384_v0  ;;  %v19100_v60 = vld [vmem:[#allocation6 + $0x64] ss:$16 sps:$4 sm:$0xff]   ;;  %v19098_v61 = vld [vmem:[#allocation6 + $0x60] ss:$16 sps:$4 sm:$0xff]  }
 0x11f   :  { %1042 = vmatprep.mubr.bf16.mxu0 %v24384_v0  ;;  %1398 = vmatpush1.bf16.msra.mxu0 %v19068_v23  ;;  %v19101_v62 = vld [vmem:[#allocation6 + $0x80] ss:$16 sps:$4 sm:$0xff]   ;;  %v19103_v63 = vld [vmem:[#allocation6 + $0x84] ss:$16 sps:$4 sm:$0xff]  }
 0x120   :  { %16052 = vmatprep.subr.msk.bf16.mxu0 %vm551_vm0, %v19076_v27  ;;  %v19106_v1 = vld [vmem:[#allocation6 + $0xa4] ss:$16 sps:$4 sm:$0xff]   ;;  %v19104_v2 = vld [vmem:[#allocation6 + $0xa0] ss:$16 sps:$4 sm:$0xff]  }
 0x121   :  { %v19107_v3 = vld [vmem:[#allocation6 + $0xc0] ss:$16 sps:$4 sm:$0xff]   ;;  %v19109_v4 = vld [vmem:[#allocation6 + $0xc4] ss:$16 sps:$4 sm:$0xff]  }
 0x122   :  { %v19112_v5 = vld [vmem:[#allocation6 + $0xe4] ss:$16 sps:$4 sm:$0xff]   ;;  %v19116_v9 = vld [vmem:[#allocation6 + $0x120] ss:$16 sps:$4 sm:$0xff]  }
 0x123   :  { %15982 = vmatmul.mubr.msk.bf16.gmra.mrb[8].mxu1 %vm508_vm1, %v21631_v17  ;;  %1400 = vmatpush1.bf16.msra.mxu0 %v1386_v29  ;;  %v19115_v8 = vld [vmem:[#allocation6 + $0x104] ss:$16 sps:$4 sm:$0xff]   ;;  %v19119_v11 = vld [vmem:[#allocation6 + $0x140] ss:$16 sps:$4 sm:$0xff]  }
 0x124   :  { %636 = vmatprep.mubr.bf16.mxu1 %v24384_v0  ;;  %3096 = vmatprep.subr.bf16.mxu0 %v19091_v55  ;;  %v19118_v10 = vld [vmem:[#allocation6 + $0x124] ss:$16 sps:$4 sm:$0xff]   ;;  %v19122_v13 = vld [vmem:[#allocation6 + $0x160] ss:$16 sps:$4 sm:$0xff]  }
 0x125   :  { %v19121_v12 = vld [vmem:[#allocation6 + $0x144] ss:$16 sps:$4 sm:$0xff]   ;;  %v19086_v24 = vld [vmem:[#allocation4 + $0x2c] ss:$16 sps:$4 sm:$0x3f]  }
 0x126   :  { %16017 = vmatmul.mubr.msk.bf16.gmra.mrb[4].mxu0 %vm508_vm1, %v21642_v20  ;;  %v19124_v14 = vld [vmem:[#allocation6 + $0x164] ss:$16 sps:$4 sm:$0xff]   ;;  %v19088_v25 = vld [vmem:[#allocation4 + $0x28] ss:$16 sps:$4 sm:$0x3f]  }
 0x127   :  { %1052 = vmatprep.mubr.bf16.mxu0 %v24384_v0  ;;  %v19127_v16 = vld [vmem:[#allocation6 + $0x184] ss:$16 sps:$4 sm:$0xff]   ;;  %v19134_v28 = vld [vmem:[#allocation6 + $0x1e0] ss:$16 sps:$4 sm:$0xff]  }
 0x128   :  { %v19130_v18 = vld [vmem:[#allocation6 + $0x1a4] ss:$16 sps:$4 sm:$0xff]  }
 0x129   :  { %v19133_v19 = vld [vmem:[#allocation6 + $0x1c4] ss:$16 sps:$4 sm:$0xff]  }
 0x12b   :  { %15983 = vmatmul.mubr.msk.bf16.gmra.mrb[12].mxu1 %vm508_vm1, %v21650_v21 }
 0x12c   :  { %646 = vmatprep.mubr.bf16.mxu1 %v24384_v0 }
 0x12e   :  { %16018 = vmatmul.mubr.msk.bf16.gmra.mrb[8].mxu0 %vm508_vm1, %v21656_v22 }
 0x12f   :  { %1062 = vmatprep.mubr.bf16.mxu0 %v24384_v0 }
 0x133   :  { %15984 = vmatmul.mubr.msk.bf16.gmra.mrb[16].mxu1 %vm508_vm1, %v21667_v26 }
 0x134   :  { %656 = vmatprep.mubr.bf16.mxu1 %v24384_v0 }
 0x136   :  { %16019 = vmatmul.mubr.msk.bf16.gmra.mrb[12].mxu0 %vm508_vm1, %v21679_v30 }
 0x137   :  { %1072 = vmatprep.mubr.bf16.mxu0 %v24384_v0 }
 0x13b   :  { %15985 = vmatmul.mubr.msk.bf16.gmra.mrb[20].mxu1 %vm508_vm1, %v21685_v31 }
 0x13c   :  { %666 = vmatprep.mubr.bf16.mxu1 %v24384_v0 }
 0x13e   :  { %16020 = vmatmul.mubr.msk.bf16.gmra.mrb[16].mxu0 %vm508_vm1, %v21693_v32 }
 0x13f   :  { %1082 = vmatprep.mubr.bf16.mxu0 %v24384_v0 }
 0x143   :  { %15986 = vmatmul.mubr.msk.bf16.gmra.mrb[24].mxu1 %vm508_vm1, %v21701_v33 }
 0x144   :  { %676 = vmatprep.mubr.bf16.mxu1 %v24384_v0 }
 0x146   :  { %16021 = vmatmul.mubr.msk.bf16.gmra.mrb[20].mxu0 %vm508_vm1, %v21709_v34 }
 0x147   :  { %1092 = vmatprep.mubr.bf16.mxu0 %v24384_v0 }
 0x14b   :  { %15987 = vmatmul.mubr.msk.bf16.gmra.mrb[28].mxu1 %vm508_vm1, %v21717_v35 }
 0x14c   :  { %686 = vmatprep.mubr.bf16.mxu1 %v24384_v0 }
 0x14e   :  { %16022 = vmatmul.mubr.msk.bf16.gmra.mrb[24].mxu0 %vm508_vm1, %v21725_v36 }
 0x14f   :  { %1102 = vmatprep.mubr.bf16.mxu0 %v24384_v0 }
 0x153   :  { %15988 = vmatmul.mubr.msk.bf16.gmra.mrb[32].mxu1 %vm508_vm1, %v21733_v37 }
 0x154   :  { %696 = vmatprep.mubr.bf16.mxu1 %v24384_v0 }
 0x156   :  { %16023 = vmatmul.mubr.msk.bf16.gmra.mrb[28].mxu0 %vm508_vm1, %v21741_v38 }
 0x157   :  { %1112 = vmatprep.mubr.bf16.mxu0 %v24384_v0 }
 0x15b   :  { %15989 = vmatmul.mubr.msk.bf16.gmra.mrb[36].mxu1 %vm508_vm1, %v21749_v39 }
 0x15c   :  { %706 = vmatprep.mubr.bf16.mxu1 %v24384_v0 }
 0x15e   :  { %16024 = vmatmul.mubr.msk.bf16.gmra.mrb[32].mxu0 %vm508_vm1, %v21757_v40 }
 0x15f   :  { %1122 = vmatprep.mubr.bf16.mxu0 %v24384_v0 }
 0x163   :  { %15990 = vmatmul.mubr.msk.bf16.gmra.mrb[40].mxu1 %vm508_vm1, %v21765_v41 }
 0x164   :  { %716 = vmatprep.mubr.bf16.mxu1 %v24384_v0 }
 0x166   :  { %16025 = vmatmul.mubr.msk.bf16.gmra.mrb[36].mxu0 %vm508_vm1, %v21773_v42 }
 0x167   :  { %1132 = vmatprep.mubr.bf16.mxu0 %v24384_v0 }
 0x16b   :  { %15991 = vmatmul.mubr.msk.bf16.gmra.mrb[44].mxu1 %vm508_vm1, %v21781_v43 }
 0x16c   :  { %726 = vmatprep.mubr.bf16.mxu1 %v24384_v0 }
 0x16e   :  { %16026 = vmatmul.mubr.msk.bf16.gmra.mrb[40].mxu0 %vm508_vm1, %v21791_v44 }
 0x16f   :  { %1142 = vmatprep.mubr.bf16.mxu0 %v24384_v0 }
 0x173   :  { %15992 = vmatmul.mubr.msk.bf16.gmra.mrb[48].mxu1 %vm508_vm1, %v21797_v45 }
 0x174   :  { %769 = vmatprep.mubr.bf16.mxu1 %v24384_v0 }
 0x176   :  { %16027 = vmatmul.mubr.msk.bf16.gmra.mrb[44].mxu0 %vm508_vm1, %v21805_v46 }
 0x177   :  { %1152 = vmatprep.mubr.bf16.mxu0 %v24384_v0 }
 0x17b   :  { %15994 = vmatmul.mubr.msk.bf16.vlgmr.msra.gmra.mrb[52].mxu1 %vm508_vm1, %v21593_v6  ;;  %v19110_v6 = vld [vmem:[#allocation6 + $0xe0] ss:$16 sps:$4 sm:$0xff]  }
 0x17c   :  { %1174 = vmatpush1.bf16.msra.mxu1 %v19071_v47  ;;  %779 = vmatprep.mubr.bf16.mxu1 %v24384_v0 }
 0x17d   :  { %16030 = vmatprep.subr.msk.bf16.mxu1 %vm551_vm0, %v19079_v48 }
 0x17e   :  { %16028 = vmatmul.mubr.msk.bf16.gmra.mrb[48].mxu0 %vm508_vm1, %v21825_v50 }
 0x17f   :  { %1162 = vmatprep.mubr.bf16.mxu0 %v24384_v0 }
 0x180   :  { %1176 = vmatpush1.bf16.msra.mxu1 %v995_v52  ;;  %v21996_v52 = vld [vmem:[%s24420_s22 + $0x38] sm:$0xff]  }
 0x181   :  { %1570 = vmatprep.subr.bf16.mxu1 %v19084_v51  ;;  %v19139_v51 = vld [vmem:[#allocation6 + $0xc] ss:$16 sps:$4 sm:$0xff]  }
 0x183   :  { %15995 = vmatmul.mubr.msk.bf16.gmra.mrb[56].mxu1 %vm508_vm1, %v21598_v7  ;;  %v19113_v7 = vld [vmem:[#allocation6 + $0x100] ss:$16 sps:$4 sm:$0xff]  }
 0x184   :  { %789 = vmatprep.mubr.bf16.mxu1 %v24384_v0 }
 0x186   :  { %16029 = vmatmul.mubr.msk.bf16.gmra.mrb[52].mxu0 %vm508_vm1, %v21838_v53 }
 0x187   :  { %1429 = vmatprep.mubr.bf16.mxu0 %v24384_v0 }
 0x18b   :  { %15996 = vmatmul.mubr.msk.bf16.gmra.mrb[60].mxu1 %vm508_vm1, %v21623_v15  ;;  %v19125_v15 = vld [vmem:[#allocation6 + $0x180] ss:$16 sps:$4 sm:$0xff]  }
 0x18c   :  { %799 = vmatprep.mubr.bf16.mxu1 %v24384_v0 }
 0x18e   :  { %16053 = vmatmul.mubr.msk.bf16.vlgmr.msra.gmra.mrb[0].mxu0 %vm508_vm1, %v21642_v20  ;;  %v19131_v20 = vld [vmem:[#allocation6 + $0x1c0] ss:$16 sps:$4 sm:$0xff]  }
 0x18f   :  { %1439 = vmatprep.mubr.bf16.mxu0 %v24384_v0  ;;  %3097 = vmatpush1.bf16.msra.mxu0 %v19089_v54 }
 0x190   :  { %3098 = vmatprep.subr.bf16.mxu0 %v19094_v56 }
 0x193   :  { %15997 = vmatmul.mubr.msk.bf16.gmra.mrb[64].mxu1 %vm508_vm1, %v21631_v17  ;;  %3099 = vmatpush1.bf16.msra.mxu0 %v19092_v57  ;;  %v19128_v17 = vld [vmem:[#allocation6 + $0x1a0] ss:$16 sps:$4 sm:$0xff]   ;;  %v22012_v57 = vld [vmem:[%s24420_s22 + $0x48] sm:$0xff]  }
 0x194   :  { %809 = vmatprep.mubr.bf16.mxu1 %v24384_v0  ;;  %3100 = vmatprep.subr.bf16.mxu0 %v19097_v59 }
 0x196   :  { %16054 = vmatmul.mubr.msk.bf16.gmra.mrb[4].mxu0 %vm508_vm1, %v21656_v22  ;;  %v19082_v22 = vld [vmem:[#allocation4 + $0x8] ss:$16 sps:$4 sm:$0xff]  }
 0x197   :  { %1449 = vmatprep.mubr.bf16.mxu0 %v24384_v0  ;;  %3101 = vmatpush1.bf16.msra.mxu0 %v19095_v58 }
 0x198   :  { %3102 = vmatprep.subr.bf16.mxu0 %v19100_v60 }
 0x19b   :  { %15998 = vmatmul.mubr.msk.bf16.gmra.mrb[68].mxu1 %vm508_vm1, %v21650_v21  ;;  %3103 = vmatpush1.bf16.msra.mxu0 %v19098_v61 }
 0x19c   :  { %819 = vmatprep.mubr.bf16.mxu1 %v24384_v0  ;;  %3104 = vmatprep.subr.bf16.mxu0 %v19103_v63 }
 0x19e   :  { %16055 = vmatmul.mubr.msk.bf16.gmra.mrb[8].mxu0 %vm508_vm1, %v21679_v30  ;;  %v1392_v30 = vsel %vm551_vm0, %v19088_v25, 0 }
 0x19f   :  { %1459 = vmatprep.mubr.bf16.mxu0 %v24384_v0  ;;  %3105 = vmatpush1.bf16.msra.mxu0 %v19101_v62  ;;  %v22028_v62 = vld [vmem:[%s24420_s22 + $0x58] sm:$0xff]  }
 0x1a0   :  { %3106 = vmatprep.subr.bf16.mxu0 %v19106_v1 }
 0x1a3   :  { %15999 = vmatmul.mubr.msk.bf16.gmra.mrb[72].mxu1 %vm508_vm1, %v21667_v26  ;;  %3107 = vmatpush1.bf16.msra.mxu0 %v19104_v2  ;;  %v19136_v26 = vld [vmem:[#allocation6 + $0x1e4] ss:$16 sps:$4 sm:$0xff]  }
 0x1a4   :  { %829 = vmatprep.mubr.bf16.mxu1 %v24384_v0  ;;  %3108 = vmatprep.subr.bf16.mxu0 %v19109_v4  ;;  %v22044_v4 = vld [vmem:[%s24420_s22 + $0x68] sm:$0xff]  }
 0x1a6   :  { %16056 = vmatmul.mubr.msk.bf16.gmra.mrb[12].mxu0 %vm508_vm1, %v21693_v32 }
 0x1a7   :  { %1469 = vmatprep.mubr.bf16.mxu0 %v24384_v0  ;;  %3109 = vmatpush1.bf16.msra.mxu0 %v19107_v3 }
 0x1a8   :  { %3110 = vmatprep.subr.bf16.mxu0 %v19112_v5 }
 0x1ab   :  { %16000 = vmatmul.mubr.msk.bf16.gmra.mrb[76].mxu1 %vm508_vm1, %v21685_v31  ;;  %3111 = vmatpush1.bf16.msra.mxu0 %v19110_v6 }
 0x1ac   :  { %839 = vmatprep.mubr.bf16.mxu1 %v24384_v0  ;;  %3112 = vmatprep.subr.bf16.mxu0 %v19115_v8 }
 0x1ae   :  { %16057 = vmatmul.mubr.msk.bf16.gmra.mrb[16].mxu0 %vm508_vm1, %v21709_v34 }
 0x1af   :  { %1479 = vmatprep.mubr.bf16.mxu0 %v24384_v0  ;;  %3113 = vmatpush1.bf16.msra.mxu0 %v19113_v7 }
 0x1b0   :  { %3114 = vmatprep.subr.bf16.mxu0 %v19118_v10 }
 0x1b3   :  { %16001 = vmatmul.mubr.msk.bf16.gmra.mrb[80].mxu1 %vm508_vm1, %v21701_v33  ;;  %3115 = vmatpush1.bf16.msra.mxu0 %v19116_v9  ;;  %v20924_v9 = vld [vmem:[%s24420_s22 + $0x78] sm:$0xff]  }
 0x1b4   :  { %849 = vmatprep.mubr.bf16.mxu1 %v24384_v0  ;;  %3116 = vmatprep.subr.bf16.mxu0 %v19121_v12 }
 0x1b6   :  { %16058 = vmatmul.mubr.msk.bf16.gmra.mrb[20].mxu0 %vm508_vm1, %v21725_v36  ;;  %v21947_v36 = vld [vmem:[%s24420_s22 + $0x8] sm:$0xff]  }
 0x1b7   :  { %1489 = vmatprep.mubr.bf16.mxu0 %v24384_v0  ;;  %3117 = vmatpush1.bf16.msra.mxu0 %v19119_v11 }
 0x1b8   :  { %3118 = vmatprep.subr.bf16.mxu0 %v19124_v14  ;;  %v20925_v14 = vld [vmem:[%s24420_s22 + $0x88] sm:$0xff]  }
 0x1bb   :  { %16002 = vmatmul.mubr.msk.bf16.gmra.mrb[84].mxu1 %vm508_vm1, %v21717_v35  ;;  %3119 = vmatpush1.bf16.msra.mxu0 %v19122_v13  ;;  %v19085_v35 = vld [vmem:[%s24420_s22 + $0xd8] sm:$0xff]  }
 0x1bc   :  { %859 = vmatprep.mubr.bf16.mxu1 %v24384_v0  ;;  %3120 = vmatprep.subr.bf16.mxu0 %v19127_v16 }
 0x1be   :  { %16059 = vmatmul.mubr.msk.bf16.gmra.mrb[24].mxu0 %vm508_vm1, %v21741_v38 }
 0x1bf   :  { %1499 = vmatprep.mubr.bf16.mxu0 %v24384_v0  ;;  %3121 = vmatpush1.bf16.msra.mxu0 %v19125_v15 }
 0x1c0   :  { %3122 = vmatprep.subr.bf16.mxu0 %v19130_v18 }
 0x1c3   :  { %16003 = vmatmul.mubr.msk.bf16.gmra.mrb[88].mxu1 %vm508_vm1, %v21733_v37  ;;  %3123 = vmatpush1.bf16.msra.mxu0 %v19128_v17 }
 0x1c4   :  { %869 = vmatprep.mubr.bf16.mxu1 %v24384_v0  ;;  %3124 = vmatprep.subr.bf16.mxu0 %v19133_v19  ;;  %v20926_v19 = vld [vmem:[%s24420_s22 + $0x98] sm:$0xff]  }
 0x1c6   :  { %16060 = vmatmul.mubr.msk.bf16.gmra.mrb[28].mxu0 %vm508_vm1, %v21757_v40 }
 0x1c7   :  { %1509 = vmatprep.mubr.bf16.mxu0 %v24384_v0  ;;  %3125 = vmatpush1.bf16.msra.mxu0 %v19131_v20 }
 0x1c8   :  { %3126 = vmatprep.subr.bf16.mxu0 %v19136_v26  ;;  %v20927_v26 = vld [vmem:[%s24420_s22 + $0xa8] sm:$0xff]  }
 0x1cb   :  { %16004 = vmatmul.mubr.msk.bf16.gmra.mrb[92].mxu1 %vm508_vm1, %v21749_v39  ;;  %3127 = vmatpush1.bf16.msra.mxu0 %v19134_v28 }
 0x1cc   :  { %879 = vmatprep.mubr.bf16.mxu1 %v24384_v0 }
 0x1ce   :  { %16061 = vmatmul.mubr.msk.bf16.gmra.mrb[32].mxu0 %vm508_vm1, %v21773_v42 }
 0x1cf   :  { %1519 = vmatprep.mubr.bf16.mxu0 %v24384_v0 }
 0x1d3   :  { %16005 = vmatmul.mubr.msk.bf16.gmra.mrb[96].mxu1 %vm508_vm1, %v21765_v41  ;;  %v21964_v41 = vld [vmem:[%s24420_s22 + $0x18] sm:$0xff]  }
 0x1d4   :  { %889 = vmatprep.mubr.bf16.mxu1 %v24384_v0 }
 0x1d6   :  { %16062 = vmatmul.mubr.msk.bf16.gmra.mrb[36].mxu0 %vm508_vm1, %v21791_v44 }
 0x1d7   :  { %1529 = vmatprep.mubr.bf16.mxu0 %v24384_v0 }
 0x1db   :  { %16006 = vmatmul.mubr.msk.bf16.gmra.mrb[100].mxu1 %vm508_vm1, %v21781_v43 }
 0x1dc   :  { %899 = vmatprep.mubr.bf16.mxu1 %v24384_v0 }
 0x1de   :  { %16063 = vmatmul.mubr.msk.bf16.gmra.mrb[40].mxu0 %vm508_vm1, %v21805_v46  ;;  %v21980_v46 = vld [vmem:[%s24420_s22 + $0x28] sm:$0xff]  }
 0x1df   :  { %1539 = vmatprep.mubr.bf16.mxu0 %v24384_v0 }
 0x1e3   :  { %16007 = vmatmul.mubr.msk.bf16.gmra.mrb[104].mxu1 %vm508_vm1, %v21797_v45 }
 0x1e4   :  { %1205 = vmatprep.mubr.bf16.mxu1 %v24384_v0 }
 0x1e6   :  { %v21915_v21 = vpop.f32.mrb[0].mxu1  ;;  %16064 = vmatmul.mubr.msk.bf16.gmra.mrb[44].mxu0 %vm508_vm1, %v21825_v50 }
 0x1e7   :  { %v21917_v23 = vpop.f32.mrb[1].mxu1  ;;  %1549 = vmatprep.mubr.bf16.mxu0 %v24384_v0 }
 0x1e8   :  { %v21921_v27 = vpop.f32.mrb[2].mxu1 }
 0x1e9   :  { %v21924_v29 = vpop.f32.mrb[3].mxu1 }
 0x1eb   :  { %1206 = vmatmul.mubr.bf16.vlgmr.msra.gmra.mrb[52].mxu1 %v24384_v0 }
 0x1ec   :  { %1571 = vmatpush1.bf16.msra.mxu1 %v19082_v22  ;;  %1215 = vmatprep.mubr.bf16.mxu1 %v24384_v0 }
 0x1ed   :  { %16067 = vmatprep.subr.msk.bf16.mxu1 %vm551_vm0, %v19086_v24 }
 0x1ee   :  { %v21930_v31 = vpop.f32.mrb[4].mxu1  ;;  %16065 = vmatmul.mubr.msk.bf16.gmra.mrb[48].mxu0 %vm508_vm1, %v21838_v53 }
 0x1ef   :  { %v21932_v32 = vpop.f32.mrb[5].mxu1  ;;  %1559 = vmatprep.mubr.bf16.mxu0 %v24384_v0 }
 0x1f0   :  { %v21936_v33 = vpop.f32.mrb[6].mxu1  ;;  %1573 = vmatpush1.bf16.msra.mxu1 %v1392_v30 }
 0x1f1   :  { %v21939_v34 = vpop.f32.mrb[7].mxu1  ;;  %3442 = vmatprep.subr.bf16.mxu1 %v19139_v51 }
 0x1f3   :  { %16031 = vmatmul.mubr.msk.bf16.gmra.mrb[56].mxu1 %vm508_vm1, %v21947_v36 }
 0x1f4   :  { %1225 = vmatprep.mubr.bf16.mxu1 %v24384_v0 }
 0x1f6   :  { %v21952_v37 = vpop.f32.mrb[8].mxu1  ;;  %16066 = vmatmul.mubr.msk.bf16.gmra.mrb[52].mxu0 %vm508_vm1, %v19085_v35 }
 0x1f7   :  { %v21954_v38 = vpop.f32.mrb[9].mxu1 }
 0x1f8   :  { %v21957_v39 = vpop.f32.mrb[10].mxu1 }
 0x1f9   :  { %v21959_v40 = vpop.f32.mrb[11].mxu1 }
 0x1fb   :  { %16032 = vmatmul.mubr.msk.bf16.gmra.mrb[60].mxu1 %vm508_vm1, %v21964_v41 }
 0x1fc   :  { %1235 = vmatprep.mubr.bf16.mxu1 %v24384_v0 }
 0x1fe   :  { %v21969_v42 = vpop.f32.mrb[12].mxu1 }
 0x1ff   :  { %v21971_v43 = vpop.f32.mrb[13].mxu1 }
 0x200   :  { %v21973_v44 = vpop.f32.mrb[14].mxu1 }
 0x201   :  { %v21975_v45 = vpop.f32.mrb[15].mxu1 }
 0x203   :  { %16033 = vmatmul.mubr.msk.bf16.gmra.mrb[64].mxu1 %vm508_vm1, %v21980_v46 }
 0x204   :  { %1245 = vmatprep.mubr.bf16.mxu1 %v24384_v0 }
 0x206   :  { %v21985_v47 = vpop.f32.mrb[16].mxu1 }
 0x207   :  { %v21987_v48 = vpop.f32.mrb[17].mxu1 }
 0x208   :  { %v21989_v49 = vpop.f32.mrb[18].mxu1 }
 0x209   :  { %v21991_v50 = vpop.f32.mrb[19].mxu1 }
 0x20b   :  { %16034 = vmatmul.mubr.msk.bf16.gmra.mrb[68].mxu1 %vm508_vm1, %v21996_v52 }
 0x20c   :  { %1255 = vmatprep.mubr.bf16.mxu1 %v24384_v0 }
 0x20e   :  { %v22001_v53 = vpop.f32.mrb[20].mxu1 }
 0x20f   :  { %v22003_v54 = vpop.f32.mrb[21].mxu1 }
 0x210   :  { %v22005_v55 = vpop.f32.mrb[22].mxu1 }
 0x211   :  { %v22007_v56 = vpop.f32.mrb[23].mxu1 }
 0x213   :  { %16035 = vmatmul.mubr.msk.bf16.gmra.mrb[72].mxu1 %vm508_vm1, %v22012_v57 }
 0x214   :  { %1265 = vmatprep.mubr.bf16.mxu1 %v24384_v0 }
 0x216   :  { %v22017_v58 = vpop.f32.mrb[24].mxu1 }
 0x217   :  { %v22019_v59 = vpop.f32.mrb[25].mxu1 }
 0x218   :  { %v22021_v60 = vpop.f32.mrb[26].mxu1 }
 0x219   :  { %v22023_v61 = vpop.f32.mrb[27].mxu1 }
 0x21b   :  { %16036 = vmatmul.mubr.msk.bf16.gmra.mrb[76].mxu1 %vm508_vm1, %v22028_v62 }
 0x21c   :  { %1275 = vmatprep.mubr.bf16.mxu1 %v24384_v0 }
 0x21e   :  { %v22033_v63 = vpop.f32.mrb[28].mxu1 }
 0x21f   :  { %v22035_v1 = vpop.f32.mrb[29].mxu1 }
 0x220   :  { %v22037_v2 = vpop.f32.mrb[30].mxu1 }
 0x221   :  { %v22039_v3 = vpop.f32.mrb[31].mxu1 }
 0x223   :  { %16037 = vmatmul.mubr.msk.bf16.gmra.mrb[80].mxu1 %vm508_vm1, %v22044_v4 }
 0x224   :  { %1285 = vmatprep.mubr.bf16.mxu1 %v24384_v0 }
 0x226   :  { %v22049_v5 = vpop.f32.mrb[32].mxu1 }
 0x227   :  { %v22051_v6 = vpop.f32.mrb[33].mxu1 }
 0x228   :  { %v22053_v7 = vpop.f32.mrb[34].mxu1 }
 0x229   :  { %v22055_v8 = vpop.f32.mrb[35].mxu1 }
 0x22b   :  { %16038 = vmatmul.mubr.msk.bf16.gmra.mrb[84].mxu1 %vm508_vm1, %v20924_v9  ;;  %v20928_v9 = vld [vmem:[%s24420_s22 + $0xb8] sm:$0xff]  }
 0x22c   :  { %1295 = vmatprep.mubr.bf16.mxu1 %v24384_v0 }
 0x22e   :  { %v22062_v10 = vpop.f32.mrb[36].mxu1 }
 0x22f   :  { %v22064_v11 = vpop.f32.mrb[37].mxu1 }
 0x230   :  { %24422 = vst [vmem:[#allocation29_spill] sm:$0xff] %v22064_v11  ;;  %v22066_v12 = vpop.f32.mrb[38].mxu1 }
 0x231   :  { %24423 = vst [vmem:[#allocation30_spill] sm:$0xff] %v22066_v12  ;;  %v22068_v13 = vpop.f32.mrb[39].mxu1 }
 0x232   :  { %24424 = vst [vmem:[#allocation31_spill] sm:$0xff] %v22068_v13 }
 0x233   :  { %16039 = vmatmul.mubr.msk.bf16.gmra.mrb[88].mxu1 %vm508_vm1, %v20925_v14  ;;  %v19187_v14 = vld [vmem:[#allocation6 + $0x204] ss:$16 sps:$4 sm:$0xff]  }
 0x234   :  { %1305 = vmatprep.mubr.bf16.mxu1 %v24384_v0  ;;  %3269 = vmatprep.subr.bf16.mxu0 %v19187_v14 }
 0x236   :  { %v22075_v15 = vpop.f32.mrb[40].mxu1 }
 0x237   :  { %24425 = vst [vmem:[#allocation32_spill] sm:$0xff] %v22075_v15  ;;  %v22077_v16 = vpop.f32.mrb[41].mxu1 }
 0x238   :  { %24426 = vst [vmem:[#allocation33_spill] sm:$0xff] %v22077_v16  ;;  %v22079_v17 = vpop.f32.mrb[42].mxu1  ;;  %v19149_v16 = vld [vmem:[#allocation6 + $0x88] ss:$16 sps:$4 sm:$0xff]  }
 0x239   :  { %24427 = vst [vmem:[#allocation34_spill] sm:$0xff] %v22079_v17  ;;  %v22081_v18 = vpop.f32.mrb[43].mxu1 }
 0x23a   :  { %24428 = vst [vmem:[#allocation35_spill] sm:$0xff] %v22081_v18 }
 0x23b   :  { %16040 = vmatmul.mubr.msk.bf16.gmra.mrb[92].mxu1 %vm508_vm1, %v20926_v19  ;;  %v20929_v19 = vld [vmem:[%s24420_s22 + $0xc8] sm:$0xff]  }
 0x23c   :  { %1315 = vmatprep.mubr.bf16.mxu1 %v24384_v0 }
 0x23e   :  { %v22088_v20 = vpop.f32.mrb[44].mxu1 }
 0x23f   :  { %24429 = vst [vmem:[#allocation36_spill] sm:$0xff] %v22088_v20  ;;  %v22090_v22 = vpop.f32.mrb[45].mxu1 }
 0x240   :  { %24430 = vst [vmem:[#allocation37_spill] sm:$0xff] %v22090_v22  ;;  %v22092_v24 = vpop.f32.mrb[46].mxu1  ;;  %v19148_v22 = vld [vmem:[#allocation6 + $0x6c] ss:$16 sps:$4 sm:$0xff]  }
 0x241   :  { %24431 = vst [vmem:[#allocation38_spill] sm:$0xff] %v22092_v24  ;;  %v22094_v25 = vpop.f32.mrb[47].mxu1 }
 0x242   :  { %24432 = vst [vmem:[#allocation39_spill] sm:$0xff] %v22094_v25  ;;  %v19145_v25 = vld [vmem:[#allocation6 + $0x4c] ss:$16 sps:$4 sm:$0xff]  }
 0x243   :  { %16041 = vmatmul.mubr.msk.bf16.gmra.mrb[96].mxu1 %vm508_vm1, %v20927_v26  ;;  %v1856_v26 = vlaneseq }
 0x244   :  { %1325 = vmatprep.mubr.bf16.mxu1 %v24384_v0 }
 0x246   :  { %v22101_v28 = vpop.f32.mrb[48].mxu1 }
 0x247   :  { %24433 = vst [vmem:[#allocation40_spill] sm:$0xff] %v22101_v28  ;;  %v22103_v30 = vpop.f32.mrb[49].mxu1  ;;  %v19140_v28 = vld [vmem:[#allocation6 + $0x28] ss:$16 sps:$4 sm:$0xff]  }
 0x248   :  { %24434 = vst [vmem:[#allocation41_spill] sm:$0xff] %v22103_v30  ;;  %v22105_v35 = vpop.f32.mrb[50].mxu1  ;;  %v19142_v30 = vld [vmem:[#allocation6 + $0x2c] ss:$16 sps:$4 sm:$0xff]  }
 0x249   :  { %24435 = vst [vmem:[#allocation42_spill] sm:$0xff] %v22105_v35  ;;  %v22107_v51 = vpop.f32.mrb[51].mxu1  ;;  %v22119_v35 = vshrl.u32 %v1856_v26, 7  ;;  %v19143_v26 = vld [vmem:[#allocation6 + $0x48] ss:$16 sps:$4 sm:$0xff]  }
 0x24a   :  { %24436 = vst [vmem:[#allocation43_spill] sm:$0xff] %v22107_v51  ;;  %v19137_v51 = vld [vmem:[#allocation6 + $0x8] ss:$16 sps:$4 sm:$0xff]  }
 0x24b   :  { %16042 = vmatmul.mubr.msk.bf16.gmra.mrb[100].mxu1 %vm508_vm1, %v20928_v9  ;;  %24437 = vst [vmem:[#allocation44_spill] sm:$0xff] %v22119_v35  ;;  %v331_v9 = vld [vmem:[%s24438_s27] sm:$0xf]  ;;  %v22127_v14 = vsub.s32 0, %v22119_v35 }
 0x24c   :  { %1335 = vmatprep.mubr.bf16.mxu1 %v24384_v0 }
 0x24d   :  { %24439 = vst [vmem:[#allocation45_spill] sm:$0xff] %v22127_v14  ;;  %v22134_v24 = vrot.slane %v331_v9, %v22127_v14  ;;  %v19146_v14 = vld [vmem:[#allocation6 + $0x68] ss:$16 sps:$4 sm:$0xff]  }
 0x253   :  { %16043 = vmatmul.mubr.msk.bf16.gmra.mrb[104].mxu1 %vm508_vm1, %v20929_v19  ;;  %v22131_v19 = vsub.s32 1, %v22119_v35  ;;  %v19151_v35 = vld [vmem:[#allocation6 + $0x8c] ss:$16 sps:$4 sm:$0xff]  }
 0x254   :  { %1602 = vmatprep.mubr.bf16.mxu1 %v24384_v0 }
 0x255   :  { %24440 = vst [vmem:[#allocation46_spill] sm:$0xff] %v22131_v19  ;;  %v22137_v20 = vrot.slane %v331_v9, %v22131_v19 }
 0x25b   :  { %16068 = vmatmul.mubr.msk.bf16.vlgmr.msra.gmra.mrb[52].mxu1 %vm508_vm1, %v21947_v36 }
 0x25c   :  { %1612 = vmatprep.mubr.bf16.mxu1 %v24384_v0  ;;  %3443 = vmatpush1.bf16.msra.mxu1 %v19137_v51 }
 0x25d   :  { %3444 = vmatprep.subr.bf16.mxu1 %v19142_v30 }
 0x260   :  { %3445 = vmatpush1.bf16.msra.mxu1 %v19140_v28 }
 0x261   :  { %3446 = vmatprep.subr.bf16.mxu1 %v19145_v25  ;;  %v1431_v36 = vpop.f32.mrb[0].mxu0 }
 0x262   :  { %v1876_v18 = vadd.f32 %v22134_v24, %v1431_v36  ;;  %v1433_v17 = vpop.f32.mrb[1].mxu0 }
 0x263   :  { %16069 = vmatmul.mubr.msk.bf16.gmra.mrb[56].mxu1 %vm508_vm1, %v21964_v41  ;;  %v1877_v51 = vadd.f32 %v22137_v20, %v1433_v17  ;;  %v1435_v30 = vpop.f32.mrb[2].mxu0  ;;  %v19154_v41 = vld [vmem:[#allocation6 + $0xac] ss:$16 sps:$4 sm:$0xff]   ;;  %v19185_v17 = vld [vmem:[#allocation6 + $0x200] ss:$16 sps:$4 sm:$0xff]  }
 0x264   :  { %1622 = vmatprep.mubr.bf16.mxu1 %v24384_v0  ;;  %3447 = vmatpush1.bf16.msra.mxu1 %v19143_v26  ;;  %v1880_v9 = vadd.f32 %v22134_v24, %v1435_v30  ;;  %v1437_v19 = vpop.f32.mrb[3].mxu0  ;;  %v1988_v28 = vmax.f32 %v1876_v18, 0.0  ;;  %v19190_v26 = vld [vmem:[#allocation6 + $0x224] ss:$16 sps:$4 sm:$0xff]   ;;  %v19152_v18 = vld [vmem:[#allocation6 + $0xa8] ss:$16 sps:$4 sm:$0xff]  }
 0x265   :  { %3448 = vmatprep.subr.bf16.mxu1 %v19148_v22  ;;  %v1881_v25 = vadd.f32 %v22137_v20, %v1437_v19  ;;  %v1989_v15 = vmax.f32 %v1877_v51, 0.0 }
 0x266   :  { %v1992_v36 = vmax.f32 %v1880_v9, 0.0  ;;  %v19157_v9 = vld [vmem:[#allocation6 + $0xcc] ss:$16 sps:$4 sm:$0xff]  }
 0x267   :  { %v1993_v13 = vmax.f32 %v1881_v25, 0.0 }
 0x268   :  { %3449 = vmatpush1.bf16.msra.mxu1 %v19146_v14  ;;  %v22146_v12 = vpack.c.bf16 %v1992_v36, %v1988_v28  ;;  %v24442_v14 = vmov 0   ;;  %v19155_v28 = vld [vmem:[#allocation6 + $0xc8] ss:$16 sps:$4 sm:$0xff]  }
 0x269   :  { %3450 = vmatprep.subr.bf16.mxu1 %v19151_v35  ;;  %v22148_v0 = vpack.c.bf16 %v1993_v13, %v1989_v15  ;;  %v1441_v11 = vpop.f32.mrb[4].mxu0  ;;  %v19188_v35 = vld [vmem:[#allocation6 + $0x220] ss:$16 sps:$4 sm:$0xff]  }
 0x26a   :  { %24441 = vst [vmem:[#allocation47_spill] sm:$0xff] %v22146_v12  ;;  %v17583_v30 = vadd.f32 %v1441_v11, %v21915_v21  ;;  %v1443_v22 = vpop.f32.mrb[5].mxu0  ;;  %v19193_v21 = vld [vmem:[#allocation6 + $0x244] ss:$16 sps:$4 sm:$0xff]  }
 0x26b   :  { %16070 = vmatmul.mubr.msk.bf16.gmra.mrb[60].mxu1 %vm508_vm1, %v21980_v46  ;;  %v17584_v19 = vadd.f32 %v1443_v22, %v21917_v23  ;;  %v1445_v51 = vpop.f32.mrb[6].mxu0  ;;  %3128 = vmatprep.mubr.bf16.mxu0 %v22148_v0 }
 0x26c   :  { %1632 = vmatprep.mubr.bf16.mxu1 %v24442_v14  ;;  %v1884_v13 = vadd.f32 %v17583_v30, %v22134_v24  ;;  %v17585_v15 = vadd.f32 %v1445_v51, %v21921_v27  ;;  %v1447_v25 = vpop.f32.mrb[7].mxu0  ;;  %3129 = vmatmul.mubr.bf16.vlgmr.msra.gmra.mrb[56].mxu0 %v22146_v12  ;;  %v19160_v30 = vld [vmem:[#allocation6 + $0xec] ss:$16 sps:$4 sm:$0xff]  }
 0x26d   :  { %3451 = vmatpush1.bf16.msra.mxu1 %v19149_v16  ;;  %v1885_v46 = vadd.f32 %v17584_v19, %v22137_v20  ;;  %v17586_v23 = vadd.f32 %v1447_v25, %v21924_v29  ;;  %3270 = vmatpush1.bf16.msra.mxu0 %v19185_v17  ;;  %v19158_v17 = vld [vmem:[#allocation6 + $0xe8] ss:$16 sps:$4 sm:$0xff]  }
 0x26e   :  { %3452 = vmatprep.subr.bf16.mxu1 %v19154_v41  ;;  %v1888_v11 = vadd.f32 %v17585_v15, %v22134_v24  ;;  %3271 = vmatprep.subr.bf16.mxu0 %v19190_v26  ;;  %v1996_v22 = vmax.f32 %v1884_v13, 0.0  ;;  %v19163_v15 = vld [vmem:[#allocation6 + $0x10c] ss:$16 sps:$4 sm:$0xff]  }
 0x26f   :  { %v1889_v36 = vadd.f32 %v17586_v23, %v22137_v20  ;;  %v1997_v51 = vmax.f32 %v1885_v46, 0.0  ;;  %v19161_v23 = vld [vmem:[#allocation6 + $0x108] ss:$16 sps:$4 sm:$0xff]  }
 0x270   :  { %v2000_v27 = vmax.f32 %v1888_v11, 0.0  ;;  %v19199_v11 = vld [vmem:[#allocation6 + $0x284] ss:$16 sps:$4 sm:$0xff]  }
 0x271   :  { %3453 = vmatpush1.bf16.msra.mxu1 %v19152_v18  ;;  %v2001_v12 = vmax.f32 %v1889_v36, 0.0  ;;  %v1451_v16 = vpop.f32.mrb[8].mxu0  ;;  %3272 = vmatpush1.bf16.msra.mxu0 %v19188_v35  ;;  %v19196_v35 = vld [vmem:[#allocation6 + $0x264] ss:$16 sps:$4 sm:$0xff]  }
 0x272   :  { %3454 = vmatprep.subr.bf16.mxu1 %v19157_v9  ;;  %v22163_v19 = vpack.c.bf16 %v2000_v27, %v1996_v22  ;;  %v17587_v29 = vadd.f32 %v1451_v16, %v21930_v31  ;;  %v1453_v41 = vpop.f32.mrb[9].mxu0  ;;  %3273 = vmatprep.subr.bf16.mxu0 %v19193_v21  ;;  %v19191_v9 = vld [vmem:[#allocation6 + $0x240] ss:$16 sps:$4 sm:$0xff]   ;;  %v19166_v22 = vld [vmem:[#allocation6 + $0x12c] ss:$16 sps:$4 sm:$0xff]  }
 0x273   :  { %16071 = vmatmul.mubr.msk.bf16.gmra.mrb[64].mxu1 %vm508_vm1, %v21996_v52  ;;  %v22168_v26 = vpack.c.bf16 %v2001_v12, %v1997_v51  ;;  %v17588_v13 = vadd.f32 %v1453_v41, %v21932_v32  ;;  %v1455_v18 = vpop.f32.mrb[10].mxu0  ;;  %v19194_v32 = vld [vmem:[#allocation6 + $0x260] ss:$16 sps:$4 sm:$0xff]   ;;  %v19164_v41 = vld [vmem:[#allocation6 + $0x128] ss:$16 sps:$4 sm:$0xff]  }
 0x274   :  { %1642 = vmatprep.mubr.bf16.mxu1 %v24442_v14  ;;  %v1892_v25 = vadd.f32 %v17587_v29, %v22134_v24  ;;  %v17589_v31 = vadd.f32 %v1455_v18, %v21936_v33  ;;  %v1457_v46 = vpop.f32.mrb[11].mxu0 }
 0x275   :  { %3455 = vmatpush1.bf16.msra.mxu1 %v19155_v28  ;;  %v1893_v52 = vadd.f32 %v17588_v13, %v22137_v20  ;;  %v17590_v21 = vadd.f32 %v1457_v46, %v21939_v34  ;;  %3138 = vmatprep.mubr.bf16.mxu0 %v22168_v26 }
 0x276   :  { %3456 = vmatprep.subr.bf16.mxu1 %v19160_v30  ;;  %v1896_v12 = vadd.f32 %v17589_v31, %v22134_v24  ;;  %3139 = vmatmul.mubr.bf16.gmra.mrb[60].mxu0 %v22163_v19  ;;  %v2004_v33 = vmax.f32 %v1892_v25, 0.0 }
 0x277   :  { %v1897_v36 = vadd.f32 %v17590_v21, %v22137_v20  ;;  %3274 = vmatpush1.bf16.msra.mxu0 %v19191_v9  ;;  %v2005_v27 = vmax.f32 %v1893_v52, 0.0  ;;  %v19167_v21 = vld [vmem:[#allocation6 + $0x148] ss:$16 sps:$4 sm:$0xff]  }
 0x278   :  { %v2008_v28 = vmax.f32 %v1896_v12, 0.0  ;;  %3275 = vmatprep.subr.bf16.mxu0 %v19196_v35  ;;  %v19197_v35 = vld [vmem:[#allocation6 + $0x280] ss:$16 sps:$4 sm:$0xff]  }
 0x279   :  { %3457 = vmatpush1.bf16.msra.mxu1 %v19158_v17  ;;  %v2009_v34 = vmax.f32 %v1897_v36, 0.0  ;;  %v1461_v51 = vpop.f32.mrb[12].mxu0  ;;  %v19169_v17 = vld [vmem:[#allocation6 + $0x14c] ss:$16 sps:$4 sm:$0xff]  }
 0x27a   :  { %3458 = vmatprep.subr.bf16.mxu1 %v19163_v15  ;;  %v22180_v30 = vpack.c.bf16 %v2008_v28, %v2004_v33  ;;  %v17591_v16 = vadd.f32 %v1461_v51, %v21952_v37  ;;  %v1463_v29 = vpop.f32.mrb[13].mxu0  ;;  %v19202_v15 = vld [vmem:[#allocation6 + $0x2a4] ss:$16 sps:$4 sm:$0xff]  }
 0x27b   :  { %16072 = vmatmul.mubr.msk.bf16.gmra.mrb[68].mxu1 %vm508_vm1, %v22012_v57  ;;  %v22185_v13 = vpack.c.bf16 %v2009_v34, %v2005_v27  ;;  %v17592_v18 = vadd.f32 %v1463_v29, %v21954_v38  ;;  %v1465_v9 = vpop.f32.mrb[14].mxu0  ;;  %3276 = vmatpush1.bf16.msra.mxu0 %v19194_v32  ;;  %v19200_v38 = vld [vmem:[#allocation6 + $0x2a0] ss:$16 sps:$4 sm:$0xff]   ;;  %v19205_v32 = vld [vmem:[#allocation6 + $0x2c4] ss:$16 sps:$4 sm:$0xff]  }
 0x27c   :  { %1652 = vmatprep.mubr.bf16.mxu1 %v24442_v14  ;;  %v1900_v25 = vadd.f32 %v17591_v16, %v22134_v24  ;;  %v17593_v37 = vadd.f32 %v1465_v9, %v21957_v39  ;;  %v1467_v31 = vpop.f32.mrb[15].mxu0  ;;  %3277 = vmatprep.subr.bf16.mxu0 %v19199_v11  ;;  %v19172_v39 = vld [vmem:[#allocation6 + $0x16c] ss:$16 sps:$4 sm:$0xff]   ;;  %v19170_v29 = vld [vmem:[#allocation6 + $0x168] ss:$16 sps:$4 sm:$0xff]  }
 0x27d   :  { %3459 = vmatpush1.bf16.msra.mxu1 %v19161_v23  ;;  %v1901_v57 = vadd.f32 %v17592_v18, %v22137_v20  ;;  %v17594_v46 = vadd.f32 %v1467_v31, %v21959_v40  ;;  %3148 = vmatprep.mubr.bf16.mxu0 %v22185_v13  ;;  %v19178_v31 = vld [vmem:[#allocation6 + $0x1ac] ss:$16 sps:$4 sm:$0xff]  }
 0x27e   :  { %3460 = vmatprep.subr.bf16.mxu1 %v19166_v22  ;;  %v1904_v52 = vadd.f32 %v17593_v37, %v22134_v24  ;;  %3149 = vmatmul.mubr.bf16.gmra.mrb[64].mxu0 %v22180_v30  ;;  %v2012_v23 = vmax.f32 %v1900_v25, 0.0  ;;  %v19173_v37 = vld [vmem:[#allocation6 + $0x188] ss:$16 sps:$4 sm:$0xff]  }
 0x27f   :  { %v1905_v12 = vadd.f32 %v17594_v46, %v22137_v20  ;;  %3278 = vmatpush1.bf16.msra.mxu0 %v19197_v35  ;;  %v2013_v36 = vmax.f32 %v1901_v57, 0.0  ;;  %v19211_v35 = vld [vmem:[#allocation6 + $0x2e4] ss:$16 sps:$4 sm:$0xff]  }
 0x280   :  { %v2016_v11 = vmax.f32 %v1904_v52, 0.0  ;;  %3279 = vmatprep.subr.bf16.mxu0 %v19202_v15 }
 0x281   :  { %3461 = vmatpush1.bf16.msra.mxu1 %v19164_v41  ;;  %v2017_v40 = vmax.f32 %v1905_v12, 0.0  ;;  %v1471_v33 = vpop.f32.mrb[16].mxu0  ;;  %v19203_v41 = vld [vmem:[#allocation6 + $0x2c0] ss:$16 sps:$4 sm:$0xff]  }
 0x282   :  { %3462 = vmatprep.subr.bf16.mxu1 %v19169_v17  ;;  %v22197_v22 = vpack.c.bf16 %v2016_v11, %v2012_v23  ;;  %v17595_v28 = vadd.f32 %v1471_v33, %v21969_v42  ;;  %v1473_v27 = vpop.f32.mrb[17].mxu0  ;;  %v19175_v42 = vld [vmem:[#allocation6 + $0x18c] ss:$16 sps:$4 sm:$0xff]  }
 0x283   :  { %16073 = vmatmul.mubr.msk.bf16.gmra.mrb[72].mxu1 %vm508_vm1, %v22028_v62  ;;  %v22202_v34 = vpack.c.bf16 %v2017_v40, %v2013_v36  ;;  %v17596_v51 = vadd.f32 %v1473_v27, %v21971_v43  ;;  %v1475_v16 = vpop.f32.mrb[18].mxu0  ;;  %3280 = vmatpush1.bf16.msra.mxu0 %v19200_v38  ;;  %v19209_v43 = vld [vmem:[#allocation6 + $0x2e0] ss:$16 sps:$4 sm:$0xff]   ;;  %v19176_v36 = vld [vmem:[#allocation6 + $0x1a8] ss:$16 sps:$4 sm:$0xff]  }
 0x284   :  { %1662 = vmatprep.mubr.bf16.mxu1 %v24442_v14  ;;  %v1908_v18 = vadd.f32 %v17595_v28, %v22134_v24  ;;  %v17597_v9 = vadd.f32 %v1475_v16, %v21973_v44  ;;  %v1477_v17 = vpop.f32.mrb[19].mxu0  ;;  %3281 = vmatprep.subr.bf16.mxu0 %v19205_v32  ;;  %v19181_v40 = vld [vmem:[#allocation6 + $0x1cc] ss:$16 sps:$4 sm:$0xff]  }
 0x285   :  { %3463 = vmatpush1.bf16.msra.mxu1 %v19167_v21  ;;  %v1909_v62 = vadd.f32 %v17596_v51, %v22137_v20  ;;  %v17598_v15 = vadd.f32 %v1477_v17, %v21975_v45  ;;  %3158 = vmatprep.mubr.bf16.mxu0 %v22202_v34  ;;  %v19179_v51 = vld [vmem:[#allocation6 + $0x1c8] ss:$16 sps:$4 sm:$0xff]  }
 0x286   :  { %3464 = vmatprep.subr.bf16.mxu1 %v19172_v39  ;;  %v1912_v25 = vadd.f32 %v17597_v9, %v22134_v24  ;;  %3159 = vmatmul.mubr.bf16.gmra.mrb[68].mxu0 %v22197_v22  ;;  %v2020_v57 = vmax.f32 %v1908_v18, 0.0 }
 0x287   :  { %v1913_v44 = vadd.f32 %v17598_v15, %v22137_v20  ;;  %3282 = vmatpush1.bf16.msra.mxu0 %v19203_v41  ;;  %v2021_v38 = vmax.f32 %v1909_v62, 0.0  ;;  %v20930_v62 = vld [vmem:[%s24420_s22 + $0x78] sm:$0xff]  }
 0x288   :  { %v2024_v46 = vmax.f32 %v1912_v25, 0.0  ;;  %3283 = vmatprep.subr.bf16.mxu0 %v19211_v35  ;;  %v19182_v15 = vld [vmem:[#allocation6 + $0x1e8] ss:$16 sps:$4 sm:$0xff]  }
 0x289   :  { %3465 = vmatpush1.bf16.msra.mxu1 %v19170_v29  ;;  %v2025_v52 = vmax.f32 %v1913_v44, 0.0  ;;  %v1481_v45 = vpop.f32.mrb[20].mxu0 }
 0x28a   :  { %3466 = vmatprep.subr.bf16.mxu1 %v19175_v42  ;;  %v22214_v21 = vpack.c.bf16 %v2024_v46, %v2020_v57  ;;  %v17599_v32 = vadd.f32 %v1481_v45, %v21985_v47  ;;  %v1483_v12 = vpop.f32.mrb[21].mxu0  ;;  %v19218_v57 = vld [vmem:[#allocation6 + $0x300] ss:$16 sps:$4 sm:$0xff]  }
 0x28b   :  { %16074 = vmatmul.mubr.msk.bf16.gmra.mrb[76].mxu1 %vm508_vm1, %v22044_v4  ;;  %v22219_v39 = vpack.c.bf16 %v2025_v52, %v2021_v38  ;;  %v17600_v23 = vadd.f32 %v1483_v12, %v21987_v48  ;;  %v1485_v11 = vpop.f32.mrb[22].mxu0  ;;  %3284 = vmatpush1.bf16.msra.mxu0 %v19209_v43  ;;  %v19220_v43 = vld [vmem:[#allocation6 + $0x304] ss:$16 sps:$4 sm:$0xff]  }
 0x28c   :  { %1672 = vmatprep.mubr.bf16.mxu1 %v24442_v14  ;;  %v1916_v33 = vadd.f32 %v17599_v32, %v22134_v24  ;;  %v17601_v28 = vadd.f32 %v1485_v11, %v21989_v49  ;;  %v1487_v27 = vpop.f32.mrb[23].mxu0  ;;  %v19184_v49 = vld [vmem:[#allocation6 + $0x1ec] ss:$16 sps:$4 sm:$0xff]   ;;  %3285 = vmatprep.subr.bf16.mxu0 %v19220_v43 }
 0x28d   :  { %3467 = vmatpush1.bf16.msra.mxu1 %v19173_v37  ;;  %v1917_v47 = vadd.f32 %v17600_v23, %v22137_v20  ;;  %v17602_v4 = vadd.f32 %v1487_v27, %v21991_v50  ;;  %3168 = vmatprep.mubr.bf16.mxu0 %v22219_v39  ;;  %v20932_v43 = vld [vmem:[%s24420_s22 + $0x98] sm:$0xff]  }
 0x28e   :  { %3468 = vmatprep.subr.bf16.mxu1 %v19178_v31  ;;  %v1920_v48 = vadd.f32 %v17601_v28, %v22134_v24  ;;  %3169 = vmatmul.mubr.bf16.gmra.mrb[72].mxu0 %v22214_v21  ;;  %v2028_v29 = vmax.f32 %v1916_v33, 0.0  ;;  %v19208_v31 = vld [vmem:[#allocation6 + $0x20c] ss:$16 sps:$4 sm:$0xff]  }
 0x28f   :  { %v1921_v16 = vadd.f32 %v17602_v4, %v22137_v20  ;;  %v2029_v18 = vmax.f32 %v1917_v47, 0.0  ;;  %3286 = vmatpush1.bf16.msra.mxu0 %v19218_v57  ;;  %v20931_v28 = vld [vmem:[%s24420_s22 + $0x88] sm:$0xff]   ;;  %v19236_v57 = vld [vmem:[#allocation6 + $0x340] ss:$16 sps:$4 sm:$0xff]  }
 0x290   :  { %v2032_v41 = vmax.f32 %v1920_v48, 0.0  ;;  %v19227_v48 = vld [vmem:[#allocation6 + $0x320] ss:$16 sps:$4 sm:$0xff]  }
 0x291   :  { %3469 = vmatpush1.bf16.msra.mxu1 %v19176_v36  ;;  %v2033_v9 = vmax.f32 %v1921_v16, 0.0  ;;  %v1491_v17 = vpop.f32.mrb[24].mxu0 }
 0x292   :  { %3470 = vmatprep.subr.bf16.mxu1 %v19181_v40  ;;  %v22231_v42 = vpack.c.bf16 %v2032_v41, %v2028_v29  ;;  %v17603_v50 = vadd.f32 %v1491_v17, %v22001_v53  ;;  %v1493_v35 = vpop.f32.mrb[25].mxu0 }
 0x293   :  { %16075 = vmatmul.mubr.msk.bf16.gmra.mrb[80].mxu1 %vm508_vm1, %v20930_v62  ;;  %v22238_v25 = vpack.c.bf16 %v2033_v9, %v2029_v18  ;;  %v17604_v37 = vadd.f32 %v1493_v35, %v22003_v54  ;;  %v1495_v44 = vpop.f32.mrb[26].mxu0 }
 0x294   :  { %1682 = vmatprep.mubr.bf16.mxu1 %v24442_v14  ;;  %v1924_v53 = vadd.f32 %v17603_v50, %v22134_v24  ;;  %v17605_v46 = vadd.f32 %v1495_v44, %v22005_v55  ;;  %v1497_v38 = vpop.f32.mrb[27].mxu0 }
 0x295   :  { %3471 = vmatpush1.bf16.msra.mxu1 %v19179_v51  ;;  %v1925_v52 = vadd.f32 %v17604_v37, %v22137_v20  ;;  %v17606_v45 = vadd.f32 %v1497_v38, %v22007_v56  ;;  %3178 = vmatprep.mubr.bf16.mxu0 %v22238_v25  ;;  %v19229_v51 = vld [vmem:[#allocation6 + $0x324] ss:$16 sps:$4 sm:$0xff]  }
 0x296   :  { %3472 = vmatprep.subr.bf16.mxu1 %v19184_v49  ;;  %v1928_v54 = vadd.f32 %v17605_v46, %v22134_v24  ;;  %3179 = vmatmul.mubr.bf16.gmra.mrb[76].mxu0 %v22231_v42  ;;  %v2036_v12 = vmax.f32 %v1924_v53, 0.0  ;;  %v19238_v53 = vld [vmem:[#allocation6 + $0x344] ss:$16 sps:$4 sm:$0xff]  }
 0x297   :  { %v1929_v32 = vadd.f32 %v17606_v45, %v22137_v20  ;;  %v2037_v55 = vmax.f32 %v1925_v52, 0.0  ;;  %3287 = vmatprep.subr.bf16.mxu0 %v19229_v51 }
 0x298   :  { %v2040_v23 = vmax.f32 %v1928_v54, 0.0  ;;  %3288 = vmatpush1.bf16.msra.mxu0 %v19227_v48 }
 0x299   :  { %3473 = vmatpush1.bf16.msra.mxu1 %v19182_v15  ;;  %v2041_v11 = vmax.f32 %v1929_v32, 0.0  ;;  %v1501_v36 = vpop.f32.mrb[28].mxu0  ;;  %3289 = vmatprep.subr.bf16.mxu0 %v19238_v53 }
 0x29a   :  { %3615 = vmatprep.subr.bf16.mxu1 %v19208_v31  ;;  %v22250_v40 = vpack.c.bf16 %v2040_v23, %v2036_v12  ;;  %v17607_v56 = vadd.f32 %v1501_v36, %v22017_v58  ;;  %v1503_v33 = vpop.f32.mrb[29].mxu0 }
 0x29b   :  { %16076 = vmatmul.mubr.msk.bf16.gmra.mrb[84].mxu1 %vm508_vm1, %v20931_v28  ;;  %v22257_v27 = vpack.c.bf16 %v2041_v11, %v2037_v55  ;;  %v17608_v47 = vadd.f32 %v1503_v33, %v22019_v59  ;;  %v1505_v4 = vpop.f32.mrb[30].mxu0 }
 0x29c   :  { %1692 = vmatprep.mubr.bf16.mxu1 %v24442_v14  ;;  %v1932_v16 = vadd.f32 %v17607_v56, %v22134_v24  ;;  %v17609_v58 = vadd.f32 %v1505_v4, %v22021_v60  ;;  %v1507_v29 = vpop.f32.mrb[31].mxu0  ;;  %3290 = vmatpush1.bf16.msra.mxu0 %v19236_v57  ;;  %v20933_v56 = vld [vmem:[%s24420_s22 + $0xa8] sm:$0xff]  }
 0x29d   :  { %v1933_v41 = vadd.f32 %v17608_v47, %v22137_v20  ;;  %v17610_v49 = vadd.f32 %v1507_v29, %v22023_v61  ;;  %3188 = vmatprep.mubr.bf16.mxu0 %v22257_v27 }
 0x29e   :  { %v1936_v18 = vadd.f32 %v17609_v58, %v22134_v24  ;;  %3189 = vmatmul.mubr.bf16.gmra.mrb[80].mxu0 %v22250_v40  ;;  %v2044_v9 = vmax.f32 %v1932_v16, 0.0 }
 0x29f   :  { %v1937_v59 = vadd.f32 %v17610_v49, %v22137_v20  ;;  %v2045_v50 = vmax.f32 %v1933_v41, 0.0 }
 0x2a0   :  { %v2048_v17 = vmax.f32 %v1936_v18, 0.0 }
 0x2a1   :  { %v2049_v35 = vmax.f32 %v1937_v59, 0.0  ;;  %v1511_v60 = vpop.f32.mrb[32].mxu0 }
 0x2a2   :  { %v22269_v62 = vpack.c.bf16 %v2048_v17, %v2044_v9  ;;  %v17611_v15 = vadd.f32 %v1511_v60, %v22033_v63  ;;  %v1513_v61 = vpop.f32.mrb[33].mxu0  ;;  %v24443_v60 = vld [vmem:[#allocation29_spill] sm:$0xff] }
 0x2a3   :  { %16077 = vmatmul.mubr.msk.bf16.gmra.mrb[88].mxu1 %vm508_vm1, %v20932_v43  ;;  %v22276_v37 = vpack.c.bf16 %v2049_v35, %v2045_v50  ;;  %v17612_v44 = vadd.f32 %v1513_v61, %v22035_v1  ;;  %v1515_v31 = vpop.f32.mrb[34].mxu0  ;;  %v19250_v50 = vld [vmem:[#allocation6 + $0x364] ss:$16 sps:$4 sm:$0xff]   ;;  %v19248_v43 = vld [vmem:[#allocation6 + $0x360] ss:$16 sps:$4 sm:$0xff]  }
 0x2a4   :  { %1702 = vmatprep.mubr.bf16.mxu1 %v24442_v14  ;;  %v1940_v46 = vadd.f32 %v17611_v15, %v22134_v24  ;;  %v17613_v63 = vadd.f32 %v1515_v31, %v22037_v2  ;;  %v1517_v38 = vpop.f32.mrb[35].mxu0  ;;  %v24444_v31 = vld [vmem:[#allocation30_spill] sm:$0xff]  ;;  %3291 = vmatprep.subr.bf16.mxu0 %v19250_v50 }
 0x2a5   :  { %v1941_v52 = vadd.f32 %v17612_v44, %v22137_v20  ;;  %v17614_v45 = vadd.f32 %v1517_v38, %v22039_v3  ;;  %3198 = vmatprep.mubr.bf16.mxu0 %v22276_v37  ;;  %3292 = vmatpush1.bf16.msra.mxu0 %v19248_v43 }
 0x2a6   :  { %v1944_v54 = vadd.f32 %v17613_v63, %v22134_v24  ;;  %3199 = vmatmul.mubr.bf16.gmra.mrb[84].mxu0 %v22269_v62  ;;  %v2052_v32 = vmax.f32 %v1940_v46, 0.0  ;;  %v24445_v46 = vld [vmem:[#allocation31_spill] sm:$0xff] }
 0x2a7   :  { %v1945_v1 = vadd.f32 %v17614_v45, %v22137_v20  ;;  %v2053_v23 = vmax.f32 %v1941_v52, 0.0 }
 0x2a8   :  { %v2056_v12 = vmax.f32 %v1944_v54, 0.0 }
 0x2a9   :  { %v2057_v55 = vmax.f32 %v1945_v1, 0.0  ;;  %v1521_v2 = vpop.f32.mrb[36].mxu0 }
 0x2aa   :  { %v22288_v11 = vpack.c.bf16 %v2056_v12, %v2052_v32  ;;  %v17615_v36 = vadd.f32 %v1521_v2, %v22049_v5  ;;  %v1523_v3 = vpop.f32.mrb[37].mxu0 }
 0x2ab   :  { %16078 = vmatmul.mubr.msk.bf16.gmra.mrb[92].mxu1 %vm508_vm1, %v20933_v56  ;;  %v22295_v33 = vpack.c.bf16 %v2057_v55, %v2053_v23  ;;  %v17616_v28 = vadd.f32 %v1523_v3, %v22051_v6  ;;  %v1525_v47 = vpop.f32.mrb[38].mxu0  ;;  %v24446_v55 = vld [vmem:[#allocation32_spill] sm:$0xff]  ;;  %v20935_v3 = vld [vmem:[%s24420_s22 + $0xc8] sm:$0xff]  }
 0x2ac   :  { %1712 = vmatprep.mubr.bf16.mxu1 %v24442_v14  ;;  %v1948_v4 = vadd.f32 %v17615_v36, %v22134_v24  ;;  %v17617_v48 = vadd.f32 %v1525_v47, %v22053_v7  ;;  %v1527_v51 = vpop.f32.mrb[39].mxu0 }
 0x2ad   :  { %v1949_v5 = vadd.f32 %v17616_v28, %v22137_v20  ;;  %v17618_v16 = vadd.f32 %v1527_v51, %v22055_v8  ;;  %3208 = vmatprep.mubr.bf16.mxu0 %v22295_v33  ;;  %v20934_v8 = vld [vmem:[%s24420_s22 + $0xb8] sm:$0xff]   ;;  %v24447_v28 = vld [vmem:[#allocation33_spill] sm:$0xff]  ;;  %v24448_v51 = vld [vmem:[#allocation34_spill] sm:$0xff] }
 0x2ae   :  { %v1952_v58 = vadd.f32 %v17617_v48, %v22134_v24  ;;  %3209 = vmatmul.mubr.bf16.gmra.mrb[88].mxu0 %v22288_v11  ;;  %v2060_v29 = vmax.f32 %v1948_v4, 0.0 }
 0x2af   :  { %v1953_v6 = vadd.f32 %v17618_v16, %v22137_v20  ;;  %v2061_v49 = vmax.f32 %v1949_v5, 0.0 }
 0x2b0   :  { %v2064_v41 = vmax.f32 %v1952_v58, 0.0 }
 0x2b1   :  { %v2065_v18 = vmax.f32 %v1953_v6, 0.0  ;;  %v1531_v59 = vpop.f32.mrb[40].mxu0  ;;  %v24449_v6 = vld [vmem:[#allocation35_spill] sm:$0xff] }
 0x2b2   :  { %v22307_v9 = vpack.c.bf16 %v2064_v41, %v2060_v29  ;;  %v17619_v7 = vadd.f32 %v1531_v59, %v22062_v10  ;;  %v1533_v17 = vpop.f32.mrb[41].mxu0  ;;  %v19259_v41 = vld [vmem:[%s24450_s2 + $0x4] ss:$16 sps:$4 sm:$0xff]  }
 0x2b3   :  { %16079 = vmatmul.mubr.msk.bf16.gmra.mrb[96].mxu1 %vm508_vm1, %v20934_v8  ;;  %v22314_v35 = vpack.c.bf16 %v2065_v18, %v2061_v49  ;;  %v17620_v15 = vadd.f32 %v1533_v17, %v24443_v60  ;;  %v1535_v61 = vpop.f32.mrb[42].mxu0  ;;  %4350 = vmatprep.subr.bf16.mxu0 %v19259_v41 }
 0x2b4   :  { %1722 = vmatprep.mubr.bf16.mxu1 %v24442_v14  ;;  %v1956_v44 = vadd.f32 %v17619_v7, %v22134_v24  ;;  %v17621_v10 = vadd.f32 %v1535_v61, %v24444_v31  ;;  %v1537_v57 = vpop.f32.mrb[43].mxu0 }
 0x2b5   :  { %v1957_v53 = vadd.f32 %v17620_v15, %v22137_v20  ;;  %v17622_v63 = vadd.f32 %v1537_v57, %v24445_v46  ;;  %3218 = vmatprep.mubr.bf16.mxu0 %v22314_v35  ;;  %v24451_v15 = vld [vmem:[#allocation36_spill] sm:$0xff] }
 0x2b6   :  { %v1960_v38 = vadd.f32 %v17621_v10, %v22134_v24  ;;  %3219 = vmatmul.mubr.bf16.gmra.mrb[92].mxu0 %v22307_v9  ;;  %v2068_v45 = vmax.f32 %v1956_v44, 0.0  ;;  %v20936_v44 = vld [vmem:[%s24420_s22 + $0xd8] sm:$0xff]   ;;  %v24452_v10 = vld [vmem:[#allocation37_spill] sm:$0xff] }
 0x2b7   :  { %v1961_v52 = vadd.f32 %v17622_v63, %v22137_v20  ;;  %v2069_v1 = vmax.f32 %v1957_v53, 0.0  ;;  %v24453_v63 = vld [vmem:[#allocation38_spill] sm:$0xff] }
 0x2b8   :  { %v2072_v54 = vmax.f32 %v1960_v38, 0.0 }
 0x2b9   :  { %v2073_v32 = vmax.f32 %v1961_v52, 0.0  ;;  %v1541_v12 = vpop.f32.mrb[44].mxu0 }
 0x2ba   :  { %v22326_v23 = vpack.c.bf16 %v2072_v54, %v2068_v45  ;;  %v17623_v2 = vadd.f32 %v1541_v12, %v24446_v55  ;;  %v1543_v36 = vpop.f32.mrb[45].mxu0  ;;  %v24454_v54 = vld [vmem:[#allocation39_spill] sm:$0xff]  ;;  %v19214_v55 = vld [vmem:[#allocation6 + $0x22c] ss:$16 sps:$4 sm:$0xff]  }
 0x2bb   :  { %16080 = vmatmul.mubr.msk.bf16.gmra.mrb[100].mxu1 %vm508_vm1, %v20935_v3  ;;  %v22333_v56 = vpack.c.bf16 %v2073_v32, %v2069_v1  ;;  %v17624_v47 = vadd.f32 %v1543_v36, %v24447_v28  ;;  %v1545_v4 = vpop.f32.mrb[46].mxu0  ;;  %v19206_v32 = vld [vmem:[#allocation6 + $0x208] ss:$16 sps:$4 sm:$0xff]  }
 0x2bc   :  { %1732 = vmatprep.mubr.bf16.mxu1 %v24442_v14  ;;  %v1964_v48 = vadd.f32 %v17623_v2, %v22134_v24  ;;  %v17625_v5 = vadd.f32 %v1545_v4, %v24448_v51  ;;  %v1547_v16 = vpop.f32.mrb[47].mxu0 }
 0x2bd   :  { %v1965_v58 = vadd.f32 %v17624_v47, %v22137_v20  ;;  %v17626_v29 = vadd.f32 %v1547_v16, %v24449_v6  ;;  %3228 = vmatprep.mubr.bf16.mxu0 %v22333_v56  ;;  %v24456_v6 = vld [vmem:[#allocation47_spill] sm:$0xff] }
 0x2be   :  { %v1968_v49 = vadd.f32 %v17625_v5, %v22134_v24  ;;  %3229 = vmatmul.mubr.bf16.gmra.mrb[96].mxu0 %v22326_v23  ;;  %v2076_v59 = vmax.f32 %v1964_v48, 0.0  ;;  %v19212_v48 = vld [vmem:[#allocation6 + $0x228] ss:$16 sps:$4 sm:$0xff]  }
 0x2bf   :  { %v1969_v18 = vadd.f32 %v17626_v29, %v22137_v20  ;;  %v2077_v17 = vmax.f32 %v1965_v58, 0.0  ;;  %v24455_v5 = vld [vmem:[#allocation40_spill] sm:$0xff] }
 0x2c0   :  { %v2080_v7 = vmax.f32 %v1968_v49, 0.0  ;;  %v19217_v29 = vld [vmem:[#allocation6 + $0x24c] ss:$16 sps:$4 sm:$0xff]   ;;  %v24457_v49 = vld [vmem:[#allocation41_spill] sm:$0xff] }
 0x2c1   :  { %v2081_v8 = vmax.f32 %v1969_v18, 0.0  ;;  %v1551_v50 = vpop.f32.mrb[48].mxu0 }
 0x2c2   :  { %v22348_v60 = vpack.c.bf16 %v2080_v7, %v2076_v59  ;;  %v17627_v61 = vadd.f32 %v1551_v50, %v24451_v15  ;;  %v1553_v43 = vpop.f32.mrb[49].mxu0 }
 0x2c3   :  { %16081 = vmatmul.mubr.msk.bf16.gmra.mrb[104].mxu1 %vm508_vm1, %v20936_v44  ;;  %v22355_v31 = vpack.c.bf16 %v2081_v8, %v2077_v17  ;;  %v17628_v57 = vadd.f32 %v1553_v43, %v24452_v10  ;;  %v1555_v53 = vpop.f32.mrb[50].mxu0  ;;  %v24458_v17 = vld [vmem:[#allocation42_spill] sm:$0xff] }
 0x2c4   :  { %3474 = vmatprep.mubr.bf16.mxu1 %v22148_v0  ;;  %v1972_v46 = vadd.f32 %v17627_v61, %v22134_v24  ;;  %v17629_v38 = vadd.f32 %v1555_v53, %v24453_v63  ;;  %v1557_v52 = vpop.f32.mrb[51].mxu0  ;;  %v24459_v61 = vld [vmem:[#allocation43_spill] sm:$0xff]  ;;  %v19215_v44 = vld [vmem:[#allocation6 + $0x248] ss:$16 sps:$4 sm:$0xff]   ;;  %v19223_v63 = vld [vmem:[#allocation6 + $0x26c] ss:$16 sps:$4 sm:$0xff]  }
 0x2c5   :  { %v1973_v45 = vadd.f32 %v17628_v57, %v22137_v20  ;;  %v17630_v1 = vadd.f32 %v1557_v52, %v24454_v54  ;;  %3238 = vmatprep.mubr.bf16.mxu0 %v22355_v31 }
 0x2c6   :  { %v1976_v12 = vadd.f32 %v17629_v38, %v22134_v24  ;;  %3239 = vmatmul.mubr.bf16.gmra.mrb[100].mxu0 %v22348_v60  ;;  %v2084_v36 = vmax.f32 %v1972_v46, 0.0 }
 0x2c7   :  { %v1977_v2 = vadd.f32 %v17630_v1, %v22137_v20  ;;  %v2085_v28 = vmax.f32 %v1973_v45, 0.0  ;;  %v19221_v45 = vld [vmem:[#allocation6 + $0x268] ss:$16 sps:$4 sm:$0xff]   ;;  %v19226_v1 = vld [vmem:[#allocation6 + $0x28c] ss:$16 sps:$4 sm:$0xff]  }
 0x2c8   :  { %v2088_v3 = vmax.f32 %v1976_v12, 0.0  ;;  %v19230_v12 = vld [vmem:[#allocation6 + $0x2a8] ss:$16 sps:$4 sm:$0xff]  }
 0x2c9   :  { %v2089_v47 = vmax.f32 %v1977_v2, 0.0  ;;  %v1561_v4 = vpop.f32.mrb[52].mxu0  ;;  %v19233_v2 = vld [vmem:[#allocation6 + $0x2c8] ss:$16 sps:$4 sm:$0xff]  }
 0x2ca   :  { %v22367_v51 = vpack.c.bf16 %v2088_v3, %v2084_v36  ;;  %v17631_v16 = vadd.f32 %v1561_v4, %v24455_v5  ;;  %v1563_v58 = vpop.f32.mrb[53].mxu0  ;;  %v19241_v36 = vld [vmem:[#allocation6 + $0x2ec] ss:$16 sps:$4 sm:$0xff]   ;;  %v19239_v3 = vld [vmem:[#allocation6 + $0x2e8] ss:$16 sps:$4 sm:$0xff]  }
 0x2cb   :  { %3475 = vmatmul.mubr.bf16.vlgmr.msra.gmra.mrb[108].mxu1 %v24456_v6  ;;  %v22371_v41 = vpack.c.bf16 %v2089_v47, %v2085_v28  ;;  %v17632_v18 = vadd.f32 %v1563_v58, %v24457_v49  ;;  %v1565_v59 = vpop.f32.mrb[54].mxu0  ;;  %v19244_v28 = vld [vmem:[#allocation6 + $0x30c] ss:$16 sps:$4 sm:$0xff]   ;;  %v19242_v47 = vld [vmem:[#allocation6 + $0x308] ss:$16 sps:$4 sm:$0xff]  }
 0x2cc   :  { %3484 = vmatprep.mubr.bf16.mxu1 %v22168_v26  ;;  %3616 = vmatpush1.bf16.msra.mxu1 %v19206_v32  ;;  %v1980_v7 = vadd.f32 %v17631_v16, %v22134_v24  ;;  %v17633_v8 = vadd.f32 %v1565_v59, %v24458_v17  ;;  %v1567_v50 = vpop.f32.mrb[55].mxu0  ;;  %v19247_v4 = vld [vmem:[#allocation6 + $0x32c] ss:$16 sps:$4 sm:$0xff]   ;;  %v19251_v16 = vld [vmem:[#allocation6 + $0x348] ss:$16 sps:$4 sm:$0xff]  }
 0x2cd   :  { %3617 = vmatprep.subr.bf16.mxu1 %v19214_v55  ;;  %v1981_v15 = vadd.f32 %v17632_v18, %v22137_v20  ;;  %v17634_v43 = vadd.f32 %v1567_v50, %v24459_v61  ;;  %3248 = vmatprep.mubr.bf16.mxu0 %v22371_v41  ;;  %v19235_v55 = vld [vmem:[#allocation6 + $0x2cc] ss:$16 sps:$4 sm:$0xff]   ;;  %v20937_v17 = vld [vmem:[%s24438_s27] sm:$0xf] }
 0x2ce   :  { %v1984_v10 = vadd.f32 %v17633_v8, %v22134_v24  ;;  %3249 = vmatmul.mubr.bf16.gmra.mrb[104].mxu0 %v22367_v51  ;;  %v2092_v53 = vmax.f32 %v1980_v7, 0.0  ;;  %v19232_v24 = vld [vmem:[#allocation6 + $0x2ac] ss:$16 sps:$4 sm:$0xff]  }
 0x2cf   :  { %v1985_v57 = vadd.f32 %v17634_v43, %v22137_v20  ;;  %v2093_v38 = vmax.f32 %v1981_v15, 0.0  ;;  %v19224_v20 = vld [vmem:[#allocation6 + $0x288] ss:$16 sps:$4 sm:$0xff]   ;;  %v19253_v5 = vld [vmem:[#allocation6 + $0x34c] ss:$16 sps:$4 sm:$0xff]  }
 0x2d0   :  { %3618 = vmatpush1.bf16.msra.mxu1 %v19212_v48  ;;  %v2096_v46 = vmax.f32 %v1984_v10, 0.0  ;;  %v19245_v48 = vld [vmem:[#allocation6 + $0x328] ss:$16 sps:$4 sm:$0xff]   ;;  %v19256_v58 = vld [vmem:[#allocation6 + $0x36c] ss:$16 sps:$4 sm:$0xff]  }
 0x2d1   :  { %3619 = vmatprep.subr.bf16.mxu1 %v19217_v29  ;;  %v2097_v52 = vmax.f32 %v1985_v57, 0.0  ;;  %v19254_v29 = vld [vmem:[#allocation6 + $0x368] ss:$16 sps:$4 sm:$0xff]   ;;  %v19283_v49 = vld [vmem:[%s24450_s2 + $0xc] ss:$16 sps:$4 sm:$0xff]  }
 0x2d2   :  { %v22383_v54 = vpack.c.bf16 %v2096_v46, %v2092_v53  ;;  %v24462_v18 = vld [vmem:[#allocation44_spill] sm:$0xff] }
 0x2d3   :  { %3485 = vmatmul.mubr.bf16.gmra.mrb[112].mxu1 %v22163_v19  ;;  %v22386_v32 = vpack.c.bf16 %v2097_v52, %v2093_v38  ;;  %v22415_v59 = vsub.s32 2, %v24462_v18  ;;  %v22418_v7 = vsub.s32 3, %v24462_v18  ;;  %v19265_v18 = vld [vmem:[%s24450_s2 + $0x44] ss:$16 sps:$4 sm:$0xff]  }
 0x2d4   :  { %24460 = vst [vmem:[#allocation29_spill] sm:$0xff] %v22383_v54  ;;  %3494 = vmatprep.mubr.bf16.mxu1 %v22185_v13  ;;  %3620 = vmatpush1.bf16.msra.mxu1 %v19215_v44 }
 0x2d5   :  { %24461 = vst [vmem:[#allocation30_spill] sm:$0xff] %v22386_v32  ;;  %3621 = vmatprep.subr.bf16.mxu1 %v19223_v63  ;;  %3258 = vmatprep.mubr.bf16.mxu0 %v22386_v32  ;;  %24463 = vst [vmem:[#allocation31_spill] sm:$0xff] %v22415_v59  ;;  %v22425_v8 = vrot.slane %v20937_v17, %v22415_v59  ;;  %v22429_v50 = vrot.slane %v20937_v17, %v22418_v7 }
 0x2d6   :  { %3259 = vmatmul.mubr.bf16.gmra.mrb[108].mxu0 %v22383_v54  ;;  %24464 = vst [vmem:[#allocation32_spill] sm:$0xff] %v22418_v7 }
 0x2d8   :  { %3622 = vmatpush1.bf16.msra.mxu1 %v19221_v45 }
 0x2d9   :  { %3623 = vmatprep.subr.bf16.mxu1 %v19226_v1 }
 0x2db   :  { %3495 = vmatmul.mubr.bf16.gmra.mrb[116].mxu1 %v22180_v30 }
 0x2dc   :  { %3504 = vmatprep.mubr.bf16.mxu1 %v22202_v34  ;;  %3624 = vmatpush1.bf16.msra.mxu1 %v19224_v20 }
 0x2dd   :  { %3625 = vmatprep.subr.bf16.mxu1 %v19232_v24 }
 0x2e0   :  { %3626 = vmatpush1.bf16.msra.mxu1 %v19230_v12  ;;  %v19257_v12 = vld [vmem:[%s24450_s2] ss:$16 sps:$4 sm:$0xff]  }
 0x2e1   :  { %3627 = vmatprep.subr.bf16.mxu1 %v19235_v55 }
 0x2e3   :  { %3505 = vmatmul.mubr.bf16.gmra.mrb[120].mxu1 %v22197_v22 }
 0x2e4   :  { %3514 = vmatprep.mubr.bf16.mxu1 %v22219_v39  ;;  %3628 = vmatpush1.bf16.msra.mxu1 %v19233_v2 }
 0x2e5   :  { %3629 = vmatprep.subr.bf16.mxu1 %v19241_v36  ;;  %v19262_v36 = vld [vmem:[%s24450_s2 + $0x24] ss:$16 sps:$4 sm:$0xff]  }
 0x2e8   :  { %3630 = vmatpush1.bf16.msra.mxu1 %v19239_v3 }
 0x2e9   :  { %3631 = vmatprep.subr.bf16.mxu1 %v19244_v28 }
 0x2eb   :  { %3515 = vmatmul.mubr.bf16.gmra.mrb[124].mxu1 %v22214_v21 }
 0x2ec   :  { %3524 = vmatprep.mubr.bf16.mxu1 %v22238_v25  ;;  %3632 = vmatpush1.bf16.msra.mxu1 %v19242_v47  ;;  %v19281_v47 = vld [vmem:[%s24450_s2 + $0x8] ss:$16 sps:$4 sm:$0xff]  }
 0x2ed   :  { %3633 = vmatprep.subr.bf16.mxu1 %v19247_v4 }
 0x2f0   :  { %3634 = vmatpush1.bf16.msra.mxu1 %v19245_v48 }
 0x2f1   :  { %3635 = vmatprep.subr.bf16.mxu1 %v19253_v5  ;;  %v19286_v5 = vld [vmem:[%s24450_s2 + $0x2c] ss:$16 sps:$4 sm:$0xff]  }
 0x2f3   :  { %3525 = vmatmul.mubr.bf16.gmra.mrb[128].mxu1 %v22231_v42 }
 0x2f4   :  { %3534 = vmatprep.mubr.bf16.mxu1 %v22257_v27  ;;  %3636 = vmatpush1.bf16.msra.mxu1 %v19251_v16 }
 0x2f5   :  { %3637 = vmatprep.subr.bf16.mxu1 %v19256_v58  ;;  %v19260_v58 = vld [vmem:[%s24450_s2 + $0x20] ss:$16 sps:$4 sm:$0xff]  }
 0x2f8   :  { %3638 = vmatpush1.bf16.msra.mxu1 %v19254_v29 }
 0x2f9   :  { %4696 = vmatprep.subr.bf16.mxu1 %v19283_v49 }
 0x2fb   :  { %3535 = vmatmul.mubr.bf16.gmra.mrb[132].mxu1 %v22250_v40 }
 0x2fc   :  { %3544 = vmatprep.mubr.bf16.mxu1 %v22276_v37 }
 0x303   :  { %3545 = vmatmul.mubr.bf16.gmra.mrb[136].mxu1 %v22269_v62 }
 0x304   :  { %3554 = vmatprep.mubr.bf16.mxu1 %v22295_v33 }
 0x30b   :  { %3555 = vmatmul.mubr.bf16.gmra.mrb[140].mxu1 %v22288_v11 }
 0x30c   :  { %3564 = vmatprep.mubr.bf16.mxu1 %v22314_v35 }
 0x313   :  { %3565 = vmatmul.mubr.bf16.gmra.mrb[144].mxu1 %v22307_v9 }
 0x314   :  { %3574 = vmatprep.mubr.bf16.mxu1 %v22333_v56 }
 0x31b   :  { %3575 = vmatmul.mubr.bf16.gmra.mrb[148].mxu1 %v22326_v23 }
 0x31c   :  { %3584 = vmatprep.mubr.bf16.mxu1 %v22355_v31 }
 0x323   :  { %3585 = vmatmul.mubr.bf16.gmra.mrb[152].mxu1 %v22348_v60 }
 0x324   :  { %3594 = vmatprep.mubr.bf16.mxu1 %v22371_v41 }
 0x32b   :  { %3595 = vmatmul.mubr.bf16.gmra.mrb[156].mxu1 %v22367_v51 }
 0x32c   :  { %3604 = vmatprep.mubr.bf16.mxu1 %v22386_v32 }
 0x32e   :  { %v1604_v15 = vpop.f32.mrb[52].mxu1 }
 0x32f   :  { %v1878_v61 = vadd.f32 %v22425_v8, %v1604_v15  ;;  %v1606_v43 = vpop.f32.mrb[53].mxu1 }
 0x330   :  { %v1879_v44 = vadd.f32 %v22429_v50, %v1606_v43  ;;  %v1608_v10 = vpop.f32.mrb[54].mxu1  ;;  %v19284_v43 = vld [vmem:[%s24450_s2 + $0x28] ss:$16 sps:$4 sm:$0xff]  }
 0x331   :  { %v1882_v57 = vadd.f32 %v22425_v8, %v1608_v10  ;;  %v1610_v53 = vpop.f32.mrb[55].mxu1  ;;  %v1990_v63 = vmax.f32 %v1878_v61, 0.0 }
 0x332   :  { %v1883_v46 = vadd.f32 %v22429_v50, %v1610_v53  ;;  %v1991_v52 = vmax.f32 %v1879_v44, 0.0  ;;  %v19292_v53 = vld [vmem:[%s24450_s2 + $0x4c] ss:$16 sps:$4 sm:$0xff]  }
 0x333   :  { %v1994_v38 = vmax.f32 %v1882_v57, 0.0  ;;  %3605 = vmatmul.mubr.bf16.gmra.mrb[160].mxu1 %v22383_v54  ;;  %v19263_v57 = vld [vmem:[%s24450_s2 + $0x40] ss:$16 sps:$4 sm:$0xff]  }
 0x334   :  { %v1995_v45 = vmax.f32 %v1883_v46, 0.0 }
 0x335   :  { %v22436_v1 = vpack.c.bf16 %v1994_v38, %v1990_v63  ;;  %v19268_v38 = vld [vmem:[%s24450_s2 + $0x64] ss:$16 sps:$4 sm:$0xff]  }
 0x336   :  { %v22438_v20 = vpack.c.bf16 %v1995_v45, %v1991_v52  ;;  %v1614_v24 = vpop.f32.mrb[56].mxu1 }
 0x337   :  { %v1886_v55 = vadd.f32 %v22425_v8, %v1614_v24  ;;  %v1616_v2 = vpop.f32.mrb[57].mxu1 }
 0x338   :  { %v1887_v3 = vadd.f32 %v22429_v50, %v1616_v2  ;;  %v1618_v28 = vpop.f32.mrb[58].mxu1  ;;  %16194 = vmatprep.mubr.msk.bf16.mxu0 %vm3053_vm2, %v22438_v20  ;;  %16208 = vmatprep.mubr.msk.bf16.mxu1 %vm3053_vm2, %v22438_v20 }
 0x339   :  { %v1890_v4 = vadd.f32 %v22425_v8, %v1618_v28  ;;  %v1620_v48 = vpop.f32.mrb[59].mxu1  ;;  %3302 = vmatmul.mubr.bf16.vlgmr.msra.gmra.mrb[56].mxu0 %v22436_v1  ;;  %v1998_v29 = vmax.f32 %v1886_v55, 0.0  ;;  %v19290_v55 = vld [vmem:[%s24450_s2 + $0x48] ss:$16 sps:$4 sm:$0xff]  }
 0x33a   :  { %v1891_v16 = vadd.f32 %v22429_v50, %v1620_v48  ;;  %4351 = vmatpush1.bf16.msra.mxu0 %v19257_v12  ;;  %v1999_v17 = vmax.f32 %v1887_v3, 0.0  ;;  %v19295_v3 = vld [vmem:[%s24450_s2 + $0x6c] ss:$16 sps:$4 sm:$0xff]  }
 0x33b   :  { %v2002_v49 = vmax.f32 %v1890_v4, 0.0  ;;  %3648 = vmatmul.mubr.bf16.vlgmr.msra.gmra.mrb[108].mxu1 %v22436_v1  ;;  %4352 = vmatprep.subr.bf16.mxu0 %v19262_v36  ;;  %v19266_v36 = vld [vmem:[%s24450_s2 + $0x60] ss:$16 sps:$4 sm:$0xff]   ;;  %v19271_v4 = vld [vmem:[%s24450_s2 + $0x84] ss:$16 sps:$4 sm:$0xff]  }
 0x33c   :  { %v2003_v15 = vmax.f32 %v1891_v16, 0.0  ;;  %4697 = vmatpush1.bf16.msra.mxu1 %v19281_v47 }
 0x33d   :  { %v22468_v61 = vpack.c.bf16 %v2002_v49, %v1998_v29  ;;  %4698 = vmatprep.subr.bf16.mxu1 %v19286_v5 }
 0x33e   :  { %v22473_v44 = vpack.c.bf16 %v2003_v15, %v1999_v17  ;;  %v1624_v10 = vpop.f32.mrb[60].mxu1  ;;  %4353 = vmatpush1.bf16.msra.mxu0 %v19260_v58  ;;  %v19293_v58 = vld [vmem:[%s24450_s2 + $0x68] ss:$16 sps:$4 sm:$0xff]   ;;  %v19301_v17 = vld [vmem:[%s24450_s2 + $0x8c] ss:$16 sps:$4 sm:$0xff]  }
 0x33f   :  { %v1894_v46 = vadd.f32 %v22425_v8, %v1624_v10  ;;  %v1626_v63 = vpop.f32.mrb[61].mxu1  ;;  %4354 = vmatprep.subr.bf16.mxu0 %v19265_v18  ;;  %v19269_v18 = vld [vmem:[%s24450_s2 + $0x80] ss:$16 sps:$4 sm:$0xff]   ;;  %v19274_v10 = vld [vmem:[%s24450_s2 + $0xa4] ss:$16 sps:$4 sm:$0xff]  }
 0x340   :  { %v1895_v52 = vadd.f32 %v22429_v50, %v1626_v63  ;;  %v1628_v45 = vpop.f32.mrb[62].mxu1  ;;  %16195 = vmatprep.mubr.msk.bf16.mxu0 %vm3053_vm2, %v22473_v44  ;;  %16209 = vmatprep.mubr.msk.bf16.mxu1 %vm3053_vm2, %v22473_v44 }
 0x341   :  { %v1898_v24 = vadd.f32 %v22425_v8, %v1628_v45  ;;  %v1630_v12 = vpop.f32.mrb[63].mxu1  ;;  %3312 = vmatmul.mubr.bf16.gmra.mrb[60].mxu0 %v22468_v61  ;;  %4699 = vmatpush1.bf16.msra.mxu1 %v19284_v43  ;;  %v2006_v28 = vmax.f32 %v1894_v46, 0.0  ;;  %v19272_v45 = vld [vmem:[%s24450_s2 + $0xa0] ss:$16 sps:$4 sm:$0xff]  }
 0x342   :  { %v1899_v2 = vadd.f32 %v22429_v50, %v1630_v12  ;;  %4355 = vmatpush1.bf16.msra.mxu0 %v19263_v57  ;;  %4700 = vmatprep.subr.bf16.mxu1 %v19292_v53  ;;  %v2007_v48 = vmax.f32 %v1895_v52, 0.0 }
 0x343   :  { %v2010_v47 = vmax.f32 %v1898_v24, 0.0  ;;  %3658 = vmatmul.mubr.bf16.gmra.mrb[112].mxu1 %v22468_v61  ;;  %4356 = vmatprep.subr.bf16.mxu0 %v19268_v38  ;;  %v19299_v38 = vld [vmem:[%s24450_s2 + $0x88] ss:$16 sps:$4 sm:$0xff]   ;;  %v19307_v24 = vld [vmem:[%s24450_s2 + $0xac] ss:$16 sps:$4 sm:$0xff]  }
 0x344   :  { %v2011_v5 = vmax.f32 %v1899_v2, 0.0  ;;  %v19277_v2 = vld [vmem:[%s24450_s2 + $0xc4] ss:$16 sps:$4 sm:$0xff]  }
 0x345   :  { %v22506_v16 = vpack.c.bf16 %v2010_v47, %v2006_v28  ;;  %4701 = vmatpush1.bf16.msra.mxu1 %v19290_v55  ;;  %v19305_v47 = vld [vmem:[%s24450_s2 + $0xa8] ss:$16 sps:$4 sm:$0xff]  }
 0x346   :  { %v22511_v29 = vpack.c.bf16 %v2011_v5, %v2007_v48  ;;  %v1634_v49 = vpop.f32.mrb[64].mxu1  ;;  %4357 = vmatpush1.bf16.msra.mxu0 %v19266_v36  ;;  %4702 = vmatprep.subr.bf16.mxu1 %v19295_v3  ;;  %v19275_v5 = vld [vmem:[%s24450_s2 + $0xc0] ss:$16 sps:$4 sm:$0xff]  }
 0x347   :  { %v1902_v15 = vadd.f32 %v22425_v8, %v1634_v49  ;;  %v1636_v43 = vpop.f32.mrb[65].mxu1  ;;  %4358 = vmatprep.subr.bf16.mxu0 %v19271_v4 }
 0x348   :  { %v1903_v57 = vadd.f32 %v22429_v50, %v1636_v43  ;;  %v1638_v53 = vpop.f32.mrb[66].mxu1  ;;  %16196 = vmatprep.mubr.msk.bf16.mxu0 %vm3053_vm2, %v22511_v29  ;;  %16210 = vmatprep.mubr.msk.bf16.mxu1 %vm3053_vm2, %v22511_v29 }
 0x349   :  { %v1906_v46 = vadd.f32 %v22425_v8, %v1638_v53  ;;  %v1640_v63 = vpop.f32.mrb[67].mxu1  ;;  %3322 = vmatmul.mubr.bf16.gmra.mrb[64].mxu0 %v22506_v16  ;;  %4703 = vmatpush1.bf16.msra.mxu1 %v19293_v58  ;;  %v2014_v12 = vmax.f32 %v1902_v15, 0.0  ;;  %v19310_v58 = vld [vmem:[%s24450_s2 + $0xcc] ss:$16 sps:$4 sm:$0xff]   ;;  %v19308_v53 = vld [vmem:[%s24450_s2 + $0xc8] ss:$16 sps:$4 sm:$0xff]  }
 0x34a   :  { %v1907_v52 = vadd.f32 %v22429_v50, %v1640_v63  ;;  %4359 = vmatpush1.bf16.msra.mxu0 %v19269_v18  ;;  %4704 = vmatprep.subr.bf16.mxu1 %v19301_v17  ;;  %v2015_v36 = vmax.f32 %v1903_v57, 0.0  ;;  %v19280_v17 = vld [vmem:[%s24450_s2 + $0xe4] ss:$16 sps:$4 sm:$0xff]   ;;  %v19278_v63 = vld [vmem:[%s24450_s2 + $0xe0] ss:$16 sps:$4 sm:$0xff]  }
 0x34b   :  { %v2018_v55 = vmax.f32 %v1906_v46, 0.0  ;;  %3668 = vmatmul.mubr.bf16.gmra.mrb[116].mxu1 %v22506_v16  ;;  %4360 = vmatprep.subr.bf16.mxu0 %v19274_v10 }
 0x34c   :  { %v2019_v3 = vmax.f32 %v1907_v52, 0.0 }
 0x34d   :  { %v22544_v28 = vpack.c.bf16 %v2018_v55, %v2014_v12  ;;  %4705 = vmatpush1.bf16.msra.mxu1 %v19299_v38  ;;  %v19316_v38 = vld [vmem:[%s24450_s2 + $0xec] ss:$16 sps:$4 sm:$0xff]  }
 0x34e   :  { %v22549_v4 = vpack.c.bf16 %v2019_v3, %v2015_v36  ;;  %v1644_v48 = vpop.f32.mrb[68].mxu1  ;;  %4361 = vmatpush1.bf16.msra.mxu0 %v19272_v45  ;;  %4706 = vmatprep.subr.bf16.mxu1 %v19307_v24  ;;  %v19289_v24 = vld [vmem:[%s24450_s2 + $0x104] ss:$16 sps:$4 sm:$0xff]   ;;  %v19314_v36 = vld [vmem:[%s24450_s2 + $0xe8] ss:$16 sps:$4 sm:$0xff]  }
 0x34f   :  { %v1910_v49 = vadd.f32 %v22425_v8, %v1644_v48  ;;  %v1646_v18 = vpop.f32.mrb[69].mxu1  ;;  %4362 = vmatprep.subr.bf16.mxu0 %v19277_v2  ;;  %v19287_v48 = vld [vmem:[%s24450_s2 + $0x100] ss:$16 sps:$4 sm:$0xff]  }
 0x350   :  { %v1911_v15 = vadd.f32 %v22429_v50, %v1646_v18  ;;  %v1648_v43 = vpop.f32.mrb[70].mxu1  ;;  %16197 = vmatprep.mubr.msk.bf16.mxu0 %vm3053_vm2, %v22549_v4  ;;  %16211 = vmatprep.mubr.msk.bf16.mxu1 %vm3053_vm2, %v22549_v4  ;;  %v19298_v18 = vld [vmem:[%s24450_s2 + $0x124] ss:$16 sps:$4 sm:$0xff]  }
 0x351   :  { %v1914_v10 = vadd.f32 %v22425_v8, %v1648_v43  ;;  %v1650_v57 = vpop.f32.mrb[71].mxu1  ;;  %3332 = vmatmul.mubr.bf16.gmra.mrb[68].mxu0 %v22544_v28  ;;  %4707 = vmatpush1.bf16.msra.mxu1 %v19305_v47  ;;  %v2022_v52 = vmax.f32 %v1910_v49, 0.0 }
 0x352   :  { %v1915_v46 = vadd.f32 %v22429_v50, %v1650_v57  ;;  %4363 = vmatpush1.bf16.msra.mxu0 %v19275_v5  ;;  %4708 = vmatprep.subr.bf16.mxu1 %v19310_v58  ;;  %v2023_v12 = vmax.f32 %v1911_v15, 0.0  ;;  %v19319_v5 = vld [vmem:[%s24450_s2 + $0x10c] ss:$16 sps:$4 sm:$0xff]   ;;  %v19317_v57 = vld [vmem:[%s24450_s2 + $0x108] ss:$16 sps:$4 sm:$0xff]  }
 0x353   :  { %v2026_v45 = vmax.f32 %v1914_v10, 0.0  ;;  %3678 = vmatmul.mubr.bf16.gmra.mrb[120].mxu1 %v22544_v28  ;;  %4364 = vmatprep.subr.bf16.mxu0 %v19280_v17 }
 0x354   :  { %v2027_v55 = vmax.f32 %v1915_v46, 0.0  ;;  %v19296_v46 = vld [vmem:[%s24450_s2 + $0x120] ss:$16 sps:$4 sm:$0xff]  }
 0x355   :  { %v22582_v2 = vpack.c.bf16 %v2026_v45, %v2022_v52  ;;  %4709 = vmatpush1.bf16.msra.mxu1 %v19308_v53  ;;  %v19304_v45 = vld [vmem:[%s24450_s2 + $0x144] ss:$16 sps:$4 sm:$0xff]  }
 0x356   :  { %v22587_v3 = vpack.c.bf16 %v2027_v55, %v2023_v12  ;;  %v1654_v47 = vpop.f32.mrb[72].mxu1  ;;  %4365 = vmatpush1.bf16.msra.mxu0 %v19278_v63  ;;  %4710 = vmatprep.subr.bf16.mxu1 %v19316_v38  ;;  %v19325_v63 = vld [vmem:[%s24450_s2 + $0x12c] ss:$16 sps:$4 sm:$0xff]  }
 0x357   :  { %v1918_v58 = vadd.f32 %v22425_v8, %v1654_v47  ;;  %v1656_v49 = vpop.f32.mrb[73].mxu1  ;;  %4366 = vmatprep.subr.bf16.mxu0 %v19289_v24 }
 0x358   :  { %v1919_v17 = vadd.f32 %v22429_v50, %v1656_v49  ;;  %v1658_v15 = vpop.f32.mrb[74].mxu1  ;;  %16198 = vmatprep.mubr.msk.bf16.mxu0 %vm3053_vm2, %v22587_v3  ;;  %16212 = vmatprep.mubr.msk.bf16.mxu1 %vm3053_vm2, %v22587_v3 }
 0x359   :  { %v1922_v43 = vadd.f32 %v22425_v8, %v1658_v15  ;;  %v1660_v10 = vpop.f32.mrb[75].mxu1  ;;  %3342 = vmatmul.mubr.bf16.gmra.mrb[72].mxu0 %v22582_v2  ;;  %4711 = vmatpush1.bf16.msra.mxu1 %v19314_v36  ;;  %v2030_v38 = vmax.f32 %v1918_v58, 0.0  ;;  %v19323_v36 = vld [vmem:[%s24450_s2 + $0x128] ss:$16 sps:$4 sm:$0xff]   ;;  %v19328_v58 = vld [vmem:[%s24450_s2 + $0x14c] ss:$16 sps:$4 sm:$0xff]  }
 0x35a   :  { %v1923_v53 = vadd.f32 %v22429_v50, %v1660_v10  ;;  %4367 = vmatpush1.bf16.msra.mxu0 %v19287_v48  ;;  %4712 = vmatprep.subr.bf16.mxu1 %v19319_v5  ;;  %v2031_v24 = vmax.f32 %v1919_v17, 0.0  ;;  %v19302_v5 = vld [vmem:[%s24450_s2 + $0x140] ss:$16 sps:$4 sm:$0xff]   ;;  %v19313_v17 = vld [vmem:[%s24450_s2 + $0x164] ss:$16 sps:$4 sm:$0xff]  }
 0x35b   :  { %v2034_v52 = vmax.f32 %v1922_v43, 0.0  ;;  %3688 = vmatmul.mubr.bf16.gmra.mrb[124].mxu1 %v22582_v2  ;;  %4368 = vmatprep.subr.bf16.mxu0 %v19298_v18 }
 0x35c   :  { %v2035_v12 = vmax.f32 %v1923_v53, 0.0  ;;  %v19326_v53 = vld [vmem:[%s24450_s2 + $0x148] ss:$16 sps:$4 sm:$0xff]  }
 0x35d   :  { %v22620_v55 = vpack.c.bf16 %v2034_v52, %v2030_v38  ;;  %4713 = vmatpush1.bf16.msra.mxu1 %v19317_v57  ;;  %v19334_v38 = vld [vmem:[%s24450_s2 + $0x16c] ss:$16 sps:$4 sm:$0xff]  }
 0x35e   :  { %v22625_v47 = vpack.c.bf16 %v2035_v12, %v2031_v24  ;;  %v1664_v48 = vpop.f32.mrb[76].mxu1  ;;  %4369 = vmatpush1.bf16.msra.mxu0 %v19296_v46  ;;  %4714 = vmatprep.subr.bf16.mxu1 %v19325_v63  ;;  %v19311_v63 = vld [vmem:[%s24450_s2 + $0x160] ss:$16 sps:$4 sm:$0xff]   ;;  %v19322_v24 = vld [vmem:[%s24450_s2 + $0x184] ss:$16 sps:$4 sm:$0xff]  }
 0x35f   :  { %v1926_v49 = vadd.f32 %v22425_v8, %v1664_v48  ;;  %v1666_v18 = vpop.f32.mrb[77].mxu1  ;;  %4370 = vmatprep.subr.bf16.mxu0 %v19304_v45 }
 0x360   :  { %v1927_v15 = vadd.f32 %v22429_v50, %v1666_v18  ;;  %v1668_v43 = vpop.f32.mrb[78].mxu1  ;;  %16199 = vmatprep.mubr.msk.bf16.mxu0 %vm3053_vm2, %v22625_v47  ;;  %16213 = vmatprep.mubr.msk.bf16.mxu1 %vm3053_vm2, %v22625_v47  ;;  %v19320_v18 = vld [vmem:[%s24450_s2 + $0x180] ss:$16 sps:$4 sm:$0xff]  }
 0x361   :  { %v1930_v10 = vadd.f32 %v22425_v8, %v1668_v43  ;;  %v1670_v57 = vpop.f32.mrb[79].mxu1  ;;  %3352 = vmatmul.mubr.bf16.gmra.mrb[76].mxu0 %v22620_v55  ;;  %4715 = vmatpush1.bf16.msra.mxu1 %v19323_v36  ;;  %v2038_v52 = vmax.f32 %v1926_v49, 0.0 }
 0x362   :  { %v1931_v46 = vadd.f32 %v22429_v50, %v1670_v57  ;;  %4371 = vmatpush1.bf16.msra.mxu0 %v19302_v5  ;;  %4716 = vmatprep.subr.bf16.mxu1 %v19328_v58  ;;  %v2039_v12 = vmax.f32 %v1927_v15, 0.0  ;;  %v19332_v5 = vld [vmem:[%s24450_s2 + $0x168] ss:$16 sps:$4 sm:$0xff]  }
 0x363   :  { %v2042_v45 = vmax.f32 %v1930_v10, 0.0  ;;  %3698 = vmatmul.mubr.bf16.gmra.mrb[128].mxu1 %v22620_v55  ;;  %4372 = vmatprep.subr.bf16.mxu0 %v19313_v17  ;;  %v19340_v17 = vld [vmem:[%s24450_s2 + $0x18c] ss:$16 sps:$4 sm:$0xff]   ;;  %v19331_v10 = vld [vmem:[%s24450_s2 + $0x1a4] ss:$16 sps:$4 sm:$0xff]  }
 0x364   :  { %v2043_v36 = vmax.f32 %v1931_v46, 0.0 }
 0x365   :  { %v22658_v48 = vpack.c.bf16 %v2042_v45, %v2038_v52  ;;  %4717 = vmatpush1.bf16.msra.mxu1 %v19326_v53  ;;  %v19329_v45 = vld [vmem:[%s24450_s2 + $0x1a0] ss:$16 sps:$4 sm:$0xff]  }
 0x366   :  { %v22663_v58 = vpack.c.bf16 %v2043_v36, %v2039_v12  ;;  %v1674_v49 = vpop.f32.mrb[80].mxu1  ;;  %4373 = vmatpush1.bf16.msra.mxu0 %v19311_v63  ;;  %4718 = vmatprep.subr.bf16.mxu1 %v19334_v38  ;;  %v19338_v38 = vld [vmem:[%s24450_s2 + $0x188] ss:$16 sps:$4 sm:$0xff]  }
 0x367   :  { %v1934_v15 = vadd.f32 %v22425_v8, %v1674_v49  ;;  %v1676_v43 = vpop.f32.mrb[81].mxu1  ;;  %4374 = vmatprep.subr.bf16.mxu0 %v19322_v24  ;;  %v19343_v24 = vld [vmem:[%s24450_s2 + $0x1ac] ss:$16 sps:$4 sm:$0xff]  }
 0x368   :  { %v1935_v57 = vadd.f32 %v22429_v50, %v1676_v43  ;;  %v1678_v53 = vpop.f32.mrb[82].mxu1  ;;  %16200 = vmatprep.mubr.msk.bf16.mxu0 %vm3053_vm2, %v22663_v58  ;;  %16214 = vmatprep.mubr.msk.bf16.mxu1 %vm3053_vm2, %v22663_v58 }
 0x369   :  { %v1938_v46 = vadd.f32 %v22425_v8, %v1678_v53  ;;  %v1680_v63 = vpop.f32.mrb[83].mxu1  ;;  %3362 = vmatmul.mubr.bf16.gmra.mrb[80].mxu0 %v22658_v48  ;;  %4719 = vmatpush1.bf16.msra.mxu1 %v19332_v5  ;;  %v2046_v12 = vmax.f32 %v1934_v15, 0.0  ;;  %v19337_v5 = vld [vmem:[%s24450_s2 + $0x1c4] ss:$16 sps:$4 sm:$0xff]  }
 0x36a   :  { %v1939_v52 = vadd.f32 %v22429_v50, %v1680_v63  ;;  %4375 = vmatpush1.bf16.msra.mxu0 %v19320_v18  ;;  %4720 = vmatprep.subr.bf16.mxu1 %v19340_v17  ;;  %v2047_v49 = vmax.f32 %v1935_v57, 0.0  ;;  %v19341_v17 = vld [vmem:[%s24450_s2 + $0x1a8] ss:$16 sps:$4 sm:$0xff]   ;;  %v19349_v57 = vld [vmem:[%s24450_s2 + $0x1cc] ss:$16 sps:$4 sm:$0xff]  }
 0x36b   :  { %v2050_v36 = vmax.f32 %v1938_v46, 0.0  ;;  %3708 = vmatmul.mubr.bf16.gmra.mrb[132].mxu1 %v22658_v48  ;;  %4376 = vmatprep.subr.bf16.mxu0 %v19331_v10  ;;  %v19335_v10 = vld [vmem:[%s24450_s2 + $0x1c0] ss:$16 sps:$4 sm:$0xff]  }
 0x36c   :  { %v2051_v18 = vmax.f32 %v1939_v52, 0.0 }
 0x36d   :  { %v22696_v43 = vpack.c.bf16 %v2050_v36, %v2046_v12  ;;  %4721 = vmatpush1.bf16.msra.mxu1 %v19338_v38  ;;  %v19346_v38 = vld [vmem:[%s24450_s2 + $0x1e4] ss:$16 sps:$4 sm:$0xff]   ;;  %v19347_v36 = vld [vmem:[%s24450_s2 + $0x1c8] ss:$16 sps:$4 sm:$0xff]  }
 0x36e   :  { %v22701_v53 = vpack.c.bf16 %v2051_v18, %v2047_v49  ;;  %v1684_v15 = vpop.f32.mrb[84].mxu1  ;;  %4377 = vmatpush1.bf16.msra.mxu0 %v19329_v45  ;;  %4722 = vmatprep.subr.bf16.mxu1 %v19343_v24  ;;  %v19344_v49 = vld [vmem:[%s24450_s2 + $0x1e0] ss:$16 sps:$4 sm:$0xff]   ;;  %v19352_v18 = vld [vmem:[%s24450_s2 + $0x1ec] ss:$16 sps:$4 sm:$0xff]  }
 0x36f   :  { %v1942_v46 = vadd.f32 %v22425_v8, %v1684_v15  ;;  %v1686_v63 = vpop.f32.mrb[85].mxu1  ;;  %4378 = vmatprep.subr.bf16.mxu0 %v19337_v5 }
 0x370   :  { %v1943_v52 = vadd.f32 %v22429_v50, %v1686_v63  ;;  %v1688_v45 = vpop.f32.mrb[86].mxu1  ;;  %16201 = vmatprep.mubr.msk.bf16.mxu0 %vm3053_vm2, %v22701_v53  ;;  %16215 = vmatprep.mubr.msk.bf16.mxu1 %vm3053_vm2, %v22701_v53 }
 0x371   :  { %v1946_v24 = vadd.f32 %v22425_v8, %v1688_v45  ;;  %v1690_v12 = vpop.f32.mrb[87].mxu1  ;;  %3372 = vmatmul.mubr.bf16.gmra.mrb[84].mxu0 %v22696_v43  ;;  %4723 = vmatpush1.bf16.msra.mxu1 %v19341_v17  ;;  %v2054_v15 = vmax.f32 %v1942_v46, 0.0  ;;  %v19355_v17 = vld [vmem:[%s24450_s2 + $0x204] ss:$16 sps:$4 sm:$0xff]  }
 0x372   :  { %v1947_v5 = vadd.f32 %v22429_v50, %v1690_v12  ;;  %4379 = vmatpush1.bf16.msra.mxu0 %v19335_v10  ;;  %4724 = vmatprep.subr.bf16.mxu1 %v19349_v57  ;;  %v2055_v45 = vmax.f32 %v1943_v52, 0.0  ;;  %v19350_v57 = vld [vmem:[%s24450_s2 + $0x1e8] ss:$16 sps:$4 sm:$0xff]  }
 0x373   :  { %v2058_v63 = vmax.f32 %v1946_v24, 0.0  ;;  %3718 = vmatmul.mubr.bf16.gmra.mrb[136].mxu1 %v22696_v43  ;;  %4380 = vmatprep.subr.bf16.mxu0 %v19346_v38  ;;  %v19376_v38 = vld [vmem:[%s24450_s2 + $0x20c] ss:$16 sps:$4 sm:$0xff]  }
 0x374   :  { %v2059_v10 = vmax.f32 %v1947_v5, 0.0 }
 0x375   :  { %v22734_v12 = vpack.c.bf16 %v2058_v63, %v2054_v15  ;;  %4725 = vmatpush1.bf16.msra.mxu1 %v19347_v36 }
 0x376   :  { %v22739_v7 = vpack.c.bf16 %v2059_v10, %v2055_v45  ;;  %v1694_v46 = vpop.f32.mrb[88].mxu1  ;;  %4381 = vmatpush1.bf16.msra.mxu0 %v19344_v49  ;;  %4726 = vmatprep.subr.bf16.mxu1 %v19352_v18 }
 0x377   :  { %v1950_v24 = vadd.f32 %v22425_v8, %v1694_v46  ;;  %v1696_v52 = vpop.f32.mrb[89].mxu1  ;;  %4523 = vmatprep.subr.bf16.mxu0 %v19355_v17 }
 0x378   :  { %v1951_v5 = vadd.f32 %v22429_v50, %v1696_v52  ;;  %v1698_v36 = vpop.f32.mrb[90].mxu1  ;;  %16202 = vmatprep.mubr.msk.bf16.mxu0 %vm3053_vm2, %v22739_v7  ;;  %16216 = vmatprep.mubr.msk.bf16.mxu1 %vm3053_vm2, %v22739_v7 }
 0x379   :  { %v1954_v49 = vadd.f32 %v22425_v8, %v1698_v36  ;;  %v1700_v18 = vpop.f32.mrb[91].mxu1  ;;  %3382 = vmatmul.mubr.bf16.gmra.mrb[88].mxu0 %v22734_v12  ;;  %4727 = vmatpush1.bf16.msra.mxu1 %v19350_v57  ;;  %v2062_v63 = vmax.f32 %v1950_v24, 0.0 }
 0x37a   :  { %v1955_v15 = vadd.f32 %v22429_v50, %v1700_v18  ;;  %4869 = vmatprep.subr.bf16.mxu1 %v19376_v38  ;;  %v2063_v45 = vmax.f32 %v1951_v5, 0.0 }
 0x37b   :  { %v2066_v17 = vmax.f32 %v1954_v49, 0.0  ;;  %3728 = vmatmul.mubr.bf16.gmra.mrb[140].mxu1 %v22734_v12 }
 0x37c   :  { %v2067_v10 = vmax.f32 %v1955_v15, 0.0 }
 0x37d   :  { %v22754_v46 = vpack.c.bf16 %v2066_v17, %v2062_v63 }
 0x37e   :  { %v22756_v52 = vpack.c.bf16 %v2067_v10, %v2063_v45  ;;  %v1704_v59 = vpop.f32.mrb[92].mxu1 }
 0x37f   :  { %24465 = vst [vmem:[#allocation33_spill] sm:$0xff] %v22754_v46  ;;  %v1958_v36 = vadd.f32 %v22425_v8, %v1704_v59  ;;  %v1706_v54 = vpop.f32.mrb[93].mxu1 }
 0x380   :  { %24466 = vst [vmem:[#allocation34_spill] sm:$0xff] %v22756_v52  ;;  %v1959_v32 = vadd.f32 %v22429_v50, %v1706_v54  ;;  %v1708_v57 = vpop.f32.mrb[94].mxu1  ;;  %16203 = vmatprep.mubr.msk.bf16.mxu0 %vm3053_vm2, %v22756_v52  ;;  %16217 = vmatprep.mubr.msk.bf16.mxu1 %vm3053_vm2, %v22756_v52 }
 0x381   :  { %v1962_v38 = vadd.f32 %v22425_v8, %v1708_v57  ;;  %v1710_v24 = vpop.f32.mrb[95].mxu1  ;;  %3392 = vmatmul.mubr.bf16.gmra.mrb[92].mxu0 %v22754_v46  ;;  %v2070_v49 = vmax.f32 %v1958_v36, 0.0 }
 0x382   :  { %v1963_v5 = vadd.f32 %v22429_v50, %v1710_v24  ;;  %v2071_v59 = vmax.f32 %v1959_v32, 0.0 }
 0x383   :  { %v2074_v18 = vmax.f32 %v1962_v38, 0.0  ;;  %3738 = vmatmul.mubr.bf16.gmra.mrb[144].mxu1 %v22754_v46 }
 0x384   :  { %v2075_v54 = vmax.f32 %v1963_v5, 0.0 }
 0x385   :  { %v22768_v15 = vpack.c.bf16 %v2074_v18, %v2070_v49 }
 0x386   :  { %v22770_v63 = vpack.c.bf16 %v2075_v54, %v2071_v59  ;;  %v1714_v17 = vpop.f32.mrb[96].mxu1 }
 0x387   :  { %24467 = vst [vmem:[#allocation35_spill] sm:$0xff] %v22768_v15  ;;  %v1966_v45 = vadd.f32 %v22425_v8, %v1714_v17  ;;  %v1716_v10 = vpop.f32.mrb[97].mxu1 }
 0x388   :  { %24468 = vst [vmem:[#allocation36_spill] sm:$0xff] %v22770_v63  ;;  %v1967_v57 = vadd.f32 %v22429_v50, %v1716_v10  ;;  %v1718_v52 = vpop.f32.mrb[98].mxu1  ;;  %16204 = vmatprep.mubr.msk.bf16.mxu0 %vm3053_vm2, %v22770_v63  ;;  %16218 = vmatprep.mubr.msk.bf16.mxu1 %vm3053_vm2, %v22770_v63 }
 0x389   :  { %v1970_v32 = vadd.f32 %v22425_v8, %v1718_v52  ;;  %v1720_v36 = vpop.f32.mrb[99].mxu1  ;;  %3402 = vmatmul.mubr.bf16.gmra.mrb[96].mxu0 %v22768_v15  ;;  %v2078_v24 = vmax.f32 %v1966_v45, 0.0 }
 0x38a   :  { %v1971_v38 = vadd.f32 %v22429_v50, %v1720_v36  ;;  %v2079_v49 = vmax.f32 %v1967_v57, 0.0 }
 0x38b   :  { %v2082_v5 = vmax.f32 %v1970_v32, 0.0  ;;  %3748 = vmatmul.mubr.bf16.gmra.mrb[148].mxu1 %v22768_v15 }
 0x38c   :  { %v2083_v18 = vmax.f32 %v1971_v38, 0.0 }
 0x38d   :  { %v22782_v59 = vpack.c.bf16 %v2082_v5, %v2078_v24 }
 0x38e   :  { %v22784_v54 = vpack.c.bf16 %v2083_v18, %v2079_v49  ;;  %v1724_v17 = vpop.f32.mrb[100].mxu1 }
 0x38f   :  { %v1974_v10 = vadd.f32 %v22425_v8, %v1724_v17  ;;  %v1726_v63 = vpop.f32.mrb[101].mxu1 }
 0x390   :  { %24469 = vst [vmem:[#allocation37_spill] sm:$0xff] %v22784_v54  ;;  %v1975_v52 = vadd.f32 %v22429_v50, %v1726_v63  ;;  %v1728_v46 = vpop.f32.mrb[102].mxu1  ;;  %16205 = vmatprep.mubr.msk.bf16.mxu0 %vm3053_vm2, %v22784_v54  ;;  %16219 = vmatprep.mubr.msk.bf16.mxu1 %vm3053_vm2, %v22784_v54 }
 0x391   :  { %v1978_v45 = vadd.f32 %v22425_v8, %v1728_v46  ;;  %v1730_v57 = vpop.f32.mrb[103].mxu1  ;;  %3412 = vmatmul.mubr.bf16.gmra.mrb[100].mxu0 %v22782_v59  ;;  %v2086_v36 = vmax.f32 %v1974_v10, 0.0 }
 0x392   :  { %v1979_v32 = vadd.f32 %v22429_v50, %v1730_v57  ;;  %v2087_v24 = vmax.f32 %v1975_v52, 0.0 }
 0x393   :  { %v2090_v38 = vmax.f32 %v1978_v45, 0.0  ;;  %3758 = vmatmul.mubr.bf16.gmra.mrb[152].mxu1 %v22782_v59 }
 0x394   :  { %v2091_v63 = vmax.f32 %v1979_v32, 0.0 }
 0x395   :  { %v22796_v5 = vpack.c.bf16 %v2090_v38, %v2086_v36 }
 0x396   :  { %v22798_v49 = vpack.c.bf16 %v2091_v63, %v2087_v24  ;;  %v1734_v18 = vpop.f32.mrb[104].mxu1  ;;  %v19382_v63 = vld [vmem:[%s24450_s2 + $0x22c] ss:$16 sps:$4 sm:$0xff]  }
 0x397   :  { %v1982_v17 = vadd.f32 %v22425_v8, %v1734_v18  ;;  %v1736_v54 = vpop.f32.mrb[105].mxu1  ;;  %v19356_v18 = vld [vmem:[%s24450_s2 + $0x220] ss:$16 sps:$4 sm:$0xff]  }
 0x398   :  { %v1983_v46 = vadd.f32 %v22429_v50, %v1736_v54  ;;  %v1738_v15 = vpop.f32.mrb[106].mxu1  ;;  %16206 = vmatprep.mubr.msk.bf16.mxu0 %vm3053_vm2, %v22798_v49  ;;  %16220 = vmatprep.mubr.msk.bf16.mxu1 %vm3053_vm2, %v22798_v49 }
 0x399   :  { %v1986_v10 = vadd.f32 %v22425_v8, %v1738_v15  ;;  %v1740_v52 = vpop.f32.mrb[107].mxu1  ;;  %3422 = vmatmul.mubr.bf16.gmra.mrb[104].mxu0 %v22796_v5  ;;  %v2094_v57 = vmax.f32 %v1982_v17, 0.0  ;;  %v19353_v8 = vld [vmem:[%s24450_s2 + $0x200] ss:$16 sps:$4 sm:$0xff]   ;;  %v19374_v15 = vld [vmem:[%s24450_s2 + $0x208] ss:$16 sps:$4 sm:$0xff]  }
 0x39a   :  { %v1987_v45 = vadd.f32 %v22429_v50, %v1740_v52  ;;  %v2095_v36 = vmax.f32 %v1983_v46, 0.0  ;;  %v19358_v50 = vld [vmem:[%s24450_s2 + $0x224] ss:$16 sps:$4 sm:$0xff]   ;;  %v19380_v46 = vld [vmem:[%s24450_s2 + $0x228] ss:$16 sps:$4 sm:$0xff]  }
 0x39b   :  { %v2098_v32 = vmax.f32 %v1986_v10, 0.0  ;;  %3768 = vmatmul.mubr.bf16.gmra.mrb[156].mxu1 %v22796_v5  ;;  %v19361_v17 = vld [vmem:[%s24450_s2 + $0x244] ss:$16 sps:$4 sm:$0xff]   ;;  %v19385_v10 = vld [vmem:[%s24450_s2 + $0x24c] ss:$16 sps:$4 sm:$0xff]  }
 0x39c   :  { %v2099_v54 = vmax.f32 %v1987_v45, 0.0  ;;  %v19359_v52 = vld [vmem:[%s24450_s2 + $0x240] ss:$16 sps:$4 sm:$0xff]   ;;  %v19383_v45 = vld [vmem:[%s24450_s2 + $0x248] ss:$16 sps:$4 sm:$0xff]  }
 0x39d   :  { %v22810_v38 = vpack.c.bf16 %v2098_v32, %v2094_v57  ;;  %v19391_v57 = vld [vmem:[%s24450_s2 + $0x26c] ss:$16 sps:$4 sm:$0xff]   ;;  %v19362_v32 = vld [vmem:[%s24450_s2 + $0x260] ss:$16 sps:$4 sm:$0xff]  }
 0x39e   :  { %v22812_v24 = vpack.c.bf16 %v2099_v54, %v2095_v36  ;;  %v19367_v36 = vld [vmem:[%s24450_s2 + $0x284] ss:$16 sps:$4 sm:$0xff]   ;;  %v19389_v54 = vld [vmem:[%s24450_s2 + $0x268] ss:$16 sps:$4 sm:$0xff]  }
 0x3a0   :  { %16207 = vmatprep.mubr.msk.bf16.mxu0 %vm3053_vm2, %v22812_v24  ;;  %16221 = vmatprep.mubr.msk.bf16.mxu1 %vm3053_vm2, %v22812_v24 }
 0x3a1   :  { %3432 = vmatmul.mubr.bf16.gmra.mrb[108].mxu0 %v22810_v38 }
 0x3a2   :  { %4382 = vmatprep.mubr.bf16.mxu0 %v24442_v14 }
 0x3a3   :  { %3778 = vmatmul.mubr.bf16.gmra.mrb[160].mxu1 %v22810_v38 }
 0x3a4   :  { %4728 = vmatprep.mubr.bf16.mxu1 %v24442_v14 }
 0x3a9   :  { %4383 = vmatmul.mubr.bf16.vlgmr.msra.gmra.mrb[56].mxu0 %v24442_v14 }
 0x3aa   :  { %4392 = vmatprep.mubr.bf16.mxu0 %v22148_v0  ;;  %4524 = vmatpush1.bf16.msra.mxu0 %v19353_v8  ;;  %v19394_v8 = vld [vmem:[%s24450_s2 + $0x28c] ss:$16 sps:$4 sm:$0xff]  }
 0x3ab   :  { %4729 = vmatmul.mubr.bf16.vlgmr.msra.gmra.mrb[108].mxu1 %v24442_v14  ;;  %4525 = vmatprep.subr.bf16.mxu0 %v19358_v50  ;;  %v19370_v50 = vld [vmem:[%s24450_s2 + $0x2a4] ss:$16 sps:$4 sm:$0xff]  }
 0x3ac   :  { %4738 = vmatprep.mubr.bf16.mxu1 %v22148_v0  ;;  %4870 = vmatpush1.bf16.msra.mxu1 %v19374_v15  ;;  %v19364_v0 = vld [vmem:[%s24450_s2 + $0x264] ss:$16 sps:$4 sm:$0xff]   ;;  %v19392_v15 = vld [vmem:[%s24450_s2 + $0x288] ss:$16 sps:$4 sm:$0xff]  }
 0x3ad   :  { %4871 = vmatprep.subr.bf16.mxu1 %v19382_v63  ;;  %v19400_v63 = vld [vmem:[%s24450_s2 + $0x2ac] ss:$16 sps:$4 sm:$0xff]  }
 0x3ae   :  { %4526 = vmatpush1.bf16.msra.mxu0 %v19356_v18  ;;  %v19368_v18 = vld [vmem:[%s24450_s2 + $0x2a0] ss:$16 sps:$4 sm:$0xff]  }
 0x3af   :  { %4527 = vmatprep.subr.bf16.mxu0 %v19361_v17  ;;  %v19373_v17 = vld [vmem:[%s24450_s2 + $0x2c4] ss:$16 sps:$4 sm:$0xff]  }
 0x3b0   :  { %4872 = vmatpush1.bf16.msra.mxu1 %v19380_v46  ;;  %v19398_v46 = vld [vmem:[%s24450_s2 + $0x2a8] ss:$16 sps:$4 sm:$0xff]  }
 0x3b1   :  { %4393 = vmatmul.mubr.bf16.gmra.mrb[60].mxu0 %v24456_v6  ;;  %4873 = vmatprep.subr.bf16.mxu1 %v19385_v10  ;;  %v19403_v10 = vld [vmem:[%s24450_s2 + $0x2cc] ss:$16 sps:$4 sm:$0xff]  }
 0x3b2   :  { %4402 = vmatprep.mubr.bf16.mxu0 %v22168_v26  ;;  %4528 = vmatpush1.bf16.msra.mxu0 %v19359_v52  ;;  %v19371_v52 = vld [vmem:[%s24450_s2 + $0x2c0] ss:$16 sps:$4 sm:$0xff]  }
 0x3b3   :  { %4739 = vmatmul.mubr.bf16.gmra.mrb[112].mxu1 %v24456_v6  ;;  %4529 = vmatprep.subr.bf16.mxu0 %v19364_v0  ;;  %v19365_v6 = vld [vmem:[%s24450_s2 + $0x280] ss:$16 sps:$4 sm:$0xff]   ;;  %v19379_v0 = vld [vmem:[%s24450_s2 + $0x2e4] ss:$16 sps:$4 sm:$0xff]  }
 0x3b4   :  { %4748 = vmatprep.mubr.bf16.mxu1 %v22168_v26  ;;  %4874 = vmatpush1.bf16.msra.mxu1 %v19383_v45  ;;  %v19401_v45 = vld [vmem:[%s24450_s2 + $0x2c8] ss:$16 sps:$4 sm:$0xff]  }
 0x3b5   :  { %4875 = vmatprep.subr.bf16.mxu1 %v19391_v57  ;;  %v19409_v57 = vld [vmem:[%s24450_s2 + $0x2ec] ss:$16 sps:$4 sm:$0xff]  }
 0x3b6   :  { %4530 = vmatpush1.bf16.msra.mxu0 %v19362_v32  ;;  %v19377_v32 = vld [vmem:[%s24450_s2 + $0x2e0] ss:$16 sps:$4 sm:$0xff]  }
 0x3b7   :  { %4531 = vmatprep.subr.bf16.mxu0 %v19367_v36  ;;  %v19388_v36 = vld [vmem:[%s24450_s2 + $0x304] ss:$16 sps:$4 sm:$0xff]  }
 0x3b8   :  { %4876 = vmatpush1.bf16.msra.mxu1 %v19389_v54  ;;  %v19407_v54 = vld [vmem:[%s24450_s2 + $0x2e8] ss:$16 sps:$4 sm:$0xff]  }
 0x3b9   :  { %4403 = vmatmul.mubr.bf16.gmra.mrb[64].mxu0 %v22163_v19  ;;  %4877 = vmatprep.subr.bf16.mxu1 %v19394_v8  ;;  %v19412_v8 = vld [vmem:[%s24450_s2 + $0x30c] ss:$16 sps:$4 sm:$0xff]  }
 0x3ba   :  { %4412 = vmatprep.mubr.bf16.mxu0 %v22185_v13  ;;  %4532 = vmatpush1.bf16.msra.mxu0 %v19365_v6  ;;  %v19386_v6 = vld [vmem:[%s24450_s2 + $0x300] ss:$16 sps:$4 sm:$0xff]  }
 0x3bb   :  { %4749 = vmatmul.mubr.bf16.gmra.mrb[116].mxu1 %v22163_v19  ;;  %4533 = vmatprep.subr.bf16.mxu0 %v19370_v50  ;;  %v19397_v50 = vld [vmem:[%s24450_s2 + $0x324] ss:$16 sps:$4 sm:$0xff]  }
 0x3bc   :  { %4758 = vmatprep.mubr.bf16.mxu1 %v22185_v13  ;;  %4878 = vmatpush1.bf16.msra.mxu1 %v19392_v15  ;;  %v19410_v15 = vld [vmem:[%s24450_s2 + $0x308] ss:$16 sps:$4 sm:$0xff]  }
 0x3bd   :  { %4879 = vmatprep.subr.bf16.mxu1 %v19400_v63  ;;  %v19415_v63 = vld [vmem:[%s24450_s2 + $0x32c] ss:$16 sps:$4 sm:$0xff]  }
 0x3be   :  { %4534 = vmatpush1.bf16.msra.mxu0 %v19368_v18  ;;  %v19395_v18 = vld [vmem:[%s24450_s2 + $0x320] ss:$16 sps:$4 sm:$0xff]  }
 0x3bf   :  { %4535 = vmatprep.subr.bf16.mxu0 %v19373_v17  ;;  %v19406_v17 = vld [vmem:[%s24450_s2 + $0x344] ss:$16 sps:$4 sm:$0xff]  }
 0x3c0   :  { %4880 = vmatpush1.bf16.msra.mxu1 %v19398_v46  ;;  %v19413_v46 = vld [vmem:[%s24450_s2 + $0x328] ss:$16 sps:$4 sm:$0xff]  }
 0x3c1   :  { %4413 = vmatmul.mubr.bf16.gmra.mrb[68].mxu0 %v22180_v30  ;;  %4881 = vmatprep.subr.bf16.mxu1 %v19403_v10  ;;  %v19421_v10 = vld [vmem:[%s24450_s2 + $0x34c] ss:$16 sps:$4 sm:$0xff]  }
 0x3c2   :  { %4422 = vmatprep.mubr.bf16.mxu0 %v22202_v34  ;;  %4536 = vmatpush1.bf16.msra.mxu0 %v19371_v52  ;;  %v19404_v52 = vld [vmem:[%s24450_s2 + $0x340] ss:$16 sps:$4 sm:$0xff]  }
 0x3c3   :  { %4759 = vmatmul.mubr.bf16.gmra.mrb[120].mxu1 %v22180_v30  ;;  %4537 = vmatprep.subr.bf16.mxu0 %v19379_v0  ;;  %v19418_v0 = vld [vmem:[%s24450_s2 + $0x364] ss:$16 sps:$4 sm:$0xff]  }
 0x3c4   :  { %4768 = vmatprep.mubr.bf16.mxu1 %v22202_v34  ;;  %4882 = vmatpush1.bf16.msra.mxu1 %v19401_v45  ;;  %v19419_v45 = vld [vmem:[%s24450_s2 + $0x348] ss:$16 sps:$4 sm:$0xff]  }
 0x3c5   :  { %4883 = vmatprep.subr.bf16.mxu1 %v19409_v57  ;;  %v19424_v57 = vld [vmem:[%s24450_s2 + $0x36c] ss:$16 sps:$4 sm:$0xff]  }
 0x3c6   :  { %4538 = vmatpush1.bf16.msra.mxu0 %v19377_v32  ;;  %v19416_v32 = vld [vmem:[%s24450_s2 + $0x360] ss:$16 sps:$4 sm:$0xff]  }
 0x3c7   :  { %4539 = vmatprep.subr.bf16.mxu0 %v19388_v36  ;;  %v19427_v36 = vld [vmem:[#allocation7 + $0x4] ss:$16 sps:$4 sm:$0xff]  }
 0x3c8   :  { %4884 = vmatpush1.bf16.msra.mxu1 %v19407_v54  ;;  %v19422_v54 = vld [vmem:[%s24450_s2 + $0x368] ss:$16 sps:$4 sm:$0xff]  }
 0x3c9   :  { %4423 = vmatmul.mubr.bf16.gmra.mrb[72].mxu0 %v22197_v22  ;;  %4885 = vmatprep.subr.bf16.mxu1 %v19412_v8  ;;  %v19451_v8 = vld [vmem:[#allocation7 + $0xc] ss:$16 sps:$4 sm:$0xff]  }
 0x3ca   :  { %4432 = vmatprep.mubr.bf16.mxu0 %v22219_v39  ;;  %4540 = vmatpush1.bf16.msra.mxu0 %v19386_v6  ;;  %v19425_v6 = vld [vmem:[#allocation7] ss:$16 sps:$4 sm:$0xff]  }
 0x3cb   :  { %4769 = vmatmul.mubr.bf16.gmra.mrb[124].mxu1 %v22197_v22  ;;  %4541 = vmatprep.subr.bf16.mxu0 %v19397_v50  ;;  %v19430_v50 = vld [vmem:[#allocation7 + $0x24] ss:$16 sps:$4 sm:$0xff]  }
 0x3cc   :  { %4778 = vmatprep.mubr.bf16.mxu1 %v22219_v39  ;;  %4886 = vmatpush1.bf16.msra.mxu1 %v19410_v15  ;;  %v19449_v15 = vld [vmem:[#allocation7 + $0x8] ss:$16 sps:$4 sm:$0xff]  }
 0x3cd   :  { %4887 = vmatprep.subr.bf16.mxu1 %v19415_v63  ;;  %v19454_v63 = vld [vmem:[#allocation7 + $0x2c] ss:$16 sps:$4 sm:$0xff]  }
 0x3ce   :  { %4542 = vmatpush1.bf16.msra.mxu0 %v19395_v18  ;;  %v19428_v18 = vld [vmem:[#allocation7 + $0x20] ss:$16 sps:$4 sm:$0xff]  }
 0x3cf   :  { %4543 = vmatprep.subr.bf16.mxu0 %v19406_v17  ;;  %v19433_v17 = vld [vmem:[#allocation7 + $0x44] ss:$16 sps:$4 sm:$0xff]  }
 0x3d0   :  { %4888 = vmatpush1.bf16.msra.mxu1 %v19413_v46  ;;  %v19452_v46 = vld [vmem:[#allocation7 + $0x28] ss:$16 sps:$4 sm:$0xff]  }
 0x3d1   :  { %4433 = vmatmul.mubr.bf16.gmra.mrb[76].mxu0 %v22214_v21  ;;  %4889 = vmatprep.subr.bf16.mxu1 %v19421_v10  ;;  %v19460_v10 = vld [vmem:[#allocation7 + $0x4c] ss:$16 sps:$4 sm:$0xff]  }
 0x3d2   :  { %4442 = vmatprep.mubr.bf16.mxu0 %v22238_v25  ;;  %4544 = vmatpush1.bf16.msra.mxu0 %v19404_v52  ;;  %v19431_v52 = vld [vmem:[#allocation7 + $0x40] ss:$16 sps:$4 sm:$0xff]  }
 0x3d3   :  { %4779 = vmatmul.mubr.bf16.gmra.mrb[128].mxu1 %v22214_v21  ;;  %4545 = vmatprep.subr.bf16.mxu0 %v19418_v0  ;;  %v19436_v0 = vld [vmem:[#allocation7 + $0x64] ss:$16 sps:$4 sm:$0xff]  }
 0x3d4   :  { %4788 = vmatprep.mubr.bf16.mxu1 %v22238_v25  ;;  %4890 = vmatpush1.bf16.msra.mxu1 %v19419_v45  ;;  %v19458_v45 = vld [vmem:[#allocation7 + $0x48] ss:$16 sps:$4 sm:$0xff]  }
 0x3d5   :  { %4891 = vmatprep.subr.bf16.mxu1 %v19424_v57  ;;  %v19463_v57 = vld [vmem:[#allocation7 + $0x6c] ss:$16 sps:$4 sm:$0xff]  }
 0x3d6   :  { %4546 = vmatpush1.bf16.msra.mxu0 %v19416_v32  ;;  %v19434_v32 = vld [vmem:[#allocation7 + $0x60] ss:$16 sps:$4 sm:$0xff]  }
 0x3d7   :  { %5602 = vmatprep.subr.bf16.mxu0 %v19427_v36  ;;  %v19461_v36 = vld [vmem:[#allocation7 + $0x68] ss:$16 sps:$4 sm:$0xff]  }
 0x3d8   :  { %4892 = vmatpush1.bf16.msra.mxu1 %v19422_v54  ;;  %v19469_v54 = vld [vmem:[#allocation7 + $0x8c] ss:$16 sps:$4 sm:$0xff]  }
 0x3d9   :  { %4443 = vmatmul.mubr.bf16.gmra.mrb[80].mxu0 %v22231_v42  ;;  %5948 = vmatprep.subr.bf16.mxu1 %v19451_v8  ;;  %v19437_v8 = vld [vmem:[#allocation7 + $0x80] ss:$16 sps:$4 sm:$0xff]  }
 0x3da   :  { %4452 = vmatprep.mubr.bf16.mxu0 %v22257_v27 }
 0x3db   :  { %4789 = vmatmul.mubr.bf16.gmra.mrb[132].mxu1 %v22231_v42 }
 0x3dc   :  { %4798 = vmatprep.mubr.bf16.mxu1 %v22257_v27 }
 0x3e1   :  { %4453 = vmatmul.mubr.bf16.gmra.mrb[84].mxu0 %v22250_v40 }
 0x3e2   :  { %4462 = vmatprep.mubr.bf16.mxu0 %v22276_v37 }
 0x3e3   :  { %4799 = vmatmul.mubr.bf16.gmra.mrb[136].mxu1 %v22250_v40 }
 0x3e4   :  { %4808 = vmatprep.mubr.bf16.mxu1 %v22276_v37 }
 0x3e9   :  { %4463 = vmatmul.mubr.bf16.gmra.mrb[88].mxu0 %v22269_v62 }
 0x3ea   :  { %4472 = vmatprep.mubr.bf16.mxu0 %v22295_v33 }
 0x3eb   :  { %4809 = vmatmul.mubr.bf16.gmra.mrb[140].mxu1 %v22269_v62 }
 0x3ec   :  { %4818 = vmatprep.mubr.bf16.mxu1 %v22295_v33 }
 0x3f1   :  { %4473 = vmatmul.mubr.bf16.gmra.mrb[92].mxu0 %v22288_v11 }
 0x3f2   :  { %4482 = vmatprep.mubr.bf16.mxu0 %v22314_v35 }
 0x3f3   :  { %4819 = vmatmul.mubr.bf16.gmra.mrb[144].mxu1 %v22288_v11 }
 0x3f4   :  { %4828 = vmatprep.mubr.bf16.mxu1 %v22314_v35 }
 0x3f9   :  { %4483 = vmatmul.mubr.bf16.gmra.mrb[96].mxu0 %v22307_v9 }
 0x3fa   :  { %4492 = vmatprep.mubr.bf16.mxu0 %v22333_v56 }
 0x3fb   :  { %4829 = vmatmul.mubr.bf16.gmra.mrb[148].mxu1 %v22307_v9 }
 0x3fc   :  { %4838 = vmatprep.mubr.bf16.mxu1 %v22333_v56 }
 0x401   :  { %4493 = vmatmul.mubr.bf16.gmra.mrb[100].mxu0 %v22326_v23 }
 0x402   :  { %4502 = vmatprep.mubr.bf16.mxu0 %v22355_v31 }
 0x403   :  { %4839 = vmatmul.mubr.bf16.gmra.mrb[152].mxu1 %v22326_v23 }
 0x404   :  { %4848 = vmatprep.mubr.bf16.mxu1 %v22355_v31 }
 0x409   :  { %4503 = vmatmul.mubr.bf16.gmra.mrb[104].mxu0 %v22348_v60 }
 0x40a   :  { %4512 = vmatprep.mubr.bf16.mxu0 %v22371_v41 }
 0x40b   :  { %4849 = vmatmul.mubr.bf16.gmra.mrb[156].mxu1 %v22348_v60 }
 0x40c   :  { %4858 = vmatprep.mubr.bf16.mxu1 %v22371_v41 }
 0x411   :  { %4513 = vmatmul.mubr.bf16.gmra.mrb[108].mxu0 %v22367_v51 }
 0x412   :  { %4555 = vmatprep.mubr.bf16.mxu0 %v24442_v14 }
 0x413   :  { %4859 = vmatmul.mubr.bf16.gmra.mrb[160].mxu1 %v22367_v51 }
 0x414   :  { %4901 = vmatprep.mubr.bf16.mxu1 %v24442_v14 }
 0x419   :  { %4556 = vmatmul.mubr.bf16.vlgmr.msra.gmra.mrb[56].mxu0 %v24442_v14 }
 0x41a   :  { %16334 = vmatprep.mubr.msk.bf16.mxu0 %vm3053_vm2, %v22438_v20  ;;  %5603 = vmatpush1.bf16.msra.mxu0 %v19425_v6  ;;  %v19442_v6 = vld [vmem:[#allocation7 + $0xa4] ss:$16 sps:$4 sm:$0xff]  }
 0x41b   :  { %4902 = vmatmul.mubr.bf16.vlgmr.msra.gmra.mrb[108].mxu1 %v24442_v14  ;;  %5604 = vmatprep.subr.bf16.mxu0 %v19430_v50  ;;  %v19467_v50 = vld [vmem:[#allocation7 + $0x88] ss:$16 sps:$4 sm:$0xff]  }
 0x41c   :  { %16347 = vmatprep.mubr.msk.bf16.mxu1 %vm3053_vm2, %v22438_v20  ;;  %5949 = vmatpush1.bf16.msra.mxu1 %v19449_v15  ;;  %v19439_v20 = vld [vmem:[#allocation7 + $0x84] ss:$16 sps:$4 sm:$0xff]   ;;  %v19475_v15 = vld [vmem:[#allocation7 + $0xac] ss:$16 sps:$4 sm:$0xff]  }
 0x41d   :  { %5950 = vmatprep.subr.bf16.mxu1 %v19454_v63  ;;  %v19445_v63 = vld [vmem:[#allocation7 + $0xc4] ss:$16 sps:$4 sm:$0xff]  }
 0x41e   :  { %5605 = vmatpush1.bf16.msra.mxu0 %v19428_v18  ;;  %v19473_v18 = vld [vmem:[#allocation7 + $0xa8] ss:$16 sps:$4 sm:$0xff]  }
 0x41f   :  { %5606 = vmatprep.subr.bf16.mxu0 %v19433_v17  ;;  %v19478_v17 = vld [vmem:[#allocation7 + $0xcc] ss:$16 sps:$4 sm:$0xff]  }
 0x420   :  { %5951 = vmatpush1.bf16.msra.mxu1 %v19452_v46  ;;  %v19443_v46 = vld [vmem:[#allocation7 + $0xc0] ss:$16 sps:$4 sm:$0xff]  }
 0x421   :  { %4566 = vmatmul.mubr.bf16.gmra.mrb[60].mxu0 %v22436_v1  ;;  %5952 = vmatprep.subr.bf16.mxu1 %v19460_v10  ;;  %v19448_v10 = vld [vmem:[#allocation7 + $0xe4] ss:$16 sps:$4 sm:$0xff]  }
 0x422   :  { %16335 = vmatprep.mubr.msk.bf16.mxu0 %vm3053_vm2, %v22473_v44  ;;  %5607 = vmatpush1.bf16.msra.mxu0 %v19431_v52  ;;  %v19476_v52 = vld [vmem:[#allocation7 + $0xc8] ss:$16 sps:$4 sm:$0xff]  }
 0x423   :  { %4912 = vmatmul.mubr.bf16.gmra.mrb[112].mxu1 %v22436_v1  ;;  %5608 = vmatprep.subr.bf16.mxu0 %v19436_v0  ;;  %v19440_v1 = vld [vmem:[#allocation7 + $0xa0] ss:$16 sps:$4 sm:$0xff]   ;;  %v19484_v0 = vld [vmem:[#allocation7 + $0xec] ss:$16 sps:$4 sm:$0xff]  }
 0x424   :  { %16348 = vmatprep.mubr.msk.bf16.mxu1 %vm3053_vm2, %v22473_v44  ;;  %5953 = vmatpush1.bf16.msra.mxu1 %v19458_v45  ;;  %v19446_v45 = vld [vmem:[#allocation7 + $0xe0] ss:$16 sps:$4 sm:$0xff]  }
 0x425   :  { %5954 = vmatprep.subr.bf16.mxu1 %v19463_v57  ;;  %v19457_v57 = vld [vmem:[#allocation7 + $0x104] ss:$16 sps:$4 sm:$0xff]  }
 0x426   :  { %5609 = vmatpush1.bf16.msra.mxu0 %v19434_v32  ;;  %v19482_v32 = vld [vmem:[#allocation7 + $0xe8] ss:$16 sps:$4 sm:$0xff]  }
 0x427   :  { %5610 = vmatprep.subr.bf16.mxu0 %v19439_v20  ;;  %v19487_v20 = vld [vmem:[#allocation7 + $0x10c] ss:$16 sps:$4 sm:$0xff]  }
 0x428   :  { %5955 = vmatpush1.bf16.msra.mxu1 %v19461_v36  ;;  %v19455_v36 = vld [vmem:[#allocation7 + $0x100] ss:$16 sps:$4 sm:$0xff]  }
 0x429   :  { %4576 = vmatmul.mubr.bf16.gmra.mrb[64].mxu0 %v22468_v61  ;;  %5956 = vmatprep.subr.bf16.mxu1 %v19469_v54  ;;  %v19466_v54 = vld [vmem:[#allocation7 + $0x124] ss:$16 sps:$4 sm:$0xff]  }
 0x42a   :  { %16336 = vmatprep.mubr.msk.bf16.mxu0 %vm3053_vm2, %v22511_v29  ;;  %5611 = vmatpush1.bf16.msra.mxu0 %v19437_v8  ;;  %v19485_v8 = vld [vmem:[#allocation7 + $0x108] ss:$16 sps:$4 sm:$0xff]  }
 0x42b   :  { %4922 = vmatmul.mubr.bf16.gmra.mrb[116].mxu1 %v22468_v61  ;;  %5612 = vmatprep.subr.bf16.mxu0 %v19442_v6  ;;  %v19493_v6 = vld [vmem:[#allocation7 + $0x12c] ss:$16 sps:$4 sm:$0xff]  }
 0x42c   :  { %16349 = vmatprep.mubr.msk.bf16.mxu1 %vm3053_vm2, %v22511_v29  ;;  %5957 = vmatpush1.bf16.msra.mxu1 %v19467_v50  ;;  %v19464_v50 = vld [vmem:[#allocation7 + $0x120] ss:$16 sps:$4 sm:$0xff]  }
 0x42d   :  { %5958 = vmatprep.subr.bf16.mxu1 %v19475_v15  ;;  %v19472_v15 = vld [vmem:[#allocation7 + $0x144] ss:$16 sps:$4 sm:$0xff]  }
 0x42e   :  { %5613 = vmatpush1.bf16.msra.mxu0 %v19440_v1  ;;  %v19491_v1 = vld [vmem:[#allocation7 + $0x128] ss:$16 sps:$4 sm:$0xff]  }
 0x42f   :  { %5614 = vmatprep.subr.bf16.mxu0 %v19445_v63  ;;  %v19496_v63 = vld [vmem:[#allocation7 + $0x14c] ss:$16 sps:$4 sm:$0xff]  }
 0x430   :  { %5959 = vmatpush1.bf16.msra.mxu1 %v19473_v18  ;;  %v19470_v18 = vld [vmem:[#allocation7 + $0x140] ss:$16 sps:$4 sm:$0xff]  }
 0x431   :  { %4586 = vmatmul.mubr.bf16.gmra.mrb[68].mxu0 %v22506_v16  ;;  %5960 = vmatprep.subr.bf16.mxu1 %v19478_v17  ;;  %v19481_v17 = vld [vmem:[#allocation7 + $0x164] ss:$16 sps:$4 sm:$0xff]  }
 0x432   :  { %16337 = vmatprep.mubr.msk.bf16.mxu0 %vm3053_vm2, %v22549_v4  ;;  %5615 = vmatpush1.bf16.msra.mxu0 %v19443_v46  ;;  %v19494_v46 = vld [vmem:[#allocation7 + $0x148] ss:$16 sps:$4 sm:$0xff]  }
 0x433   :  { %4932 = vmatmul.mubr.bf16.gmra.mrb[120].mxu1 %v22506_v16  ;;  %5616 = vmatprep.subr.bf16.mxu0 %v19448_v10  ;;  %v19502_v10 = vld [vmem:[#allocation7 + $0x16c] ss:$16 sps:$4 sm:$0xff]  }
 0x434   :  { %16350 = vmatprep.mubr.msk.bf16.mxu1 %vm3053_vm2, %v22549_v4  ;;  %5961 = vmatpush1.bf16.msra.mxu1 %v19476_v52  ;;  %v19479_v52 = vld [vmem:[#allocation7 + $0x160] ss:$16 sps:$4 sm:$0xff]  }
 0x435   :  { %5962 = vmatprep.subr.bf16.mxu1 %v19484_v0  ;;  %v19490_v0 = vld [vmem:[#allocation7 + $0x184] ss:$16 sps:$4 sm:$0xff]  }
 0x436   :  { %5617 = vmatpush1.bf16.msra.mxu0 %v19446_v45  ;;  %v19500_v45 = vld [vmem:[#allocation7 + $0x168] ss:$16 sps:$4 sm:$0xff]  }
 0x437   :  { %5618 = vmatprep.subr.bf16.mxu0 %v19457_v57  ;;  %v19508_v57 = vld [vmem:[#allocation7 + $0x18c] ss:$16 sps:$4 sm:$0xff]  }
 0x438   :  { %5963 = vmatpush1.bf16.msra.mxu1 %v19482_v32  ;;  %v19488_v32 = vld [vmem:[#allocation7 + $0x180] ss:$16 sps:$4 sm:$0xff]  }
 0x439   :  { %4596 = vmatmul.mubr.bf16.gmra.mrb[72].mxu0 %v22544_v28  ;;  %5964 = vmatprep.subr.bf16.mxu1 %v19487_v20  ;;  %v19499_v20 = vld [vmem:[#allocation7 + $0x1a4] ss:$16 sps:$4 sm:$0xff]  }
 0x43a   :  { %16338 = vmatprep.mubr.msk.bf16.mxu0 %vm3053_vm2, %v22587_v3  ;;  %5619 = vmatpush1.bf16.msra.mxu0 %v19455_v36  ;;  %v19506_v36 = vld [vmem:[#allocation7 + $0x188] ss:$16 sps:$4 sm:$0xff]  }
 0x43b   :  { %4942 = vmatmul.mubr.bf16.gmra.mrb[124].mxu1 %v22544_v28  ;;  %5620 = vmatprep.subr.bf16.mxu0 %v19466_v54  ;;  %v19511_v54 = vld [vmem:[#allocation7 + $0x1ac] ss:$16 sps:$4 sm:$0xff]  }
 0x43c   :  { %16351 = vmatprep.mubr.msk.bf16.mxu1 %vm3053_vm2, %v22587_v3  ;;  %5965 = vmatpush1.bf16.msra.mxu1 %v19485_v8  ;;  %v19497_v8 = vld [vmem:[#allocation7 + $0x1a0] ss:$16 sps:$4 sm:$0xff]  }
 0x43d   :  { %5966 = vmatprep.subr.bf16.mxu1 %v19493_v6  ;;  %v19505_v6 = vld [vmem:[#allocation7 + $0x1c4] ss:$16 sps:$4 sm:$0xff]  }
 0x43e   :  { %5621 = vmatpush1.bf16.msra.mxu0 %v19464_v50  ;;  %v19509_v50 = vld [vmem:[#allocation7 + $0x1a8] ss:$16 sps:$4 sm:$0xff]  }
 0x43f   :  { %5622 = vmatprep.subr.bf16.mxu0 %v19472_v15  ;;  %v19517_v15 = vld [vmem:[#allocation7 + $0x1cc] ss:$16 sps:$4 sm:$0xff]  }
 0x440   :  { %5967 = vmatpush1.bf16.msra.mxu1 %v19491_v1  ;;  %v19503_v1 = vld [vmem:[#allocation7 + $0x1c0] ss:$16 sps:$4 sm:$0xff]  }
 0x441   :  { %4606 = vmatmul.mubr.bf16.gmra.mrb[76].mxu0 %v22582_v2  ;;  %5968 = vmatprep.subr.bf16.mxu1 %v19496_v63  ;;  %v19514_v63 = vld [vmem:[#allocation7 + $0x1e4] ss:$16 sps:$4 sm:$0xff]  }
 0x442   :  { %16339 = vmatprep.mubr.msk.bf16.mxu0 %vm3053_vm2, %v22625_v47  ;;  %5623 = vmatpush1.bf16.msra.mxu0 %v19470_v18  ;;  %v19515_v18 = vld [vmem:[#allocation7 + $0x1c8] ss:$16 sps:$4 sm:$0xff]  }
 0x443   :  { %4952 = vmatmul.mubr.bf16.gmra.mrb[128].mxu1 %v22582_v2  ;;  %5624 = vmatprep.subr.bf16.mxu0 %v19481_v17  ;;  %v19520_v17 = vld [vmem:[#allocation7 + $0x1ec] ss:$16 sps:$4 sm:$0xff]  }
 0x444   :  { %16352 = vmatprep.mubr.msk.bf16.mxu1 %vm3053_vm2, %v22625_v47  ;;  %5969 = vmatpush1.bf16.msra.mxu1 %v19494_v46  ;;  %v19512_v46 = vld [vmem:[#allocation7 + $0x1e0] ss:$16 sps:$4 sm:$0xff]  }
 0x445   :  { %5970 = vmatprep.subr.bf16.mxu1 %v19502_v10  ;;  %v19523_v10 = vld [vmem:[#allocation7 + $0x204] ss:$16 sps:$4 sm:$0xff]  }
 0x446   :  { %5625 = vmatpush1.bf16.msra.mxu0 %v19479_v52  ;;  %v19518_v52 = vld [vmem:[#allocation7 + $0x1e8] ss:$16 sps:$4 sm:$0xff]  }
 0x447   :  { %5626 = vmatprep.subr.bf16.mxu0 %v19490_v0  ;;  %v19544_v0 = vld [vmem:[#allocation7 + $0x20c] ss:$16 sps:$4 sm:$0xff]  }
 0x448   :  { %5971 = vmatpush1.bf16.msra.mxu1 %v19500_v45  ;;  %v24470_v45 = vld [vmem:[#allocation34_spill] sm:$0xff] }
 0x449   :  { %4616 = vmatmul.mubr.bf16.gmra.mrb[80].mxu0 %v22620_v55  ;;  %5972 = vmatprep.subr.bf16.mxu1 %v19508_v57  ;;  %v24471_v57 = vld [vmem:[#allocation33_spill] sm:$0xff] }
 0x44a   :  { %16340 = vmatprep.mubr.msk.bf16.mxu0 %vm3053_vm2, %v22663_v58  ;;  %5627 = vmatpush1.bf16.msra.mxu0 %v19488_v32  ;;  %v24472_v32 = vld [vmem:[#allocation36_spill] sm:$0xff] }
 0x44b   :  { %4962 = vmatmul.mubr.bf16.gmra.mrb[132].mxu1 %v22620_v55  ;;  %5628 = vmatprep.subr.bf16.mxu0 %v19499_v20  ;;  %v24473_v20 = vld [vmem:[#allocation35_spill] sm:$0xff] }
 0x44c   :  { %16353 = vmatprep.mubr.msk.bf16.mxu1 %vm3053_vm2, %v22663_v58  ;;  %5973 = vmatpush1.bf16.msra.mxu1 %v19506_v36  ;;  %v24474_v36 = vld [vmem:[#allocation37_spill] sm:$0xff] }
 0x44d   :  { %5974 = vmatprep.subr.bf16.mxu1 %v19511_v54  ;;  %v19521_v54 = vld [vmem:[#allocation7 + $0x200] ss:$16 sps:$4 sm:$0xff]  }
 0x44e   :  { %5629 = vmatpush1.bf16.msra.mxu0 %v19497_v8  ;;  %v19526_v8 = vld [vmem:[#allocation7 + $0x224] ss:$16 sps:$4 sm:$0xff]  }
 0x44f   :  { %5630 = vmatprep.subr.bf16.mxu0 %v19505_v6  ;;  %v19542_v6 = vld [vmem:[#allocation7 + $0x208] ss:$16 sps:$4 sm:$0xff]  }
 0x450   :  { %5975 = vmatpush1.bf16.msra.mxu1 %v19509_v50  ;;  %v19550_v50 = vld [vmem:[#allocation7 + $0x22c] ss:$16 sps:$4 sm:$0xff]  }
 0x451   :  { %4626 = vmatmul.mubr.bf16.gmra.mrb[84].mxu0 %v22658_v48  ;;  %5976 = vmatprep.subr.bf16.mxu1 %v19517_v15  ;;  %v19524_v15 = vld [vmem:[#allocation7 + $0x220] ss:$16 sps:$4 sm:$0xff]  }
 0x452   :  { %16341 = vmatprep.mubr.msk.bf16.mxu0 %vm3053_vm2, %v22701_v53  ;;  %5631 = vmatpush1.bf16.msra.mxu0 %v19503_v1  ;;  %v19529_v1 = vld [vmem:[#allocation7 + $0x244] ss:$16 sps:$4 sm:$0xff]  }
 0x453   :  { %4972 = vmatmul.mubr.bf16.gmra.mrb[136].mxu1 %v22658_v48  ;;  %5632 = vmatprep.subr.bf16.mxu0 %v19514_v63  ;;  %v19548_v63 = vld [vmem:[#allocation7 + $0x228] ss:$16 sps:$4 sm:$0xff]  }
 0x454   :  { %16354 = vmatprep.mubr.msk.bf16.mxu1 %vm3053_vm2, %v22701_v53  ;;  %5977 = vmatpush1.bf16.msra.mxu1 %v19515_v18  ;;  %v19527_v18 = vld [vmem:[#allocation7 + $0x240] ss:$16 sps:$4 sm:$0xff]  }
 0x455   :  { %5978 = vmatprep.subr.bf16.mxu1 %v19520_v17  ;;  %v19532_v17 = vld [vmem:[#allocation7 + $0x264] ss:$16 sps:$4 sm:$0xff]  }
 0x456   :  { %5633 = vmatpush1.bf16.msra.mxu0 %v19512_v46  ;;  %v19551_v46 = vld [vmem:[#allocation7 + $0x248] ss:$16 sps:$4 sm:$0xff]  }
 0x457   :  { %5775 = vmatprep.subr.bf16.mxu0 %v19523_v10  ;;  %v19559_v10 = vld [vmem:[#allocation7 + $0x26c] ss:$16 sps:$4 sm:$0xff]  }
 0x458   :  { %5979 = vmatpush1.bf16.msra.mxu1 %v19518_v52  ;;  %v19557_v52 = vld [vmem:[#allocation7 + $0x268] ss:$16 sps:$4 sm:$0xff]  }
 0x459   :  { %4636 = vmatmul.mubr.bf16.gmra.mrb[88].mxu0 %v22696_v43  ;;  %6121 = vmatprep.subr.bf16.mxu1 %v19544_v0  ;;  %v19562_v0 = vld [vmem:[#allocation7 + $0x28c] ss:$16 sps:$4 sm:$0xff]  }
 0x45a   :  { %16342 = vmatprep.mubr.msk.bf16.mxu0 %vm3053_vm2, %v22739_v7 }
 0x45b   :  { %4982 = vmatmul.mubr.bf16.gmra.mrb[140].mxu1 %v22696_v43 }
 0x45c   :  { %16355 = vmatprep.mubr.msk.bf16.mxu1 %vm3053_vm2, %v22739_v7 }
 0x461   :  { %4646 = vmatmul.mubr.bf16.gmra.mrb[92].mxu0 %v22734_v12 }
 0x462   :  { %16343 = vmatprep.mubr.msk.bf16.mxu0 %vm3053_vm2, %v24470_v45 }
 0x463   :  { %4992 = vmatmul.mubr.bf16.gmra.mrb[144].mxu1 %v22734_v12 }
 0x464   :  { %16356 = vmatprep.mubr.msk.bf16.mxu1 %vm3053_vm2, %v24470_v45 }
 0x469   :  { %4656 = vmatmul.mubr.bf16.gmra.mrb[96].mxu0 %v24471_v57 }
 0x46a   :  { %16344 = vmatprep.mubr.msk.bf16.mxu0 %vm3053_vm2, %v24472_v32 }
 0x46b   :  { %5002 = vmatmul.mubr.bf16.gmra.mrb[148].mxu1 %v24471_v57 }
 0x46c   :  { %16357 = vmatprep.mubr.msk.bf16.mxu1 %vm3053_vm2, %v24472_v32 }
 0x471   :  { %4666 = vmatmul.mubr.bf16.gmra.mrb[100].mxu0 %v24473_v20 }
 0x472   :  { %16345 = vmatprep.mubr.msk.bf16.mxu0 %vm3053_vm2, %v24474_v36 }
 0x473   :  { %5012 = vmatmul.mubr.bf16.gmra.mrb[152].mxu1 %v24473_v20 }
 0x474   :  { %16358 = vmatprep.mubr.msk.bf16.mxu1 %vm3053_vm2, %v24474_v36 }
 0x479   :  { %4676 = vmatmul.mubr.bf16.gmra.mrb[104].mxu0 %v22782_v59 }
 0x47a   :  { %16346 = vmatprep.mubr.msk.bf16.mxu0 %vm3053_vm2, %v22798_v49 }
 0x47b   :  { %5022 = vmatmul.mubr.bf16.gmra.mrb[156].mxu1 %v22782_v59 }
 0x47c   :  { %16359 = vmatprep.mubr.msk.bf16.mxu1 %vm3053_vm2, %v22798_v49 }
 0x481   :  { %4686 = vmatmul.mubr.bf16.gmra.mrb[108].mxu0 %v22796_v5 }
 0x482   :  { %5634 = vmatprep.mubr.bf16.mxu0 %v22168_v26 }
 0x483   :  { %5032 = vmatmul.mubr.bf16.gmra.mrb[160].mxu1 %v22796_v5 }
 0x484   :  { %5980 = vmatprep.mubr.bf16.mxu1 %v22168_v26  ;;  %v19553_v26 = vld [vmem:[#allocation7 + $0x24c] ss:$16 sps:$4 sm:$0xff]  }
 0x489   :  { %5635 = vmatmul.mubr.bf16.vlgmr.msra.gmra.mrb[56].mxu0 %v22163_v19 }
 0x48a   :  { %5644 = vmatprep.mubr.bf16.mxu0 %v22185_v13  ;;  %5776 = vmatpush1.bf16.msra.mxu0 %v19521_v54  ;;  %v19533_v54 = vld [vmem:[#allocation7 + $0x280] ss:$16 sps:$4 sm:$0xff]  }
 0x48b   :  { %5981 = vmatmul.mubr.bf16.vlgmr.msra.gmra.mrb[108].mxu1 %v22163_v19  ;;  %5777 = vmatprep.subr.bf16.mxu0 %v19526_v8  ;;  %v19530_v19 = vld [vmem:[#allocation7 + $0x260] ss:$16 sps:$4 sm:$0xff]   ;;  %v19538_v8 = vld [vmem:[#allocation7 + $0x2a4] ss:$16 sps:$4 sm:$0xff]  }
 0x48c   :  { %5990 = vmatprep.mubr.bf16.mxu1 %v22185_v13  ;;  %6122 = vmatpush1.bf16.msra.mxu1 %v19542_v6  ;;  %v19535_v13 = vld [vmem:[#allocation7 + $0x284] ss:$16 sps:$4 sm:$0xff]   ;;  %v19560_v6 = vld [vmem:[#allocation7 + $0x288] ss:$16 sps:$4 sm:$0xff]  }
 0x48d   :  { %6123 = vmatprep.subr.bf16.mxu1 %v19550_v50  ;;  %v19568_v50 = vld [vmem:[#allocation7 + $0x2ac] ss:$16 sps:$4 sm:$0xff]  }
 0x48e   :  { %5778 = vmatpush1.bf16.msra.mxu0 %v19524_v15  ;;  %v19566_v15 = vld [vmem:[#allocation7 + $0x2a8] ss:$16 sps:$4 sm:$0xff]  }
 0x48f   :  { %5779 = vmatprep.subr.bf16.mxu0 %v19529_v1  ;;  %v19571_v1 = vld [vmem:[#allocation7 + $0x2cc] ss:$16 sps:$4 sm:$0xff]  }
 0x490   :  { %6124 = vmatpush1.bf16.msra.mxu1 %v19548_v63  ;;  %v19539_v63 = vld [vmem:[#allocation7 + $0x2c0] ss:$16 sps:$4 sm:$0xff]  }
 0x491   :  { %5645 = vmatmul.mubr.bf16.gmra.mrb[60].mxu0 %v22180_v30  ;;  %6125 = vmatprep.subr.bf16.mxu1 %v19553_v26  ;;  %v19547_v26 = vld [vmem:[#allocation7 + $0x2e4] ss:$16 sps:$4 sm:$0xff]  }
 0x492   :  { %5654 = vmatprep.mubr.bf16.mxu0 %v22202_v34  ;;  %5780 = vmatpush1.bf16.msra.mxu0 %v19527_v18  ;;  %v19569_v18 = vld [vmem:[#allocation7 + $0x2c8] ss:$16 sps:$4 sm:$0xff]  }
 0x493   :  { %5991 = vmatmul.mubr.bf16.gmra.mrb[112].mxu1 %v22180_v30  ;;  %5781 = vmatprep.subr.bf16.mxu0 %v19532_v17  ;;  %v19536_v30 = vld [vmem:[#allocation7 + $0x2a0] ss:$16 sps:$4 sm:$0xff]   ;;  %v19577_v17 = vld [vmem:[#allocation7 + $0x2ec] ss:$16 sps:$4 sm:$0xff]  }
 0x494   :  { %6000 = vmatprep.mubr.bf16.mxu1 %v22202_v34  ;;  %6126 = vmatpush1.bf16.msra.mxu1 %v19551_v46  ;;  %v19541_v34 = vld [vmem:[#allocation7 + $0x2c4] ss:$16 sps:$4 sm:$0xff]   ;;  %v19575_v46 = vld [vmem:[#allocation7 + $0x2e8] ss:$16 sps:$4 sm:$0xff]  }
 0x495   :  { %6127 = vmatprep.subr.bf16.mxu1 %v19559_v10  ;;  %v19580_v10 = vld [vmem:[#allocation7 + $0x30c] ss:$16 sps:$4 sm:$0xff]  }
 0x496   :  { %5782 = vmatpush1.bf16.msra.mxu0 %v19530_v19  ;;  %v19554_v19 = vld [vmem:[#allocation7 + $0x300] ss:$16 sps:$4 sm:$0xff]  }
 0x497   :  { %5783 = vmatprep.subr.bf16.mxu0 %v19535_v13  ;;  %v19565_v13 = vld [vmem:[#allocation7 + $0x324] ss:$16 sps:$4 sm:$0xff]  }
 0x498   :  { %6128 = vmatpush1.bf16.msra.mxu1 %v19557_v52  ;;  %v19578_v52 = vld [vmem:[#allocation7 + $0x308] ss:$16 sps:$4 sm:$0xff]  }
 0x499   :  { %5655 = vmatmul.mubr.bf16.gmra.mrb[64].mxu0 %v22197_v22  ;;  %6129 = vmatprep.subr.bf16.mxu1 %v19562_v0  ;;  %v19583_v0 = vld [vmem:[#allocation7 + $0x32c] ss:$16 sps:$4 sm:$0xff]  }
 0x49a   :  { %5664 = vmatprep.mubr.bf16.mxu0 %v22219_v39  ;;  %5784 = vmatpush1.bf16.msra.mxu0 %v19533_v54  ;;  %v19581_v54 = vld [vmem:[#allocation7 + $0x328] ss:$16 sps:$4 sm:$0xff]  }
 0x49b   :  { %6001 = vmatmul.mubr.bf16.gmra.mrb[116].mxu1 %v22197_v22  ;;  %5785 = vmatprep.subr.bf16.mxu0 %v19538_v8  ;;  %v19545_v22 = vld [vmem:[#allocation7 + $0x2e0] ss:$16 sps:$4 sm:$0xff]   ;;  %v19589_v8 = vld [vmem:[#allocation7 + $0x34c] ss:$16 sps:$4 sm:$0xff]  }
 0x49c   :  { %6010 = vmatprep.mubr.bf16.mxu1 %v22219_v39  ;;  %6130 = vmatpush1.bf16.msra.mxu1 %v19560_v6  ;;  %v19556_v39 = vld [vmem:[#allocation7 + $0x304] ss:$16 sps:$4 sm:$0xff]   ;;  %v19572_v6 = vld [vmem:[#allocation7 + $0x340] ss:$16 sps:$4 sm:$0xff]  }
 0x49d   :  { %6131 = vmatprep.subr.bf16.mxu1 %v19568_v50  ;;  %v19586_v50 = vld [vmem:[#allocation7 + $0x364] ss:$16 sps:$4 sm:$0xff]  }
 0x49e   :  { %5786 = vmatpush1.bf16.msra.mxu0 %v19536_v30  ;;  %v19587_v30 = vld [vmem:[#allocation7 + $0x348] ss:$16 sps:$4 sm:$0xff]  }
 0x49f   :  { %5787 = vmatprep.subr.bf16.mxu0 %v19541_v34  ;;  %v19592_v34 = vld [vmem:[#allocation7 + $0x36c] ss:$16 sps:$4 sm:$0xff]  }
 0x4a0   :  { %6132 = vmatpush1.bf16.msra.mxu1 %v19566_v15  ;;  %v19608_v15 = vld [vmem:[#allocation10 + $0x48] ss:$16 sps:$4 sm:$0xff]  }
 0x4a1   :  { %5665 = vmatmul.mubr.bf16.gmra.mrb[68].mxu0 %v22214_v21  ;;  %6133 = vmatprep.subr.bf16.mxu1 %v19571_v1  ;;  %v19616_v1 = vld [vmem:[#allocation10 + $0x6c] ss:$16 sps:$4 sm:$0xff]  }
 0x4a2   :  { %5674 = vmatprep.mubr.bf16.mxu0 %v22238_v25  ;;  %5788 = vmatpush1.bf16.msra.mxu0 %v19539_v63  ;;  %v19614_v63 = vld [vmem:[#allocation10 + $0x68] ss:$16 sps:$4 sm:$0xff]  }
 0x4a3   :  { %6011 = vmatmul.mubr.bf16.gmra.mrb[120].mxu1 %v22214_v21  ;;  %5789 = vmatprep.subr.bf16.mxu0 %v19547_v26  ;;  %v19563_v21 = vld [vmem:[#allocation7 + $0x320] ss:$16 sps:$4 sm:$0xff]   ;;  %v19622_v26 = vld [vmem:[#allocation10 + $0x8c] ss:$16 sps:$4 sm:$0xff]  }
 0x4a4   :  { %6020 = vmatprep.mubr.bf16.mxu1 %v22238_v25  ;;  %6134 = vmatpush1.bf16.msra.mxu1 %v19569_v18  ;;  %v19574_v25 = vld [vmem:[#allocation7 + $0x344] ss:$16 sps:$4 sm:$0xff]   ;;  %v19617_v18 = vld [vmem:[#allocation10 + $0x80] ss:$16 sps:$4 sm:$0xff]  }
 0x4a5   :  { %6135 = vmatprep.subr.bf16.mxu1 %v19577_v17  ;;  %v19625_v17 = vld [vmem:[#allocation10 + $0xa4] ss:$16 sps:$4 sm:$0xff]  }
 0x4a6   :  { %5790 = vmatpush1.bf16.msra.mxu0 %v19545_v22  ;;  %v19620_v22 = vld [vmem:[#allocation10 + $0x88] ss:$16 sps:$4 sm:$0xff]  }
 0x4a7   :  { %5791 = vmatprep.subr.bf16.mxu0 %v19556_v39  ;;  %v19628_v39 = vld [vmem:[#allocation10 + $0xac] ss:$16 sps:$4 sm:$0xff]  }
 0x4a8   :  { %6136 = vmatpush1.bf16.msra.mxu1 %v19575_v46  ;;  %v19626_v46 = vld [vmem:[#allocation10 + $0xa8] ss:$16 sps:$4 sm:$0xff]  }
 0x4a9   :  { %5675 = vmatmul.mubr.bf16.gmra.mrb[72].mxu0 %v22231_v42  ;;  %6137 = vmatprep.subr.bf16.mxu1 %v19580_v10  ;;  %v19634_v10 = vld [vmem:[#allocation10 + $0xcc] ss:$16 sps:$4 sm:$0xff]  }
 0x4aa   :  { %5684 = vmatprep.mubr.bf16.mxu0 %v22257_v27  ;;  %5792 = vmatpush1.bf16.msra.mxu0 %v19554_v19  ;;  %v19629_v19 = vld [vmem:[#allocation10 + $0xc0] ss:$16 sps:$4 sm:$0xff]  }
 0x4ab   :  { %6021 = vmatmul.mubr.bf16.gmra.mrb[124].mxu1 %v22231_v42  ;;  %5793 = vmatprep.subr.bf16.mxu0 %v19565_v13  ;;  %v19584_v42 = vld [vmem:[#allocation7 + $0x360] ss:$16 sps:$4 sm:$0xff]   ;;  %v19637_v13 = vld [vmem:[#allocation10 + $0xe4] ss:$16 sps:$4 sm:$0xff]  }
 0x4ac   :  { %6030 = vmatprep.mubr.bf16.mxu1 %v22257_v27  ;;  %6138 = vmatpush1.bf16.msra.mxu1 %v19578_v52  ;;  %v19590_v27 = vld [vmem:[#allocation7 + $0x368] ss:$16 sps:$4 sm:$0xff]  }
 0x4ad   :  { %6139 = vmatprep.subr.bf16.mxu1 %v19583_v0  ;;  %v19632_v52 = vld [vmem:[#allocation10 + $0xc8] ss:$16 sps:$4 sm:$0xff]   ;;  %v19640_v0 = vld [vmem:[#allocation10 + $0xec] ss:$16 sps:$4 sm:$0xff]  }
 0x4ae   :  { %5794 = vmatpush1.bf16.msra.mxu0 %v19563_v21  ;;  %v19638_v21 = vld [vmem:[#allocation10 + $0xe8] ss:$16 sps:$4 sm:$0xff]  }
 0x4af   :  { %5795 = vmatprep.subr.bf16.mxu0 %v19574_v25  ;;  %v19646_v25 = vld [vmem:[#allocation10 + $0x10c] ss:$16 sps:$4 sm:$0xff]  }
 0x4b0   :  { %6140 = vmatpush1.bf16.msra.mxu1 %v19581_v54  ;;  %v19641_v54 = vld [vmem:[#allocation10 + $0x100] ss:$16 sps:$4 sm:$0xff]  }
 0x4b1   :  { %5685 = vmatmul.mubr.bf16.gmra.mrb[76].mxu0 %v22250_v40  ;;  %6141 = vmatprep.subr.bf16.mxu1 %v19589_v8  ;;  %v19649_v8 = vld [vmem:[#allocation10 + $0x124] ss:$16 sps:$4 sm:$0xff]  }
 0x4b2   :  { %5694 = vmatprep.mubr.bf16.mxu0 %v22276_v37  ;;  %5796 = vmatpush1.bf16.msra.mxu0 %v19572_v6  ;;  %v19644_v6 = vld [vmem:[#allocation10 + $0x108] ss:$16 sps:$4 sm:$0xff]  }
 0x4b3   :  { %6031 = vmatmul.mubr.bf16.gmra.mrb[128].mxu1 %v22250_v40  ;;  %5797 = vmatprep.subr.bf16.mxu0 %v19586_v50  ;;  %v24475_v40 = vld [vmem:[#allocation30_spill] sm:$0xff] }
 0x4b4   :  { %6040 = vmatprep.mubr.bf16.mxu1 %v22276_v37  ;;  %6142 = vmatpush1.bf16.msra.mxu1 %v19587_v30  ;;  %v19598_v37 = vld [vmem:[#allocation10 + $0xc] ss:$16 sps:$4 sm:$0xff]   ;;  %v19650_v30 = vld [vmem:[#allocation10 + $0x128] ss:$16 sps:$4 sm:$0xff]  }
 0x4b5   :  { %6143 = vmatprep.subr.bf16.mxu1 %v19592_v34  ;;  %v19652_v50 = vld [vmem:[#allocation10 + $0x12c] ss:$16 sps:$4 sm:$0xff]  }
 0x4b6   :  { %5798 = vmatpush1.bf16.msra.mxu0 %v19584_v42  ;;  %v19658_v34 = vld [vmem:[#allocation10 + $0x14c] ss:$16 sps:$4 sm:$0xff]   ;;  %v19653_v42 = vld [vmem:[#allocation10 + $0x140] ss:$16 sps:$4 sm:$0xff]  }
 0x4b8   :  { %6144 = vmatpush1.bf16.msra.mxu1 %v19590_v27  ;;  %v19661_v27 = vld [vmem:[#allocation10 + $0x164] ss:$16 sps:$4 sm:$0xff]  }
 0x4b9   :  { %5695 = vmatmul.mubr.bf16.gmra.mrb[80].mxu0 %v22269_v62  ;;  %7831 = vmatprep.subr.bf16.mxu1 %v19598_v37  ;;  %v19662_v37 = vld [vmem:[#allocation10 + $0x168] ss:$16 sps:$4 sm:$0xff]  }
 0x4ba   :  { %5704 = vmatprep.mubr.bf16.mxu0 %v22295_v33 }
 0x4bb   :  { %6041 = vmatmul.mubr.bf16.gmra.mrb[132].mxu1 %v22269_v62  ;;  %v19595_v62 = vld [vmem:[#allocation10 + $0x4] ss:$16 sps:$4 sm:$0xff]  }
 0x4bc   :  { %6050 = vmatprep.mubr.bf16.mxu1 %v22295_v33  ;;  %7625 = vmatprep.subr.bf16.mxu0 %v19595_v62  ;;  %v19593_v33 = vld [vmem:[#allocation10] ss:$16 sps:$4 sm:$0xff]   ;;  %v19664_v62 = vld [vmem:[#allocation10 + $0x16c] ss:$16 sps:$4 sm:$0xff]  }
 0x4c1   :  { %5705 = vmatmul.mubr.bf16.gmra.mrb[84].mxu0 %v22288_v11 }
 0x4c2   :  { %5714 = vmatprep.mubr.bf16.mxu0 %v22314_v35 }
 0x4c3   :  { %6051 = vmatmul.mubr.bf16.gmra.mrb[136].mxu1 %v22288_v11  ;;  %v24476_v11 = vld [vmem:[#allocation29_spill] sm:$0xff] }
 0x4c4   :  { %6060 = vmatprep.mubr.bf16.mxu1 %v22314_v35  ;;  %v19596_v35 = vld [vmem:[#allocation10 + $0x8] ss:$16 sps:$4 sm:$0xff]  }
 0x4c9   :  { %5715 = vmatmul.mubr.bf16.gmra.mrb[88].mxu0 %v22307_v9 }
 0x4ca   :  { %5724 = vmatprep.mubr.bf16.mxu0 %v22333_v56 }
 0x4cb   :  { %6061 = vmatmul.mubr.bf16.gmra.mrb[140].mxu1 %v22307_v9  ;;  %v19601_v9 = vld [vmem:[#allocation10 + $0x24] ss:$16 sps:$4 sm:$0xff]  }
 0x4cc   :  { %6070 = vmatprep.mubr.bf16.mxu1 %v22333_v56  ;;  %v19599_v56 = vld [vmem:[#allocation10 + $0x20] ss:$16 sps:$4 sm:$0xff]  }
 0x4d1   :  { %5725 = vmatmul.mubr.bf16.gmra.mrb[92].mxu0 %v22326_v23 }
 0x4d2   :  { %5734 = vmatprep.mubr.bf16.mxu0 %v22355_v31 }
 0x4d3   :  { %6071 = vmatmul.mubr.bf16.gmra.mrb[144].mxu1 %v22326_v23  ;;  %v19604_v23 = vld [vmem:[#allocation10 + $0x2c] ss:$16 sps:$4 sm:$0xff]  }
 0x4d4   :  { %6080 = vmatprep.mubr.bf16.mxu1 %v22355_v31  ;;  %v19602_v31 = vld [vmem:[#allocation10 + $0x28] ss:$16 sps:$4 sm:$0xff]  }
 0x4d9   :  { %5735 = vmatmul.mubr.bf16.gmra.mrb[96].mxu0 %v22348_v60 }
 0x4da   :  { %5744 = vmatprep.mubr.bf16.mxu0 %v22371_v41 }
 0x4db   :  { %6081 = vmatmul.mubr.bf16.gmra.mrb[148].mxu1 %v22348_v60  ;;  %v19607_v60 = vld [vmem:[#allocation10 + $0x44] ss:$16 sps:$4 sm:$0xff]  }
 0x4dc   :  { %6090 = vmatprep.mubr.bf16.mxu1 %v22371_v41  ;;  %v19605_v41 = vld [vmem:[#allocation10 + $0x40] ss:$16 sps:$4 sm:$0xff]  }
 0x4e1   :  { %5745 = vmatmul.mubr.bf16.gmra.mrb[100].mxu0 %v22367_v51 }
 0x4e2   :  { %5754 = vmatprep.mubr.bf16.mxu0 %v24475_v40 }
 0x4e3   :  { %6091 = vmatmul.mubr.bf16.gmra.mrb[152].mxu1 %v22367_v51  ;;  %v19610_v51 = vld [vmem:[#allocation10 + $0x4c] ss:$16 sps:$4 sm:$0xff]  }
 0x4e4   :  { %6100 = vmatprep.mubr.bf16.mxu1 %v24475_v40  ;;  %v19656_v40 = vld [vmem:[#allocation10 + $0x148] ss:$16 sps:$4 sm:$0xff]  }
 0x4e9   :  { %5755 = vmatmul.mubr.bf16.gmra.mrb[104].mxu0 %v24476_v11 }
 0x4ea   :  { %5764 = vmatprep.mubr.bf16.mxu0 %v24442_v14 }
 0x4eb   :  { %6101 = vmatmul.mubr.bf16.gmra.mrb[156].mxu1 %v24476_v11  ;;  %v19670_v11 = vld [vmem:[#allocation10 + $0x18c] ss:$16 sps:$4 sm:$0xff]  }
 0x4ec   :  { %6110 = vmatprep.mubr.bf16.mxu1 %v24442_v14 }
 0x4f1   :  { %5765 = vmatmul.mubr.bf16.gmra.mrb[108].mxu0 %v24442_v14 }
 0x4f2   :  { %16472 = vmatprep.mubr.msk.bf16.mxu0 %vm3053_vm2, %v22473_v44 }
 0x4f3   :  { %6111 = vmatmul.mubr.bf16.gmra.mrb[160].mxu1 %v24442_v14 }
 0x4f4   :  { %16485 = vmatprep.mubr.msk.bf16.mxu1 %vm3053_vm2, %v22473_v44  ;;  %v19613_v44 = vld [vmem:[#allocation10 + $0x64] ss:$16 sps:$4 sm:$0xff]  }
 0x4f9   :  { %5808 = vmatmul.mubr.bf16.vlgmr.msra.gmra.mrb[56].mxu0 %v22468_v61 }
 0x4fa   :  { %16473 = vmatprep.mubr.msk.bf16.mxu0 %vm3053_vm2, %v22511_v29  ;;  %7626 = vmatpush1.bf16.msra.mxu0 %v19593_v33  ;;  %v19665_v33 = vld [vmem:[#allocation10 + $0x180] ss:$16 sps:$4 sm:$0xff]  }
 0x4fb   :  { %6154 = vmatmul.mubr.bf16.vlgmr.msra.gmra.mrb[108].mxu1 %v22468_v61  ;;  %7627 = vmatprep.subr.bf16.mxu0 %v19601_v9  ;;  %v19611_v61 = vld [vmem:[#allocation10 + $0x60] ss:$16 sps:$4 sm:$0xff]   ;;  %v19673_v9 = vld [vmem:[#allocation10 + $0x1a4] ss:$16 sps:$4 sm:$0xff]  }
 0x4fc   :  { %16486 = vmatprep.mubr.msk.bf16.mxu1 %vm3053_vm2, %v22511_v29  ;;  %7832 = vmatpush1.bf16.msra.mxu1 %v19596_v35  ;;  %v19619_v29 = vld [vmem:[#allocation10 + $0x84] ss:$16 sps:$4 sm:$0xff]   ;;  %v19668_v35 = vld [vmem:[#allocation10 + $0x188] ss:$16 sps:$4 sm:$0xff]  }
 0x4fd   :  { %7833 = vmatprep.subr.bf16.mxu1 %v19604_v23  ;;  %v19676_v23 = vld [vmem:[#allocation10 + $0x1ac] ss:$16 sps:$4 sm:$0xff]  }
 0x4fe   :  { %7628 = vmatpush1.bf16.msra.mxu0 %v19599_v56 }
 0x4ff   :  { %7629 = vmatprep.subr.bf16.mxu0 %v19607_v60  ;;  %v24478_v60 = vld [vmem:[#allocation46_spill] sm:$0xff] }
 0x500   :  { %7834 = vmatpush1.bf16.msra.mxu1 %v19602_v31 }
 0x501   :  { %5818 = vmatmul.mubr.bf16.gmra.mrb[60].mxu0 %v22506_v16  ;;  %7835 = vmatprep.subr.bf16.mxu1 %v19610_v51 }
 0x502   :  { %16474 = vmatprep.mubr.msk.bf16.mxu0 %vm3053_vm2, %v22549_v4  ;;  %7630 = vmatpush1.bf16.msra.mxu0 %v19605_v41 }
 0x503   :  { %6164 = vmatmul.mubr.bf16.gmra.mrb[112].mxu1 %v22506_v16  ;;  %7631 = vmatprep.subr.bf16.mxu0 %v19613_v44  ;;  %v19623_v16 = vld [vmem:[#allocation10 + $0xa0] ss:$16 sps:$4 sm:$0xff]   ;;  %v24480_v44 = vld [vmem:[#allocation32_spill] sm:$0xff] }
 0x504   :  { %16487 = vmatprep.mubr.msk.bf16.mxu1 %vm3053_vm2, %v22549_v4  ;;  %7836 = vmatpush1.bf16.msra.mxu1 %v19608_v15  ;;  %v19631_v4 = vld [vmem:[#allocation10 + $0xc4] ss:$16 sps:$4 sm:$0xff]  }
 0x505   :  { %7837 = vmatprep.subr.bf16.mxu1 %v19616_v1 }
 0x506   :  { %7632 = vmatpush1.bf16.msra.mxu0 %v19611_v61 }
 0x507   :  { %7633 = vmatprep.subr.bf16.mxu0 %v19619_v29 }
 0x508   :  { %7838 = vmatpush1.bf16.msra.mxu1 %v19614_v63 }
 0x509   :  { %5828 = vmatmul.mubr.bf16.gmra.mrb[64].mxu0 %v22544_v28  ;;  %7839 = vmatprep.subr.bf16.mxu1 %v19622_v26 }
 0x50a   :  { %16475 = vmatprep.mubr.msk.bf16.mxu0 %vm3053_vm2, %v22587_v3  ;;  %7634 = vmatpush1.bf16.msra.mxu0 %v19617_v18 }
 0x50b   :  { %6174 = vmatmul.mubr.bf16.gmra.mrb[116].mxu1 %v22544_v28  ;;  %7635 = vmatprep.subr.bf16.mxu0 %v19625_v17  ;;  %v19635_v28 = vld [vmem:[#allocation10 + $0xe0] ss:$16 sps:$4 sm:$0xff]  }
 0x50c   :  { %16488 = vmatprep.mubr.msk.bf16.mxu1 %vm3053_vm2, %v22587_v3  ;;  %7840 = vmatpush1.bf16.msra.mxu1 %v19620_v22  ;;  %v19643_v3 = vld [vmem:[#allocation10 + $0x104] ss:$16 sps:$4 sm:$0xff]  }
 0x50d   :  { %7841 = vmatprep.subr.bf16.mxu1 %v19628_v39 }
 0x50e   :  { %7636 = vmatpush1.bf16.msra.mxu0 %v19623_v16 }
 0x50f   :  { %7637 = vmatprep.subr.bf16.mxu0 %v19631_v4 }
 0x510   :  { %7842 = vmatpush1.bf16.msra.mxu1 %v19626_v46 }
 0x511   :  { %5838 = vmatmul.mubr.bf16.gmra.mrb[68].mxu0 %v22582_v2  ;;  %7843 = vmatprep.subr.bf16.mxu1 %v19634_v10 }
 0x512   :  { %16476 = vmatprep.mubr.msk.bf16.mxu0 %vm3053_vm2, %v22625_v47  ;;  %7638 = vmatpush1.bf16.msra.mxu0 %v19629_v19 }
 0x513   :  { %6184 = vmatmul.mubr.bf16.gmra.mrb[120].mxu1 %v22582_v2  ;;  %7639 = vmatprep.subr.bf16.mxu0 %v19637_v13  ;;  %v19647_v2 = vld [vmem:[#allocation10 + $0x120] ss:$16 sps:$4 sm:$0xff]  }
 0x514   :  { %16489 = vmatprep.mubr.msk.bf16.mxu1 %vm3053_vm2, %v22625_v47  ;;  %7844 = vmatpush1.bf16.msra.mxu1 %v19632_v52  ;;  %v19655_v47 = vld [vmem:[#allocation10 + $0x144] ss:$16 sps:$4 sm:$0xff]  }
 0x515   :  { %7845 = vmatprep.subr.bf16.mxu1 %v19640_v0 }
 0x516   :  { %7640 = vmatpush1.bf16.msra.mxu0 %v19635_v28 }
 0x517   :  { %7641 = vmatprep.subr.bf16.mxu0 %v19643_v3 }
 0x518   :  { %7846 = vmatpush1.bf16.msra.mxu1 %v19638_v21 }
 0x519   :  { %5848 = vmatmul.mubr.bf16.gmra.mrb[72].mxu0 %v22620_v55  ;;  %7847 = vmatprep.subr.bf16.mxu1 %v19646_v25 }
 0x51a   :  { %16477 = vmatprep.mubr.msk.bf16.mxu0 %vm3053_vm2, %v22663_v58  ;;  %7642 = vmatpush1.bf16.msra.mxu0 %v19641_v54 }
 0x51b   :  { %6194 = vmatmul.mubr.bf16.gmra.mrb[124].mxu1 %v22620_v55  ;;  %7643 = vmatprep.subr.bf16.mxu0 %v19649_v8  ;;  %v19659_v55 = vld [vmem:[#allocation10 + $0x160] ss:$16 sps:$4 sm:$0xff]  }
 0x51c   :  { %16490 = vmatprep.mubr.msk.bf16.mxu1 %vm3053_vm2, %v22663_v58  ;;  %7848 = vmatpush1.bf16.msra.mxu1 %v19644_v6  ;;  %v19667_v58 = vld [vmem:[#allocation10 + $0x184] ss:$16 sps:$4 sm:$0xff]   ;;  %v19689_v8 = vld [vmem:[#allocation10 + $0x200] ss:$16 sps:$4 sm:$0xff]  }
 0x51d   :  { %7849 = vmatprep.subr.bf16.mxu1 %v19652_v50 }
 0x51e   :  { %7644 = vmatpush1.bf16.msra.mxu0 %v19647_v2 }
 0x51f   :  { %7645 = vmatprep.subr.bf16.mxu0 %v19655_v47 }
 0x520   :  { %7850 = vmatpush1.bf16.msra.mxu1 %v19650_v30  ;;  %v19695_v30 = vld [vmem:[#allocation10 + $0x208] ss:$16 sps:$4 sm:$0xff]  }
 0x521   :  { %5858 = vmatmul.mubr.bf16.gmra.mrb[76].mxu0 %v22658_v48  ;;  %7851 = vmatprep.subr.bf16.mxu1 %v19658_v34 }
 0x522   :  { %16478 = vmatprep.mubr.msk.bf16.mxu0 %vm3053_vm2, %v22701_v53  ;;  %7646 = vmatpush1.bf16.msra.mxu0 %v19653_v42 }
 0x523   :  { %6204 = vmatmul.mubr.bf16.gmra.mrb[128].mxu1 %v22658_v48  ;;  %7647 = vmatprep.subr.bf16.mxu0 %v19661_v27  ;;  %v19671_v48 = vld [vmem:[#allocation10 + $0x1a0] ss:$16 sps:$4 sm:$0xff]  }
 0x524   :  { %16491 = vmatprep.mubr.msk.bf16.mxu1 %vm3053_vm2, %v22701_v53  ;;  %7852 = vmatpush1.bf16.msra.mxu1 %v19656_v40  ;;  %v19674_v53 = vld [vmem:[#allocation10 + $0x1a8] ss:$16 sps:$4 sm:$0xff]   ;;  %v19694_v40 = vld [vmem:[#allocation10 + $0x224] ss:$16 sps:$4 sm:$0xff]  }
 0x525   :  { %7853 = vmatprep.subr.bf16.mxu1 %v19664_v62  ;;  %v19703_v62 = vld [vmem:[#allocation10 + $0x22c] ss:$16 sps:$4 sm:$0xff]  }
 0x526   :  { %7648 = vmatpush1.bf16.msra.mxu0 %v19659_v55 }
 0x527   :  { %7649 = vmatprep.subr.bf16.mxu0 %v19667_v58 }
 0x528   :  { %7854 = vmatpush1.bf16.msra.mxu1 %v19662_v37 }
 0x529   :  { %5868 = vmatmul.mubr.bf16.gmra.mrb[80].mxu0 %v22696_v43  ;;  %7855 = vmatprep.subr.bf16.mxu1 %v19670_v11 }
 0x52a   :  { %16479 = vmatprep.mubr.msk.bf16.mxu0 %vm3053_vm2, %v22739_v7  ;;  %7650 = vmatpush1.bf16.msra.mxu0 %v19665_v33 }
 0x52b   :  { %6214 = vmatmul.mubr.bf16.gmra.mrb[132].mxu1 %v22696_v43  ;;  %7651 = vmatprep.subr.bf16.mxu0 %v19673_v9  ;;  %v19682_v43 = vld [vmem:[#allocation10 + $0x1cc] ss:$16 sps:$4 sm:$0xff]  }
 0x52c   :  { %16492 = vmatprep.mubr.msk.bf16.mxu1 %vm3053_vm2, %v22739_v7  ;;  %7856 = vmatpush1.bf16.msra.mxu1 %v19668_v35  ;;  %v19679_v7 = vld [vmem:[#allocation10 + $0x1c4] ss:$16 sps:$4 sm:$0xff]  }
 0x52d   :  { %7857 = vmatprep.subr.bf16.mxu1 %v19676_v23 }
 0x52e   :  { %7652 = vmatpush1.bf16.msra.mxu0 %v19671_v48  ;;  %v19692_v48 = vld [vmem:[#allocation10 + $0x220] ss:$16 sps:$4 sm:$0xff]  }
 0x52f   :  { %7653 = vmatprep.subr.bf16.mxu0 %v19679_v7 }
 0x530   :  { %7858 = vmatpush1.bf16.msra.mxu1 %v19674_v53 }
 0x531   :  { %5878 = vmatmul.mubr.bf16.gmra.mrb[84].mxu0 %v22734_v12  ;;  %7859 = vmatprep.subr.bf16.mxu1 %v19682_v43 }
 0x532   :  { %16480 = vmatprep.mubr.msk.bf16.mxu0 %vm3053_vm2, %v24470_v45 }
 0x533   :  { %6224 = vmatmul.mubr.bf16.gmra.mrb[136].mxu1 %v22734_v12  ;;  %v19677_v12 = vld [vmem:[#allocation10 + $0x1c0] ss:$16 sps:$4 sm:$0xff]  }
 0x534   :  { %16493 = vmatprep.mubr.msk.bf16.mxu1 %vm3053_vm2, %v24470_v45  ;;  %v19680_v45 = vld [vmem:[#allocation10 + $0x1c8] ss:$16 sps:$4 sm:$0xff]   ;;  %7654 = vmatpush1.bf16.msra.mxu0 %v19677_v12  ;;  %v19700_v12 = vld [vmem:[#allocation10 + $0x244] ss:$16 sps:$4 sm:$0xff]  }
 0x535   :  { %7860 = vmatpush1.bf16.msra.mxu1 %v19680_v45  ;;  %v19701_v45 = vld [vmem:[#allocation10 + $0x228] ss:$16 sps:$4 sm:$0xff]  }
 0x539   :  { %5888 = vmatmul.mubr.bf16.gmra.mrb[88].mxu0 %v24471_v57 }
 0x53a   :  { %16481 = vmatprep.mubr.msk.bf16.mxu0 %vm3053_vm2, %v24472_v32 }
 0x53b   :  { %6234 = vmatmul.mubr.bf16.gmra.mrb[140].mxu1 %v24471_v57  ;;  %v19685_v57 = vld [vmem:[#allocation10 + $0x1e4] ss:$16 sps:$4 sm:$0xff]  }
 0x53c   :  { %16494 = vmatprep.mubr.msk.bf16.mxu1 %vm3053_vm2, %v24472_v32  ;;  %v19688_v32 = vld [vmem:[#allocation10 + $0x1ec] ss:$16 sps:$4 sm:$0xff]   ;;  %7655 = vmatprep.subr.bf16.mxu0 %v19685_v57 }
 0x53d   :  { %7861 = vmatprep.subr.bf16.mxu1 %v19688_v32 }
 0x541   :  { %5898 = vmatmul.mubr.bf16.gmra.mrb[92].mxu0 %v24473_v20 }
 0x542   :  { %16482 = vmatprep.mubr.msk.bf16.mxu0 %vm3053_vm2, %v24474_v36 }
 0x543   :  { %6244 = vmatmul.mubr.bf16.gmra.mrb[144].mxu1 %v24473_v20  ;;  %v19683_v20 = vld [vmem:[#allocation10 + $0x1e0] ss:$16 sps:$4 sm:$0xff]  }
 0x544   :  { %16495 = vmatprep.mubr.msk.bf16.mxu1 %vm3053_vm2, %v24474_v36  ;;  %7656 = vmatpush1.bf16.msra.mxu0 %v19683_v20  ;;  %v24477_v36 = vld [vmem:[#allocation45_spill] sm:$0xff] }
 0x549   :  { %5908 = vmatmul.mubr.bf16.gmra.mrb[96].mxu0 %v22782_v59 }
 0x54a   :  { %16483 = vmatprep.mubr.msk.bf16.mxu0 %vm3053_vm2, %v22798_v49 }
 0x54b   :  { %6254 = vmatmul.mubr.bf16.gmra.mrb[148].mxu1 %v22782_v59  ;;  %v19686_v59 = vld [vmem:[#allocation10 + $0x1e8] ss:$16 sps:$4 sm:$0xff]  }
 0x54c   :  { %16496 = vmatprep.mubr.msk.bf16.mxu1 %vm3053_vm2, %v22798_v49  ;;  %7862 = vmatpush1.bf16.msra.mxu1 %v19686_v59  ;;  %v19697_v49 = vld [vmem:[#allocation10 + $0x20c] ss:$16 sps:$4 sm:$0xff]  }
 0x54d   :  { %7934 = vmatprep.subr.bf16.mxu1 %v19697_v49 }
 0x551   :  { %5918 = vmatmul.mubr.bf16.gmra.mrb[100].mxu0 %v22796_v5 }
 0x552   :  { %16484 = vmatprep.mubr.msk.bf16.mxu0 %vm3053_vm2, %v22812_v24 }
 0x553   :  { %6264 = vmatmul.mubr.bf16.gmra.mrb[152].mxu1 %v22796_v5  ;;  %v19691_v5 = vld [vmem:[#allocation10 + $0x204] ss:$16 sps:$4 sm:$0xff]  }
 0x554   :  { %16497 = vmatprep.mubr.msk.bf16.mxu1 %vm3053_vm2, %v22812_v24  ;;  %7728 = vmatprep.subr.bf16.mxu0 %v19691_v5  ;;  %v2492_v24 = vld [vmem:[%s24353_s8] sm:$0xf]  ;;  %v19709_v5 = vld [vmem:[#allocation10 + $0x24c] ss:$16 sps:$4 sm:$0xff]  }
 0x555   :  { %v23238_v56 = vrot.slane %v2492_v24, %v24477_v36  ;;  %v23241_v31 = vrot.slane %v2492_v24, %v24478_v60  ;;  %v23247_v15 = vrot.slane %v2492_v24, %v24480_v44 }
 0x559   :  { %5928 = vmatmul.mubr.bf16.gmra.mrb[104].mxu0 %v22810_v38 }
 0x55a   :  { %5937 = vmatprep.mubr.bf16.mxu0 %v24442_v14 }
 0x55b   :  { %6274 = vmatmul.mubr.bf16.gmra.mrb[156].mxu1 %v22810_v38  ;;  %v24479_v38 = vld [vmem:[#allocation31_spill] sm:$0xff] }
 0x55c   :  { %6283 = vmatprep.mubr.bf16.mxu1 %v24442_v14  ;;  %v23244_v51 = vrot.slane %v2492_v24, %v24479_v38 }
 0x561   :  { %5938 = vmatmul.mubr.bf16.gmra.mrb[108].mxu0 %v24442_v14 }
 0x563   :  { %6284 = vmatmul.mubr.bf16.gmra.mrb[160].mxu1 %v24442_v14 }
 0x5cc   :  { %v5809_v41 = vpop.f32.mrb[56].mxu0 }
 0x5cd   :  { %v6427_v1 = vadd.f32 %v23238_v56, %v5809_v41  ;;  %v5811_v61 = vpop.f32.mrb[57].mxu0 }
 0x5ce   :  { %v6428_v29 = vadd.f32 %v23241_v31, %v5811_v61  ;;  %v5813_v63 = vpop.f32.mrb[58].mxu0  ;;  %v6155_v26 = vpop.f32.mrb[108].mxu1 }
 0x5cf   :  { %v6431_v18 = vadd.f32 %v23238_v56, %v5813_v63  ;;  %v6429_v17 = vadd.f32 %v23244_v51, %v6155_v26  ;;  %v5815_v22 = vpop.f32.mrb[59].mxu0  ;;  %v6157_v39 = vpop.f32.mrb[109].mxu1  ;;  %v6539_v10 = vmax.f32 %v6427_v1, 0.0  ;;  %v19698_v63 = vld [vmem:[#allocation10 + $0x240] ss:$16 sps:$4 sm:$0xff]  }
 0x5d0   :  { %v6432_v16 = vadd.f32 %v23241_v31, %v5815_v22  ;;  %v6430_v4 = vadd.f32 %v23247_v15, %v6157_v39  ;;  %v6159_v46 = vpop.f32.mrb[110].mxu1  ;;  %v6540_v0 = vmax.f32 %v6428_v29, 0.0  ;;  %v19707_v39 = vld [vmem:[#allocation10 + $0x248] ss:$16 sps:$4 sm:$0xff]  }
 0x5d1   :  { %v6543_v19 = vmax.f32 %v6431_v18, 0.0  ;;  %v6433_v13 = vadd.f32 %v23244_v51, %v6159_v46  ;;  %v6161_v52 = vpop.f32.mrb[111].mxu1  ;;  %v6541_v25 = vmax.f32 %v6429_v17, 0.0 }
 0x5d2   :  { %v6544_v28 = vmax.f32 %v6432_v16, 0.0  ;;  %v6434_v3 = vadd.f32 %v23247_v15, %v6161_v52  ;;  %v6542_v50 = vmax.f32 %v6430_v4, 0.0 }
 0x5d3   :  { %v6651_v21 = vpack.c.bf16 %v6543_v19, %v6539_v10  ;;  %v6545_v54 = vmax.f32 %v6433_v13, 0.0  ;;  %v19706_v10 = vld [vmem:[#allocation10 + $0x264] ss:$16 sps:$4 sm:$0xff]   ;;  %v19715_v19 = vld [vmem:[#allocation10 + $0x26c] ss:$16 sps:$4 sm:$0xff]  }
 0x5d4   :  { %v6652_v6 = vpack.c.bf16 %v6544_v28, %v6540_v0  ;;  %v6546_v2 = vmax.f32 %v6434_v3, 0.0  ;;  %v5819_v47 = vpop.f32.mrb[60].mxu0 }
 0x5d5   :  { %v23257_v34 = vpack.c.bf16 %v6545_v54, %v6541_v25  ;;  %v6435_v42 = vadd.f32 %v23238_v56, %v5819_v47  ;;  %v5821_v27 = vpop.f32.mrb[61].mxu0  ;;  %v19712_v47 = vld [vmem:[#allocation10 + $0x284] ss:$16 sps:$4 sm:$0xff]  }
 0x5d6   :  { %v23260_v55 = vpack.c.bf16 %v6546_v2, %v6542_v50  ;;  %v6436_v58 = vadd.f32 %v23241_v31, %v5821_v27  ;;  %v5823_v37 = vpop.f32.mrb[62].mxu0  ;;  %v6165_v11 = vpop.f32.mrb[112].mxu1  ;;  %7657 = vmatprep.mubr.bf16.mxu0 %v6652_v6  ;;  %7863 = vmatprep.mubr.bf16.mxu1 %v6652_v6 }
 0x5d7   :  { %v6439_v33 = vadd.f32 %v23238_v56, %v5823_v37  ;;  %v6437_v9 = vadd.f32 %v23244_v51, %v6165_v11  ;;  %v5825_v35 = vpop.f32.mrb[63].mxu0  ;;  %v6167_v23 = vpop.f32.mrb[113].mxu1  ;;  %7658 = vmatmul.mubr.bf16.vlgmr.msra.gmra.mrb[112].mxu0 %v6651_v21  ;;  %7864 = vmatmul.mubr.bf16.vlgmr.msra.gmra.mrb[164].mxu1 %v6651_v21  ;;  %v6547_v57 = vmax.f32 %v6435_v42, 0.0 }
 0x5d8   :  { %v6440_v53 = vadd.f32 %v23241_v31, %v5825_v35  ;;  %v6438_v7 = vadd.f32 %v23247_v15, %v6167_v23  ;;  %v6169_v43 = vpop.f32.mrb[114].mxu1  ;;  %7729 = vmatpush1.bf16.msra.mxu0 %v19689_v8  ;;  %7935 = vmatpush1.bf16.msra.mxu1 %v19695_v30  ;;  %v6548_v49 = vmax.f32 %v6436_v58, 0.0  ;;  %v19704_v8 = vld [vmem:[#allocation10 + $0x260] ss:$16 sps:$4 sm:$0xff]   ;;  %v19713_v30 = vld [vmem:[#allocation10 + $0x268] ss:$16 sps:$4 sm:$0xff]  }
 0x5d9   :  { %v6551_v32 = vmax.f32 %v6439_v33, 0.0  ;;  %v6441_v20 = vadd.f32 %v23244_v51, %v6169_v43  ;;  %v6171_v59 = vpop.f32.mrb[115].mxu1  ;;  %7730 = vmatprep.subr.bf16.mxu0 %v19694_v40  ;;  %7936 = vmatprep.subr.bf16.mxu1 %v19703_v62  ;;  %v6549_v61 = vmax.f32 %v6437_v9, 0.0  ;;  %v19718_v58 = vld [vmem:[#allocation10 + $0x28c] ss:$16 sps:$4 sm:$0xff]  }
 0x5da   :  { %v6552_v24 = vmax.f32 %v6440_v53, 0.0  ;;  %v6442_v41 = vadd.f32 %v23247_v15, %v6171_v59  ;;  %v6550_v18 = vmax.f32 %v6438_v7, 0.0  ;;  %v19721_v59 = vld [vmem:[#allocation10 + $0x2a4] ss:$16 sps:$4 sm:$0xff]  }
 0x5db   :  { %v23269_v1 = vpack.c.bf16 %v6551_v32, %v6547_v57  ;;  %v6553_v29 = vmax.f32 %v6441_v20, 0.0 }
 0x5dc   :  { %v23271_v26 = vpack.c.bf16 %v6552_v24, %v6548_v49  ;;  %v6554_v17 = vmax.f32 %v6442_v41, 0.0  ;;  %v5829_v22 = vpop.f32.mrb[64].mxu0  ;;  %7731 = vmatpush1.bf16.msra.mxu0 %v19692_v48  ;;  %7937 = vmatpush1.bf16.msra.mxu1 %v19701_v45  ;;  %v19710_v48 = vld [vmem:[#allocation10 + $0x280] ss:$16 sps:$4 sm:$0xff]   ;;  %v19716_v45 = vld [vmem:[#allocation10 + $0x288] ss:$16 sps:$4 sm:$0xff]  }
 0x5dd   :  { %v23273_v16 = vpack.c.bf16 %v6553_v29, %v6549_v61  ;;  %v6443_v4 = vadd.f32 %v23238_v56, %v5829_v22  ;;  %v5831_v46 = vpop.f32.mrb[65].mxu0  ;;  %7732 = vmatprep.subr.bf16.mxu0 %v19700_v12  ;;  %7938 = vmatprep.subr.bf16.mxu1 %v19709_v5  ;;  %v19724_v5 = vld [vmem:[#allocation10 + $0x2ac] ss:$16 sps:$4 sm:$0xff]   ;;  %v19719_v22 = vld [vmem:[#allocation10 + $0x2a0] ss:$16 sps:$4 sm:$0xff]  }
 0x5de   :  { %v23276_v13 = vpack.c.bf16 %v6554_v17, %v6550_v18  ;;  %v6444_v52 = vadd.f32 %v23241_v31, %v5831_v46  ;;  %v5833_v0 = vpop.f32.mrb[66].mxu0  ;;  %v6175_v28 = vpop.f32.mrb[116].mxu1 }
 0x5df   :  { %v6447_v3 = vadd.f32 %v23238_v56, %v5833_v0  ;;  %v6445_v21 = vadd.f32 %v23244_v51, %v6175_v28  ;;  %v5835_v25 = vpop.f32.mrb[67].mxu0  ;;  %v6177_v54 = vpop.f32.mrb[117].mxu1  ;;  %v6555_v42 = vmax.f32 %v6443_v4, 0.0 }
 0x5e0   :  { %v6448_v6 = vadd.f32 %v23241_v31, %v5835_v25  ;;  %v6446_v50 = vadd.f32 %v23247_v15, %v6177_v54  ;;  %v6179_v2 = vpop.f32.mrb[118].mxu1  ;;  %7733 = vmatpush1.bf16.msra.mxu0 %v19698_v63  ;;  %7939 = vmatpush1.bf16.msra.mxu1 %v19707_v39  ;;  %v6556_v37 = vmax.f32 %v6444_v52, 0.0 }
 0x5e1   :  { %v6559_v27 = vmax.f32 %v6447_v3, 0.0  ;;  %v6449_v40 = vadd.f32 %v23244_v51, %v6179_v2  ;;  %v6181_v62 = vpop.f32.mrb[119].mxu1  ;;  %7734 = vmatprep.subr.bf16.mxu0 %v19706_v10  ;;  %7940 = vmatprep.subr.bf16.mxu1 %v19715_v19  ;;  %v6557_v35 = vmax.f32 %v6445_v21, 0.0  ;;  %v19722_v10 = vld [vmem:[#allocation10 + $0x2a8] ss:$16 sps:$4 sm:$0xff]  }
 0x5e2   :  { %v6560_v11 = vmax.f32 %v6448_v6, 0.0  ;;  %v6450_v33 = vadd.f32 %v23247_v15, %v6181_v62  ;;  %v6558_v7 = vmax.f32 %v6446_v50, 0.0  ;;  %v19727_v19 = vld [vmem:[#allocation10 + $0x2c4] ss:$16 sps:$4 sm:$0xff]   ;;  %v19730_v21 = vld [vmem:[#allocation10 + $0x2cc] ss:$16 sps:$4 sm:$0xff]  }
 0x5e3   :  { %v6659_v9 = vpack.c.bf16 %v6559_v27, %v6555_v42  ;;  %v6561_v23 = vmax.f32 %v6449_v40, 0.0  ;;  %v19728_v62 = vld [vmem:[#allocation10 + $0x2c8] ss:$16 sps:$4 sm:$0xff]  }
 0x5e4   :  { %v6660_v53 = vpack.c.bf16 %v6560_v11, %v6556_v37  ;;  %v6562_v43 = vmax.f32 %v6450_v33, 0.0  ;;  %v5839_v12 = vpop.f32.mrb[68].mxu0  ;;  %7735 = vmatpush1.bf16.msra.mxu0 %v19704_v8  ;;  %7941 = vmatpush1.bf16.msra.mxu1 %v19713_v30  ;;  %v19733_v33 = vld [vmem:[#allocation10 + $0x2e4] ss:$16 sps:$4 sm:$0xff]  }
 0x5e5   :  { %v23285_v57 = vpack.c.bf16 %v6561_v23, %v6557_v35  ;;  %v6451_v32 = vadd.f32 %v23238_v56, %v5839_v12  ;;  %v5841_v20 = vpop.f32.mrb[69].mxu0  ;;  %7736 = vmatprep.subr.bf16.mxu0 %v19712_v47  ;;  %7942 = vmatprep.subr.bf16.mxu1 %v19718_v58  ;;  %v19725_v47 = vld [vmem:[#allocation10 + $0x2c0] ss:$16 sps:$4 sm:$0xff]  }
 0x5e6   :  { %v23288_v49 = vpack.c.bf16 %v6562_v43, %v6558_v7  ;;  %v6452_v24 = vadd.f32 %v23241_v31, %v5841_v20  ;;  %v5843_v41 = vpop.f32.mrb[70].mxu0  ;;  %v6185_v61 = vpop.f32.mrb[120].mxu1  ;;  %7667 = vmatprep.mubr.bf16.mxu0 %v6660_v53  ;;  %7873 = vmatprep.mubr.bf16.mxu1 %v6660_v53 }
 0x5e7   :  { %v6455_v29 = vadd.f32 %v23238_v56, %v5843_v41  ;;  %v6453_v63 = vadd.f32 %v23244_v51, %v6185_v61  ;;  %v5845_v18 = vpop.f32.mrb[71].mxu0  ;;  %v6187_v17 = vpop.f32.mrb[121].mxu1  ;;  %7668 = vmatmul.mubr.bf16.gmra.mrb[116].mxu0 %v6659_v9  ;;  %7874 = vmatmul.mubr.bf16.gmra.mrb[168].mxu1 %v6659_v9  ;;  %v6563_v52 = vmax.f32 %v6451_v32, 0.0  ;;  %v19736_v9 = vld [vmem:[#allocation10 + $0x2ec] ss:$16 sps:$4 sm:$0xff]  }
 0x5e8   :  { %v6456_v39 = vadd.f32 %v23241_v31, %v5845_v18  ;;  %v6454_v4 = vadd.f32 %v23247_v15, %v6187_v17  ;;  %v6189_v46 = vpop.f32.mrb[122].mxu1  ;;  %7737 = vmatpush1.bf16.msra.mxu0 %v19710_v48  ;;  %7943 = vmatpush1.bf16.msra.mxu1 %v19716_v45  ;;  %v6564_v25 = vmax.f32 %v6452_v24, 0.0  ;;  %v19731_v32 = vld [vmem:[#allocation10 + $0x2e0] ss:$16 sps:$4 sm:$0xff]   ;;  %v19734_v24 = vld [vmem:[#allocation10 + $0x2e8] ss:$16 sps:$4 sm:$0xff]  }
 0x5e9   :  { %v6567_v0 = vmax.f32 %v6455_v29, 0.0  ;;  %v6457_v28 = vadd.f32 %v23244_v51, %v6189_v46  ;;  %v6191_v3 = vpop.f32.mrb[123].mxu1  ;;  %7738 = vmatprep.subr.bf16.mxu0 %v19721_v59  ;;  %7944 = vmatprep.subr.bf16.mxu1 %v19724_v5  ;;  %v6565_v50 = vmax.f32 %v6453_v63, 0.0  ;;  %v19739_v41 = vld [vmem:[#allocation10 + $0x304] ss:$16 sps:$4 sm:$0xff]  }
 0x5ea   :  { %v6568_v54 = vmax.f32 %v6456_v39, 0.0  ;;  %v6458_v8 = vadd.f32 %v23247_v15, %v6191_v3  ;;  %v6566_v42 = vmax.f32 %v6454_v4, 0.0  ;;  %v19742_v17 = vld [vmem:[#allocation10 + $0x30c] ss:$16 sps:$4 sm:$0xff]  }
 0x5eb   :  { %v23297_v6 = vpack.c.bf16 %v6567_v0, %v6563_v52  ;;  %v6569_v2 = vmax.f32 %v6457_v28, 0.0  ;;  %v19737_v52 = vld [vmem:[#allocation10 + $0x300] ss:$16 sps:$4 sm:$0xff]  }
 0x5ec   :  { %v23299_v30 = vpack.c.bf16 %v6568_v54, %v6564_v25  ;;  %v6570_v27 = vmax.f32 %v6458_v8, 0.0  ;;  %v5849_v40 = vpop.f32.mrb[72].mxu0  ;;  %7739 = vmatpush1.bf16.msra.mxu0 %v19719_v22  ;;  %7945 = vmatpush1.bf16.msra.mxu1 %v19722_v10  ;;  %v19740_v25 = vld [vmem:[#allocation10 + $0x308] ss:$16 sps:$4 sm:$0xff]  }
 0x5ed   :  { %v23301_v58 = vpack.c.bf16 %v6569_v2, %v6565_v50  ;;  %v6459_v37 = vadd.f32 %v23238_v56, %v5849_v40  ;;  %v5851_v11 = vpop.f32.mrb[73].mxu0  ;;  %7740 = vmatprep.subr.bf16.mxu0 %v19727_v19  ;;  %7946 = vmatprep.subr.bf16.mxu1 %v19730_v21  ;;  %v19745_v2 = vld [vmem:[#allocation10 + $0x324] ss:$16 sps:$4 sm:$0xff]  }
 0x5ee   :  { %v23304_v35 = vpack.c.bf16 %v6570_v27, %v6566_v42  ;;  %v6460_v23 = vadd.f32 %v23241_v31, %v5851_v11  ;;  %v5853_v48 = vpop.f32.mrb[74].mxu0  ;;  %v6195_v53 = vpop.f32.mrb[124].mxu1 }
 0x5ef   :  { %v6463_v7 = vadd.f32 %v23238_v56, %v5853_v48  ;;  %v6461_v43 = vadd.f32 %v23244_v51, %v6195_v53  ;;  %v5855_v12 = vpop.f32.mrb[75].mxu0  ;;  %v6197_v45 = vpop.f32.mrb[125].mxu1  ;;  %v6571_v61 = vmax.f32 %v6459_v37, 0.0 }
 0x5f0   :  { %v6464_v20 = vadd.f32 %v23241_v31, %v5855_v12  ;;  %v6462_v59 = vadd.f32 %v23247_v15, %v6197_v45  ;;  %v6199_v5 = vpop.f32.mrb[126].mxu1  ;;  %7741 = vmatpush1.bf16.msra.mxu0 %v19725_v47  ;;  %7947 = vmatpush1.bf16.msra.mxu1 %v19728_v62  ;;  %v6572_v22 = vmax.f32 %v6460_v23, 0.0  ;;  %v19748_v47 = vld [vmem:[#allocation10 + $0x32c] ss:$16 sps:$4 sm:$0xff]   ;;  %v19743_v23 = vld [vmem:[#allocation10 + $0x320] ss:$16 sps:$4 sm:$0xff]  }
 0x5f1   :  { %v6575_v29 = vmax.f32 %v6463_v7, 0.0  ;;  %v6465_v63 = vadd.f32 %v23244_v51, %v6199_v5  ;;  %v6201_v18 = vpop.f32.mrb[127].mxu1  ;;  %7742 = vmatprep.subr.bf16.mxu0 %v19733_v33  ;;  %7948 = vmatprep.subr.bf16.mxu1 %v19736_v9  ;;  %v6573_v10 = vmax.f32 %v6461_v43, 0.0  ;;  %v19746_v43 = vld [vmem:[#allocation10 + $0x328] ss:$16 sps:$4 sm:$0xff]  }
 0x5f2   :  { %v6576_v39 = vmax.f32 %v6464_v20, 0.0  ;;  %v6466_v4 = vadd.f32 %v23247_v15, %v6201_v18  ;;  %v6574_v28 = vmax.f32 %v6462_v59, 0.0  ;;  %v19751_v12 = vld [vmem:[#allocation10 + $0x344] ss:$16 sps:$4 sm:$0xff]   ;;  %v19754_v5 = vld [vmem:[#allocation10 + $0x34c] ss:$16 sps:$4 sm:$0xff]  }
 0x5f3   :  { %v6667_v46 = vpack.c.bf16 %v6575_v29, %v6571_v61  ;;  %v6577_v19 = vmax.f32 %v6465_v63, 0.0 }
 0x5f4   :  { %v6668_v0 = vpack.c.bf16 %v6576_v39, %v6572_v22  ;;  %v6578_v3 = vmax.f32 %v6466_v4, 0.0  ;;  %v5859_v21 = vpop.f32.mrb[76].mxu0  ;;  %7743 = vmatpush1.bf16.msra.mxu0 %v19731_v32  ;;  %7949 = vmatpush1.bf16.msra.mxu1 %v19734_v24 }
 0x5f5   :  { %v23313_v54 = vpack.c.bf16 %v6577_v19, %v6573_v10  ;;  %v6467_v8 = vadd.f32 %v23238_v56, %v5859_v21  ;;  %v5861_v50 = vpop.f32.mrb[77].mxu0  ;;  %7744 = vmatprep.subr.bf16.mxu0 %v19739_v41  ;;  %7950 = vmatprep.subr.bf16.mxu1 %v19742_v17  ;;  %v19749_v17 = vld [vmem:[#allocation10 + $0x340] ss:$16 sps:$4 sm:$0xff]   ;;  %v19752_v10 = vld [vmem:[#allocation10 + $0x348] ss:$16 sps:$4 sm:$0xff]  }
 0x5f6   :  { %v23316_v42 = vpack.c.bf16 %v6578_v3, %v6574_v28  ;;  %v6468_v27 = vadd.f32 %v23241_v31, %v5861_v50  ;;  %v5863_v40 = vpop.f32.mrb[78].mxu0  ;;  %v6205_v62 = vpop.f32.mrb[128].mxu1  ;;  %7677 = vmatprep.mubr.bf16.mxu0 %v6668_v0  ;;  %7883 = vmatprep.mubr.bf16.mxu1 %v6668_v0  ;;  %v19757_v28 = vld [vmem:[#allocation10 + $0x364] ss:$16 sps:$4 sm:$0xff]   ;;  %v19760_v3 = vld [vmem:[#allocation10 + $0x36c] ss:$16 sps:$4 sm:$0xff]  }
 0x5f7   :  { %v6471_v37 = vadd.f32 %v23238_v56, %v5863_v40  ;;  %v6469_v11 = vadd.f32 %v23244_v51, %v6205_v62  ;;  %v5865_v33 = vpop.f32.mrb[79].mxu0  ;;  %v6207_v9 = vpop.f32.mrb[129].mxu1  ;;  %7678 = vmatmul.mubr.bf16.gmra.mrb[120].mxu0 %v6667_v46  ;;  %7884 = vmatmul.mubr.bf16.gmra.mrb[172].mxu1 %v6667_v46  ;;  %v6579_v45 = vmax.f32 %v6467_v8, 0.0  ;;  %v19755_v62 = vld [vmem:[#allocation10 + $0x360] ss:$16 sps:$4 sm:$0xff]  }
 0x5f8   :  { %v6472_v48 = vadd.f32 %v23241_v31, %v5865_v33  ;;  %v6470_v53 = vadd.f32 %v23247_v15, %v6207_v9  ;;  %v6209_v7 = vpop.f32.mrb[130].mxu1  ;;  %7745 = vmatpush1.bf16.msra.mxu0 %v19737_v52  ;;  %7951 = vmatpush1.bf16.msra.mxu1 %v19740_v25  ;;  %v6580_v24 = vmax.f32 %v6468_v27, 0.0  ;;  %v19758_v9 = vld [vmem:[#allocation10 + $0x368] ss:$16 sps:$4 sm:$0xff]  }
 0x5f9   :  { %v6583_v32 = vmax.f32 %v6471_v37, 0.0  ;;  %v6473_v20 = vadd.f32 %v23244_v51, %v6209_v7  ;;  %v6211_v59 = vpop.f32.mrb[131].mxu1  ;;  %7746 = vmatprep.subr.bf16.mxu0 %v19745_v2  ;;  %7952 = vmatprep.subr.bf16.mxu1 %v19748_v47  ;;  %v6581_v63 = vmax.f32 %v6469_v11, 0.0 }
 0x5fa   :  { %v6584_v41 = vmax.f32 %v6472_v48, 0.0  ;;  %v6474_v61 = vadd.f32 %v23247_v15, %v6211_v59  ;;  %v6582_v39 = vmax.f32 %v6470_v53, 0.0 }
 0x5fb   :  { %v23325_v29 = vpack.c.bf16 %v6583_v32, %v6579_v45  ;;  %v6585_v18 = vmax.f32 %v6473_v20, 0.0 }
 0x5fc   :  { %v23327_v22 = vpack.c.bf16 %v6584_v41, %v6580_v24  ;;  %v6586_v4 = vmax.f32 %v6474_v61, 0.0  ;;  %v5869_v46 = vpop.f32.mrb[80].mxu0  ;;  %7747 = vmatpush1.bf16.msra.mxu0 %v19743_v23  ;;  %7953 = vmatpush1.bf16.msra.mxu1 %v19746_v43  ;;  %v19763_v23 = vld [vmem:[#allocation9 + $0x4] ss:$16 sps:$4 sm:$0xff]  }
 0x5fd   :  { %v23329_v19 = vpack.c.bf16 %v6585_v18, %v6581_v63  ;;  %v6475_v52 = vadd.f32 %v23238_v56, %v5869_v46  ;;  %v5871_v0 = vpop.f32.mrb[81].mxu0  ;;  %7748 = vmatprep.subr.bf16.mxu0 %v19751_v12  ;;  %7954 = vmatprep.subr.bf16.mxu1 %v19754_v5  ;;  %v19766_v12 = vld [vmem:[#allocation9 + $0xc] ss:$16 sps:$4 sm:$0xff]  }
 0x5fe   :  { %v23332_v21 = vpack.c.bf16 %v6586_v4, %v6582_v39  ;;  %v6476_v25 = vadd.f32 %v23241_v31, %v5871_v0  ;;  %v5873_v8 = vpop.f32.mrb[82].mxu0  ;;  %v6215_v50 = vpop.f32.mrb[132].mxu1 }
 0x5ff   :  { %v6479_v2 = vadd.f32 %v23238_v56, %v5873_v8  ;;  %v6477_v47 = vadd.f32 %v23244_v51, %v6215_v50  ;;  %v5875_v27 = vpop.f32.mrb[83].mxu0  ;;  %v6217_v40 = vpop.f32.mrb[133].mxu1  ;;  %v6587_v48 = vmax.f32 %v6475_v52, 0.0 }
 0x600   :  { %v6480_v37 = vadd.f32 %v23241_v31, %v5875_v27  ;;  %v6478_v11 = vadd.f32 %v23247_v15, %v6217_v40  ;;  %v6219_v33 = vpop.f32.mrb[134].mxu1  ;;  %7749 = vmatpush1.bf16.msra.mxu0 %v19749_v17  ;;  %7955 = vmatpush1.bf16.msra.mxu1 %v19752_v10  ;;  %v6588_v45 = vmax.f32 %v6476_v25, 0.0 }
 0x601   :  { %v6591_v53 = vmax.f32 %v6479_v2, 0.0  ;;  %v6481_v7 = vadd.f32 %v23244_v51, %v6219_v33  ;;  %v6221_v43 = vpop.f32.mrb[135].mxu1  ;;  %7750 = vmatprep.subr.bf16.mxu0 %v19757_v28  ;;  %7956 = vmatprep.subr.bf16.mxu1 %v19760_v3  ;;  %v6589_v5 = vmax.f32 %v6477_v47, 0.0 }
 0x602   :  { %v6592_v32 = vmax.f32 %v6480_v37, 0.0  ;;  %v6482_v20 = vadd.f32 %v23247_v15, %v6221_v43  ;;  %v6590_v61 = vmax.f32 %v6478_v11, 0.0 }
 0x603   :  { %v6675_v59 = vpack.c.bf16 %v6591_v53, %v6587_v48  ;;  %v6593_v24 = vmax.f32 %v6481_v7, 0.0 }
 0x604   :  { %v6676_v41 = vpack.c.bf16 %v6592_v32, %v6588_v45  ;;  %v6594_v63 = vmax.f32 %v6482_v20, 0.0  ;;  %v5879_v18 = vpop.f32.mrb[84].mxu0  ;;  %7751 = vmatpush1.bf16.msra.mxu0 %v19755_v62  ;;  %7957 = vmatpush1.bf16.msra.mxu1 %v19758_v9 }
 0x605   :  { %v23341_v17 = vpack.c.bf16 %v6593_v24, %v6589_v5  ;;  %v6483_v39 = vadd.f32 %v23238_v56, %v5879_v18  ;;  %v5881_v4 = vpop.f32.mrb[85].mxu0  ;;  %8615 = vmatprep.subr.bf16.mxu0 %v19763_v23  ;;  %8821 = vmatprep.subr.bf16.mxu1 %v19766_v12 }
 0x606   :  { %v23344_v46 = vpack.c.bf16 %v6594_v63, %v6590_v61  ;;  %v6484_v10 = vadd.f32 %v23241_v31, %v5881_v4  ;;  %v5883_v52 = vpop.f32.mrb[86].mxu0  ;;  %v6225_v0 = vpop.f32.mrb[136].mxu1  ;;  %7687 = vmatprep.mubr.bf16.mxu0 %v6676_v41  ;;  %7893 = vmatprep.mubr.bf16.mxu1 %v6676_v41 }
 0x607   :  { %v6487_v28 = vadd.f32 %v23238_v56, %v5883_v52  ;;  %v6485_v3 = vadd.f32 %v23244_v51, %v6225_v0  ;;  %v5885_v25 = vpop.f32.mrb[87].mxu0  ;;  %v6227_v8 = vpop.f32.mrb[137].mxu1  ;;  %7688 = vmatmul.mubr.bf16.gmra.mrb[124].mxu0 %v6675_v59  ;;  %7894 = vmatmul.mubr.bf16.gmra.mrb[176].mxu1 %v6675_v59  ;;  %v6595_v27 = vmax.f32 %v6483_v39, 0.0 }
 0x608   :  { %v6488_v50 = vadd.f32 %v23241_v31, %v5885_v25  ;;  %v6486_v2 = vadd.f32 %v23247_v15, %v6227_v8  ;;  %v6229_v47 = vpop.f32.mrb[138].mxu1  ;;  %v6596_v11 = vmax.f32 %v6484_v10, 0.0 }
 0x609   :  { %v6599_v40 = vmax.f32 %v6487_v28, 0.0  ;;  %v6489_v62 = vadd.f32 %v23244_v51, %v6229_v47  ;;  %v6231_v37 = vpop.f32.mrb[139].mxu1  ;;  %v6597_v48 = vmax.f32 %v6485_v3, 0.0 }
 0x60a   :  { %v6600_v33 = vmax.f32 %v6488_v50, 0.0  ;;  %v6490_v9 = vadd.f32 %v23247_v15, %v6231_v37  ;;  %v6598_v43 = vmax.f32 %v6486_v2, 0.0 }
 0x60b   :  { %v23353_v23 = vpack.c.bf16 %v6599_v40, %v6595_v27  ;;  %v6601_v53 = vmax.f32 %v6489_v62, 0.0 }
 0x60c   :  { %v23355_v7 = vpack.c.bf16 %v6600_v33, %v6596_v11  ;;  %v6602_v12 = vmax.f32 %v6490_v9, 0.0  ;;  %v5889_v45 = vpop.f32.mrb[88].mxu0 }
 0x60d   :  { %v23357_v32 = vpack.c.bf16 %v6601_v53, %v6597_v48  ;;  %v6491_v20 = vadd.f32 %v23238_v56, %v5889_v45  ;;  %v5891_v59 = vpop.f32.mrb[89].mxu0 }
 0x60e   :  { %v23360_v5 = vpack.c.bf16 %v6602_v12, %v6598_v43  ;;  %v6492_v24 = vadd.f32 %v23241_v31, %v5891_v59  ;;  %v5893_v41 = vpop.f32.mrb[90].mxu0  ;;  %v6235_v61 = vpop.f32.mrb[140].mxu1 }
 0x60f   :  { %v6495_v63 = vadd.f32 %v23238_v56, %v5893_v41  ;;  %v6493_v18 = vadd.f32 %v23244_v51, %v6235_v61  ;;  %v5895_v39 = vpop.f32.mrb[91].mxu0  ;;  %v6237_v4 = vpop.f32.mrb[141].mxu1  ;;  %v6603_v28 = vmax.f32 %v6491_v20, 0.0 }
 0x610   :  { %v6496_v10 = vadd.f32 %v23241_v31, %v5895_v39  ;;  %v6494_v52 = vadd.f32 %v23247_v15, %v6237_v4  ;;  %v6239_v0 = vpop.f32.mrb[142].mxu1  ;;  %v6604_v50 = vmax.f32 %v6492_v24, 0.0 }
 0x611   :  { %v6607_v3 = vmax.f32 %v6495_v63, 0.0  ;;  %v6497_v25 = vadd.f32 %v23244_v51, %v6239_v0  ;;  %v6241_v8 = vpop.f32.mrb[143].mxu1  ;;  %v6605_v40 = vmax.f32 %v6493_v18, 0.0 }
 0x612   :  { %v6608_v2 = vmax.f32 %v6496_v10, 0.0  ;;  %v6498_v47 = vadd.f32 %v23247_v15, %v6241_v8  ;;  %v6606_v11 = vmax.f32 %v6494_v52, 0.0 }
 0x613   :  { %v6683_v27 = vpack.c.bf16 %v6607_v3, %v6603_v28  ;;  %v6609_v62 = vmax.f32 %v6497_v25, 0.0 }
 0x614   :  { %v6684_v37 = vpack.c.bf16 %v6608_v2, %v6604_v50  ;;  %v6610_v33 = vmax.f32 %v6498_v47, 0.0  ;;  %v5899_v9 = vpop.f32.mrb[92].mxu0 }
 0x615   :  { %v23369_v48 = vpack.c.bf16 %v6609_v62, %v6605_v40  ;;  %v6499_v53 = vadd.f32 %v23238_v56, %v5899_v9  ;;  %v5901_v43 = vpop.f32.mrb[93].mxu0 }
 0x616   :  { %v23372_v12 = vpack.c.bf16 %v6610_v33, %v6606_v11  ;;  %v6500_v45 = vadd.f32 %v23241_v31, %v5901_v43  ;;  %v5903_v20 = vpop.f32.mrb[94].mxu0  ;;  %v6245_v59 = vpop.f32.mrb[144].mxu1  ;;  %7697 = vmatprep.mubr.bf16.mxu0 %v6684_v37  ;;  %7903 = vmatprep.mubr.bf16.mxu1 %v6684_v37 }
 0x617   :  { %v6503_v24 = vadd.f32 %v23238_v56, %v5903_v20  ;;  %v6501_v41 = vadd.f32 %v23244_v51, %v6245_v59  ;;  %v5905_v61 = vpop.f32.mrb[95].mxu0  ;;  %v6247_v63 = vpop.f32.mrb[145].mxu1  ;;  %7698 = vmatmul.mubr.bf16.gmra.mrb[128].mxu0 %v6683_v27  ;;  %7904 = vmatmul.mubr.bf16.gmra.mrb[180].mxu1 %v6683_v27  ;;  %v6611_v10 = vmax.f32 %v6499_v53, 0.0 }
 0x618   :  { %v6504_v18 = vadd.f32 %v23241_v31, %v5905_v61  ;;  %v6502_v39 = vadd.f32 %v23247_v15, %v6247_v63  ;;  %v6249_v4 = vpop.f32.mrb[146].mxu1  ;;  %v6612_v3 = vmax.f32 %v6500_v45, 0.0 }
 0x619   :  { %v6615_v52 = vmax.f32 %v6503_v24, 0.0  ;;  %v6505_v0 = vadd.f32 %v23244_v51, %v6249_v4  ;;  %v6251_v28 = vpop.f32.mrb[147].mxu1  ;;  %v6613_v2 = vmax.f32 %v6501_v41, 0.0 }
 0x61a   :  { %v6616_v25 = vmax.f32 %v6504_v18, 0.0  ;;  %v6506_v8 = vadd.f32 %v23247_v15, %v6251_v28  ;;  %v6614_v27 = vmax.f32 %v6502_v39, 0.0 }
 0x61b   :  { %v23381_v50 = vpack.c.bf16 %v6615_v52, %v6611_v10  ;;  %v6617_v47 = vmax.f32 %v6505_v0, 0.0 }
 0x61c   :  { %v23383_v40 = vpack.c.bf16 %v6616_v25, %v6612_v3  ;;  %v6618_v62 = vmax.f32 %v6506_v8, 0.0  ;;  %v5909_v37 = vpop.f32.mrb[96].mxu0 }
 0x61d   :  { %v23385_v11 = vpack.c.bf16 %v6617_v47, %v6613_v2  ;;  %v6507_v33 = vadd.f32 %v23238_v56, %v5909_v37  ;;  %v5911_v9 = vpop.f32.mrb[97].mxu0 }
 0x61e   :  { %v23388_v53 = vpack.c.bf16 %v6618_v62, %v6614_v27  ;;  %v6508_v43 = vadd.f32 %v23241_v31, %v5911_v9  ;;  %v5913_v45 = vpop.f32.mrb[98].mxu0  ;;  %v6255_v20 = vpop.f32.mrb[148].mxu1 }
 0x61f   :  { %v6511_v59 = vadd.f32 %v23238_v56, %v5913_v45  ;;  %v6509_v24 = vadd.f32 %v23244_v51, %v6255_v20  ;;  %v5915_v41 = vpop.f32.mrb[99].mxu0  ;;  %v6257_v61 = vpop.f32.mrb[149].mxu1  ;;  %v6619_v4 = vmax.f32 %v6507_v33, 0.0 }
 0x620   :  { %v6512_v63 = vadd.f32 %v23241_v31, %v5915_v41  ;;  %v6510_v18 = vadd.f32 %v23247_v15, %v6257_v61  ;;  %v6259_v39 = vpop.f32.mrb[150].mxu1  ;;  %v6620_v28 = vmax.f32 %v6508_v43, 0.0 }
 0x621   :  { %v6623_v10 = vmax.f32 %v6511_v59, 0.0  ;;  %v6513_v52 = vadd.f32 %v23244_v51, %v6259_v39  ;;  %v6261_v0 = vpop.f32.mrb[151].mxu1  ;;  %v6621_v2 = vmax.f32 %v6509_v24, 0.0 }
 0x622   :  { %v6624_v3 = vmax.f32 %v6512_v63, 0.0  ;;  %v6514_v25 = vadd.f32 %v23247_v15, %v6261_v0  ;;  %v6622_v62 = vmax.f32 %v6510_v18, 0.0 }
 0x623   :  { %v6691_v8 = vpack.c.bf16 %v6623_v10, %v6619_v4  ;;  %v6625_v47 = vmax.f32 %v6513_v52, 0.0 }
 0x624   :  { %v6692_v27 = vpack.c.bf16 %v6624_v3, %v6620_v28  ;;  %v6626_v37 = vmax.f32 %v6514_v25, 0.0  ;;  %v5919_v9 = vpop.f32.mrb[100].mxu0 }
 0x625   :  { %v23397_v45 = vpack.c.bf16 %v6625_v47, %v6621_v2  ;;  %v6515_v20 = vadd.f32 %v23238_v56, %v5919_v9  ;;  %v5921_v33 = vpop.f32.mrb[101].mxu0 }
 0x626   :  { %v23400_v59 = vpack.c.bf16 %v6626_v37, %v6622_v62  ;;  %v6516_v41 = vadd.f32 %v23241_v31, %v5921_v33  ;;  %v5923_v43 = vpop.f32.mrb[102].mxu0  ;;  %v6265_v61 = vpop.f32.mrb[152].mxu1  ;;  %7707 = vmatprep.mubr.bf16.mxu0 %v6692_v27  ;;  %7913 = vmatprep.mubr.bf16.mxu1 %v6692_v27 }
 0x627   :  { %v6519_v24 = vadd.f32 %v23238_v56, %v5923_v43  ;;  %v6517_v63 = vadd.f32 %v23244_v51, %v6265_v61  ;;  %v5925_v18 = vpop.f32.mrb[103].mxu0  ;;  %v6267_v39 = vpop.f32.mrb[153].mxu1  ;;  %7708 = vmatmul.mubr.bf16.gmra.mrb[132].mxu0 %v6691_v8  ;;  %7914 = vmatmul.mubr.bf16.gmra.mrb[184].mxu1 %v6691_v8  ;;  %v6627_v0 = vmax.f32 %v6515_v20, 0.0 }
 0x628   :  { %v6520_v4 = vadd.f32 %v23241_v31, %v5925_v18  ;;  %v6518_v10 = vadd.f32 %v23247_v15, %v6267_v39  ;;  %v6269_v52 = vpop.f32.mrb[154].mxu1  ;;  %v6628_v2 = vmax.f32 %v6516_v41, 0.0 }
 0x629   :  { %v6631_v28 = vmax.f32 %v6519_v24, 0.0  ;;  %v6521_v3 = vadd.f32 %v23244_v51, %v6269_v52  ;;  %v6271_v25 = vpop.f32.mrb[155].mxu1  ;;  %v6629_v37 = vmax.f32 %v6517_v63, 0.0 }
 0x62a   :  { %v6632_v47 = vmax.f32 %v6520_v4, 0.0  ;;  %v6522_v27 = vadd.f32 %v23247_v15, %v6271_v25  ;;  %v6630_v8 = vmax.f32 %v6518_v10, 0.0 }
 0x62b   :  { %v23409_v62 = vpack.c.bf16 %v6631_v28, %v6627_v0  ;;  %v6633_v9 = vmax.f32 %v6521_v3, 0.0 }
 0x62c   :  { %v23411_v33 = vpack.c.bf16 %v6632_v47, %v6628_v2  ;;  %v6634_v43 = vmax.f32 %v6522_v27, 0.0  ;;  %v5929_v61 = vpop.f32.mrb[104].mxu0 }
 0x62d   :  { %v23413_v18 = vpack.c.bf16 %v6633_v9, %v6629_v37  ;;  %v6523_v20 = vadd.f32 %v23238_v56, %v5929_v61  ;;  %v5931_v24 = vpop.f32.mrb[105].mxu0 }
 0x62e   :  { %v23416_v39 = vpack.c.bf16 %v6634_v43, %v6630_v8  ;;  %v6524_v41 = vadd.f32 %v23241_v31, %v5931_v24  ;;  %v5933_v4 = vpop.f32.mrb[106].mxu0  ;;  %v6275_v52 = vpop.f32.mrb[156].mxu1 }
 0x62f   :  { %v6527_v0 = vadd.f32 %v23238_v56, %v5933_v4  ;;  %v6525_v63 = vadd.f32 %v23244_v51, %v6275_v52  ;;  %v5935_v28 = vpop.f32.mrb[107].mxu0  ;;  %v6277_v3 = vpop.f32.mrb[157].mxu1  ;;  %v6635_v47 = vmax.f32 %v6523_v20, 0.0 }
 0x630   :  { %v6528_v10 = vadd.f32 %v23241_v31, %v5935_v28  ;;  %v6526_v25 = vadd.f32 %v23247_v15, %v6277_v3  ;;  %v6279_v2 = vpop.f32.mrb[158].mxu1  ;;  %v6636_v8 = vmax.f32 %v6524_v41, 0.0 }
 0x631   :  { %v6639_v27 = vmax.f32 %v6527_v0, 0.0  ;;  %v6529_v37 = vadd.f32 %v23244_v51, %v6279_v2  ;;  %v6281_v9 = vpop.f32.mrb[159].mxu1  ;;  %v6637_v4 = vmax.f32 %v6525_v63, 0.0 }
 0x632   :  { %v6640_v43 = vmax.f32 %v6528_v10, 0.0  ;;  %v6530_v61 = vadd.f32 %v23247_v15, %v6281_v9  ;;  %v6638_v60 = vmax.f32 %v6526_v25, 0.0 }
 0x633   :  { %v6699_v24 = vpack.c.bf16 %v6639_v27, %v6635_v47  ;;  %v6641_v44 = vmax.f32 %v6529_v37, 0.0 }
 0x634   :  { %v6700_v52 = vpack.c.bf16 %v6640_v43, %v6636_v8  ;;  %v6642_v38 = vmax.f32 %v6530_v61, 0.0  ;;  %v5939_v36 = vpop.f32.mrb[108].mxu0 }
 0x635   :  { %v23425_v28 = vpack.c.bf16 %v6641_v44, %v6637_v4  ;;  %v6531_v3 = vadd.f32 %v23238_v56, %v5939_v36  ;;  %v5941_v20 = vpop.f32.mrb[109].mxu0 }
 0x636   :  { %v23428_v0 = vpack.c.bf16 %v6642_v38, %v6638_v60  ;;  %v6532_v2 = vadd.f32 %v23241_v31, %v5941_v20  ;;  %v5943_v41 = vpop.f32.mrb[110].mxu0  ;;  %v6285_v10 = vpop.f32.mrb[160].mxu1  ;;  %7717 = vmatprep.mubr.bf16.mxu0 %v6700_v52  ;;  %7923 = vmatprep.mubr.bf16.mxu1 %v6700_v52 }
 0x637   :  { %v6535_v63 = vadd.f32 %v23238_v56, %v5943_v41  ;;  %v6533_v47 = vadd.f32 %v23244_v51, %v6285_v10  ;;  %v5945_v25 = vpop.f32.mrb[111].mxu0  ;;  %v6287_v27 = vpop.f32.mrb[161].mxu1  ;;  %7718 = vmatmul.mubr.bf16.gmra.mrb[136].mxu0 %v6699_v24  ;;  %7924 = vmatmul.mubr.bf16.gmra.mrb[188].mxu1 %v6699_v24  ;;  %v6643_v38 = vmax.f32 %v6531_v3, 0.0  ;;  %v19761_v10 = vld [vmem:[#allocation9] ss:$16 sps:$4 sm:$0xff]  }
 0x638   :  { %v6536_v44 = vadd.f32 %v23241_v31, %v5945_v25  ;;  %v6534_v36 = vadd.f32 %v23247_v15, %v6287_v27  ;;  %v6289_v60 = vpop.f32.mrb[162].mxu1  ;;  %16610 = vmatprep.mubr.msk.bf16.mxu0 %vm3053_vm2, %v23260_v55  ;;  %16617 = vmatprep.mubr.msk.bf16.mxu1 %vm3053_vm2, %v23260_v55  ;;  %v6644_v8 = vmax.f32 %v6532_v2, 0.0  ;;  %v19764_v25 = vld [vmem:[#allocation9 + $0x8] ss:$16 sps:$4 sm:$0xff]   ;;  %v19778_v27 = vld [vmem:[#allocation9 + $0x4c] ss:$16 sps:$4 sm:$0xff]  }
 0x639   :  { %v6647_v37 = vmax.f32 %v6535_v63, 0.0  ;;  %v6537_v56 = vadd.f32 %v23244_v51, %v6289_v60  ;;  %v6291_v9 = vpop.f32.mrb[163].mxu1  ;;  %v6645_v31 = vmax.f32 %v6533_v47, 0.0  ;;  %v19769_v51 = vld [vmem:[#allocation9 + $0x24] ss:$16 sps:$4 sm:$0xff]  }
 0x63a   :  { %v6648_v43 = vmax.f32 %v6536_v44, 0.0  ;;  %v6538_v61 = vadd.f32 %v23247_v15, %v6291_v9  ;;  %v6646_v20 = vmax.f32 %v6534_v36, 0.0  ;;  %v19772_v63 = vld [vmem:[#allocation9 + $0x2c] ss:$16 sps:$4 sm:$0xff]   ;;  %v19767_v15 = vld [vmem:[#allocation9 + $0x20] ss:$16 sps:$4 sm:$0xff]  }
 0x63b   :  { %v23441_v24 = vpack.c.bf16 %v6647_v37, %v6643_v38  ;;  %v6649_v4 = vmax.f32 %v6537_v56, 0.0  ;;  %v19770_v2 = vld [vmem:[#allocation9 + $0x28] ss:$16 sps:$4 sm:$0xff]   ;;  %v19775_v47 = vld [vmem:[#allocation9 + $0x44] ss:$16 sps:$4 sm:$0xff]  }
 0x63c   :  { %v23443_v52 = vpack.c.bf16 %v6648_v43, %v6644_v8  ;;  %v6650_v41 = vmax.f32 %v6538_v61, 0.0  ;;  %v19773_v44 = vld [vmem:[#allocation9 + $0x40] ss:$16 sps:$4 sm:$0xff]   ;;  %v19776_v36 = vld [vmem:[#allocation9 + $0x48] ss:$16 sps:$4 sm:$0xff]  }
 0x63d   :  { %v23445_v55 = vpack.c.bf16 %v6649_v4, %v6645_v31  ;;  %v19784_v60 = vld [vmem:[#allocation9 + $0x6c] ss:$16 sps:$4 sm:$0xff]   ;;  %v19779_v38 = vld [vmem:[#allocation9 + $0x60] ss:$16 sps:$4 sm:$0xff]   ;;  %v19787_v37 = vld [vmem:[#allocation9 + $0x84] ss:$16 sps:$4 sm:$0xff]  }
 0x63e   :  { %v23447_v3 = vpack.c.bf16 %v6650_v41, %v6646_v20  ;;  %v19790_v56 = vld [vmem:[#allocation9 + $0x8c] ss:$16 sps:$4 sm:$0xff]   ;;  %v19785_v9 = vld [vmem:[#allocation9 + $0x80] ss:$16 sps:$4 sm:$0xff]   ;;  %v19788_v8 = vld [vmem:[#allocation9 + $0x88] ss:$16 sps:$4 sm:$0xff]  }
 0x63f   :  { %7761 = vmatmul.mubr.bf16.vlgmr.msra.gmra.mrb[112].mxu0 %v23257_v34  ;;  %7967 = vmatmul.mubr.bf16.vlgmr.msra.gmra.mrb[164].mxu1 %v23257_v34  ;;  %v19781_v34 = vld [vmem:[#allocation9 + $0x64] ss:$16 sps:$4 sm:$0xff]   ;;  %v19796_v43 = vld [vmem:[#allocation9 + $0xac] ss:$16 sps:$4 sm:$0xff]   ;;  %v19791_v61 = vld [vmem:[#allocation9 + $0xa0] ss:$16 sps:$4 sm:$0xff]  }
 0x640   :  { %8616 = vmatpush1.bf16.msra.mxu0 %v19761_v10  ;;  %8822 = vmatpush1.bf16.msra.mxu1 %v19764_v25  ;;  %v19799_v31 = vld [vmem:[#allocation9 + $0xc4] ss:$16 sps:$4 sm:$0xff]   ;;  %v19802_v4 = vld [vmem:[#allocation9 + $0xcc] ss:$16 sps:$4 sm:$0xff]   ;;  %v19797_v20 = vld [vmem:[#allocation9 + $0xc0] ss:$16 sps:$4 sm:$0xff]  }
 0x641   :  { %16611 = vmatprep.mubr.msk.bf16.mxu0 %vm3053_vm2, %v23288_v49  ;;  %16618 = vmatprep.mubr.msk.bf16.mxu1 %vm3053_vm2, %v23288_v49  ;;  %v19782_v49 = vld [vmem:[#allocation9 + $0x68] ss:$16 sps:$4 sm:$0xff]   ;;  %v19808_v10 = vld [vmem:[#allocation9 + $0xec] ss:$16 sps:$4 sm:$0xff]   ;;  %v19803_v25 = vld [vmem:[#allocation9 + $0xe0] ss:$16 sps:$4 sm:$0xff]  }
 0x642   :  { %8617 = vmatprep.subr.bf16.mxu0 %v19769_v51  ;;  %8823 = vmatprep.subr.bf16.mxu1 %v19772_v63  ;;  %v19800_v41 = vld [vmem:[#allocation9 + $0xc8] ss:$16 sps:$4 sm:$0xff]   ;;  %v19811_v51 = vld [vmem:[#allocation9 + $0x104] ss:$16 sps:$4 sm:$0xff]   ;;  %v19814_v63 = vld [vmem:[#allocation9 + $0x10c] ss:$16 sps:$4 sm:$0xff]  }
 0x644   :  { %8618 = vmatpush1.bf16.msra.mxu0 %v19767_v15  ;;  %8824 = vmatpush1.bf16.msra.mxu1 %v19770_v2  ;;  %v19809_v15 = vld [vmem:[#allocation9 + $0x100] ss:$16 sps:$4 sm:$0xff]   ;;  %v19812_v2 = vld [vmem:[#allocation9 + $0x108] ss:$16 sps:$4 sm:$0xff]  }
 0x645   :  { %8619 = vmatprep.subr.bf16.mxu0 %v19775_v47  ;;  %8825 = vmatprep.subr.bf16.mxu1 %v19778_v27  ;;  %v19820_v47 = vld [vmem:[#allocation9 + $0x12c] ss:$16 sps:$4 sm:$0xff]   ;;  %v19815_v27 = vld [vmem:[#allocation9 + $0x120] ss:$16 sps:$4 sm:$0xff]  }
 0x647   :  { %7771 = vmatmul.mubr.bf16.gmra.mrb[116].mxu0 %v23285_v57  ;;  %7977 = vmatmul.mubr.bf16.gmra.mrb[168].mxu1 %v23285_v57  ;;  %v19793_v57 = vld [vmem:[#allocation9 + $0xa4] ss:$16 sps:$4 sm:$0xff]  }
 0x648   :  { %8620 = vmatpush1.bf16.msra.mxu0 %v19773_v44  ;;  %8826 = vmatpush1.bf16.msra.mxu1 %v19776_v36  ;;  %v19823_v44 = vld [vmem:[#allocation9 + $0x144] ss:$16 sps:$4 sm:$0xff]   ;;  %v19826_v36 = vld [vmem:[#allocation9 + $0x14c] ss:$16 sps:$4 sm:$0xff]  }
 0x649   :  { %16612 = vmatprep.mubr.msk.bf16.mxu0 %vm3053_vm2, %v23316_v42  ;;  %16619 = vmatprep.mubr.msk.bf16.mxu1 %vm3053_vm2, %v23316_v42  ;;  %v19794_v42 = vld [vmem:[#allocation9 + $0xa8] ss:$16 sps:$4 sm:$0xff]  }
 0x64a   :  { %8621 = vmatprep.subr.bf16.mxu0 %v19781_v34  ;;  %8827 = vmatprep.subr.bf16.mxu1 %v19784_v60  ;;  %v19821_v34 = vld [vmem:[#allocation9 + $0x140] ss:$16 sps:$4 sm:$0xff]   ;;  %v19824_v60 = vld [vmem:[#allocation9 + $0x148] ss:$16 sps:$4 sm:$0xff]  }
 0x64c   :  { %8622 = vmatpush1.bf16.msra.mxu0 %v19779_v38  ;;  %8828 = vmatpush1.bf16.msra.mxu1 %v19782_v49  ;;  %v19832_v38 = vld [vmem:[#allocation9 + $0x16c] ss:$16 sps:$4 sm:$0xff]   ;;  %v19827_v49 = vld [vmem:[#allocation9 + $0x160] ss:$16 sps:$4 sm:$0xff]  }
 0x64d   :  { %8623 = vmatprep.subr.bf16.mxu0 %v19787_v37  ;;  %8829 = vmatprep.subr.bf16.mxu1 %v19790_v56  ;;  %v19835_v37 = vld [vmem:[#allocation9 + $0x184] ss:$16 sps:$4 sm:$0xff]   ;;  %v19838_v56 = vld [vmem:[#allocation9 + $0x18c] ss:$16 sps:$4 sm:$0xff]  }
 0x64f   :  { %7781 = vmatmul.mubr.bf16.gmra.mrb[120].mxu0 %v23313_v54  ;;  %7987 = vmatmul.mubr.bf16.gmra.mrb[172].mxu1 %v23313_v54  ;;  %v19805_v54 = vld [vmem:[#allocation9 + $0xe4] ss:$16 sps:$4 sm:$0xff]  }
 0x650   :  { %8624 = vmatpush1.bf16.msra.mxu0 %v19785_v9  ;;  %8830 = vmatpush1.bf16.msra.mxu1 %v19788_v8  ;;  %v19833_v9 = vld [vmem:[#allocation9 + $0x180] ss:$16 sps:$4 sm:$0xff]   ;;  %v19836_v8 = vld [vmem:[#allocation9 + $0x188] ss:$16 sps:$4 sm:$0xff]  }
 0x651   :  { %16613 = vmatprep.mubr.msk.bf16.mxu0 %vm3053_vm2, %v23344_v46  ;;  %16620 = vmatprep.mubr.msk.bf16.mxu1 %vm3053_vm2, %v23344_v46  ;;  %v19806_v46 = vld [vmem:[#allocation9 + $0xe8] ss:$16 sps:$4 sm:$0xff]  }
 0x652   :  { %8625 = vmatprep.subr.bf16.mxu0 %v19793_v57  ;;  %8831 = vmatprep.subr.bf16.mxu1 %v19796_v43  ;;  %v19844_v57 = vld [vmem:[#allocation9 + $0x1ac] ss:$16 sps:$4 sm:$0xff]   ;;  %v19839_v43 = vld [vmem:[#allocation9 + $0x1a0] ss:$16 sps:$4 sm:$0xff]  }
 0x654   :  { %8626 = vmatpush1.bf16.msra.mxu0 %v19791_v61  ;;  %8832 = vmatpush1.bf16.msra.mxu1 %v19794_v42  ;;  %v19847_v61 = vld [vmem:[#allocation9 + $0x1c4] ss:$16 sps:$4 sm:$0xff]   ;;  %v19850_v42 = vld [vmem:[#allocation9 + $0x1cc] ss:$16 sps:$4 sm:$0xff]  }
 0x655   :  { %8627 = vmatprep.subr.bf16.mxu0 %v19799_v31  ;;  %8833 = vmatprep.subr.bf16.mxu1 %v19802_v4  ;;  %v19845_v31 = vld [vmem:[#allocation9 + $0x1c0] ss:$16 sps:$4 sm:$0xff]   ;;  %v19848_v4 = vld [vmem:[#allocation9 + $0x1c8] ss:$16 sps:$4 sm:$0xff]  }
 0x657   :  { %7791 = vmatmul.mubr.bf16.gmra.mrb[124].mxu0 %v23341_v17  ;;  %7997 = vmatmul.mubr.bf16.gmra.mrb[176].mxu1 %v23341_v17  ;;  %v19817_v17 = vld [vmem:[#allocation9 + $0x124] ss:$16 sps:$4 sm:$0xff]  }
 0x658   :  { %8628 = vmatpush1.bf16.msra.mxu0 %v19797_v20  ;;  %8834 = vmatpush1.bf16.msra.mxu1 %v19800_v41  ;;  %v19853_v20 = vld [vmem:[#allocation9 + $0x1e4] ss:$16 sps:$4 sm:$0xff]   ;;  %v19851_v41 = vld [vmem:[#allocation9 + $0x1e0] ss:$16 sps:$4 sm:$0xff]  }
 0x659   :  { %16614 = vmatprep.mubr.msk.bf16.mxu0 %vm3053_vm2, %v23372_v12  ;;  %16621 = vmatprep.mubr.msk.bf16.mxu1 %vm3053_vm2, %v23372_v12  ;;  %v19818_v12 = vld [vmem:[#allocation9 + $0x128] ss:$16 sps:$4 sm:$0xff]  }
 0x65a   :  { %8629 = vmatprep.subr.bf16.mxu0 %v19805_v54  ;;  %8835 = vmatprep.subr.bf16.mxu1 %v19808_v10  ;;  %v19854_v54 = vld [vmem:[#allocation9 + $0x1e8] ss:$16 sps:$4 sm:$0xff]   ;;  %v19859_v10 = vld [vmem:[#allocation9 + $0x204] ss:$16 sps:$4 sm:$0xff]  }
 0x65c   :  { %8630 = vmatpush1.bf16.msra.mxu0 %v19803_v25  ;;  %8836 = vmatpush1.bf16.msra.mxu1 %v19806_v46  ;;  %v19865_v25 = vld [vmem:[#allocation9 + $0x20c] ss:$16 sps:$4 sm:$0xff]   ;;  %v19857_v46 = vld [vmem:[#allocation9 + $0x200] ss:$16 sps:$4 sm:$0xff]  }
 0x65d   :  { %8631 = vmatprep.subr.bf16.mxu0 %v19811_v51  ;;  %8837 = vmatprep.subr.bf16.mxu1 %v19814_v63  ;;  %v19862_v51 = vld [vmem:[#allocation9 + $0x224] ss:$16 sps:$4 sm:$0xff]   ;;  %v19863_v63 = vld [vmem:[#allocation9 + $0x208] ss:$16 sps:$4 sm:$0xff]  }
 0x65f   :  { %7801 = vmatmul.mubr.bf16.gmra.mrb[128].mxu0 %v23369_v48  ;;  %8007 = vmatmul.mubr.bf16.gmra.mrb[180].mxu1 %v23369_v48  ;;  %v19829_v48 = vld [vmem:[#allocation9 + $0x164] ss:$16 sps:$4 sm:$0xff]  }
 0x660   :  { %8632 = vmatpush1.bf16.msra.mxu0 %v19809_v15  ;;  %8838 = vmatpush1.bf16.msra.mxu1 %v19812_v2  ;;  %v19871_v15 = vld [vmem:[#allocation9 + $0x22c] ss:$16 sps:$4 sm:$0xff]   ;;  %v19860_v2 = vld [vmem:[#allocation9 + $0x220] ss:$16 sps:$4 sm:$0xff]  }
 0x661   :  { %16615 = vmatprep.mubr.msk.bf16.mxu0 %vm3053_vm2, %v23400_v59  ;;  %16622 = vmatprep.mubr.msk.bf16.mxu1 %vm3053_vm2, %v23400_v59  ;;  %v19830_v59 = vld [vmem:[#allocation9 + $0x168] ss:$16 sps:$4 sm:$0xff]  }
 0x662   :  { %8633 = vmatprep.subr.bf16.mxu0 %v19817_v17  ;;  %8839 = vmatprep.subr.bf16.mxu1 %v19820_v47  ;;  %v19868_v17 = vld [vmem:[#allocation9 + $0x244] ss:$16 sps:$4 sm:$0xff]   ;;  %v19869_v47 = vld [vmem:[#allocation9 + $0x228] ss:$16 sps:$4 sm:$0xff]  }
 0x664   :  { %8634 = vmatpush1.bf16.msra.mxu0 %v19815_v27  ;;  %8840 = vmatpush1.bf16.msra.mxu1 %v19818_v12  ;;  %v19866_v27 = vld [vmem:[#allocation9 + $0x240] ss:$16 sps:$4 sm:$0xff]   ;;  %v19877_v12 = vld [vmem:[#allocation9 + $0x24c] ss:$16 sps:$4 sm:$0xff]  }
 0x665   :  { %8635 = vmatprep.subr.bf16.mxu0 %v19823_v44  ;;  %8841 = vmatprep.subr.bf16.mxu1 %v19826_v36  ;;  %v19874_v44 = vld [vmem:[#allocation9 + $0x264] ss:$16 sps:$4 sm:$0xff]   ;;  %v19875_v36 = vld [vmem:[#allocation9 + $0x248] ss:$16 sps:$4 sm:$0xff]  }
 0x667   :  { %7811 = vmatmul.mubr.bf16.gmra.mrb[132].mxu0 %v23397_v45  ;;  %8017 = vmatmul.mubr.bf16.gmra.mrb[184].mxu1 %v23397_v45  ;;  %v19841_v45 = vld [vmem:[#allocation9 + $0x1a4] ss:$16 sps:$4 sm:$0xff]  }
 0x668   :  { %8636 = vmatpush1.bf16.msra.mxu0 %v19821_v34  ;;  %8842 = vmatpush1.bf16.msra.mxu1 %v19824_v60  ;;  %v19883_v34 = vld [vmem:[#allocation9 + $0x26c] ss:$16 sps:$4 sm:$0xff]   ;;  %v19872_v60 = vld [vmem:[#allocation9 + $0x260] ss:$16 sps:$4 sm:$0xff]  }
 0x669   :  { %16616 = vmatprep.mubr.msk.bf16.mxu0 %vm3053_vm2, %v23428_v0  ;;  %16623 = vmatprep.mubr.msk.bf16.mxu1 %vm3053_vm2, %v23428_v0  ;;  %v19842_v0 = vld [vmem:[#allocation9 + $0x1a8] ss:$16 sps:$4 sm:$0xff]  }
 0x66a   :  { %8637 = vmatprep.subr.bf16.mxu0 %v19829_v48  ;;  %8843 = vmatprep.subr.bf16.mxu1 %v19832_v38  ;;  %v19880_v48 = vld [vmem:[#allocation9 + $0x284] ss:$16 sps:$4 sm:$0xff]   ;;  %v19881_v38 = vld [vmem:[#allocation9 + $0x268] ss:$16 sps:$4 sm:$0xff]  }
 0x66c   :  { %8638 = vmatpush1.bf16.msra.mxu0 %v19827_v49  ;;  %8844 = vmatpush1.bf16.msra.mxu1 %v19830_v59  ;;  %v19878_v49 = vld [vmem:[#allocation9 + $0x280] ss:$16 sps:$4 sm:$0xff]   ;;  %v19886_v59 = vld [vmem:[#allocation9 + $0x28c] ss:$16 sps:$4 sm:$0xff]  }
 0x66d   :  { %8639 = vmatprep.subr.bf16.mxu0 %v19835_v37  ;;  %8845 = vmatprep.subr.bf16.mxu1 %v19838_v56  ;;  %v19884_v37 = vld [vmem:[#allocation9 + $0x288] ss:$16 sps:$4 sm:$0xff]   ;;  %v19889_v56 = vld [vmem:[#allocation9 + $0x2a4] ss:$16 sps:$4 sm:$0xff]  }
 0x66f   :  { %7821 = vmatmul.mubr.bf16.gmra.mrb[136].mxu0 %v23425_v28  ;;  %8027 = vmatmul.mubr.bf16.gmra.mrb[188].mxu1 %v23425_v28  ;;  %v19856_v28 = vld [vmem:[#allocation9 + $0x1ec] ss:$16 sps:$4 sm:$0xff]  }
 0x670   :  { %8640 = vmatpush1.bf16.msra.mxu0 %v19833_v9  ;;  %8846 = vmatpush1.bf16.msra.mxu1 %v19836_v8  ;;  %v19892_v9 = vld [vmem:[#allocation9 + $0x2ac] ss:$16 sps:$4 sm:$0xff]   ;;  %v19887_v8 = vld [vmem:[#allocation9 + $0x2a0] ss:$16 sps:$4 sm:$0xff]  }
 0x671   :  { %8641 = vmatprep.subr.bf16.mxu0 %v19841_v45  ;;  %8847 = vmatprep.subr.bf16.mxu1 %v19844_v57  ;;  %v19890_v45 = vld [vmem:[#allocation9 + $0x2a8] ss:$16 sps:$4 sm:$0xff]   ;;  %v19895_v57 = vld [vmem:[#allocation9 + $0x2c4] ss:$16 sps:$4 sm:$0xff]  }
 0x672   :  { %8647 = vmatprep.mubr.bf16.mxu0 %v24442_v14  ;;  %8853 = vmatprep.mubr.bf16.mxu1 %v24442_v14 }
 0x674   :  { %8642 = vmatpush1.bf16.msra.mxu0 %v19839_v43  ;;  %8848 = vmatpush1.bf16.msra.mxu1 %v19842_v0  ;;  %v19893_v43 = vld [vmem:[#allocation9 + $0x2c0] ss:$16 sps:$4 sm:$0xff]   ;;  %v19898_v0 = vld [vmem:[#allocation9 + $0x2cc] ss:$16 sps:$4 sm:$0xff]  }
 0x675   :  { %8643 = vmatprep.subr.bf16.mxu0 %v19847_v61  ;;  %8849 = vmatprep.subr.bf16.mxu1 %v19850_v42  ;;  %v19896_v61 = vld [vmem:[#allocation9 + $0x2c8] ss:$16 sps:$4 sm:$0xff]   ;;  %v19901_v42 = vld [vmem:[#allocation9 + $0x2e4] ss:$16 sps:$4 sm:$0xff]  }
 0x678   :  { %8644 = vmatpush1.bf16.msra.mxu0 %v19845_v31  ;;  %8850 = vmatpush1.bf16.msra.mxu1 %v19848_v4  ;;  %v19904_v31 = vld [vmem:[#allocation9 + $0x2ec] ss:$16 sps:$4 sm:$0xff]   ;;  %v19899_v4 = vld [vmem:[#allocation9 + $0x2e0] ss:$16 sps:$4 sm:$0xff]  }
 0x679   :  { %8645 = vmatprep.subr.bf16.mxu0 %v19853_v20  ;;  %8851 = vmatprep.subr.bf16.mxu1 %v19856_v28  ;;  %v19902_v20 = vld [vmem:[#allocation9 + $0x2e8] ss:$16 sps:$4 sm:$0xff]   ;;  %v19907_v28 = vld [vmem:[#allocation9 + $0x304] ss:$16 sps:$4 sm:$0xff]  }
 0x67c   :  { %8646 = vmatpush1.bf16.msra.mxu0 %v19851_v41  ;;  %8852 = vmatpush1.bf16.msra.mxu1 %v19854_v54  ;;  %v19905_v41 = vld [vmem:[#allocation9 + $0x300] ss:$16 sps:$4 sm:$0xff]   ;;  %v19910_v54 = vld [vmem:[#allocation9 + $0x30c] ss:$16 sps:$4 sm:$0xff]  }
 0x67d   :  { %8718 = vmatprep.subr.bf16.mxu0 %v19859_v10  ;;  %8924 = vmatprep.subr.bf16.mxu1 %v19865_v25  ;;  %v19908_v10 = vld [vmem:[#allocation9 + $0x308] ss:$16 sps:$4 sm:$0xff]   ;;  %v19913_v25 = vld [vmem:[#allocation9 + $0x324] ss:$16 sps:$4 sm:$0xff]  }
 0x67f   :  { %8648 = vmatmul.mubr.bf16.vlgmr.msra.gmra.mrb[112].mxu0 %v24442_v14  ;;  %8854 = vmatmul.mubr.bf16.vlgmr.msra.gmra.mrb[164].mxu1 %v24442_v14 }
 0x680   :  { %8657 = vmatprep.mubr.bf16.mxu0 %v23271_v26  ;;  %8719 = vmatpush1.bf16.msra.mxu0 %v19857_v46  ;;  %v19916_v46 = vld [vmem:[#allocation9 + $0x32c] ss:$16 sps:$4 sm:$0xff]  }
 0x681   :  { %8863 = vmatprep.mubr.bf16.mxu1 %v23271_v26  ;;  %8720 = vmatprep.subr.bf16.mxu0 %v19862_v51  ;;  %v19911_v51 = vld [vmem:[#allocation9 + $0x320] ss:$16 sps:$4 sm:$0xff]  }
 0x682   :  { %8925 = vmatpush1.bf16.msra.mxu1 %v19863_v63  ;;  %v19914_v63 = vld [vmem:[#allocation9 + $0x328] ss:$16 sps:$4 sm:$0xff]  }
 0x683   :  { %8926 = vmatprep.subr.bf16.mxu1 %v19871_v15  ;;  %v19919_v15 = vld [vmem:[#allocation9 + $0x344] ss:$16 sps:$4 sm:$0xff]  }
 0x684   :  { %8721 = vmatpush1.bf16.msra.mxu0 %v19860_v2  ;;  %v19917_v2 = vld [vmem:[#allocation9 + $0x340] ss:$16 sps:$4 sm:$0xff]  }
 0x685   :  { %8722 = vmatprep.subr.bf16.mxu0 %v19868_v17  ;;  %v19922_v17 = vld [vmem:[#allocation9 + $0x34c] ss:$16 sps:$4 sm:$0xff]  }
 0x686   :  { %8927 = vmatpush1.bf16.msra.mxu1 %v19869_v47  ;;  %v19920_v47 = vld [vmem:[#allocation9 + $0x348] ss:$16 sps:$4 sm:$0xff]  }
 0x687   :  { %8658 = vmatmul.mubr.bf16.gmra.mrb[116].mxu0 %v23269_v1  ;;  %8864 = vmatmul.mubr.bf16.gmra.mrb[168].mxu1 %v23269_v1 }
 0x688   :  { %8667 = vmatprep.mubr.bf16.mxu0 %v23299_v30  ;;  %8873 = vmatprep.mubr.bf16.mxu1 %v23299_v30 }
 0x689   :  { %8723 = vmatpush1.bf16.msra.mxu0 %v19866_v27  ;;  %8928 = vmatprep.subr.bf16.mxu1 %v19877_v12  ;;  %v19925_v27 = vld [vmem:[#allocation9 + $0x364] ss:$16 sps:$4 sm:$0xff]   ;;  %v19928_v12 = vld [vmem:[#allocation9 + $0x36c] ss:$16 sps:$4 sm:$0xff]  }
 0x68a   :  { %8724 = vmatprep.subr.bf16.mxu0 %v19874_v44  ;;  %8929 = vmatpush1.bf16.msra.mxu1 %v19875_v36  ;;  %v19923_v44 = vld [vmem:[#allocation9 + $0x360] ss:$16 sps:$4 sm:$0xff]   ;;  %v19926_v36 = vld [vmem:[#allocation9 + $0x368] ss:$16 sps:$4 sm:$0xff]  }
 0x68b   :  { %8930 = vmatprep.subr.bf16.mxu1 %v19883_v34  ;;  %v19931_v34 = vld [vmem:[#allocation12 + $0x4] ss:$16 sps:$4 sm:$0xff]  }
 0x68d   :  { %8725 = vmatpush1.bf16.msra.mxu0 %v19872_v60  ;;  %v19934_v60 = vld [vmem:[#allocation12 + $0xc] ss:$16 sps:$4 sm:$0xff]  }
 0x68e   :  { %8726 = vmatprep.subr.bf16.mxu0 %v19880_v48  ;;  %8931 = vmatpush1.bf16.msra.mxu1 %v19881_v38  ;;  %v19929_v48 = vld [vmem:[#allocation12] ss:$16 sps:$4 sm:$0xff]   ;;  %v19932_v38 = vld [vmem:[#allocation12 + $0x8] ss:$16 sps:$4 sm:$0xff]  }
 0x68f   :  { %8668 = vmatmul.mubr.bf16.gmra.mrb[120].mxu0 %v23297_v6  ;;  %8874 = vmatmul.mubr.bf16.gmra.mrb[172].mxu1 %v23297_v6 }
 0x690   :  { %8677 = vmatprep.mubr.bf16.mxu0 %v23327_v22  ;;  %8883 = vmatprep.mubr.bf16.mxu1 %v23327_v22 }
 0x691   :  { %8727 = vmatpush1.bf16.msra.mxu0 %v19878_v49  ;;  %8932 = vmatprep.subr.bf16.mxu1 %v19886_v59  ;;  %v19937_v49 = vld [vmem:[#allocation12 + $0x24] ss:$16 sps:$4 sm:$0xff]   ;;  %v19940_v59 = vld [vmem:[#allocation12 + $0x2c] ss:$16 sps:$4 sm:$0xff]  }
 0x692   :  { %8728 = vmatprep.subr.bf16.mxu0 %v19889_v56  ;;  %8933 = vmatpush1.bf16.msra.mxu1 %v19884_v37  ;;  %v19935_v37 = vld [vmem:[#allocation12 + $0x20] ss:$16 sps:$4 sm:$0xff]   ;;  %v19938_v56 = vld [vmem:[#allocation12 + $0x28] ss:$16 sps:$4 sm:$0xff]  }
 0x693   :  { %8934 = vmatprep.subr.bf16.mxu1 %v19892_v9  ;;  %v19943_v9 = vld [vmem:[#allocation12 + $0x44] ss:$16 sps:$4 sm:$0xff]  }
 0x695   :  { %8729 = vmatpush1.bf16.msra.mxu0 %v19887_v8  ;;  %v19946_v8 = vld [vmem:[#allocation12 + $0x4c] ss:$16 sps:$4 sm:$0xff]  }
 0x696   :  { %8730 = vmatprep.subr.bf16.mxu0 %v19895_v57  ;;  %8935 = vmatpush1.bf16.msra.mxu1 %v19890_v45  ;;  %v19941_v45 = vld [vmem:[#allocation12 + $0x40] ss:$16 sps:$4 sm:$0xff]   ;;  %v19944_v57 = vld [vmem:[#allocation12 + $0x48] ss:$16 sps:$4 sm:$0xff]  }
 0x697   :  { %8678 = vmatmul.mubr.bf16.gmra.mrb[124].mxu0 %v23325_v29  ;;  %8884 = vmatmul.mubr.bf16.gmra.mrb[176].mxu1 %v23325_v29 }
 0x698   :  { %8687 = vmatprep.mubr.bf16.mxu0 %v23355_v7  ;;  %8893 = vmatprep.mubr.bf16.mxu1 %v23355_v7 }
 0x699   :  { %8731 = vmatpush1.bf16.msra.mxu0 %v19893_v43  ;;  %8936 = vmatprep.subr.bf16.mxu1 %v19898_v0  ;;  %v19949_v43 = vld [vmem:[#allocation12 + $0x64] ss:$16 sps:$4 sm:$0xff]   ;;  %v19952_v0 = vld [vmem:[#allocation12 + $0x6c] ss:$16 sps:$4 sm:$0xff]  }
 0x69a   :  { %8937 = vmatpush1.bf16.msra.mxu1 %v19896_v61  ;;  %8732 = vmatprep.subr.bf16.mxu0 %v19901_v42  ;;  %v19947_v61 = vld [vmem:[#allocation12 + $0x60] ss:$16 sps:$4 sm:$0xff]   ;;  %v19950_v42 = vld [vmem:[#allocation12 + $0x68] ss:$16 sps:$4 sm:$0xff]  }
 0x69b   :  { %8938 = vmatprep.subr.bf16.mxu1 %v19904_v31  ;;  %v19955_v31 = vld [vmem:[#allocation12 + $0x84] ss:$16 sps:$4 sm:$0xff]  }
 0x69d   :  { %8733 = vmatpush1.bf16.msra.mxu0 %v19899_v4  ;;  %v19958_v4 = vld [vmem:[#allocation12 + $0x8c] ss:$16 sps:$4 sm:$0xff]  }
 0x69e   :  { %8939 = vmatpush1.bf16.msra.mxu1 %v19902_v20  ;;  %8734 = vmatprep.subr.bf16.mxu0 %v19907_v28  ;;  %v19953_v20 = vld [vmem:[#allocation12 + $0x80] ss:$16 sps:$4 sm:$0xff]   ;;  %v19956_v28 = vld [vmem:[#allocation12 + $0x88] ss:$16 sps:$4 sm:$0xff]  }
 0x69f   :  { %8688 = vmatmul.mubr.bf16.gmra.mrb[128].mxu0 %v23353_v23  ;;  %8894 = vmatmul.mubr.bf16.gmra.mrb[180].mxu1 %v23353_v23 }
 0x6a0   :  { %8697 = vmatprep.mubr.bf16.mxu0 %v23383_v40  ;;  %8903 = vmatprep.mubr.bf16.mxu1 %v23383_v40 }
 0x6a1   :  { %8735 = vmatpush1.bf16.msra.mxu0 %v19905_v41  ;;  %8940 = vmatprep.subr.bf16.mxu1 %v19910_v54  ;;  %v19961_v41 = vld [vmem:[#allocation12 + $0xa4] ss:$16 sps:$4 sm:$0xff]   ;;  %v19964_v54 = vld [vmem:[#allocation12 + $0xac] ss:$16 sps:$4 sm:$0xff]  }
 0x6a2   :  { %8941 = vmatpush1.bf16.msra.mxu1 %v19908_v10  ;;  %8736 = vmatprep.subr.bf16.mxu0 %v19913_v25  ;;  %v19959_v10 = vld [vmem:[#allocation12 + $0xa0] ss:$16 sps:$4 sm:$0xff]   ;;  %v19962_v25 = vld [vmem:[#allocation12 + $0xa8] ss:$16 sps:$4 sm:$0xff]  }
 0x6a3   :  { %8942 = vmatprep.subr.bf16.mxu1 %v19916_v46  ;;  %v19967_v46 = vld [vmem:[#allocation12 + $0xc4] ss:$16 sps:$4 sm:$0xff]  }
 0x6a5   :  { %8737 = vmatpush1.bf16.msra.mxu0 %v19911_v51  ;;  %v19970_v51 = vld [vmem:[#allocation12 + $0xcc] ss:$16 sps:$4 sm:$0xff]  }
 0x6a6   :  { %8943 = vmatpush1.bf16.msra.mxu1 %v19914_v63  ;;  %8738 = vmatprep.subr.bf16.mxu0 %v19919_v15  ;;  %v19965_v63 = vld [vmem:[#allocation12 + $0xc0] ss:$16 sps:$4 sm:$0xff]   ;;  %v19968_v15 = vld [vmem:[#allocation12 + $0xc8] ss:$16 sps:$4 sm:$0xff]  }
 0x6a7   :  { %8698 = vmatmul.mubr.bf16.gmra.mrb[132].mxu0 %v23381_v50  ;;  %8904 = vmatmul.mubr.bf16.gmra.mrb[184].mxu1 %v23381_v50 }
 0x6a8   :  { %8707 = vmatprep.mubr.bf16.mxu0 %v23411_v33  ;;  %8913 = vmatprep.mubr.bf16.mxu1 %v23411_v33 }
 0x6a9   :  { %8944 = vmatprep.subr.bf16.mxu1 %v19922_v17  ;;  %8739 = vmatpush1.bf16.msra.mxu0 %v19917_v2  ;;  %v19973_v2 = vld [vmem:[#allocation12 + $0xe4] ss:$16 sps:$4 sm:$0xff]   ;;  %v19976_v17 = vld [vmem:[#allocation12 + $0xec] ss:$16 sps:$4 sm:$0xff]  }
 0x6aa   :  { %8945 = vmatpush1.bf16.msra.mxu1 %v19920_v47  ;;  %8740 = vmatprep.subr.bf16.mxu0 %v19925_v27  ;;  %v19971_v47 = vld [vmem:[#allocation12 + $0xe0] ss:$16 sps:$4 sm:$0xff]   ;;  %v19974_v27 = vld [vmem:[#allocation12 + $0xe8] ss:$16 sps:$4 sm:$0xff]  }
 0x6ab   :  { %8946 = vmatprep.subr.bf16.mxu1 %v19928_v12  ;;  %v19979_v12 = vld [vmem:[#allocation12 + $0x104] ss:$16 sps:$4 sm:$0xff]  }
 0x6ad   :  { %8741 = vmatpush1.bf16.msra.mxu0 %v19923_v44  ;;  %v19982_v44 = vld [vmem:[#allocation12 + $0x10c] ss:$16 sps:$4 sm:$0xff]  }
 0x6ae   :  { %8947 = vmatpush1.bf16.msra.mxu1 %v19926_v36  ;;  %9590 = vmatprep.subr.bf16.mxu0 %v19931_v34  ;;  %v19977_v36 = vld [vmem:[#allocation12 + $0x100] ss:$16 sps:$4 sm:$0xff]   ;;  %v19980_v34 = vld [vmem:[#allocation12 + $0x108] ss:$16 sps:$4 sm:$0xff]  }
 0x6af   :  { %8708 = vmatmul.mubr.bf16.gmra.mrb[136].mxu0 %v23409_v62  ;;  %8914 = vmatmul.mubr.bf16.gmra.mrb[188].mxu1 %v23409_v62 }
 0x6b0   :  { %8750 = vmatprep.mubr.bf16.mxu0 %v24442_v14  ;;  %8956 = vmatprep.mubr.bf16.mxu1 %v24442_v14 }
 0x6b1   :  { %9796 = vmatprep.subr.bf16.mxu1 %v19934_v60  ;;  %v19985_v60 = vld [vmem:[#allocation12 + $0x124] ss:$16 sps:$4 sm:$0xff]  }
 0x6b7   :  { %8751 = vmatmul.mubr.bf16.vlgmr.msra.gmra.mrb[112].mxu0 %v24442_v14  ;;  %8957 = vmatmul.mubr.bf16.vlgmr.msra.gmra.mrb[164].mxu1 %v24442_v14 }
 0x6b8   :  { %9591 = vmatpush1.bf16.msra.mxu0 %v19929_v48  ;;  %9797 = vmatpush1.bf16.msra.mxu1 %v19932_v38  ;;  %v19988_v48 = vld [vmem:[#allocation12 + $0x12c] ss:$16 sps:$4 sm:$0xff]   ;;  %v19983_v38 = vld [vmem:[#allocation12 + $0x120] ss:$16 sps:$4 sm:$0xff]  }
 0x6b9   :  { %16736 = vmatprep.mubr.msk.bf16.mxu0 %vm3053_vm2, %v23276_v13  ;;  %16742 = vmatprep.mubr.msk.bf16.mxu1 %vm3053_vm2, %v23276_v13 }
 0x6ba   :  { %9592 = vmatprep.subr.bf16.mxu0 %v19937_v49  ;;  %9798 = vmatprep.subr.bf16.mxu1 %v19940_v59  ;;  %v19986_v49 = vld [vmem:[#allocation12 + $0x128] ss:$16 sps:$4 sm:$0xff]   ;;  %v19991_v59 = vld [vmem:[#allocation12 + $0x144] ss:$16 sps:$4 sm:$0xff]  }
 0x6bc   :  { %9593 = vmatpush1.bf16.msra.mxu0 %v19935_v37  ;;  %9799 = vmatpush1.bf16.msra.mxu1 %v19938_v56  ;;  %v19994_v37 = vld [vmem:[#allocation12 + $0x14c] ss:$16 sps:$4 sm:$0xff]   ;;  %v19989_v56 = vld [vmem:[#allocation12 + $0x140] ss:$16 sps:$4 sm:$0xff]  }
 0x6bd   :  { %9594 = vmatprep.subr.bf16.mxu0 %v19943_v9  ;;  %9800 = vmatprep.subr.bf16.mxu1 %v19946_v8  ;;  %v19992_v9 = vld [vmem:[#allocation12 + $0x148] ss:$16 sps:$4 sm:$0xff]   ;;  %v19997_v8 = vld [vmem:[#allocation12 + $0x164] ss:$16 sps:$4 sm:$0xff]  }
 0x6bf   :  { %8761 = vmatmul.mubr.bf16.gmra.mrb[116].mxu0 %v23273_v16  ;;  %8967 = vmatmul.mubr.bf16.gmra.mrb[168].mxu1 %v23273_v16 }
 0x6c0   :  { %9595 = vmatpush1.bf16.msra.mxu0 %v19941_v45  ;;  %9801 = vmatpush1.bf16.msra.mxu1 %v19944_v57  ;;  %v20000_v45 = vld [vmem:[#allocation12 + $0x16c] ss:$16 sps:$4 sm:$0xff]   ;;  %v19995_v57 = vld [vmem:[#allocation12 + $0x160] ss:$16 sps:$4 sm:$0xff]  }
 0x6c1   :  { %16737 = vmatprep.mubr.msk.bf16.mxu0 %vm3053_vm2, %v23304_v35  ;;  %16743 = vmatprep.mubr.msk.bf16.mxu1 %vm3053_vm2, %v23304_v35 }
 0x6c2   :  { %9596 = vmatprep.subr.bf16.mxu0 %v19949_v43  ;;  %9802 = vmatprep.subr.bf16.mxu1 %v19952_v0  ;;  %v19998_v43 = vld [vmem:[#allocation12 + $0x168] ss:$16 sps:$4 sm:$0xff]   ;;  %v20003_v0 = vld [vmem:[#allocation12 + $0x184] ss:$16 sps:$4 sm:$0xff]  }
 0x6c4   :  { %9597 = vmatpush1.bf16.msra.mxu0 %v19947_v61  ;;  %9803 = vmatpush1.bf16.msra.mxu1 %v19950_v42  ;;  %v20006_v61 = vld [vmem:[#allocation12 + $0x18c] ss:$16 sps:$4 sm:$0xff]   ;;  %v20001_v42 = vld [vmem:[#allocation12 + $0x180] ss:$16 sps:$4 sm:$0xff]  }
 0x6c5   :  { %9598 = vmatprep.subr.bf16.mxu0 %v19955_v31  ;;  %9804 = vmatprep.subr.bf16.mxu1 %v19958_v4  ;;  %v20004_v31 = vld [vmem:[#allocation12 + $0x188] ss:$16 sps:$4 sm:$0xff]   ;;  %v20009_v4 = vld [vmem:[#allocation12 + $0x1a4] ss:$16 sps:$4 sm:$0xff]  }
 0x6c7   :  { %8771 = vmatmul.mubr.bf16.gmra.mrb[120].mxu0 %v23301_v58  ;;  %8977 = vmatmul.mubr.bf16.gmra.mrb[172].mxu1 %v23301_v58 }
 0x6c8   :  { %9599 = vmatpush1.bf16.msra.mxu0 %v19953_v20  ;;  %9805 = vmatpush1.bf16.msra.mxu1 %v19956_v28  ;;  %v20012_v20 = vld [vmem:[#allocation12 + $0x1ac] ss:$16 sps:$4 sm:$0xff]   ;;  %v20007_v28 = vld [vmem:[#allocation12 + $0x1a0] ss:$16 sps:$4 sm:$0xff]  }
 0x6c9   :  { %16738 = vmatprep.mubr.msk.bf16.mxu0 %vm3053_vm2, %v23332_v21  ;;  %16744 = vmatprep.mubr.msk.bf16.mxu1 %vm3053_vm2, %v23332_v21 }
 0x6ca   :  { %9600 = vmatprep.subr.bf16.mxu0 %v19961_v41  ;;  %9806 = vmatprep.subr.bf16.mxu1 %v19964_v54  ;;  %v20010_v41 = vld [vmem:[#allocation12 + $0x1a8] ss:$16 sps:$4 sm:$0xff]   ;;  %v20015_v54 = vld [vmem:[#allocation12 + $0x1c4] ss:$16 sps:$4 sm:$0xff]  }
 0x6cc   :  { %9601 = vmatpush1.bf16.msra.mxu0 %v19959_v10  ;;  %9807 = vmatpush1.bf16.msra.mxu1 %v19962_v25  ;;  %v20018_v10 = vld [vmem:[#allocation12 + $0x1cc] ss:$16 sps:$4 sm:$0xff]   ;;  %v20013_v25 = vld [vmem:[#allocation12 + $0x1c0] ss:$16 sps:$4 sm:$0xff]  }
 0x6cd   :  { %9602 = vmatprep.subr.bf16.mxu0 %v19967_v46  ;;  %9808 = vmatprep.subr.bf16.mxu1 %v19970_v51  ;;  %v20016_v46 = vld [vmem:[#allocation12 + $0x1c8] ss:$16 sps:$4 sm:$0xff]   ;;  %v20021_v51 = vld [vmem:[#allocation12 + $0x1e4] ss:$16 sps:$4 sm:$0xff]  }
 0x6cf   :  { %8781 = vmatmul.mubr.bf16.gmra.mrb[124].mxu0 %v23329_v19  ;;  %8987 = vmatmul.mubr.bf16.gmra.mrb[176].mxu1 %v23329_v19 }
 0x6d0   :  { %9603 = vmatpush1.bf16.msra.mxu0 %v19965_v63  ;;  %9809 = vmatpush1.bf16.msra.mxu1 %v19968_v15  ;;  %v20024_v63 = vld [vmem:[#allocation12 + $0x1ec] ss:$16 sps:$4 sm:$0xff]   ;;  %v20019_v15 = vld [vmem:[#allocation12 + $0x1e0] ss:$16 sps:$4 sm:$0xff]  }
 0x6d1   :  { %16739 = vmatprep.mubr.msk.bf16.mxu0 %vm3053_vm2, %v23360_v5  ;;  %16745 = vmatprep.mubr.msk.bf16.mxu1 %vm3053_vm2, %v23360_v5 }
 0x6d2   :  { %9604 = vmatprep.subr.bf16.mxu0 %v19973_v2  ;;  %9810 = vmatprep.subr.bf16.mxu1 %v19976_v17  ;;  %v20022_v2 = vld [vmem:[#allocation12 + $0x1e8] ss:$16 sps:$4 sm:$0xff]   ;;  %v20027_v17 = vld [vmem:[#allocation12 + $0x204] ss:$16 sps:$4 sm:$0xff]  }
 0x6d4   :  { %9605 = vmatpush1.bf16.msra.mxu0 %v19971_v47  ;;  %9811 = vmatpush1.bf16.msra.mxu1 %v19974_v27  ;;  %v20025_v47 = vld [vmem:[#allocation12 + $0x200] ss:$16 sps:$4 sm:$0xff]   ;;  %v20030_v27 = vld [vmem:[#allocation12 + $0x224] ss:$16 sps:$4 sm:$0xff]  }
 0x6d5   :  { %9606 = vmatprep.subr.bf16.mxu0 %v19979_v12  ;;  %9812 = vmatprep.subr.bf16.mxu1 %v19982_v44  ;;  %v20031_v12 = vld [vmem:[#allocation12 + $0x208] ss:$16 sps:$4 sm:$0xff]   ;;  %v20039_v44 = vld [vmem:[#allocation12 + $0x22c] ss:$16 sps:$4 sm:$0xff]  }
 0x6d7   :  { %8791 = vmatmul.mubr.bf16.gmra.mrb[128].mxu0 %v23357_v32  ;;  %8997 = vmatmul.mubr.bf16.gmra.mrb[180].mxu1 %v23357_v32 }
 0x6d8   :  { %9607 = vmatpush1.bf16.msra.mxu0 %v19977_v36  ;;  %9813 = vmatpush1.bf16.msra.mxu1 %v19980_v34  ;;  %v20028_v36 = vld [vmem:[#allocation12 + $0x220] ss:$16 sps:$4 sm:$0xff]   ;;  %v20036_v34 = vld [vmem:[#allocation12 + $0x244] ss:$16 sps:$4 sm:$0xff]  }
 0x6d9   :  { %16740 = vmatprep.mubr.msk.bf16.mxu0 %vm3053_vm2, %v23388_v53  ;;  %16746 = vmatprep.mubr.msk.bf16.mxu1 %vm3053_vm2, %v23388_v53 }
 0x6da   :  { %9608 = vmatprep.subr.bf16.mxu0 %v19985_v60  ;;  %9814 = vmatprep.subr.bf16.mxu1 %v19988_v48  ;;  %v20037_v60 = vld [vmem:[#allocation12 + $0x228] ss:$16 sps:$4 sm:$0xff]   ;;  %v20034_v48 = vld [vmem:[#allocation12 + $0x240] ss:$16 sps:$4 sm:$0xff]  }
 0x6dc   :  { %9609 = vmatpush1.bf16.msra.mxu0 %v19983_v38  ;;  %9815 = vmatpush1.bf16.msra.mxu1 %v19986_v49  ;;  %v20045_v38 = vld [vmem:[#allocation12 + $0x24c] ss:$16 sps:$4 sm:$0xff]   ;;  %v20042_v49 = vld [vmem:[#allocation12 + $0x264] ss:$16 sps:$4 sm:$0xff]  }
 0x6dd   :  { %9610 = vmatprep.subr.bf16.mxu0 %v19991_v59  ;;  %9816 = vmatprep.subr.bf16.mxu1 %v19994_v37  ;;  %v20043_v59 = vld [vmem:[#allocation12 + $0x248] ss:$16 sps:$4 sm:$0xff]   ;;  %v20048_v37 = vld [vmem:[#allocation12 + $0x284] ss:$16 sps:$4 sm:$0xff]  }
 0x6df   :  { %8801 = vmatmul.mubr.bf16.gmra.mrb[132].mxu0 %v23385_v11  ;;  %9007 = vmatmul.mubr.bf16.gmra.mrb[184].mxu1 %v23385_v11 }
 0x6e0   :  { %9611 = vmatpush1.bf16.msra.mxu0 %v19989_v56  ;;  %9817 = vmatpush1.bf16.msra.mxu1 %v19992_v9  ;;  %v20049_v56 = vld [vmem:[#allocation12 + $0x268] ss:$16 sps:$4 sm:$0xff]   ;;  %v20046_v9 = vld [vmem:[#allocation12 + $0x280] ss:$16 sps:$4 sm:$0xff]  }
 0x6e1   :  { %16741 = vmatprep.mubr.msk.bf16.mxu0 %vm3053_vm2, %v23416_v39  ;;  %16747 = vmatprep.mubr.msk.bf16.mxu1 %vm3053_vm2, %v23416_v39 }
 0x6e2   :  { %9612 = vmatprep.subr.bf16.mxu0 %v19997_v8  ;;  %9818 = vmatprep.subr.bf16.mxu1 %v20000_v45  ;;  %v20057_v8 = vld [vmem:[#allocation12 + $0x28c] ss:$16 sps:$4 sm:$0xff]   ;;  %v20054_v45 = vld [vmem:[#allocation12 + $0x2a4] ss:$16 sps:$4 sm:$0xff]  }
 0x6e4   :  { %9613 = vmatpush1.bf16.msra.mxu0 %v19995_v57  ;;  %9819 = vmatpush1.bf16.msra.mxu1 %v19998_v43  ;;  %v20052_v57 = vld [vmem:[#allocation12 + $0x2a0] ss:$16 sps:$4 sm:$0xff]   ;;  %v20060_v43 = vld [vmem:[#allocation12 + $0x2c4] ss:$16 sps:$4 sm:$0xff]  }
 0x6e5   :  { %9614 = vmatprep.subr.bf16.mxu0 %v20003_v0  ;;  %9820 = vmatprep.subr.bf16.mxu1 %v20006_v61  ;;  %v20061_v0 = vld [vmem:[#allocation12 + $0x2a8] ss:$16 sps:$4 sm:$0xff]   ;;  %v20058_v61 = vld [vmem:[#allocation12 + $0x2c0] ss:$16 sps:$4 sm:$0xff]  }
 0x6e7   :  { %8811 = vmatmul.mubr.bf16.gmra.mrb[136].mxu0 %v23413_v18  ;;  %9017 = vmatmul.mubr.bf16.gmra.mrb[188].mxu1 %v23413_v18 }
 0x6e8   :  { %9615 = vmatpush1.bf16.msra.mxu0 %v20001_v42  ;;  %9821 = vmatpush1.bf16.msra.mxu1 %v20004_v31  ;;  %v20066_v42 = vld [vmem:[#allocation12 + $0x2cc] ss:$16 sps:$4 sm:$0xff]   ;;  %v20064_v31 = vld [vmem:[#allocation12 + $0x2c8] ss:$16 sps:$4 sm:$0xff]  }
 0x6e9   :  { %9622 = vmatprep.mubr.bf16.mxu0 %v23271_v26  ;;  %9828 = vmatprep.mubr.bf16.mxu1 %v23271_v26  ;;  %v20033_v26 = vld [vmem:[#allocation12 + $0x20c] ss:$16 sps:$4 sm:$0xff]  }
 0x6ea   :  { %9616 = vmatprep.subr.bf16.mxu0 %v20009_v4  ;;  %9822 = vmatprep.subr.bf16.mxu1 %v20012_v20  ;;  %v20067_v4 = vld [vmem:[#allocation12 + $0x2e0] ss:$16 sps:$4 sm:$0xff]   ;;  %v20070_v20 = vld [vmem:[#allocation12 + $0x2e8] ss:$16 sps:$4 sm:$0xff]  }
 0x6ec   :  { %9617 = vmatpush1.bf16.msra.mxu0 %v20007_v28  ;;  %9823 = vmatpush1.bf16.msra.mxu1 %v20010_v41  ;;  %v20075_v28 = vld [vmem:[#allocation12 + $0x304] ss:$16 sps:$4 sm:$0xff]   ;;  %v20073_v41 = vld [vmem:[#allocation12 + $0x300] ss:$16 sps:$4 sm:$0xff]  }
 0x6ed   :  { %9618 = vmatprep.subr.bf16.mxu0 %v20015_v54  ;;  %9824 = vmatprep.subr.bf16.mxu1 %v20018_v10  ;;  %v20078_v54 = vld [vmem:[#allocation12 + $0x30c] ss:$16 sps:$4 sm:$0xff]   ;;  %v20076_v10 = vld [vmem:[#allocation12 + $0x308] ss:$16 sps:$4 sm:$0xff]  }
 0x6f0   :  { %9619 = vmatpush1.bf16.msra.mxu0 %v20013_v25  ;;  %9825 = vmatpush1.bf16.msra.mxu1 %v20016_v46  ;;  %v20079_v25 = vld [vmem:[#allocation12 + $0x320] ss:$16 sps:$4 sm:$0xff]   ;;  %v20082_v46 = vld [vmem:[#allocation12 + $0x328] ss:$16 sps:$4 sm:$0xff]  }
 0x6f1   :  { %9620 = vmatprep.subr.bf16.mxu0 %v20021_v51  ;;  %9826 = vmatprep.subr.bf16.mxu1 %v20024_v63  ;;  %v20087_v51 = vld [vmem:[#allocation12 + $0x344] ss:$16 sps:$4 sm:$0xff]   ;;  %v20085_v63 = vld [vmem:[#allocation12 + $0x340] ss:$16 sps:$4 sm:$0xff]  }
 0x6f4   :  { %9621 = vmatpush1.bf16.msra.mxu0 %v20019_v15  ;;  %9827 = vmatpush1.bf16.msra.mxu1 %v20022_v2  ;;  %v20090_v15 = vld [vmem:[#allocation12 + $0x34c] ss:$16 sps:$4 sm:$0xff]   ;;  %v20088_v2 = vld [vmem:[#allocation12 + $0x348] ss:$16 sps:$4 sm:$0xff]  }
 0x6f5   :  { %9693 = vmatprep.subr.bf16.mxu0 %v20027_v17  ;;  %9899 = vmatprep.subr.bf16.mxu1 %v20033_v26  ;;  %v20091_v17 = vld [vmem:[#allocation12 + $0x360] ss:$16 sps:$4 sm:$0xff]   ;;  %v20094_v26 = vld [vmem:[#allocation12 + $0x368] ss:$16 sps:$4 sm:$0xff]  }
 0x6f7   :  { %9623 = vmatmul.mubr.bf16.vlgmr.msra.gmra.mrb[112].mxu0 %v23269_v1  ;;  %9829 = vmatmul.mubr.bf16.vlgmr.msra.gmra.mrb[164].mxu1 %v23269_v1  ;;  %v20051_v1 = vld [vmem:[#allocation12 + $0x26c] ss:$16 sps:$4 sm:$0xff]  }
 0x6f8   :  { %9632 = vmatprep.mubr.bf16.mxu0 %v23299_v30  ;;  %9694 = vmatpush1.bf16.msra.mxu0 %v20025_v47  ;;  %v20099_v47 = vld [vmem:[#allocation15 + $0x4] ss:$16 sps:$4 sm:$0xff]  }
 0x6f9   :  { %9838 = vmatprep.mubr.bf16.mxu1 %v23299_v30  ;;  %9695 = vmatprep.subr.bf16.mxu0 %v20030_v27  ;;  %v20040_v30 = vld [vmem:[#allocation12 + $0x260] ss:$16 sps:$4 sm:$0xff]   ;;  %v20102_v27 = vld [vmem:[#allocation15 + $0xc] ss:$16 sps:$4 sm:$0xff]  }
 0x6fa   :  { %9900 = vmatpush1.bf16.msra.mxu1 %v20031_v12  ;;  %v20105_v12 = vld [vmem:[#allocation15 + $0x24] ss:$16 sps:$4 sm:$0xff]  }
 0x6fb   :  { %9901 = vmatprep.subr.bf16.mxu1 %v20039_v44  ;;  %v20108_v44 = vld [vmem:[#allocation15 + $0x2c] ss:$16 sps:$4 sm:$0xff]  }
 0x6fc   :  { %9696 = vmatpush1.bf16.msra.mxu0 %v20028_v36  ;;  %v20106_v36 = vld [vmem:[#allocation15 + $0x28] ss:$16 sps:$4 sm:$0xff]  }
 0x6fd   :  { %9697 = vmatprep.subr.bf16.mxu0 %v20036_v34  ;;  %v20114_v34 = vld [vmem:[#allocation15 + $0x4c] ss:$16 sps:$4 sm:$0xff]  }
 0x6fe   :  { %9902 = vmatpush1.bf16.msra.mxu1 %v20037_v60  ;;  %v20109_v60 = vld [vmem:[#allocation15 + $0x40] ss:$16 sps:$4 sm:$0xff]  }
 0x6ff   :  { %9633 = vmatmul.mubr.bf16.gmra.mrb[116].mxu0 %v23297_v6  ;;  %9839 = vmatmul.mubr.bf16.gmra.mrb[168].mxu1 %v23297_v6  ;;  %v20055_v6 = vld [vmem:[#allocation12 + $0x288] ss:$16 sps:$4 sm:$0xff]  }
 0x700   :  { %9642 = vmatprep.mubr.bf16.mxu0 %v23327_v22  ;;  %9848 = vmatprep.mubr.bf16.mxu1 %v23327_v22  ;;  %v20063_v22 = vld [vmem:[#allocation12 + $0x2ac] ss:$16 sps:$4 sm:$0xff]  }
 0x701   :  { %9698 = vmatpush1.bf16.msra.mxu0 %v20034_v48  ;;  %9903 = vmatprep.subr.bf16.mxu1 %v20045_v38  ;;  %v20112_v48 = vld [vmem:[#allocation15 + $0x48] ss:$16 sps:$4 sm:$0xff]   ;;  %v20120_v38 = vld [vmem:[#allocation15 + $0x6c] ss:$16 sps:$4 sm:$0xff]  }
 0x702   :  { %9699 = vmatprep.subr.bf16.mxu0 %v20042_v49  ;;  %9904 = vmatpush1.bf16.msra.mxu1 %v20043_v59  ;;  %v20118_v49 = vld [vmem:[#allocation15 + $0x68] ss:$16 sps:$4 sm:$0xff]   ;;  %v20123_v59 = vld [vmem:[#allocation15 + $0x84] ss:$16 sps:$4 sm:$0xff]  }
 0x703   :  { %9905 = vmatprep.subr.bf16.mxu1 %v20051_v1  ;;  %v20126_v1 = vld [vmem:[#allocation15 + $0x8c] ss:$16 sps:$4 sm:$0xff]  }
 0x705   :  { %9700 = vmatpush1.bf16.msra.mxu0 %v20040_v30  ;;  %v20121_v30 = vld [vmem:[#allocation15 + $0x80] ss:$16 sps:$4 sm:$0xff]  }
 0x706   :  { %9701 = vmatprep.subr.bf16.mxu0 %v20048_v37  ;;  %9906 = vmatpush1.bf16.msra.mxu1 %v20049_v56  ;;  %v20124_v37 = vld [vmem:[#allocation15 + $0x88] ss:$16 sps:$4 sm:$0xff]   ;;  %v20132_v56 = vld [vmem:[#allocation15 + $0xac] ss:$16 sps:$4 sm:$0xff]  }
 0x707   :  { %9643 = vmatmul.mubr.bf16.gmra.mrb[120].mxu0 %v23325_v29  ;;  %9849 = vmatmul.mubr.bf16.gmra.mrb[172].mxu1 %v23325_v29  ;;  %v20069_v29 = vld [vmem:[#allocation12 + $0x2e4] ss:$16 sps:$4 sm:$0xff]  }
 0x708   :  { %9652 = vmatprep.mubr.bf16.mxu0 %v23355_v7  ;;  %9858 = vmatprep.mubr.bf16.mxu1 %v23355_v7  ;;  %v20072_v7 = vld [vmem:[#allocation12 + $0x2ec] ss:$16 sps:$4 sm:$0xff]  }
 0x709   :  { %9702 = vmatpush1.bf16.msra.mxu0 %v20046_v9  ;;  %9907 = vmatprep.subr.bf16.mxu1 %v20057_v8  ;;  %v20130_v9 = vld [vmem:[#allocation15 + $0xa8] ss:$16 sps:$4 sm:$0xff]   ;;  %v20135_v8 = vld [vmem:[#allocation15 + $0xc4] ss:$16 sps:$4 sm:$0xff]  }
 0x70a   :  { %9703 = vmatprep.subr.bf16.mxu0 %v20054_v45  ;;  %9908 = vmatpush1.bf16.msra.mxu1 %v20055_v6  ;;  %v20138_v45 = vld [vmem:[#allocation15 + $0xcc] ss:$16 sps:$4 sm:$0xff]   ;;  %v20133_v6 = vld [vmem:[#allocation15 + $0xc0] ss:$16 sps:$4 sm:$0xff]  }
 0x70b   :  { %9909 = vmatprep.subr.bf16.mxu1 %v20063_v22  ;;  %v20136_v22 = vld [vmem:[#allocation15 + $0xc8] ss:$16 sps:$4 sm:$0xff]  }
 0x70d   :  { %9704 = vmatpush1.bf16.msra.mxu0 %v20052_v57  ;;  %v20144_v57 = vld [vmem:[#allocation15 + $0xec] ss:$16 sps:$4 sm:$0xff]  }
 0x70e   :  { %9705 = vmatprep.subr.bf16.mxu0 %v20060_v43  ;;  %9910 = vmatpush1.bf16.msra.mxu1 %v20061_v0  ;;  %v20142_v43 = vld [vmem:[#allocation15 + $0xe8] ss:$16 sps:$4 sm:$0xff]   ;;  %v20147_v0 = vld [vmem:[#allocation15 + $0x104] ss:$16 sps:$4 sm:$0xff]  }
 0x70f   :  { %9653 = vmatmul.mubr.bf16.gmra.mrb[124].mxu0 %v23353_v23  ;;  %9859 = vmatmul.mubr.bf16.gmra.mrb[176].mxu1 %v23353_v23  ;;  %v20081_v23 = vld [vmem:[#allocation12 + $0x324] ss:$16 sps:$4 sm:$0xff]  }
 0x710   :  { %9662 = vmatprep.mubr.bf16.mxu0 %v23383_v40  ;;  %9868 = vmatprep.mubr.bf16.mxu1 %v23383_v40  ;;  %v20084_v40 = vld [vmem:[#allocation12 + $0x32c] ss:$16 sps:$4 sm:$0xff]  }
 0x711   :  { %9706 = vmatpush1.bf16.msra.mxu0 %v20058_v61  ;;  %9911 = vmatprep.subr.bf16.mxu1 %v20066_v42  ;;  %v20150_v61 = vld [vmem:[#allocation15 + $0x10c] ss:$16 sps:$4 sm:$0xff]   ;;  %v20145_v42 = vld [vmem:[#allocation15 + $0x100] ss:$16 sps:$4 sm:$0xff]  }
 0x712   :  { %9707 = vmatprep.subr.bf16.mxu0 %v20069_v29  ;;  %9912 = vmatpush1.bf16.msra.mxu1 %v20064_v31  ;;  %v20148_v31 = vld [vmem:[#allocation15 + $0x108] ss:$16 sps:$4 sm:$0xff]   ;;  %v20156_v29 = vld [vmem:[#allocation15 + $0x12c] ss:$16 sps:$4 sm:$0xff]  }
 0x713   :  { %9913 = vmatprep.subr.bf16.mxu1 %v20072_v7  ;;  %v20154_v7 = vld [vmem:[#allocation15 + $0x128] ss:$16 sps:$4 sm:$0xff]  }
 0x715   :  { %9708 = vmatpush1.bf16.msra.mxu0 %v20067_v4  ;;  %v20159_v4 = vld [vmem:[#allocation15 + $0x144] ss:$16 sps:$4 sm:$0xff]  }
 0x716   :  { %9914 = vmatpush1.bf16.msra.mxu1 %v20070_v20  ;;  %9709 = vmatprep.subr.bf16.mxu0 %v20075_v28  ;;  %v20162_v20 = vld [vmem:[#allocation15 + $0x14c] ss:$16 sps:$4 sm:$0xff]   ;;  %v20157_v28 = vld [vmem:[#allocation15 + $0x140] ss:$16 sps:$4 sm:$0xff]  }
 0x717   :  { %9663 = vmatmul.mubr.bf16.gmra.mrb[128].mxu0 %v23381_v50  ;;  %9869 = vmatmul.mubr.bf16.gmra.mrb[180].mxu1 %v23381_v50  ;;  %v20093_v50 = vld [vmem:[#allocation12 + $0x364] ss:$16 sps:$4 sm:$0xff]  }
 0x718   :  { %9672 = vmatprep.mubr.bf16.mxu0 %v23411_v33  ;;  %9878 = vmatprep.mubr.bf16.mxu1 %v23411_v33  ;;  %v20096_v33 = vld [vmem:[#allocation12 + $0x36c] ss:$16 sps:$4 sm:$0xff]  }
 0x719   :  { %9710 = vmatpush1.bf16.msra.mxu0 %v20073_v41  ;;  %9915 = vmatprep.subr.bf16.mxu1 %v20078_v54  ;;  %v20160_v41 = vld [vmem:[#allocation15 + $0x148] ss:$16 sps:$4 sm:$0xff]   ;;  %v20168_v54 = vld [vmem:[#allocation15 + $0x16c] ss:$16 sps:$4 sm:$0xff]  }
 0x71a   :  { %9916 = vmatpush1.bf16.msra.mxu1 %v20076_v10  ;;  %9711 = vmatprep.subr.bf16.mxu0 %v20081_v23  ;;  %v20166_v10 = vld [vmem:[#allocation15 + $0x168] ss:$16 sps:$4 sm:$0xff]   ;;  %v20171_v23 = vld [vmem:[#allocation15 + $0x184] ss:$16 sps:$4 sm:$0xff]  }
 0x71b   :  { %9917 = vmatprep.subr.bf16.mxu1 %v20084_v40  ;;  %v20174_v40 = vld [vmem:[#allocation15 + $0x18c] ss:$16 sps:$4 sm:$0xff]  }
 0x71d   :  { %9712 = vmatpush1.bf16.msra.mxu0 %v20079_v25  ;;  %v20169_v25 = vld [vmem:[#allocation15 + $0x180] ss:$16 sps:$4 sm:$0xff]  }
 0x71e   :  { %9918 = vmatpush1.bf16.msra.mxu1 %v20082_v46  ;;  %9713 = vmatprep.subr.bf16.mxu0 %v20087_v51  ;;  %v20172_v46 = vld [vmem:[#allocation15 + $0x188] ss:$16 sps:$4 sm:$0xff]   ;;  %v20180_v51 = vld [vmem:[#allocation15 + $0x1ac] ss:$16 sps:$4 sm:$0xff]  }
 0x71f   :  { %9673 = vmatmul.mubr.bf16.gmra.mrb[132].mxu0 %v23409_v62  ;;  %9879 = vmatmul.mubr.bf16.gmra.mrb[184].mxu1 %v23409_v62  ;;  %v20097_v62 = vld [vmem:[#allocation15] ss:$16 sps:$4 sm:$0xff]  }
 0x720   :  { %9682 = vmatprep.mubr.bf16.mxu0 %v23443_v52  ;;  %9888 = vmatprep.mubr.bf16.mxu1 %v23443_v52  ;;  %v20100_v52 = vld [vmem:[#allocation15 + $0x8] ss:$16 sps:$4 sm:$0xff]  }
 0x721   :  { %9714 = vmatpush1.bf16.msra.mxu0 %v20085_v63  ;;  %9919 = vmatprep.subr.bf16.mxu1 %v20090_v15  ;;  %v20178_v63 = vld [vmem:[#allocation15 + $0x1a8] ss:$16 sps:$4 sm:$0xff]   ;;  %v20183_v15 = vld [vmem:[#allocation15 + $0x1c4] ss:$16 sps:$4 sm:$0xff]  }
 0x722   :  { %9920 = vmatpush1.bf16.msra.mxu1 %v20088_v2  ;;  %9715 = vmatprep.subr.bf16.mxu0 %v20093_v50  ;;  %v20186_v2 = vld [vmem:[#allocation15 + $0x1cc] ss:$16 sps:$4 sm:$0xff]   ;;  %v20181_v50 = vld [vmem:[#allocation15 + $0x1c0] ss:$16 sps:$4 sm:$0xff]  }
 0x723   :  { %9921 = vmatprep.subr.bf16.mxu1 %v20096_v33  ;;  %v20184_v33 = vld [vmem:[#allocation15 + $0x1c8] ss:$16 sps:$4 sm:$0xff]  }
 0x725   :  { %9716 = vmatpush1.bf16.msra.mxu0 %v20091_v17  ;;  %v20189_v17 = vld [vmem:[#allocation15 + $0x1e4] ss:$16 sps:$4 sm:$0xff]  }
 0x726   :  { %9922 = vmatpush1.bf16.msra.mxu1 %v20094_v26  ;;  %11137 = vmatprep.subr.bf16.mxu0 %v20099_v47  ;;  %v20192_v26 = vld [vmem:[#allocation15 + $0x1ec] ss:$16 sps:$4 sm:$0xff]   ;;  %v20187_v47 = vld [vmem:[#allocation15 + $0x1e0] ss:$16 sps:$4 sm:$0xff]  }
 0x727   :  { %9683 = vmatmul.mubr.bf16.gmra.mrb[136].mxu0 %v23441_v24  ;;  %9889 = vmatmul.mubr.bf16.gmra.mrb[188].mxu1 %v23441_v24  ;;  %v20103_v24 = vld [vmem:[#allocation15 + $0x20] ss:$16 sps:$4 sm:$0xff]  }
 0x728   :  { %16860 = vmatprep.mubr.msk.bf16.mxu0 %vm3053_vm2, %v23276_v13  ;;  %16867 = vmatprep.mubr.msk.bf16.mxu1 %vm3053_vm2, %v23276_v13  ;;  %v20111_v13 = vld [vmem:[#allocation15 + $0x44] ss:$16 sps:$4 sm:$0xff]  }
 0x729   :  { %11343 = vmatprep.subr.bf16.mxu1 %v20102_v27  ;;  %v20195_v27 = vld [vmem:[#allocation15 + $0x204] ss:$16 sps:$4 sm:$0xff]  }
 0x72f   :  { %9726 = vmatmul.mubr.bf16.vlgmr.msra.gmra.mrb[112].mxu0 %v23273_v16  ;;  %9932 = vmatmul.mubr.bf16.vlgmr.msra.gmra.mrb[164].mxu1 %v23273_v16  ;;  %v20117_v16 = vld [vmem:[#allocation15 + $0x64] ss:$16 sps:$4 sm:$0xff]  }
 0x730   :  { %16861 = vmatprep.mubr.msk.bf16.mxu0 %vm3053_vm2, %v23304_v35  ;;  %16868 = vmatprep.mubr.msk.bf16.mxu1 %vm3053_vm2, %v23304_v35  ;;  %v20115_v35 = vld [vmem:[#allocation15 + $0x60] ss:$16 sps:$4 sm:$0xff]  }
 0x731   :  { %11138 = vmatpush1.bf16.msra.mxu0 %v20097_v62  ;;  %11344 = vmatpush1.bf16.msra.mxu1 %v20100_v52  ;;  %v20201_v62 = vld [vmem:[#allocation15 + $0x20c] ss:$16 sps:$4 sm:$0xff]   ;;  %v7043_v52 = vld [vmem:[%s24357_s12] sm:$0xf] }
 0x732   :  { %11139 = vmatprep.subr.bf16.mxu0 %v20105_v12  ;;  %11345 = vmatprep.subr.bf16.mxu1 %v20108_v44  ;;  %v24481_v12 = vld [vmem:[#allocation45_spill] sm:$0xff] }
 0x733   :  { %v23629_v44 = vrot.slane %v7043_v52, %v24481_v12 }
 0x735   :  { %11140 = vmatpush1.bf16.msra.mxu0 %v20103_v24  ;;  %11346 = vmatpush1.bf16.msra.mxu1 %v20106_v36  ;;  %v24482_v24 = vld [vmem:[#allocation31_spill] sm:$0xff] }
 0x736   :  { %11141 = vmatprep.subr.bf16.mxu0 %v20111_v13  ;;  %11347 = vmatprep.subr.bf16.mxu1 %v20114_v34  ;;  %v23632_v36 = vrot.slane %v7043_v52, %v24482_v24  ;;  %v24483_v13 = vld [vmem:[#allocation46_spill] sm:$0xff] }
 0x737   :  { %9736 = vmatmul.mubr.bf16.gmra.mrb[116].mxu0 %v23301_v58  ;;  %9942 = vmatmul.mubr.bf16.gmra.mrb[168].mxu1 %v23301_v58  ;;  %v20129_v58 = vld [vmem:[#allocation15 + $0xa4] ss:$16 sps:$4 sm:$0xff]   ;;  %v23635_v34 = vrot.slane %v7043_v52, %v24483_v13 }
 0x738   :  { %16862 = vmatprep.mubr.msk.bf16.mxu0 %vm3053_vm2, %v23332_v21  ;;  %16869 = vmatprep.mubr.msk.bf16.mxu1 %vm3053_vm2, %v23332_v21  ;;  %v20127_v21 = vld [vmem:[#allocation15 + $0xa0] ss:$16 sps:$4 sm:$0xff]  }
 0x739   :  { %11142 = vmatpush1.bf16.msra.mxu0 %v20109_v60  ;;  %11348 = vmatpush1.bf16.msra.mxu1 %v20112_v48  ;;  %v24484_v60 = vld [vmem:[#allocation32_spill] sm:$0xff] }
 0x73a   :  { %11143 = vmatprep.subr.bf16.mxu0 %v20117_v16  ;;  %11349 = vmatprep.subr.bf16.mxu1 %v20120_v38  ;;  %v23638_v48 = vrot.slane %v7043_v52, %v24484_v60 }
 0x73d   :  { %11144 = vmatpush1.bf16.msra.mxu0 %v20115_v35  ;;  %11350 = vmatpush1.bf16.msra.mxu1 %v20118_v49 }
 0x73e   :  { %11145 = vmatprep.subr.bf16.mxu0 %v20123_v59  ;;  %11351 = vmatprep.subr.bf16.mxu1 %v20126_v1 }
 0x73f   :  { %9746 = vmatmul.mubr.bf16.gmra.mrb[120].mxu0 %v23329_v19  ;;  %9952 = vmatmul.mubr.bf16.gmra.mrb[172].mxu1 %v23329_v19  ;;  %v20141_v19 = vld [vmem:[#allocation15 + $0xe4] ss:$16 sps:$4 sm:$0xff]  }
 0x740   :  { %16863 = vmatprep.mubr.msk.bf16.mxu0 %vm3053_vm2, %v23360_v5  ;;  %16870 = vmatprep.mubr.msk.bf16.mxu1 %vm3053_vm2, %v23360_v5  ;;  %v20139_v5 = vld [vmem:[#allocation15 + $0xe0] ss:$16 sps:$4 sm:$0xff]  }
 0x741   :  { %11146 = vmatpush1.bf16.msra.mxu0 %v20121_v30  ;;  %11352 = vmatpush1.bf16.msra.mxu1 %v20124_v37 }
 0x742   :  { %11147 = vmatprep.subr.bf16.mxu0 %v20129_v58  ;;  %11353 = vmatprep.subr.bf16.mxu1 %v20132_v56 }
 0x745   :  { %11148 = vmatpush1.bf16.msra.mxu0 %v20127_v21  ;;  %11354 = vmatpush1.bf16.msra.mxu1 %v20130_v9 }
 0x746   :  { %11149 = vmatprep.subr.bf16.mxu0 %v20135_v8  ;;  %11355 = vmatprep.subr.bf16.mxu1 %v20138_v45 }
 0x747   :  { %9756 = vmatmul.mubr.bf16.gmra.mrb[124].mxu0 %v23357_v32  ;;  %9962 = vmatmul.mubr.bf16.gmra.mrb[176].mxu1 %v23357_v32  ;;  %v20153_v32 = vld [vmem:[#allocation15 + $0x124] ss:$16 sps:$4 sm:$0xff]  }
 0x748   :  { %16864 = vmatprep.mubr.msk.bf16.mxu0 %vm3053_vm2, %v23388_v53  ;;  %16871 = vmatprep.mubr.msk.bf16.mxu1 %vm3053_vm2, %v23388_v53  ;;  %v20151_v53 = vld [vmem:[#allocation15 + $0x120] ss:$16 sps:$4 sm:$0xff]  }
 0x749   :  { %11150 = vmatpush1.bf16.msra.mxu0 %v20133_v6  ;;  %11356 = vmatpush1.bf16.msra.mxu1 %v20136_v22 }
 0x74a   :  { %11151 = vmatprep.subr.bf16.mxu0 %v20141_v19  ;;  %11357 = vmatprep.subr.bf16.mxu1 %v20144_v57 }
 0x74d   :  { %11152 = vmatpush1.bf16.msra.mxu0 %v20139_v5  ;;  %11358 = vmatpush1.bf16.msra.mxu1 %v20142_v43 }
 0x74e   :  { %11153 = vmatprep.subr.bf16.mxu0 %v20147_v0  ;;  %11359 = vmatprep.subr.bf16.mxu1 %v20150_v61 }
 0x74f   :  { %9766 = vmatmul.mubr.bf16.gmra.mrb[128].mxu0 %v23385_v11  ;;  %9972 = vmatmul.mubr.bf16.gmra.mrb[180].mxu1 %v23385_v11  ;;  %v20165_v11 = vld [vmem:[#allocation15 + $0x164] ss:$16 sps:$4 sm:$0xff]  }
 0x750   :  { %16865 = vmatprep.mubr.msk.bf16.mxu0 %vm3053_vm2, %v23416_v39  ;;  %16872 = vmatprep.mubr.msk.bf16.mxu1 %vm3053_vm2, %v23416_v39  ;;  %v20163_v39 = vld [vmem:[#allocation15 + $0x160] ss:$16 sps:$4 sm:$0xff]  }
 0x751   :  { %11154 = vmatpush1.bf16.msra.mxu0 %v20145_v42  ;;  %11360 = vmatpush1.bf16.msra.mxu1 %v20148_v31 }
 0x752   :  { %11155 = vmatprep.subr.bf16.mxu0 %v20153_v32  ;;  %11361 = vmatprep.subr.bf16.mxu1 %v20156_v29 }
 0x755   :  { %11156 = vmatpush1.bf16.msra.mxu0 %v20151_v53  ;;  %11362 = vmatpush1.bf16.msra.mxu1 %v20154_v7 }
 0x756   :  { %11157 = vmatprep.subr.bf16.mxu0 %v20159_v4  ;;  %11363 = vmatprep.subr.bf16.mxu1 %v20162_v20 }
 0x757   :  { %9776 = vmatmul.mubr.bf16.gmra.mrb[132].mxu0 %v23413_v18  ;;  %9982 = vmatmul.mubr.bf16.gmra.mrb[184].mxu1 %v23413_v18  ;;  %v20177_v18 = vld [vmem:[#allocation15 + $0x1a4] ss:$16 sps:$4 sm:$0xff]  }
 0x758   :  { %16866 = vmatprep.mubr.msk.bf16.mxu0 %vm3053_vm2, %v23447_v3  ;;  %16873 = vmatprep.mubr.msk.bf16.mxu1 %vm3053_vm2, %v23447_v3  ;;  %v20175_v3 = vld [vmem:[#allocation15 + $0x1a0] ss:$16 sps:$4 sm:$0xff]  }
 0x759   :  { %11158 = vmatpush1.bf16.msra.mxu0 %v20157_v28  ;;  %11364 = vmatpush1.bf16.msra.mxu1 %v20160_v41  ;;  %v20193_v28 = vld [vmem:[#allocation15 + $0x200] ss:$16 sps:$4 sm:$0xff]   ;;  %v20199_v41 = vld [vmem:[#allocation15 + $0x208] ss:$16 sps:$4 sm:$0xff]  }
 0x75a   :  { %11159 = vmatprep.subr.bf16.mxu0 %v20165_v11  ;;  %11365 = vmatprep.subr.bf16.mxu1 %v20168_v54 }
 0x75d   :  { %11160 = vmatpush1.bf16.msra.mxu0 %v20163_v39  ;;  %11366 = vmatpush1.bf16.msra.mxu1 %v20166_v10 }
 0x75e   :  { %11161 = vmatprep.subr.bf16.mxu0 %v20171_v23  ;;  %11367 = vmatprep.subr.bf16.mxu1 %v20174_v40  ;;  %v20198_v23 = vld [vmem:[#allocation15 + $0x224] ss:$16 sps:$4 sm:$0xff]   ;;  %v20207_v40 = vld [vmem:[#allocation15 + $0x22c] ss:$16 sps:$4 sm:$0xff]  }
 0x75f   :  { %9786 = vmatmul.mubr.bf16.gmra.mrb[136].mxu0 %v23445_v55  ;;  %9992 = vmatmul.mubr.bf16.gmra.mrb[188].mxu1 %v23445_v55  ;;  %v20190_v55 = vld [vmem:[#allocation15 + $0x1e8] ss:$16 sps:$4 sm:$0xff]  }
 0x761   :  { %11162 = vmatpush1.bf16.msra.mxu0 %v20169_v25  ;;  %11368 = vmatpush1.bf16.msra.mxu1 %v20172_v46 }
 0x762   :  { %11163 = vmatprep.subr.bf16.mxu0 %v20177_v18  ;;  %11369 = vmatprep.subr.bf16.mxu1 %v20180_v51 }
 0x765   :  { %11164 = vmatpush1.bf16.msra.mxu0 %v20175_v3  ;;  %11370 = vmatpush1.bf16.msra.mxu1 %v20178_v63 }
 0x766   :  { %11165 = vmatprep.subr.bf16.mxu0 %v20183_v15  ;;  %11371 = vmatprep.subr.bf16.mxu1 %v20186_v2 }
 0x769   :  { %11166 = vmatpush1.bf16.msra.mxu0 %v20181_v50  ;;  %11372 = vmatpush1.bf16.msra.mxu1 %v20184_v33 }
 0x76a   :  { %11167 = vmatprep.subr.bf16.mxu0 %v20189_v17  ;;  %11373 = vmatprep.subr.bf16.mxu1 %v20192_v26  ;;  %v20196_v17 = vld [vmem:[#allocation15 + $0x220] ss:$16 sps:$4 sm:$0xff]   ;;  %v20204_v26 = vld [vmem:[#allocation15 + $0x244] ss:$16 sps:$4 sm:$0xff]  }
 0x76d   :  { %11168 = vmatpush1.bf16.msra.mxu0 %v20187_v47  ;;  %11374 = vmatpush1.bf16.msra.mxu1 %v20190_v55  ;;  %v20205_v47 = vld [vmem:[#allocation15 + $0x228] ss:$16 sps:$4 sm:$0xff]  }
 0x76e   :  { %11240 = vmatprep.subr.bf16.mxu0 %v20195_v27  ;;  %11446 = vmatprep.subr.bf16.mxu1 %v20201_v62 }
 0x802   :  { %v9727_v16 = vpop.f32.mrb[112].mxu0  ;;  %v9933_v38 = vpop.f32.mrb[164].mxu1 }
 0x803   :  { %v10079_v35 = vadd.f32 %v23629_v44, %v9727_v16  ;;  %v10081_v49 = vadd.f32 %v23632_v36, %v9933_v38  ;;  %v9729_v59 = vpop.f32.mrb[113].mxu0  ;;  %v9935_v1 = vpop.f32.mrb[165].mxu1  ;;  %v20213_v16 = vld [vmem:[#allocation15 + $0x24c] ss:$16 sps:$4 sm:$0xff]  }
 0x804   :  { %v10080_v30 = vadd.f32 %v23635_v34, %v9729_v59  ;;  %v10082_v37 = vadd.f32 %v23638_v48, %v9935_v1  ;;  %v9731_v58 = vpop.f32.mrb[114].mxu0  ;;  %v9937_v56 = vpop.f32.mrb[166].mxu1 }
 0x805   :  { %v10083_v21 = vadd.f32 %v23629_v44, %v9731_v58  ;;  %v10085_v9 = vadd.f32 %v23632_v36, %v9937_v56  ;;  %v9733_v8 = vpop.f32.mrb[115].mxu0  ;;  %v9939_v45 = vpop.f32.mrb[167].mxu1  ;;  %v10135_v19 = vmax.f32 %v10079_v35, 0.0  ;;  %v10137_v57 = vmax.f32 %v10081_v49, 0.0 }
 0x806   :  { %v10084_v6 = vadd.f32 %v23635_v34, %v9733_v8  ;;  %v10086_v22 = vadd.f32 %v23638_v48, %v9939_v45  ;;  %v10136_v0 = vmax.f32 %v10080_v30, 0.0  ;;  %v10138_v61 = vmax.f32 %v10082_v37, 0.0  ;;  %v20211_v8 = vld [vmem:[#allocation15 + $0x248] ss:$16 sps:$4 sm:$0xff]  }
 0x807   :  { %v10139_v5 = vmax.f32 %v10083_v21, 0.0  ;;  %v10141_v43 = vmax.f32 %v10085_v9, 0.0  ;;  %v20202_v9 = vld [vmem:[#allocation15 + $0x240] ss:$16 sps:$4 sm:$0xff]  }
 0x808   :  { %v10140_v42 = vmax.f32 %v10084_v6, 0.0  ;;  %v10142_v31 = vmax.f32 %v10086_v22, 0.0 }
 0x809   :  { %v23648_v32 = vpack.c.bf16 %v10139_v5, %v10135_v19  ;;  %v23650_v29 = vpack.c.bf16 %v10141_v43, %v10137_v57  ;;  %v20210_v57 = vld [vmem:[#allocation15 + $0x264] ss:$16 sps:$4 sm:$0xff]   ;;  %v20219_v5 = vld [vmem:[#allocation15 + $0x26c] ss:$16 sps:$4 sm:$0xff]  }
 0x80a   :  { %v23652_v53 = vpack.c.bf16 %v10140_v42, %v10136_v0  ;;  %v23654_v7 = vpack.c.bf16 %v10142_v31, %v10138_v61  ;;  %v9737_v4 = vpop.f32.mrb[116].mxu0  ;;  %v9943_v20 = vpop.f32.mrb[168].mxu1 }
 0x80b   :  { %v10087_v11 = vadd.f32 %v23629_v44, %v9737_v4  ;;  %v10089_v54 = vadd.f32 %v23632_v36, %v9943_v20  ;;  %v9739_v39 = vpop.f32.mrb[117].mxu0  ;;  %v9945_v10 = vpop.f32.mrb[169].mxu1 }
 0x80c   :  { %v10088_v25 = vadd.f32 %v23635_v34, %v9739_v39  ;;  %v10090_v46 = vadd.f32 %v23638_v48, %v9945_v10  ;;  %v9741_v18 = vpop.f32.mrb[118].mxu0  ;;  %v9947_v51 = vpop.f32.mrb[170].mxu1  ;;  %11169 = vmatprep.mubr.bf16.mxu0 %v23652_v53  ;;  %11375 = vmatprep.mubr.bf16.mxu1 %v23652_v53  ;;  %v20216_v39 = vld [vmem:[#allocation15 + $0x284] ss:$16 sps:$4 sm:$0xff]   ;;  %v20217_v10 = vld [vmem:[#allocation15 + $0x268] ss:$16 sps:$4 sm:$0xff]  }
 0x80d   :  { %v10091_v3 = vadd.f32 %v23629_v44, %v9741_v18  ;;  %v10093_v63 = vadd.f32 %v23632_v36, %v9947_v51  ;;  %v9743_v15 = vpop.f32.mrb[119].mxu0  ;;  %v9949_v2 = vpop.f32.mrb[171].mxu1  ;;  %11170 = vmatmul.mubr.bf16.vlgmr.msra.gmra.mrb[140].mxu0 %v23648_v32  ;;  %11376 = vmatmul.mubr.bf16.vlgmr.msra.gmra.mrb[192].mxu1 %v23648_v32  ;;  %v10143_v55 = vmax.f32 %v10087_v11, 0.0  ;;  %v10145_v27 = vmax.f32 %v10089_v54, 0.0  ;;  %v20208_v54 = vld [vmem:[#allocation15 + $0x260] ss:$16 sps:$4 sm:$0xff]  }
 0x80e   :  { %v10092_v50 = vadd.f32 %v23635_v34, %v9743_v15  ;;  %v10094_v33 = vadd.f32 %v23638_v48, %v9949_v2  ;;  %11241 = vmatpush1.bf16.msra.mxu0 %v20193_v28  ;;  %11447 = vmatpush1.bf16.msra.mxu1 %v20199_v41  ;;  %v10144_v38 = vmax.f32 %v10088_v25, 0.0  ;;  %v10146_v35 = vmax.f32 %v10090_v46, 0.0  ;;  %v20222_v18 = vld [vmem:[#allocation15 + $0x28c] ss:$16 sps:$4 sm:$0xff]  }
 0x80f   :  { %v10147_v62 = vmax.f32 %v10091_v3, 0.0  ;;  %v10149_v52 = vmax.f32 %v10093_v63, 0.0  ;;  %11242 = vmatprep.subr.bf16.mxu0 %v20198_v23  ;;  %11448 = vmatprep.subr.bf16.mxu1 %v20207_v40 }
 0x810   :  { %v10148_v49 = vmax.f32 %v10092_v50, 0.0  ;;  %v10150_v59 = vmax.f32 %v10094_v33, 0.0 }
 0x811   :  { %v23668_v1 = vpack.c.bf16 %v10147_v62, %v10143_v55  ;;  %v23670_v30 = vpack.c.bf16 %v10149_v52, %v10145_v27  ;;  %v20214_v55 = vld [vmem:[#allocation15 + $0x280] ss:$16 sps:$4 sm:$0xff]   ;;  %v20220_v27 = vld [vmem:[#allocation15 + $0x288] ss:$16 sps:$4 sm:$0xff]  }
 0x812   :  { %v23672_v37 = vpack.c.bf16 %v10148_v49, %v10144_v38  ;;  %v23674_v58 = vpack.c.bf16 %v10150_v59, %v10146_v35  ;;  %v9747_v56 = vpop.f32.mrb[120].mxu0  ;;  %v9953_v21 = vpop.f32.mrb[172].mxu1  ;;  %11243 = vmatpush1.bf16.msra.mxu0 %v20196_v17  ;;  %11449 = vmatpush1.bf16.msra.mxu1 %v20205_v47  ;;  %v20225_v35 = vld [vmem:[#allocation15 + $0x2a4] ss:$16 sps:$4 sm:$0xff]   ;;  %v20228_v49 = vld [vmem:[#allocation15 + $0x2ac] ss:$16 sps:$4 sm:$0xff]  }
 0x813   :  { %v10095_v45 = vadd.f32 %v23629_v44, %v9747_v56  ;;  %v10097_v6 = vadd.f32 %v23632_v36, %v9953_v21  ;;  %v9749_v22 = vpop.f32.mrb[121].mxu0  ;;  %v9955_v19 = vpop.f32.mrb[173].mxu1  ;;  %11244 = vmatprep.subr.bf16.mxu0 %v20204_v26  ;;  %11450 = vmatprep.subr.bf16.mxu1 %v20213_v16 }
 0x814   :  { %v10096_v43 = vadd.f32 %v23635_v34, %v9749_v22  ;;  %v10098_v0 = vadd.f32 %v23638_v48, %v9955_v19  ;;  %v9751_v61 = vpop.f32.mrb[122].mxu0  ;;  %v9957_v42 = vpop.f32.mrb[174].mxu1  ;;  %11179 = vmatprep.mubr.bf16.mxu0 %v23672_v37  ;;  %11385 = vmatprep.mubr.bf16.mxu1 %v23672_v37 }
 0x815   :  { %v10099_v31 = vadd.f32 %v23629_v44, %v9751_v61  ;;  %v10101_v4 = vadd.f32 %v23632_v36, %v9957_v42  ;;  %v9753_v20 = vpop.f32.mrb[123].mxu0  ;;  %v9959_v28 = vpop.f32.mrb[175].mxu1  ;;  %11180 = vmatmul.mubr.bf16.gmra.mrb[144].mxu0 %v23668_v1  ;;  %11386 = vmatmul.mubr.bf16.gmra.mrb[196].mxu1 %v23668_v1  ;;  %v10151_v23 = vmax.f32 %v10095_v45, 0.0  ;;  %v10153_v40 = vmax.f32 %v10097_v6, 0.0 }
 0x816   :  { %v10100_v41 = vadd.f32 %v23635_v34, %v9753_v20  ;;  %v10102_v11 = vadd.f32 %v23638_v48, %v9959_v28  ;;  %11245 = vmatpush1.bf16.msra.mxu0 %v20202_v9  ;;  %11451 = vmatpush1.bf16.msra.mxu1 %v20211_v8  ;;  %v10152_v51 = vmax.f32 %v10096_v43, 0.0  ;;  %v10154_v3 = vmax.f32 %v10098_v0, 0.0  ;;  %v20226_v43 = vld [vmem:[#allocation15 + $0x2a8] ss:$16 sps:$4 sm:$0xff]   ;;  %v20231_v0 = vld [vmem:[#allocation15 + $0x2c4] ss:$16 sps:$4 sm:$0xff]  }
 0x817   :  { %v10155_v25 = vmax.f32 %v10099_v31, 0.0  ;;  %v10157_v46 = vmax.f32 %v10101_v4, 0.0  ;;  %11246 = vmatprep.subr.bf16.mxu0 %v20210_v57  ;;  %11452 = vmatprep.subr.bf16.mxu1 %v20219_v5  ;;  %v20223_v5 = vld [vmem:[#allocation15 + $0x2a0] ss:$16 sps:$4 sm:$0xff]   ;;  %v20234_v20 = vld [vmem:[#allocation15 + $0x2cc] ss:$16 sps:$4 sm:$0xff]  }
 0x818   :  { %v10156_v63 = vmax.f32 %v10100_v41, 0.0  ;;  %v10158_v15 = vmax.f32 %v10102_v11, 0.0 }
 0x819   :  { %v23688_v2 = vpack.c.bf16 %v10155_v25, %v10151_v23  ;;  %v23690_v50 = vpack.c.bf16 %v10157_v46, %v10153_v40 }
 0x81a   :  { %v23692_v33 = vpack.c.bf16 %v10156_v63, %v10152_v51  ;;  %v23694_v17 = vpack.c.bf16 %v10158_v15, %v10154_v3  ;;  %v9757_v26 = vpop.f32.mrb[124].mxu0  ;;  %v9963_v47 = vpop.f32.mrb[176].mxu1  ;;  %11247 = vmatpush1.bf16.msra.mxu0 %v20208_v54  ;;  %11453 = vmatpush1.bf16.msra.mxu1 %v20217_v10  ;;  %v20232_v51 = vld [vmem:[#allocation15 + $0x2c8] ss:$16 sps:$4 sm:$0xff]  }
 0x81b   :  { %v10103_v62 = vadd.f32 %v23629_v44, %v9757_v26  ;;  %v10105_v52 = vadd.f32 %v23632_v36, %v9963_v47  ;;  %v9759_v16 = vpop.f32.mrb[125].mxu0  ;;  %v9965_v38 = vpop.f32.mrb[177].mxu1  ;;  %11248 = vmatprep.subr.bf16.mxu0 %v20216_v39  ;;  %11454 = vmatprep.subr.bf16.mxu1 %v20222_v18  ;;  %v20229_v18 = vld [vmem:[#allocation15 + $0x2c0] ss:$16 sps:$4 sm:$0xff]   ;;  %v20237_v47 = vld [vmem:[#allocation15 + $0x2e4] ss:$16 sps:$4 sm:$0xff]  }
 0x81c   :  { %v10104_v59 = vadd.f32 %v23635_v34, %v9759_v16  ;;  %v10106_v56 = vadd.f32 %v23638_v48, %v9965_v38  ;;  %v9761_v21 = vpop.f32.mrb[126].mxu0  ;;  %v9967_v9 = vpop.f32.mrb[178].mxu1  ;;  %11189 = vmatprep.mubr.bf16.mxu0 %v23692_v33  ;;  %11395 = vmatprep.mubr.bf16.mxu1 %v23692_v33 }
 0x81d   :  { %v10107_v8 = vadd.f32 %v23629_v44, %v9761_v21  ;;  %v10109_v45 = vadd.f32 %v23632_v36, %v9967_v9  ;;  %v9763_v6 = vpop.f32.mrb[127].mxu0  ;;  %v9969_v22 = vpop.f32.mrb[179].mxu1  ;;  %11190 = vmatmul.mubr.bf16.gmra.mrb[148].mxu0 %v23688_v2  ;;  %11396 = vmatmul.mubr.bf16.gmra.mrb[200].mxu1 %v23688_v2  ;;  %v10159_v61 = vmax.f32 %v10103_v62, 0.0  ;;  %v10161_v42 = vmax.f32 %v10105_v52, 0.0  ;;  %v20235_v9 = vld [vmem:[#allocation15 + $0x2e0] ss:$16 sps:$4 sm:$0xff]  }
 0x81e   :  { %v10108_v19 = vadd.f32 %v23635_v34, %v9763_v6  ;;  %v10110_v57 = vadd.f32 %v23638_v48, %v9969_v22  ;;  %11249 = vmatpush1.bf16.msra.mxu0 %v20214_v55  ;;  %11455 = vmatpush1.bf16.msra.mxu1 %v20220_v27  ;;  %v10160_v28 = vmax.f32 %v10104_v59, 0.0  ;;  %v10162_v41 = vmax.f32 %v10106_v56, 0.0  ;;  %v20240_v55 = vld [vmem:[#allocation15 + $0x2ec] ss:$16 sps:$4 sm:$0xff]  }
 0x81f   :  { %v10163_v31 = vmax.f32 %v10107_v8, 0.0  ;;  %v10165_v4 = vmax.f32 %v10109_v45, 0.0  ;;  %11250 = vmatprep.subr.bf16.mxu0 %v20225_v35  ;;  %11456 = vmatprep.subr.bf16.mxu1 %v20228_v49  ;;  %v20238_v8 = vld [vmem:[#allocation15 + $0x2e8] ss:$16 sps:$4 sm:$0xff]   ;;  %v20243_v45 = vld [vmem:[#allocation15 + $0x304] ss:$16 sps:$4 sm:$0xff]  }
 0x820   :  { %v10164_v11 = vmax.f32 %v10108_v19, 0.0  ;;  %v10166_v54 = vmax.f32 %v10110_v57, 0.0 }
 0x821   :  { %v23708_v39 = vpack.c.bf16 %v10163_v31, %v10159_v61  ;;  %v23710_v10 = vpack.c.bf16 %v10165_v4, %v10161_v42 }
 0x822   :  { %v23712_v23 = vpack.c.bf16 %v10164_v11, %v10160_v28  ;;  %v23714_v40 = vpack.c.bf16 %v10166_v54, %v10162_v41  ;;  %v9767_v25 = vpop.f32.mrb[128].mxu0  ;;  %v9973_v46 = vpop.f32.mrb[180].mxu1  ;;  %11251 = vmatpush1.bf16.msra.mxu0 %v20223_v5  ;;  %11457 = vmatpush1.bf16.msra.mxu1 %v20226_v43  ;;  %v20246_v5 = vld [vmem:[#allocation15 + $0x30c] ss:$16 sps:$4 sm:$0xff]   ;;  %v20241_v54 = vld [vmem:[#allocation15 + $0x300] ss:$16 sps:$4 sm:$0xff]  }
 0x823   :  { %v10111_v3 = vadd.f32 %v23629_v44, %v9767_v25  ;;  %v10113_v63 = vadd.f32 %v23632_v36, %v9973_v46  ;;  %v9769_v15 = vpop.f32.mrb[129].mxu0  ;;  %v9975_v26 = vpop.f32.mrb[181].mxu1  ;;  %11252 = vmatprep.subr.bf16.mxu0 %v20231_v0  ;;  %11458 = vmatprep.subr.bf16.mxu1 %v20234_v20  ;;  %v20244_v25 = vld [vmem:[#allocation15 + $0x308] ss:$16 sps:$4 sm:$0xff]  }
 0x824   :  { %v10112_v27 = vadd.f32 %v23635_v34, %v9769_v15  ;;  %v10114_v62 = vadd.f32 %v23638_v48, %v9975_v26  ;;  %v9771_v52 = vpop.f32.mrb[130].mxu0  ;;  %v9977_v16 = vpop.f32.mrb[182].mxu1  ;;  %11199 = vmatprep.mubr.bf16.mxu0 %v23712_v23  ;;  %11405 = vmatprep.mubr.bf16.mxu1 %v23712_v23  ;;  %v20252_v15 = vld [vmem:[#allocation15 + $0x32c] ss:$16 sps:$4 sm:$0xff]  }
 0x825   :  { %v10115_v38 = vadd.f32 %v23629_v44, %v9771_v52  ;;  %v10117_v35 = vadd.f32 %v23632_v36, %v9977_v16  ;;  %v9773_v49 = vpop.f32.mrb[131].mxu0  ;;  %v9979_v59 = vpop.f32.mrb[183].mxu1  ;;  %11200 = vmatmul.mubr.bf16.gmra.mrb[152].mxu0 %v23708_v39  ;;  %11406 = vmatmul.mubr.bf16.gmra.mrb[204].mxu1 %v23708_v39  ;;  %v10167_v6 = vmax.f32 %v10111_v3, 0.0  ;;  %v10169_v22 = vmax.f32 %v10113_v63, 0.0  ;;  %v20249_v63 = vld [vmem:[#allocation15 + $0x324] ss:$16 sps:$4 sm:$0xff]  }
 0x826   :  { %v10116_v56 = vadd.f32 %v23635_v34, %v9773_v49  ;;  %v10118_v21 = vadd.f32 %v23638_v48, %v9979_v59  ;;  %11253 = vmatpush1.bf16.msra.mxu0 %v20229_v18  ;;  %11459 = vmatpush1.bf16.msra.mxu1 %v20232_v51  ;;  %v10168_v43 = vmax.f32 %v10112_v27, 0.0  ;;  %v10170_v0 = vmax.f32 %v10114_v62, 0.0  ;;  %v20247_v59 = vld [vmem:[#allocation15 + $0x320] ss:$16 sps:$4 sm:$0xff]  }
 0x827   :  { %v10171_v19 = vmax.f32 %v10115_v38, 0.0  ;;  %v10173_v57 = vmax.f32 %v10117_v35, 0.0  ;;  %11254 = vmatprep.subr.bf16.mxu0 %v20237_v47  ;;  %11460 = vmatprep.subr.bf16.mxu1 %v20240_v55 }
 0x828   :  { %v10172_v61 = vmax.f32 %v10116_v56, 0.0  ;;  %v10174_v42 = vmax.f32 %v10118_v21, 0.0  ;;  %v20250_v56 = vld [vmem:[#allocation15 + $0x328] ss:$16 sps:$4 sm:$0xff]   ;;  %v20255_v21 = vld [vmem:[#allocation15 + $0x344] ss:$16 sps:$4 sm:$0xff]  }
 0x829   :  { %v23728_v31 = vpack.c.bf16 %v10171_v19, %v10167_v6  ;;  %v23730_v4 = vpack.c.bf16 %v10173_v57, %v10169_v22  ;;  %v20258_v22 = vld [vmem:[#allocation15 + $0x34c] ss:$16 sps:$4 sm:$0xff]  }
 0x82a   :  { %v23732_v20 = vpack.c.bf16 %v10172_v61, %v10168_v43  ;;  %v23734_v28 = vpack.c.bf16 %v10174_v42, %v10170_v0  ;;  %v9777_v41 = vpop.f32.mrb[132].mxu0  ;;  %v9983_v11 = vpop.f32.mrb[184].mxu1  ;;  %11255 = vmatpush1.bf16.msra.mxu0 %v20235_v9  ;;  %11461 = vmatpush1.bf16.msra.mxu1 %v20238_v8 }
 0x82b   :  { %v10119_v46 = vadd.f32 %v23629_v44, %v9777_v41  ;;  %v10121_v18 = vadd.f32 %v23632_v36, %v9983_v11  ;;  %v9779_v51 = vpop.f32.mrb[133].mxu0  ;;  %v9985_v3 = vpop.f32.mrb[185].mxu1  ;;  %11256 = vmatprep.subr.bf16.mxu0 %v20243_v45  ;;  %11462 = vmatprep.subr.bf16.mxu1 %v20246_v5 }
 0x82c   :  { %v10120_v26 = vadd.f32 %v23635_v34, %v9779_v51  ;;  %v10122_v47 = vadd.f32 %v23638_v48, %v9985_v3  ;;  %v9781_v55 = vpop.f32.mrb[134].mxu0  ;;  %v9987_v27 = vpop.f32.mrb[186].mxu1  ;;  %11209 = vmatprep.mubr.bf16.mxu0 %v23732_v20  ;;  %11415 = vmatprep.mubr.bf16.mxu1 %v23732_v20 }
 0x82d   :  { %v10123_v62 = vadd.f32 %v23629_v44, %v9781_v55  ;;  %v10125_v52 = vadd.f32 %v23632_v36, %v9987_v27  ;;  %v9783_v16 = vpop.f32.mrb[135].mxu0  ;;  %v9989_v38 = vpop.f32.mrb[187].mxu1  ;;  %11210 = vmatmul.mubr.bf16.gmra.mrb[156].mxu0 %v23728_v31  ;;  %11416 = vmatmul.mubr.bf16.gmra.mrb[208].mxu1 %v23728_v31  ;;  %v10175_v9 = vmax.f32 %v10119_v46, 0.0  ;;  %v10177_v8 = vmax.f32 %v10121_v18, 0.0  ;;  %v20256_v46 = vld [vmem:[#allocation15 + $0x348] ss:$16 sps:$4 sm:$0xff]  }
 0x82e   :  { %v10124_v35 = vadd.f32 %v23635_v34, %v9783_v16  ;;  %v10126_v49 = vadd.f32 %v23638_v48, %v9989_v38  ;;  %11257 = vmatpush1.bf16.msra.mxu0 %v20241_v54  ;;  %11463 = vmatpush1.bf16.msra.mxu1 %v20244_v25  ;;  %v10176_v19 = vmax.f32 %v10120_v26, 0.0  ;;  %v10178_v57 = vmax.f32 %v10122_v47, 0.0  ;;  %v20253_v25 = vld [vmem:[#allocation15 + $0x340] ss:$16 sps:$4 sm:$0xff]   ;;  %v20264_v26 = vld [vmem:[#allocation15 + $0x36c] ss:$16 sps:$4 sm:$0xff]  }
 0x82f   :  { %v10179_v45 = vmax.f32 %v10123_v62, 0.0  ;;  %v10181_v6 = vmax.f32 %v10125_v52, 0.0  ;;  %11258 = vmatprep.subr.bf16.mxu0 %v20249_v63  ;;  %11464 = vmatprep.subr.bf16.mxu1 %v20252_v15  ;;  %v20261_v15 = vld [vmem:[#allocation15 + $0x364] ss:$16 sps:$4 sm:$0xff]  }
 0x830   :  { %v10180_v5 = vmax.f32 %v10124_v35, 0.0  ;;  %v10182_v43 = vmax.f32 %v10126_v49, 0.0 }
 0x831   :  { %v23748_v0 = vpack.c.bf16 %v10179_v45, %v10175_v9  ;;  %v23750_v61 = vpack.c.bf16 %v10181_v6, %v10177_v8  ;;  %v20267_v9 = vld [vmem:[#allocation13 + $0x4] ss:$16 sps:$4 sm:$0xff]  }
 0x832   :  { %v23752_v42 = vpack.c.bf16 %v10180_v5, %v10176_v19  ;;  %v23754_v41 = vpack.c.bf16 %v10182_v43, %v10178_v57  ;;  %v9787_v11 = vpop.f32.mrb[136].mxu0  ;;  %v9993_v54 = vpop.f32.mrb[188].mxu1  ;;  %11259 = vmatpush1.bf16.msra.mxu0 %v20247_v59  ;;  %11465 = vmatpush1.bf16.msra.mxu1 %v20250_v56  ;;  %v20259_v56 = vld [vmem:[#allocation15 + $0x360] ss:$16 sps:$4 sm:$0xff]  }
 0x833   :  { %v10127_v18 = vadd.f32 %v23629_v44, %v9787_v11  ;;  %v10129_v51 = vadd.f32 %v23632_v36, %v9993_v54  ;;  %v9789_v3 = vpop.f32.mrb[137].mxu0  ;;  %v9995_v63 = vpop.f32.mrb[189].mxu1  ;;  %11260 = vmatprep.subr.bf16.mxu0 %v20255_v21  ;;  %11466 = vmatprep.subr.bf16.mxu1 %v20258_v22  ;;  %v20262_v21 = vld [vmem:[#allocation15 + $0x368] ss:$16 sps:$4 sm:$0xff]   ;;  %v20265_v54 = vld [vmem:[#allocation13] ss:$16 sps:$4 sm:$0xff]  }
 0x834   :  { %v10128_v47 = vadd.f32 %v23635_v34, %v9789_v3  ;;  %v10130_v55 = vadd.f32 %v23638_v48, %v9995_v63  ;;  %v9791_v27 = vpop.f32.mrb[138].mxu0  ;;  %v9997_v62 = vpop.f32.mrb[190].mxu1  ;;  %11219 = vmatprep.mubr.bf16.mxu0 %v23752_v42  ;;  %11425 = vmatprep.mubr.bf16.mxu1 %v23752_v42  ;;  %v20274_v3 = vld [vmem:[#allocation13 + $0x28] ss:$16 sps:$4 sm:$0xff]   ;;  %v20279_v63 = vld [vmem:[#allocation13 + $0x44] ss:$16 sps:$4 sm:$0xff]  }
 0x835   :  { %v10131_v52 = vadd.f32 %v23629_v44, %v9791_v27  ;;  %v10133_v16 = vadd.f32 %v23632_v36, %v9997_v62  ;;  %v9793_v38 = vpop.f32.mrb[139].mxu0  ;;  %v9999_v35 = vpop.f32.mrb[191].mxu1  ;;  %11220 = vmatmul.mubr.bf16.gmra.mrb[160].mxu0 %v23748_v0  ;;  %11426 = vmatmul.mubr.bf16.gmra.mrb[212].mxu1 %v23748_v0  ;;  %v10183_v8 = vmax.f32 %v10127_v18, 0.0  ;;  %v10185_v45 = vmax.f32 %v10129_v51, 0.0  ;;  %v20270_v36 = vld [vmem:[#allocation13 + $0xc] ss:$16 sps:$4 sm:$0xff]  }
 0x836   :  { %v10132_v49 = vadd.f32 %v23635_v34, %v9793_v38  ;;  %v10134_v59 = vadd.f32 %v23638_v48, %v9999_v35  ;;  %11261 = vmatpush1.bf16.msra.mxu0 %v20253_v25  ;;  %11467 = vmatpush1.bf16.msra.mxu1 %v20256_v46  ;;  %v10184_v22 = vmax.f32 %v10128_v47, 0.0  ;;  %v10186_v19 = vmax.f32 %v10130_v55, 0.0  ;;  %v20268_v25 = vld [vmem:[#allocation13 + $0x8] ss:$16 sps:$4 sm:$0xff]   ;;  %v20273_v46 = vld [vmem:[#allocation13 + $0x24] ss:$16 sps:$4 sm:$0xff]  }
 0x837   :  { %v10187_v44 = vmax.f32 %v10131_v52, 0.0  ;;  %v10189_v6 = vmax.f32 %v10133_v16, 0.0  ;;  %11262 = vmatprep.subr.bf16.mxu0 %v20261_v15  ;;  %11468 = vmatprep.subr.bf16.mxu1 %v20264_v26  ;;  %v20276_v18 = vld [vmem:[#allocation13 + $0x2c] ss:$16 sps:$4 sm:$0xff]   ;;  %v20271_v51 = vld [vmem:[#allocation13 + $0x20] ss:$16 sps:$4 sm:$0xff]  }
 0x838   :  { %v10188_v57 = vmax.f32 %v10132_v49, 0.0  ;;  %v10190_v5 = vmax.f32 %v10134_v59, 0.0  ;;  %v20282_v15 = vld [vmem:[#allocation13 + $0x4c] ss:$16 sps:$4 sm:$0xff]   ;;  %v20277_v26 = vld [vmem:[#allocation13 + $0x40] ss:$16 sps:$4 sm:$0xff]  }
 0x839   :  { %v23768_v43 = vpack.c.bf16 %v10187_v44, %v10183_v8  ;;  %v23770_v34 = vpack.c.bf16 %v10189_v6, %v10185_v45  ;;  %v20280_v47 = vld [vmem:[#allocation13 + $0x48] ss:$16 sps:$4 sm:$0xff]   ;;  %v20285_v55 = vld [vmem:[#allocation13 + $0x64] ss:$16 sps:$4 sm:$0xff]   ;;  %v20288_v27 = vld [vmem:[#allocation13 + $0x6c] ss:$16 sps:$4 sm:$0xff]  }
 0x83a   :  { %v23772_v48 = vpack.c.bf16 %v10188_v57, %v10184_v22  ;;  %v23774_v11 = vpack.c.bf16 %v10190_v5, %v10186_v19  ;;  %11263 = vmatpush1.bf16.msra.mxu0 %v20259_v56  ;;  %11469 = vmatpush1.bf16.msra.mxu1 %v20262_v21  ;;  %v20283_v62 = vld [vmem:[#allocation13 + $0x60] ss:$16 sps:$4 sm:$0xff]   ;;  %v20286_v52 = vld [vmem:[#allocation13 + $0x68] ss:$16 sps:$4 sm:$0xff]   ;;  %v20291_v16 = vld [vmem:[#allocation13 + $0x84] ss:$16 sps:$4 sm:$0xff]  }
 0x83b   :  { %12109 = vmatprep.subr.bf16.mxu0 %v20267_v9  ;;  %12315 = vmatprep.subr.bf16.mxu1 %v20270_v36  ;;  %v20294_v38 = vld [vmem:[#allocation13 + $0x8c] ss:$16 sps:$4 sm:$0xff]   ;;  %v20289_v35 = vld [vmem:[#allocation13 + $0x80] ss:$16 sps:$4 sm:$0xff]   ;;  %v20292_v49 = vld [vmem:[#allocation13 + $0x88] ss:$16 sps:$4 sm:$0xff]  }
 0x83c   :  { %11229 = vmatprep.mubr.bf16.mxu0 %v23772_v48  ;;  %11435 = vmatprep.mubr.bf16.mxu1 %v23772_v48  ;;  %v20297_v59 = vld [vmem:[#allocation13 + $0xa4] ss:$16 sps:$4 sm:$0xff]   ;;  %v20300_v56 = vld [vmem:[#allocation13 + $0xac] ss:$16 sps:$4 sm:$0xff]   ;;  %v20295_v21 = vld [vmem:[#allocation13 + $0xa0] ss:$16 sps:$4 sm:$0xff]  }
 0x83d   :  { %11230 = vmatmul.mubr.bf16.gmra.mrb[164].mxu0 %v23768_v43  ;;  %11436 = vmatmul.mubr.bf16.gmra.mrb[216].mxu1 %v23768_v43  ;;  %v20298_v9 = vld [vmem:[#allocation13 + $0xa8] ss:$16 sps:$4 sm:$0xff]   ;;  %v20303_v8 = vld [vmem:[#allocation13 + $0xc4] ss:$16 sps:$4 sm:$0xff]   ;;  %v20306_v45 = vld [vmem:[#allocation13 + $0xcc] ss:$16 sps:$4 sm:$0xff]  }
 0x83e   :  { %16986 = vmatprep.mubr.msk.bf16.mxu0 %vm3053_vm2, %v23654_v7  ;;  %16993 = vmatprep.mubr.msk.bf16.mxu1 %vm3053_vm2, %v23654_v7  ;;  %v20301_v44 = vld [vmem:[#allocation13 + $0xc0] ss:$16 sps:$4 sm:$0xff]   ;;  %v20304_v6 = vld [vmem:[#allocation13 + $0xc8] ss:$16 sps:$4 sm:$0xff]   ;;  %v20309_v36 = vld [vmem:[#allocation13 + $0xe4] ss:$16 sps:$4 sm:$0xff]  }
 0x83f   :  { %v20312_v22 = vld [vmem:[#allocation13 + $0xec] ss:$16 sps:$4 sm:$0xff]   ;;  %v20307_v19 = vld [vmem:[#allocation13 + $0xe0] ss:$16 sps:$4 sm:$0xff]   ;;  %v20310_v57 = vld [vmem:[#allocation13 + $0xe8] ss:$16 sps:$4 sm:$0xff]  }
 0x840   :  { %v20315_v5 = vld [vmem:[#allocation13 + $0x104] ss:$16 sps:$4 sm:$0xff]  }
 0x845   :  { %11273 = vmatmul.mubr.bf16.vlgmr.msra.gmra.mrb[140].mxu0 %v23650_v29  ;;  %11479 = vmatmul.mubr.bf16.vlgmr.msra.gmra.mrb[192].mxu1 %v23650_v29 }
 0x846   :  { %12110 = vmatpush1.bf16.msra.mxu0 %v20265_v54  ;;  %12316 = vmatpush1.bf16.msra.mxu1 %v20268_v25  ;;  %v20318_v54 = vld [vmem:[#allocation13 + $0x10c] ss:$16 sps:$4 sm:$0xff]   ;;  %v20313_v25 = vld [vmem:[#allocation13 + $0x100] ss:$16 sps:$4 sm:$0xff]  }
 0x847   :  { %16987 = vmatprep.mubr.msk.bf16.mxu0 %vm3053_vm2, %v23674_v58  ;;  %16994 = vmatprep.mubr.msk.bf16.mxu1 %vm3053_vm2, %v23674_v58 }
 0x848   :  { %12111 = vmatprep.subr.bf16.mxu0 %v20273_v46  ;;  %12317 = vmatprep.subr.bf16.mxu1 %v20276_v18  ;;  %v20316_v46 = vld [vmem:[#allocation13 + $0x108] ss:$16 sps:$4 sm:$0xff]   ;;  %v20321_v18 = vld [vmem:[#allocation13 + $0x124] ss:$16 sps:$4 sm:$0xff]  }
 0x84a   :  { %12112 = vmatpush1.bf16.msra.mxu0 %v20271_v51  ;;  %12318 = vmatpush1.bf16.msra.mxu1 %v20274_v3  ;;  %v20324_v51 = vld [vmem:[#allocation13 + $0x12c] ss:$16 sps:$4 sm:$0xff]   ;;  %v20319_v3 = vld [vmem:[#allocation13 + $0x120] ss:$16 sps:$4 sm:$0xff]  }
 0x84b   :  { %12113 = vmatprep.subr.bf16.mxu0 %v20279_v63  ;;  %12319 = vmatprep.subr.bf16.mxu1 %v20282_v15  ;;  %v20322_v63 = vld [vmem:[#allocation13 + $0x128] ss:$16 sps:$4 sm:$0xff]   ;;  %v20327_v15 = vld [vmem:[#allocation13 + $0x144] ss:$16 sps:$4 sm:$0xff]  }
 0x84d   :  { %11283 = vmatmul.mubr.bf16.gmra.mrb[144].mxu0 %v23670_v30  ;;  %11489 = vmatmul.mubr.bf16.gmra.mrb[196].mxu1 %v23670_v30 }
 0x84e   :  { %12114 = vmatpush1.bf16.msra.mxu0 %v20277_v26  ;;  %12320 = vmatpush1.bf16.msra.mxu1 %v20280_v47  ;;  %v20330_v26 = vld [vmem:[#allocation13 + $0x14c] ss:$16 sps:$4 sm:$0xff]   ;;  %v20325_v47 = vld [vmem:[#allocation13 + $0x140] ss:$16 sps:$4 sm:$0xff]  }
 0x84f   :  { %16988 = vmatprep.mubr.msk.bf16.mxu0 %vm3053_vm2, %v23694_v17  ;;  %16995 = vmatprep.mubr.msk.bf16.mxu1 %vm3053_vm2, %v23694_v17 }
 0x850   :  { %12115 = vmatprep.subr.bf16.mxu0 %v20285_v55  ;;  %12321 = vmatprep.subr.bf16.mxu1 %v20288_v27  ;;  %v20328_v55 = vld [vmem:[#allocation13 + $0x148] ss:$16 sps:$4 sm:$0xff]   ;;  %v20333_v27 = vld [vmem:[#allocation13 + $0x164] ss:$16 sps:$4 sm:$0xff]  }
 0x852   :  { %12116 = vmatpush1.bf16.msra.mxu0 %v20283_v62  ;;  %12322 = vmatpush1.bf16.msra.mxu1 %v20286_v52  ;;  %v20336_v62 = vld [vmem:[#allocation13 + $0x16c] ss:$16 sps:$4 sm:$0xff]   ;;  %v20331_v52 = vld [vmem:[#allocation13 + $0x160] ss:$16 sps:$4 sm:$0xff]  }
 0x853   :  { %12117 = vmatprep.subr.bf16.mxu0 %v20291_v16  ;;  %12323 = vmatprep.subr.bf16.mxu1 %v20294_v38  ;;  %v20334_v16 = vld [vmem:[#allocation13 + $0x168] ss:$16 sps:$4 sm:$0xff]   ;;  %v20339_v38 = vld [vmem:[#allocation13 + $0x184] ss:$16 sps:$4 sm:$0xff]  }
 0x855   :  { %11293 = vmatmul.mubr.bf16.gmra.mrb[148].mxu0 %v23690_v50  ;;  %11499 = vmatmul.mubr.bf16.gmra.mrb[200].mxu1 %v23690_v50 }
 0x856   :  { %12118 = vmatpush1.bf16.msra.mxu0 %v20289_v35  ;;  %12324 = vmatpush1.bf16.msra.mxu1 %v20292_v49  ;;  %v20342_v35 = vld [vmem:[#allocation13 + $0x18c] ss:$16 sps:$4 sm:$0xff]   ;;  %v20337_v49 = vld [vmem:[#allocation13 + $0x180] ss:$16 sps:$4 sm:$0xff]  }
 0x857   :  { %16989 = vmatprep.mubr.msk.bf16.mxu0 %vm3053_vm2, %v23714_v40  ;;  %16996 = vmatprep.mubr.msk.bf16.mxu1 %vm3053_vm2, %v23714_v40 }
 0x858   :  { %12119 = vmatprep.subr.bf16.mxu0 %v20297_v59  ;;  %12325 = vmatprep.subr.bf16.mxu1 %v20300_v56  ;;  %v20340_v59 = vld [vmem:[#allocation13 + $0x188] ss:$16 sps:$4 sm:$0xff]   ;;  %v20345_v56 = vld [vmem:[#allocation13 + $0x1a4] ss:$16 sps:$4 sm:$0xff]  }
 0x85a   :  { %12120 = vmatpush1.bf16.msra.mxu0 %v20295_v21  ;;  %12326 = vmatpush1.bf16.msra.mxu1 %v20298_v9  ;;  %v20348_v21 = vld [vmem:[#allocation13 + $0x1ac] ss:$16 sps:$4 sm:$0xff]   ;;  %v20343_v9 = vld [vmem:[#allocation13 + $0x1a0] ss:$16 sps:$4 sm:$0xff]  }
 0x85b   :  { %12121 = vmatprep.subr.bf16.mxu0 %v20303_v8  ;;  %12327 = vmatprep.subr.bf16.mxu1 %v20306_v45  ;;  %v20346_v8 = vld [vmem:[#allocation13 + $0x1a8] ss:$16 sps:$4 sm:$0xff]   ;;  %v20351_v45 = vld [vmem:[#allocation13 + $0x1c4] ss:$16 sps:$4 sm:$0xff]  }
 0x85d   :  { %11303 = vmatmul.mubr.bf16.gmra.mrb[152].mxu0 %v23710_v10  ;;  %11509 = vmatmul.mubr.bf16.gmra.mrb[204].mxu1 %v23710_v10 }
 0x85e   :  { %12122 = vmatpush1.bf16.msra.mxu0 %v20301_v44  ;;  %12328 = vmatpush1.bf16.msra.mxu1 %v20304_v6  ;;  %v20354_v44 = vld [vmem:[#allocation13 + $0x1cc] ss:$16 sps:$4 sm:$0xff]   ;;  %v20349_v6 = vld [vmem:[#allocation13 + $0x1c0] ss:$16 sps:$4 sm:$0xff]  }
 0x85f   :  { %16990 = vmatprep.mubr.msk.bf16.mxu0 %vm3053_vm2, %v23734_v28  ;;  %16997 = vmatprep.mubr.msk.bf16.mxu1 %vm3053_vm2, %v23734_v28 }
 0x860   :  { %12123 = vmatprep.subr.bf16.mxu0 %v20309_v36  ;;  %12329 = vmatprep.subr.bf16.mxu1 %v20312_v22  ;;  %v20352_v36 = vld [vmem:[#allocation13 + $0x1c8] ss:$16 sps:$4 sm:$0xff]   ;;  %v20357_v22 = vld [vmem:[#allocation13 + $0x1e4] ss:$16 sps:$4 sm:$0xff]  }
 0x862   :  { %12124 = vmatpush1.bf16.msra.mxu0 %v20307_v19  ;;  %12330 = vmatpush1.bf16.msra.mxu1 %v20310_v57  ;;  %v20360_v19 = vld [vmem:[#allocation13 + $0x1ec] ss:$16 sps:$4 sm:$0xff]   ;;  %v20355_v57 = vld [vmem:[#allocation13 + $0x1e0] ss:$16 sps:$4 sm:$0xff]  }
 0x863   :  { %12125 = vmatprep.subr.bf16.mxu0 %v20315_v5  ;;  %12331 = vmatprep.subr.bf16.mxu1 %v20318_v54  ;;  %v20358_v5 = vld [vmem:[#allocation13 + $0x1e8] ss:$16 sps:$4 sm:$0xff]   ;;  %v20363_v54 = vld [vmem:[#allocation13 + $0x204] ss:$16 sps:$4 sm:$0xff]  }
 0x865   :  { %11313 = vmatmul.mubr.bf16.gmra.mrb[156].mxu0 %v23730_v4  ;;  %11519 = vmatmul.mubr.bf16.gmra.mrb[208].mxu1 %v23730_v4 }
 0x866   :  { %12126 = vmatpush1.bf16.msra.mxu0 %v20313_v25  ;;  %12332 = vmatpush1.bf16.msra.mxu1 %v20316_v46  ;;  %v20369_v25 = vld [vmem:[#allocation13 + $0x20c] ss:$16 sps:$4 sm:$0xff]   ;;  %v20361_v46 = vld [vmem:[#allocation13 + $0x200] ss:$16 sps:$4 sm:$0xff]  }
 0x867   :  { %16991 = vmatprep.mubr.msk.bf16.mxu0 %vm3053_vm2, %v23754_v41  ;;  %16998 = vmatprep.mubr.msk.bf16.mxu1 %vm3053_vm2, %v23754_v41 }
 0x868   :  { %12127 = vmatprep.subr.bf16.mxu0 %v20321_v18  ;;  %12333 = vmatprep.subr.bf16.mxu1 %v20324_v51  ;;  %v20366_v18 = vld [vmem:[#allocation13 + $0x224] ss:$16 sps:$4 sm:$0xff]   ;;  %v20367_v51 = vld [vmem:[#allocation13 + $0x208] ss:$16 sps:$4 sm:$0xff]  }
 0x86a   :  { %12128 = vmatpush1.bf16.msra.mxu0 %v20319_v3  ;;  %12334 = vmatpush1.bf16.msra.mxu1 %v20322_v63  ;;  %v20375_v3 = vld [vmem:[#allocation13 + $0x22c] ss:$16 sps:$4 sm:$0xff]   ;;  %v20364_v63 = vld [vmem:[#allocation13 + $0x220] ss:$16 sps:$4 sm:$0xff]  }
 0x86b   :  { %12129 = vmatprep.subr.bf16.mxu0 %v20327_v15  ;;  %12335 = vmatprep.subr.bf16.mxu1 %v20330_v26  ;;  %v20372_v15 = vld [vmem:[#allocation13 + $0x244] ss:$16 sps:$4 sm:$0xff]   ;;  %v20373_v26 = vld [vmem:[#allocation13 + $0x228] ss:$16 sps:$4 sm:$0xff]  }
 0x86d   :  { %11323 = vmatmul.mubr.bf16.gmra.mrb[160].mxu0 %v23750_v61  ;;  %11529 = vmatmul.mubr.bf16.gmra.mrb[212].mxu1 %v23750_v61 }
 0x86e   :  { %12130 = vmatpush1.bf16.msra.mxu0 %v20325_v47  ;;  %12336 = vmatpush1.bf16.msra.mxu1 %v20328_v55  ;;  %v20370_v47 = vld [vmem:[#allocation13 + $0x240] ss:$16 sps:$4 sm:$0xff]   ;;  %v20381_v55 = vld [vmem:[#allocation13 + $0x24c] ss:$16 sps:$4 sm:$0xff]  }
 0x86f   :  { %16992 = vmatprep.mubr.msk.bf16.mxu0 %vm3053_vm2, %v23774_v11  ;;  %16999 = vmatprep.mubr.msk.bf16.mxu1 %vm3053_vm2, %v23774_v11 }
 0x870   :  { %12131 = vmatprep.subr.bf16.mxu0 %v20333_v27  ;;  %12337 = vmatprep.subr.bf16.mxu1 %v20336_v62  ;;  %v20378_v27 = vld [vmem:[#allocation13 + $0x264] ss:$16 sps:$4 sm:$0xff]   ;;  %v20379_v62 = vld [vmem:[#allocation13 + $0x248] ss:$16 sps:$4 sm:$0xff]  }
 0x872   :  { %12132 = vmatpush1.bf16.msra.mxu0 %v20331_v52  ;;  %12338 = vmatpush1.bf16.msra.mxu1 %v20334_v16  ;;  %v20387_v52 = vld [vmem:[#allocation13 + $0x26c] ss:$16 sps:$4 sm:$0xff]   ;;  %v20384_v16 = vld [vmem:[#allocation13 + $0x284] ss:$16 sps:$4 sm:$0xff]  }
 0x873   :  { %12133 = vmatprep.subr.bf16.mxu0 %v20339_v38  ;;  %12339 = vmatprep.subr.bf16.mxu1 %v20342_v35  ;;  %v20385_v38 = vld [vmem:[#allocation13 + $0x268] ss:$16 sps:$4 sm:$0xff]   ;;  %v20382_v35 = vld [vmem:[#allocation13 + $0x280] ss:$16 sps:$4 sm:$0xff]  }
 0x875   :  { %11333 = vmatmul.mubr.bf16.gmra.mrb[164].mxu0 %v23770_v34  ;;  %11539 = vmatmul.mubr.bf16.gmra.mrb[216].mxu1 %v23770_v34 }
 0x876   :  { %12134 = vmatpush1.bf16.msra.mxu0 %v20337_v49  ;;  %12340 = vmatpush1.bf16.msra.mxu1 %v20340_v59  ;;  %v20390_v49 = vld [vmem:[#allocation13 + $0x28c] ss:$16 sps:$4 sm:$0xff]   ;;  %v20388_v59 = vld [vmem:[#allocation13 + $0x288] ss:$16 sps:$4 sm:$0xff]  }
 0x877   :  { %12135 = vmatprep.subr.bf16.mxu0 %v20345_v56  ;;  %12341 = vmatprep.subr.bf16.mxu1 %v20348_v21  ;;  %v20396_v56 = vld [vmem:[#allocation13 + $0x2ac] ss:$16 sps:$4 sm:$0xff]   ;;  %v20391_v21 = vld [vmem:[#allocation13 + $0x2a0] ss:$16 sps:$4 sm:$0xff]  }
 0x878   :  { %12141 = vmatprep.mubr.bf16.mxu0 %v24442_v14  ;;  %12347 = vmatprep.mubr.bf16.mxu1 %v24442_v14 }
 0x87a   :  { %12136 = vmatpush1.bf16.msra.mxu0 %v20343_v9  ;;  %12342 = vmatpush1.bf16.msra.mxu1 %v20346_v8  ;;  %v20394_v9 = vld [vmem:[#allocation13 + $0x2a8] ss:$16 sps:$4 sm:$0xff]   ;;  %v20399_v8 = vld [vmem:[#allocation13 + $0x2c4] ss:$16 sps:$4 sm:$0xff]  }
 0x87b   :  { %12137 = vmatprep.subr.bf16.mxu0 %v20351_v45  ;;  %12343 = vmatprep.subr.bf16.mxu1 %v20354_v44  ;;  %v20397_v45 = vld [vmem:[#allocation13 + $0x2c0] ss:$16 sps:$4 sm:$0xff]   ;;  %v20402_v44 = vld [vmem:[#allocation13 + $0x2cc] ss:$16 sps:$4 sm:$0xff]  }
 0x87e   :  { %12138 = vmatpush1.bf16.msra.mxu0 %v20349_v6  ;;  %12344 = vmatpush1.bf16.msra.mxu1 %v20352_v36  ;;  %v20400_v6 = vld [vmem:[#allocation13 + $0x2c8] ss:$16 sps:$4 sm:$0xff]   ;;  %v20405_v36 = vld [vmem:[#allocation13 + $0x2e4] ss:$16 sps:$4 sm:$0xff]  }
 0x87f   :  { %12139 = vmatprep.subr.bf16.mxu0 %v20357_v22  ;;  %12345 = vmatprep.subr.bf16.mxu1 %v20360_v19  ;;  %v20408_v22 = vld [vmem:[#allocation13 + $0x2ec] ss:$16 sps:$4 sm:$0xff]   ;;  %v20403_v19 = vld [vmem:[#allocation13 + $0x2e0] ss:$16 sps:$4 sm:$0xff]  }
 0x882   :  { %12140 = vmatpush1.bf16.msra.mxu0 %v20355_v57  ;;  %12346 = vmatpush1.bf16.msra.mxu1 %v20358_v5  ;;  %v20406_v57 = vld [vmem:[#allocation13 + $0x2e8] ss:$16 sps:$4 sm:$0xff]   ;;  %v20411_v5 = vld [vmem:[#allocation13 + $0x304] ss:$16 sps:$4 sm:$0xff]  }
 0x883   :  { %12212 = vmatprep.subr.bf16.mxu0 %v20363_v54  ;;  %12418 = vmatprep.subr.bf16.mxu1 %v20369_v25  ;;  %v20409_v54 = vld [vmem:[#allocation13 + $0x300] ss:$16 sps:$4 sm:$0xff]   ;;  %v20414_v25 = vld [vmem:[#allocation13 + $0x30c] ss:$16 sps:$4 sm:$0xff]  }
 0x885   :  { %12142 = vmatmul.mubr.bf16.vlgmr.msra.gmra.mrb[140].mxu0 %v24442_v14  ;;  %12348 = vmatmul.mubr.bf16.vlgmr.msra.gmra.mrb[192].mxu1 %v24442_v14 }
 0x886   :  { %12151 = vmatprep.mubr.bf16.mxu0 %v23652_v53  ;;  %12213 = vmatpush1.bf16.msra.mxu0 %v20361_v46  ;;  %v20412_v46 = vld [vmem:[#allocation13 + $0x308] ss:$16 sps:$4 sm:$0xff]  }
 0x887   :  { %12357 = vmatprep.mubr.bf16.mxu1 %v23652_v53  ;;  %12214 = vmatprep.subr.bf16.mxu0 %v20366_v18  ;;  %v20376_v53 = vld [vmem:[#allocation13 + $0x260] ss:$16 sps:$4 sm:$0xff]   ;;  %v20417_v18 = vld [vmem:[#allocation13 + $0x324] ss:$16 sps:$4 sm:$0xff]  }
 0x888   :  { %12419 = vmatpush1.bf16.msra.mxu1 %v20367_v51  ;;  %v20420_v51 = vld [vmem:[#allocation13 + $0x32c] ss:$16 sps:$4 sm:$0xff]  }
 0x889   :  { %12420 = vmatprep.subr.bf16.mxu1 %v20375_v3  ;;  %v20415_v3 = vld [vmem:[#allocation13 + $0x320] ss:$16 sps:$4 sm:$0xff]  }
 0x88a   :  { %12215 = vmatpush1.bf16.msra.mxu0 %v20364_v63  ;;  %v20418_v63 = vld [vmem:[#allocation13 + $0x328] ss:$16 sps:$4 sm:$0xff]  }
 0x88b   :  { %12216 = vmatprep.subr.bf16.mxu0 %v20372_v15  ;;  %v20423_v15 = vld [vmem:[#allocation13 + $0x344] ss:$16 sps:$4 sm:$0xff]  }
 0x88c   :  { %12421 = vmatpush1.bf16.msra.mxu1 %v20373_v26  ;;  %v20421_v26 = vld [vmem:[#allocation13 + $0x340] ss:$16 sps:$4 sm:$0xff]  }
 0x88d   :  { %12152 = vmatmul.mubr.bf16.gmra.mrb[144].mxu0 %v23648_v32  ;;  %12358 = vmatmul.mubr.bf16.gmra.mrb[196].mxu1 %v23648_v32  ;;  %v20393_v32 = vld [vmem:[#allocation13 + $0x2a4] ss:$16 sps:$4 sm:$0xff]  }
 0x88e   :  { %12161 = vmatprep.mubr.bf16.mxu0 %v23672_v37  ;;  %12367 = vmatprep.mubr.bf16.mxu1 %v23672_v37 }
 0x88f   :  { %12217 = vmatpush1.bf16.msra.mxu0 %v20370_v47  ;;  %12422 = vmatprep.subr.bf16.mxu1 %v20381_v55  ;;  %v20426_v47 = vld [vmem:[#allocation13 + $0x34c] ss:$16 sps:$4 sm:$0xff]   ;;  %v20424_v55 = vld [vmem:[#allocation13 + $0x348] ss:$16 sps:$4 sm:$0xff]  }
 0x890   :  { %12218 = vmatprep.subr.bf16.mxu0 %v20378_v27  ;;  %12423 = vmatpush1.bf16.msra.mxu1 %v20379_v62  ;;  %v20429_v27 = vld [vmem:[#allocation13 + $0x364] ss:$16 sps:$4 sm:$0xff]   ;;  %v20432_v62 = vld [vmem:[#allocation13 + $0x36c] ss:$16 sps:$4 sm:$0xff]  }
 0x891   :  { %12424 = vmatprep.subr.bf16.mxu1 %v20387_v52  ;;  %v20427_v52 = vld [vmem:[#allocation13 + $0x360] ss:$16 sps:$4 sm:$0xff]  }
 0x893   :  { %12219 = vmatpush1.bf16.msra.mxu0 %v20376_v53  ;;  %v20430_v53 = vld [vmem:[#allocation13 + $0x368] ss:$16 sps:$4 sm:$0xff]  }
 0x894   :  { %12220 = vmatprep.subr.bf16.mxu0 %v20384_v16  ;;  %12425 = vmatpush1.bf16.msra.mxu1 %v20385_v38  ;;  %v20435_v16 = vld [vmem:[#allocation16 + $0x4] ss:$16 sps:$4 sm:$0xff]   ;;  %v20438_v38 = vld [vmem:[#allocation16 + $0xc] ss:$16 sps:$4 sm:$0xff]  }
 0x895   :  { %12162 = vmatmul.mubr.bf16.gmra.mrb[148].mxu0 %v23668_v1  ;;  %12368 = vmatmul.mubr.bf16.gmra.mrb[200].mxu1 %v23668_v1 }
 0x896   :  { %12171 = vmatprep.mubr.bf16.mxu0 %v23692_v33  ;;  %12377 = vmatprep.mubr.bf16.mxu1 %v23692_v33 }
 0x897   :  { %12221 = vmatpush1.bf16.msra.mxu0 %v20382_v35  ;;  %12426 = vmatprep.subr.bf16.mxu1 %v20390_v49  ;;  %v20433_v35 = vld [vmem:[#allocation16] ss:$16 sps:$4 sm:$0xff]   ;;  %v20436_v49 = vld [vmem:[#allocation16 + $0x8] ss:$16 sps:$4 sm:$0xff]  }
 0x898   :  { %12222 = vmatprep.subr.bf16.mxu0 %v20393_v32  ;;  %12427 = vmatpush1.bf16.msra.mxu1 %v20388_v59  ;;  %v20441_v59 = vld [vmem:[#allocation16 + $0x24] ss:$16 sps:$4 sm:$0xff]   ;;  %v20444_v32 = vld [vmem:[#allocation16 + $0x2c] ss:$16 sps:$4 sm:$0xff]  }
 0x899   :  { %12428 = vmatprep.subr.bf16.mxu1 %v20396_v56  ;;  %v20439_v56 = vld [vmem:[#allocation16 + $0x20] ss:$16 sps:$4 sm:$0xff]  }
 0x89b   :  { %12223 = vmatpush1.bf16.msra.mxu0 %v20391_v21  ;;  %v20442_v21 = vld [vmem:[#allocation16 + $0x28] ss:$16 sps:$4 sm:$0xff]  }
 0x89c   :  { %12224 = vmatprep.subr.bf16.mxu0 %v20399_v8  ;;  %12429 = vmatpush1.bf16.msra.mxu1 %v20394_v9  ;;  %v20447_v9 = vld [vmem:[#allocation16 + $0x44] ss:$16 sps:$4 sm:$0xff]   ;;  %v20450_v8 = vld [vmem:[#allocation16 + $0x4c] ss:$16 sps:$4 sm:$0xff]  }
 0x89d   :  { %12172 = vmatmul.mubr.bf16.gmra.mrb[152].mxu0 %v23688_v2  ;;  %12378 = vmatmul.mubr.bf16.gmra.mrb[204].mxu1 %v23688_v2 }
 0x89e   :  { %12181 = vmatprep.mubr.bf16.mxu0 %v23712_v23  ;;  %12387 = vmatprep.mubr.bf16.mxu1 %v23712_v23 }
 0x89f   :  { %12225 = vmatpush1.bf16.msra.mxu0 %v20397_v45  ;;  %12430 = vmatprep.subr.bf16.mxu1 %v20402_v44  ;;  %v20445_v45 = vld [vmem:[#allocation16 + $0x40] ss:$16 sps:$4 sm:$0xff]   ;;  %v20448_v44 = vld [vmem:[#allocation16 + $0x48] ss:$16 sps:$4 sm:$0xff]  }
 0x8a0   :  { %12431 = vmatpush1.bf16.msra.mxu1 %v20400_v6  ;;  %12226 = vmatprep.subr.bf16.mxu0 %v20405_v36  ;;  %v20453_v6 = vld [vmem:[#allocation16 + $0x64] ss:$16 sps:$4 sm:$0xff]   ;;  %v20456_v36 = vld [vmem:[#allocation16 + $0x6c] ss:$16 sps:$4 sm:$0xff]  }
 0x8a1   :  { %12432 = vmatprep.subr.bf16.mxu1 %v20408_v22  ;;  %v20451_v22 = vld [vmem:[#allocation16 + $0x60] ss:$16 sps:$4 sm:$0xff]  }
 0x8a3   :  { %12227 = vmatpush1.bf16.msra.mxu0 %v20403_v19  ;;  %v20459_v19 = vld [vmem:[#allocation16 + $0x84] ss:$16 sps:$4 sm:$0xff]  }
 0x8a4   :  { %12433 = vmatpush1.bf16.msra.mxu1 %v20406_v57  ;;  %12228 = vmatprep.subr.bf16.mxu0 %v20411_v5  ;;  %v20462_v57 = vld [vmem:[#allocation16 + $0x8c] ss:$16 sps:$4 sm:$0xff]   ;;  %v20457_v5 = vld [vmem:[#allocation16 + $0x80] ss:$16 sps:$4 sm:$0xff]  }
 0x8a5   :  { %12182 = vmatmul.mubr.bf16.gmra.mrb[156].mxu0 %v23708_v39  ;;  %12388 = vmatmul.mubr.bf16.gmra.mrb[208].mxu1 %v23708_v39 }
 0x8a6   :  { %12191 = vmatprep.mubr.bf16.mxu0 %v23732_v20  ;;  %12397 = vmatprep.mubr.bf16.mxu1 %v23732_v20 }
 0x8a7   :  { %12229 = vmatpush1.bf16.msra.mxu0 %v20409_v54  ;;  %12434 = vmatprep.subr.bf16.mxu1 %v20414_v25  ;;  %v20460_v54 = vld [vmem:[#allocation16 + $0x88] ss:$16 sps:$4 sm:$0xff]   ;;  %v20468_v25 = vld [vmem:[#allocation16 + $0xac] ss:$16 sps:$4 sm:$0xff]  }
 0x8a8   :  { %12435 = vmatpush1.bf16.msra.mxu1 %v20412_v46  ;;  %12230 = vmatprep.subr.bf16.mxu0 %v20417_v18  ;;  %v20463_v46 = vld [vmem:[#allocation16 + $0xa0] ss:$16 sps:$4 sm:$0xff]   ;;  %v20466_v18 = vld [vmem:[#allocation16 + $0xa8] ss:$16 sps:$4 sm:$0xff]  }
 0x8a9   :  { %12436 = vmatprep.subr.bf16.mxu1 %v20420_v51  ;;  %v20471_v51 = vld [vmem:[#allocation16 + $0xc4] ss:$16 sps:$4 sm:$0xff]  }
 0x8ab   :  { %12231 = vmatpush1.bf16.msra.mxu0 %v20415_v3  ;;  %v20474_v3 = vld [vmem:[#allocation16 + $0xcc] ss:$16 sps:$4 sm:$0xff]  }
 0x8ac   :  { %12437 = vmatpush1.bf16.msra.mxu1 %v20418_v63  ;;  %12232 = vmatprep.subr.bf16.mxu0 %v20423_v15  ;;  %v20469_v63 = vld [vmem:[#allocation16 + $0xc0] ss:$16 sps:$4 sm:$0xff]   ;;  %v20472_v15 = vld [vmem:[#allocation16 + $0xc8] ss:$16 sps:$4 sm:$0xff]  }
 0x8ad   :  { %12192 = vmatmul.mubr.bf16.gmra.mrb[160].mxu0 %v23728_v31  ;;  %12398 = vmatmul.mubr.bf16.gmra.mrb[212].mxu1 %v23728_v31 }
 0x8ae   :  { %12201 = vmatprep.mubr.bf16.mxu0 %v23752_v42  ;;  %12407 = vmatprep.mubr.bf16.mxu1 %v23752_v42 }
 0x8af   :  { %12438 = vmatprep.subr.bf16.mxu1 %v20426_v47  ;;  %12233 = vmatpush1.bf16.msra.mxu0 %v20421_v26  ;;  %v20477_v26 = vld [vmem:[#allocation16 + $0xe4] ss:$16 sps:$4 sm:$0xff]   ;;  %v20480_v47 = vld [vmem:[#allocation16 + $0xec] ss:$16 sps:$4 sm:$0xff]  }
 0x8b0   :  { %12439 = vmatpush1.bf16.msra.mxu1 %v20424_v55  ;;  %12234 = vmatprep.subr.bf16.mxu0 %v20429_v27  ;;  %v20475_v55 = vld [vmem:[#allocation16 + $0xe0] ss:$16 sps:$4 sm:$0xff]   ;;  %v20478_v27 = vld [vmem:[#allocation16 + $0xe8] ss:$16 sps:$4 sm:$0xff]  }
 0x8b1   :  { %12440 = vmatprep.subr.bf16.mxu1 %v20432_v62  ;;  %v20483_v62 = vld [vmem:[#allocation16 + $0x104] ss:$16 sps:$4 sm:$0xff]  }
 0x8b3   :  { %12235 = vmatpush1.bf16.msra.mxu0 %v20427_v52  ;;  %v20486_v52 = vld [vmem:[#allocation16 + $0x10c] ss:$16 sps:$4 sm:$0xff]  }
 0x8b4   :  { %12441 = vmatpush1.bf16.msra.mxu1 %v20430_v53  ;;  %13081 = vmatprep.subr.bf16.mxu0 %v20435_v16  ;;  %v20481_v53 = vld [vmem:[#allocation16 + $0x100] ss:$16 sps:$4 sm:$0xff]   ;;  %v20484_v16 = vld [vmem:[#allocation16 + $0x108] ss:$16 sps:$4 sm:$0xff]  }
 0x8b5   :  { %12202 = vmatmul.mubr.bf16.gmra.mrb[164].mxu0 %v23748_v0  ;;  %12408 = vmatmul.mubr.bf16.gmra.mrb[216].mxu1 %v23748_v0 }
 0x8b6   :  { %12244 = vmatprep.mubr.bf16.mxu0 %v24442_v14  ;;  %12450 = vmatprep.mubr.bf16.mxu1 %v24442_v14 }
 0x8b7   :  { %13287 = vmatprep.subr.bf16.mxu1 %v20438_v38  ;;  %v20489_v38 = vld [vmem:[#allocation16 + $0x124] ss:$16 sps:$4 sm:$0xff]  }
 0x8bd   :  { %12245 = vmatmul.mubr.bf16.vlgmr.msra.gmra.mrb[140].mxu0 %v24442_v14  ;;  %12451 = vmatmul.mubr.bf16.vlgmr.msra.gmra.mrb[192].mxu1 %v24442_v14 }
 0x8be   :  { %13082 = vmatpush1.bf16.msra.mxu0 %v20433_v35  ;;  %13288 = vmatpush1.bf16.msra.mxu1 %v20436_v49  ;;  %v20492_v35 = vld [vmem:[#allocation16 + $0x12c] ss:$16 sps:$4 sm:$0xff]   ;;  %v20487_v49 = vld [vmem:[#allocation16 + $0x120] ss:$16 sps:$4 sm:$0xff]  }
 0x8bf   :  { %17112 = vmatprep.mubr.msk.bf16.mxu0 %vm3053_vm2, %v23654_v7  ;;  %17118 = vmatprep.mubr.msk.bf16.mxu1 %vm3053_vm2, %v23654_v7  ;;  %v20454_v7 = vld [vmem:[#allocation16 + $0x68] ss:$16 sps:$4 sm:$0xff]  }
 0x8c0   :  { %13083 = vmatprep.subr.bf16.mxu0 %v20441_v59  ;;  %13289 = vmatprep.subr.bf16.mxu1 %v20444_v32  ;;  %v20490_v59 = vld [vmem:[#allocation16 + $0x128] ss:$16 sps:$4 sm:$0xff]   ;;  %v20495_v32 = vld [vmem:[#allocation16 + $0x144] ss:$16 sps:$4 sm:$0xff]  }
 0x8c2   :  { %13084 = vmatpush1.bf16.msra.mxu0 %v20439_v56  ;;  %13290 = vmatpush1.bf16.msra.mxu1 %v20442_v21  ;;  %v20498_v56 = vld [vmem:[#allocation16 + $0x14c] ss:$16 sps:$4 sm:$0xff]   ;;  %v20493_v21 = vld [vmem:[#allocation16 + $0x140] ss:$16 sps:$4 sm:$0xff]  }
 0x8c3   :  { %13085 = vmatprep.subr.bf16.mxu0 %v20447_v9  ;;  %13291 = vmatprep.subr.bf16.mxu1 %v20450_v8  ;;  %v20496_v9 = vld [vmem:[#allocation16 + $0x148] ss:$16 sps:$4 sm:$0xff]   ;;  %v20501_v8 = vld [vmem:[#allocation16 + $0x164] ss:$16 sps:$4 sm:$0xff]  }
 0x8c5   :  { %12255 = vmatmul.mubr.bf16.gmra.mrb[144].mxu0 %v23650_v29  ;;  %12461 = vmatmul.mubr.bf16.gmra.mrb[196].mxu1 %v23650_v29  ;;  %v20465_v29 = vld [vmem:[#allocation16 + $0xa4] ss:$16 sps:$4 sm:$0xff]  }
 0x8c6   :  { %13086 = vmatpush1.bf16.msra.mxu0 %v20445_v45  ;;  %13292 = vmatpush1.bf16.msra.mxu1 %v20448_v44  ;;  %v20504_v45 = vld [vmem:[#allocation16 + $0x16c] ss:$16 sps:$4 sm:$0xff]   ;;  %v20499_v44 = vld [vmem:[#allocation16 + $0x160] ss:$16 sps:$4 sm:$0xff]  }
 0x8c7   :  { %17113 = vmatprep.mubr.msk.bf16.mxu0 %vm3053_vm2, %v23674_v58  ;;  %17119 = vmatprep.mubr.msk.bf16.mxu1 %vm3053_vm2, %v23674_v58 }
 0x8c8   :  { %13087 = vmatprep.subr.bf16.mxu0 %v20453_v6  ;;  %13293 = vmatprep.subr.bf16.mxu1 %v20456_v36  ;;  %v20502_v6 = vld [vmem:[#allocation16 + $0x168] ss:$16 sps:$4 sm:$0xff]   ;;  %v20507_v36 = vld [vmem:[#allocation16 + $0x184] ss:$16 sps:$4 sm:$0xff]  }
 0x8ca   :  { %13088 = vmatpush1.bf16.msra.mxu0 %v20451_v22  ;;  %13294 = vmatpush1.bf16.msra.mxu1 %v20454_v7  ;;  %v20510_v22 = vld [vmem:[#allocation16 + $0x18c] ss:$16 sps:$4 sm:$0xff]   ;;  %v20505_v7 = vld [vmem:[#allocation16 + $0x180] ss:$16 sps:$4 sm:$0xff]  }
 0x8cb   :  { %13089 = vmatprep.subr.bf16.mxu0 %v20459_v19  ;;  %13295 = vmatprep.subr.bf16.mxu1 %v20462_v57  ;;  %v20508_v19 = vld [vmem:[#allocation16 + $0x188] ss:$16 sps:$4 sm:$0xff]   ;;  %v20513_v57 = vld [vmem:[#allocation16 + $0x1a4] ss:$16 sps:$4 sm:$0xff]  }
 0x8cd   :  { %12265 = vmatmul.mubr.bf16.gmra.mrb[148].mxu0 %v23670_v30  ;;  %12471 = vmatmul.mubr.bf16.gmra.mrb[200].mxu1 %v23670_v30 }
 0x8ce   :  { %13090 = vmatpush1.bf16.msra.mxu0 %v20457_v5  ;;  %13296 = vmatpush1.bf16.msra.mxu1 %v20460_v54  ;;  %v20516_v5 = vld [vmem:[#allocation16 + $0x1ac] ss:$16 sps:$4 sm:$0xff]   ;;  %v20511_v54 = vld [vmem:[#allocation16 + $0x1a0] ss:$16 sps:$4 sm:$0xff]  }
 0x8cf   :  { %17114 = vmatprep.mubr.msk.bf16.mxu0 %vm3053_vm2, %v23694_v17  ;;  %17120 = vmatprep.mubr.msk.bf16.mxu1 %vm3053_vm2, %v23694_v17 }
 0x8d0   :  { %13091 = vmatprep.subr.bf16.mxu0 %v20465_v29  ;;  %13297 = vmatprep.subr.bf16.mxu1 %v20468_v25  ;;  %v20514_v29 = vld [vmem:[#allocation16 + $0x1a8] ss:$16 sps:$4 sm:$0xff]   ;;  %v20519_v25 = vld [vmem:[#allocation16 + $0x1c4] ss:$16 sps:$4 sm:$0xff]  }
 0x8d2   :  { %13092 = vmatpush1.bf16.msra.mxu0 %v20463_v46  ;;  %13298 = vmatpush1.bf16.msra.mxu1 %v20466_v18  ;;  %v20522_v46 = vld [vmem:[#allocation16 + $0x1cc] ss:$16 sps:$4 sm:$0xff]   ;;  %v20517_v18 = vld [vmem:[#allocation16 + $0x1c0] ss:$16 sps:$4 sm:$0xff]  }
 0x8d3   :  { %13093 = vmatprep.subr.bf16.mxu0 %v20471_v51  ;;  %13299 = vmatprep.subr.bf16.mxu1 %v20474_v3  ;;  %v20520_v51 = vld [vmem:[#allocation16 + $0x1c8] ss:$16 sps:$4 sm:$0xff]   ;;  %v20525_v3 = vld [vmem:[#allocation16 + $0x1e4] ss:$16 sps:$4 sm:$0xff]  }
 0x8d5   :  { %12275 = vmatmul.mubr.bf16.gmra.mrb[152].mxu0 %v23690_v50  ;;  %12481 = vmatmul.mubr.bf16.gmra.mrb[204].mxu1 %v23690_v50 }
 0x8d6   :  { %13094 = vmatpush1.bf16.msra.mxu0 %v20469_v63  ;;  %13300 = vmatpush1.bf16.msra.mxu1 %v20472_v15  ;;  %v20528_v63 = vld [vmem:[#allocation16 + $0x1ec] ss:$16 sps:$4 sm:$0xff]   ;;  %v20523_v15 = vld [vmem:[#allocation16 + $0x1e0] ss:$16 sps:$4 sm:$0xff]  }
 0x8d7   :  { %17115 = vmatprep.mubr.msk.bf16.mxu0 %vm3053_vm2, %v23714_v40  ;;  %17121 = vmatprep.mubr.msk.bf16.mxu1 %vm3053_vm2, %v23714_v40 }
 0x8d8   :  { %13095 = vmatprep.subr.bf16.mxu0 %v20477_v26  ;;  %13301 = vmatprep.subr.bf16.mxu1 %v20480_v47  ;;  %v20526_v26 = vld [vmem:[#allocation16 + $0x1e8] ss:$16 sps:$4 sm:$0xff]   ;;  %v20531_v47 = vld [vmem:[#allocation16 + $0x204] ss:$16 sps:$4 sm:$0xff]  }
 0x8da   :  { %13096 = vmatpush1.bf16.msra.mxu0 %v20475_v55  ;;  %13302 = vmatpush1.bf16.msra.mxu1 %v20478_v27  ;;  %v20529_v55 = vld [vmem:[#allocation16 + $0x200] ss:$16 sps:$4 sm:$0xff]   ;;  %v20534_v27 = vld [vmem:[#allocation16 + $0x224] ss:$16 sps:$4 sm:$0xff]  }
 0x8db   :  { %13097 = vmatprep.subr.bf16.mxu0 %v20483_v62  ;;  %13303 = vmatprep.subr.bf16.mxu1 %v20486_v52  ;;  %v20535_v62 = vld [vmem:[#allocation16 + $0x208] ss:$16 sps:$4 sm:$0xff]   ;;  %v20543_v52 = vld [vmem:[#allocation16 + $0x22c] ss:$16 sps:$4 sm:$0xff]  }
 0x8dd   :  { %12285 = vmatmul.mubr.bf16.gmra.mrb[156].mxu0 %v23710_v10  ;;  %12491 = vmatmul.mubr.bf16.gmra.mrb[208].mxu1 %v23710_v10 }
 0x8de   :  { %13098 = vmatpush1.bf16.msra.mxu0 %v20481_v53  ;;  %13304 = vmatpush1.bf16.msra.mxu1 %v20484_v16  ;;  %v20532_v53 = vld [vmem:[#allocation16 + $0x220] ss:$16 sps:$4 sm:$0xff]   ;;  %v20540_v16 = vld [vmem:[#allocation16 + $0x244] ss:$16 sps:$4 sm:$0xff]  }
 0x8df   :  { %17116 = vmatprep.mubr.msk.bf16.mxu0 %vm3053_vm2, %v23734_v28  ;;  %17122 = vmatprep.mubr.msk.bf16.mxu1 %vm3053_vm2, %v23734_v28 }
 0x8e0   :  { %13099 = vmatprep.subr.bf16.mxu0 %v20489_v38  ;;  %13305 = vmatprep.subr.bf16.mxu1 %v20492_v35  ;;  %v20541_v38 = vld [vmem:[#allocation16 + $0x228] ss:$16 sps:$4 sm:$0xff]   ;;  %v20538_v35 = vld [vmem:[#allocation16 + $0x240] ss:$16 sps:$4 sm:$0xff]  }
 0x8e2   :  { %13100 = vmatpush1.bf16.msra.mxu0 %v20487_v49  ;;  %13306 = vmatpush1.bf16.msra.mxu1 %v20490_v59  ;;  %v20549_v49 = vld [vmem:[#allocation16 + $0x24c] ss:$16 sps:$4 sm:$0xff]   ;;  %v20546_v59 = vld [vmem:[#allocation16 + $0x264] ss:$16 sps:$4 sm:$0xff]  }
 0x8e3   :  { %13101 = vmatprep.subr.bf16.mxu0 %v20495_v32  ;;  %13307 = vmatprep.subr.bf16.mxu1 %v20498_v56  ;;  %v20547_v32 = vld [vmem:[#allocation16 + $0x248] ss:$16 sps:$4 sm:$0xff]   ;;  %v20552_v56 = vld [vmem:[#allocation16 + $0x284] ss:$16 sps:$4 sm:$0xff]  }
 0x8e5   :  { %12295 = vmatmul.mubr.bf16.gmra.mrb[160].mxu0 %v23730_v4  ;;  %12501 = vmatmul.mubr.bf16.gmra.mrb[212].mxu1 %v23730_v4 }
 0x8e6   :  { %13102 = vmatpush1.bf16.msra.mxu0 %v20493_v21  ;;  %13308 = vmatpush1.bf16.msra.mxu1 %v20496_v9  ;;  %v20553_v21 = vld [vmem:[#allocation16 + $0x268] ss:$16 sps:$4 sm:$0xff]   ;;  %v20550_v9 = vld [vmem:[#allocation16 + $0x280] ss:$16 sps:$4 sm:$0xff]  }
 0x8e7   :  { %17117 = vmatprep.mubr.msk.bf16.mxu0 %vm3053_vm2, %v23754_v41  ;;  %17123 = vmatprep.mubr.msk.bf16.mxu1 %vm3053_vm2, %v23754_v41 }
 0x8e8   :  { %13103 = vmatprep.subr.bf16.mxu0 %v20501_v8  ;;  %13309 = vmatprep.subr.bf16.mxu1 %v20504_v45  ;;  %v20561_v8 = vld [vmem:[#allocation16 + $0x28c] ss:$16 sps:$4 sm:$0xff]   ;;  %v20558_v45 = vld [vmem:[#allocation16 + $0x2a4] ss:$16 sps:$4 sm:$0xff]  }
 0x8ea   :  { %13104 = vmatpush1.bf16.msra.mxu0 %v20499_v44  ;;  %13310 = vmatpush1.bf16.msra.mxu1 %v20502_v6  ;;  %v20556_v44 = vld [vmem:[#allocation16 + $0x2a0] ss:$16 sps:$4 sm:$0xff]   ;;  %v20564_v6 = vld [vmem:[#allocation16 + $0x2c4] ss:$16 sps:$4 sm:$0xff]  }
 0x8eb   :  { %13105 = vmatprep.subr.bf16.mxu0 %v20507_v36  ;;  %13311 = vmatprep.subr.bf16.mxu1 %v20510_v22  ;;  %v20565_v36 = vld [vmem:[#allocation16 + $0x2a8] ss:$16 sps:$4 sm:$0xff]   ;;  %v20562_v22 = vld [vmem:[#allocation16 + $0x2c0] ss:$16 sps:$4 sm:$0xff]  }
 0x8ed   :  { %12305 = vmatmul.mubr.bf16.gmra.mrb[164].mxu0 %v23750_v61  ;;  %12511 = vmatmul.mubr.bf16.gmra.mrb[216].mxu1 %v23750_v61 }
 0x8ee   :  { %13106 = vmatpush1.bf16.msra.mxu0 %v20505_v7  ;;  %13312 = vmatpush1.bf16.msra.mxu1 %v20508_v19  ;;  %v20570_v7 = vld [vmem:[#allocation16 + $0x2cc] ss:$16 sps:$4 sm:$0xff]   ;;  %v20568_v19 = vld [vmem:[#allocation16 + $0x2c8] ss:$16 sps:$4 sm:$0xff]  }
 0x8ef   :  { %13113 = vmatprep.mubr.bf16.mxu0 %v23672_v37  ;;  %13319 = vmatprep.mubr.bf16.mxu1 %v23672_v37  ;;  %v20537_v37 = vld [vmem:[#allocation16 + $0x20c] ss:$16 sps:$4 sm:$0xff]  }
 0x8f0   :  { %13107 = vmatprep.subr.bf16.mxu0 %v20513_v57  ;;  %13313 = vmatprep.subr.bf16.mxu1 %v20516_v5  ;;  %v20571_v57 = vld [vmem:[#allocation16 + $0x2e0] ss:$16 sps:$4 sm:$0xff]   ;;  %v20574_v5 = vld [vmem:[#allocation16 + $0x2e8] ss:$16 sps:$4 sm:$0xff]  }
 0x8f2   :  { %13108 = vmatpush1.bf16.msra.mxu0 %v20511_v54  ;;  %13314 = vmatpush1.bf16.msra.mxu1 %v20514_v29  ;;  %v20579_v54 = vld [vmem:[#allocation16 + $0x304] ss:$16 sps:$4 sm:$0xff]   ;;  %v20577_v29 = vld [vmem:[#allocation16 + $0x300] ss:$16 sps:$4 sm:$0xff]  }
 0x8f3   :  { %13109 = vmatprep.subr.bf16.mxu0 %v20519_v25  ;;  %13315 = vmatprep.subr.bf16.mxu1 %v20522_v46  ;;  %v20582_v25 = vld [vmem:[#allocation16 + $0x30c] ss:$16 sps:$4 sm:$0xff]   ;;  %v20580_v46 = vld [vmem:[#allocation16 + $0x308] ss:$16 sps:$4 sm:$0xff]  }
 0x8f6   :  { %13110 = vmatpush1.bf16.msra.mxu0 %v20517_v18  ;;  %13316 = vmatpush1.bf16.msra.mxu1 %v20520_v51  ;;  %v20583_v18 = vld [vmem:[#allocation16 + $0x320] ss:$16 sps:$4 sm:$0xff]   ;;  %v20586_v51 = vld [vmem:[#allocation16 + $0x328] ss:$16 sps:$4 sm:$0xff]  }
 0x8f7   :  { %13111 = vmatprep.subr.bf16.mxu0 %v20525_v3  ;;  %13317 = vmatprep.subr.bf16.mxu1 %v20528_v63  ;;  %v20591_v3 = vld [vmem:[#allocation16 + $0x344] ss:$16 sps:$4 sm:$0xff]   ;;  %v20589_v63 = vld [vmem:[#allocation16 + $0x340] ss:$16 sps:$4 sm:$0xff]  }
 0x8fa   :  { %13112 = vmatpush1.bf16.msra.mxu0 %v20523_v15  ;;  %13318 = vmatpush1.bf16.msra.mxu1 %v20526_v26  ;;  %v20594_v15 = vld [vmem:[#allocation16 + $0x34c] ss:$16 sps:$4 sm:$0xff]   ;;  %v20592_v26 = vld [vmem:[#allocation16 + $0x348] ss:$16 sps:$4 sm:$0xff]  }
 0x8fb   :  { %13184 = vmatprep.subr.bf16.mxu0 %v20531_v47  ;;  %13390 = vmatprep.subr.bf16.mxu1 %v20537_v37  ;;  %v20595_v47 = vld [vmem:[#allocation16 + $0x360] ss:$16 sps:$4 sm:$0xff]   ;;  %v20598_v37 = vld [vmem:[#allocation16 + $0x368] ss:$16 sps:$4 sm:$0xff]  }
 0x8fd   :  { %13114 = vmatmul.mubr.bf16.vlgmr.msra.gmra.mrb[140].mxu0 %v23668_v1  ;;  %13320 = vmatmul.mubr.bf16.vlgmr.msra.gmra.mrb[192].mxu1 %v23668_v1  ;;  %v20555_v1 = vld [vmem:[#allocation16 + $0x26c] ss:$16 sps:$4 sm:$0xff]  }
 0x8fe   :  { %13123 = vmatprep.mubr.bf16.mxu0 %v23692_v33  ;;  %13185 = vmatpush1.bf16.msra.mxu0 %v20529_v55  ;;  %v20603_v55 = vld [vmem:[#allocation19 + $0x4] ss:$8 sps:$4 sm:$0xff]  }
 0x8ff   :  { %13329 = vmatprep.mubr.bf16.mxu1 %v23692_v33  ;;  %13186 = vmatprep.subr.bf16.mxu0 %v20534_v27  ;;  %v20544_v33 = vld [vmem:[#allocation16 + $0x260] ss:$16 sps:$4 sm:$0xff]   ;;  %v20606_v27 = vld [vmem:[#allocation19 + $0x14] ss:$8 sps:$4 sm:$0xff]  }
 0x900   :  { %13391 = vmatpush1.bf16.msra.mxu1 %v20535_v62  ;;  %v20604_v62 = vld [vmem:[#allocation19 + $0x10] ss:$8 sps:$4 sm:$0xff]  }
 0x901   :  { %13392 = vmatprep.subr.bf16.mxu1 %v20543_v52  ;;  %v20609_v52 = vld [vmem:[#allocation19 + $0x24] ss:$8 sps:$4 sm:$0xff]  }
 0x902   :  { %13187 = vmatpush1.bf16.msra.mxu0 %v20532_v53  ;;  %v20607_v53 = vld [vmem:[#allocation19 + $0x20] ss:$8 sps:$4 sm:$0xff]  }
 0x903   :  { %13188 = vmatprep.subr.bf16.mxu0 %v20540_v16  ;;  %v20613_v16 = vld [vmem:[#allocation19 + $0x40] ss:$8 sps:$4 sm:$0xff]  }
 0x904   :  { %13393 = vmatpush1.bf16.msra.mxu1 %v20541_v38  ;;  %v20618_v38 = vld [vmem:[#allocation19 + $0x54] ss:$8 sps:$4 sm:$0xff]  }
 0x905   :  { %13124 = vmatmul.mubr.bf16.gmra.mrb[144].mxu0 %v23688_v2  ;;  %13330 = vmatmul.mubr.bf16.gmra.mrb[196].mxu1 %v23688_v2  ;;  %v20559_v2 = vld [vmem:[#allocation16 + $0x288] ss:$16 sps:$4 sm:$0xff]  }
 0x906   :  { %13133 = vmatprep.mubr.bf16.mxu0 %v23712_v23  ;;  %13339 = vmatprep.mubr.bf16.mxu1 %v23712_v23  ;;  %v20567_v23 = vld [vmem:[#allocation16 + $0x2ac] ss:$16 sps:$4 sm:$0xff]  }
 0x907   :  { %13189 = vmatpush1.bf16.msra.mxu0 %v20538_v35  ;;  %13394 = vmatprep.subr.bf16.mxu1 %v20549_v49  ;;  %v20619_v35 = vld [vmem:[#allocation19 + $0x60] ss:$8 sps:$4 sm:$0xff]   ;;  %v20624_v49 = vld [vmem:[#allocation19 + $0x74] ss:$8 sps:$4 sm:$0xff]  }
 0x908   :  { %13190 = vmatprep.subr.bf16.mxu0 %v20546_v59  ;;  %13395 = vmatpush1.bf16.msra.mxu1 %v20547_v32  ;;  %v20625_v59 = vld [vmem:[#allocation19 + $0x80] ss:$8 sps:$4 sm:$0xff]   ;;  %v20630_v32 = vld [vmem:[#allocation19 + $0x94] ss:$8 sps:$4 sm:$0xff]  }
 0x909   :  { %13396 = vmatprep.subr.bf16.mxu1 %v20555_v1  ;;  %v20631_v1 = vld [vmem:[#allocation19 + $0xa0] ss:$8 sps:$4 sm:$0xff]  }
 0x90b   :  { %13191 = vmatpush1.bf16.msra.mxu0 %v20544_v33  ;;  %v20636_v33 = vld [vmem:[#allocation19 + $0xb4] ss:$8 sps:$4 sm:$0xff]  }
 0x90c   :  { %13192 = vmatprep.subr.bf16.mxu0 %v20552_v56  ;;  %13397 = vmatpush1.bf16.msra.mxu1 %v20553_v21  ;;  %v20637_v56 = vld [vmem:[#allocation19 + $0xc0] ss:$8 sps:$4 sm:$0xff]   ;;  %v20642_v21 = vld [vmem:[#allocation19 + $0xd4] ss:$8 sps:$4 sm:$0xff]  }
 0x90d   :  { %13134 = vmatmul.mubr.bf16.gmra.mrb[148].mxu0 %v23708_v39  ;;  %13340 = vmatmul.mubr.bf16.gmra.mrb[200].mxu1 %v23708_v39  ;;  %v20573_v39 = vld [vmem:[#allocation16 + $0x2e4] ss:$16 sps:$4 sm:$0xff]  }
 0x90e   :  { %13143 = vmatprep.mubr.bf16.mxu0 %v23732_v20  ;;  %13349 = vmatprep.mubr.bf16.mxu1 %v23732_v20  ;;  %v20576_v20 = vld [vmem:[#allocation16 + $0x2ec] ss:$16 sps:$4 sm:$0xff]  }
 0x90f   :  { %13193 = vmatpush1.bf16.msra.mxu0 %v20550_v9  ;;  %13398 = vmatprep.subr.bf16.mxu1 %v20561_v8  ;;  %v20640_v9 = vld [vmem:[#allocation19 + $0xd0] ss:$8 sps:$4 sm:$0xff]   ;;  %v20643_v8 = vld [vmem:[#allocation19 + $0xe0] ss:$8 sps:$4 sm:$0xff]  }
 0x910   :  { %13194 = vmatprep.subr.bf16.mxu0 %v20558_v45  ;;  %13399 = vmatpush1.bf16.msra.mxu1 %v20559_v2  ;;  %v20648_v45 = vld [vmem:[#allocation19 + $0xf4] ss:$8 sps:$4 sm:$0xff]   ;;  %v20646_v2 = vld [vmem:[#allocation19 + $0xf0] ss:$8 sps:$4 sm:$0xff]  }
 0x911   :  { %13400 = vmatprep.subr.bf16.mxu1 %v20567_v23  ;;  %v20651_v23 = vld [vmem:[#allocation19 + $0x104] ss:$8 sps:$4 sm:$0xff]  }
 0x913   :  { %13195 = vmatpush1.bf16.msra.mxu0 %v20556_v44  ;;  %v10555_v44 = vld [vmem:[%s24361_s16] sm:$0xf] }
 0x914   :  { %13196 = vmatprep.subr.bf16.mxu0 %v20564_v6  ;;  %13401 = vmatpush1.bf16.msra.mxu1 %v20565_v36  ;;  %v23962_v6 = vrot.slane %v10555_v44, %v24481_v12  ;;  %v23965_v36 = vrot.slane %v10555_v44, %v24482_v24 }
 0x915   :  { %13144 = vmatmul.mubr.bf16.gmra.mrb[152].mxu0 %v23728_v31  ;;  %13350 = vmatmul.mubr.bf16.gmra.mrb[204].mxu1 %v23728_v31  ;;  %v20585_v31 = vld [vmem:[#allocation16 + $0x324] ss:$16 sps:$4 sm:$0xff]  }
 0x916   :  { %13153 = vmatprep.mubr.bf16.mxu0 %v23752_v42  ;;  %13359 = vmatprep.mubr.bf16.mxu1 %v23752_v42  ;;  %v20588_v42 = vld [vmem:[#allocation16 + $0x32c] ss:$16 sps:$4 sm:$0xff]  }
 0x917   :  { %13197 = vmatpush1.bf16.msra.mxu0 %v20562_v22  ;;  %13402 = vmatprep.subr.bf16.mxu1 %v20570_v7  ;;  %v23968_v22 = vrot.slane %v10555_v44, %v24483_v13  ;;  %v23971_v7 = vrot.slane %v10555_v44, %v24484_v60 }
 0x918   :  { %13198 = vmatprep.subr.bf16.mxu0 %v20573_v39  ;;  %13403 = vmatpush1.bf16.msra.mxu1 %v20568_v19 }
 0x919   :  { %13404 = vmatprep.subr.bf16.mxu1 %v20576_v20 }
 0x91b   :  { %13199 = vmatpush1.bf16.msra.mxu0 %v20571_v57 }
 0x91c   :  { %13405 = vmatpush1.bf16.msra.mxu1 %v20574_v5  ;;  %13200 = vmatprep.subr.bf16.mxu0 %v20579_v54 }
 0x91d   :  { %13154 = vmatmul.mubr.bf16.gmra.mrb[156].mxu0 %v23748_v0  ;;  %13360 = vmatmul.mubr.bf16.gmra.mrb[208].mxu1 %v23748_v0  ;;  %v20597_v0 = vld [vmem:[#allocation16 + $0x364] ss:$16 sps:$4 sm:$0xff]  }
 0x91e   :  { %13163 = vmatprep.mubr.bf16.mxu0 %v23772_v48  ;;  %13369 = vmatprep.mubr.bf16.mxu1 %v23772_v48  ;;  %v20600_v48 = vld [vmem:[#allocation16 + $0x36c] ss:$16 sps:$4 sm:$0xff]  }
 0x91f   :  { %13201 = vmatpush1.bf16.msra.mxu0 %v20577_v29  ;;  %13406 = vmatprep.subr.bf16.mxu1 %v20582_v25 }
 0x920   :  { %13407 = vmatpush1.bf16.msra.mxu1 %v20580_v46  ;;  %13202 = vmatprep.subr.bf16.mxu0 %v20585_v31 }
 0x921   :  { %13408 = vmatprep.subr.bf16.mxu1 %v20588_v42 }
 0x923   :  { %13203 = vmatpush1.bf16.msra.mxu0 %v20583_v18 }
 0x924   :  { %13409 = vmatpush1.bf16.msra.mxu1 %v20586_v51  ;;  %13204 = vmatprep.subr.bf16.mxu0 %v20591_v3 }
 0x925   :  { %13164 = vmatmul.mubr.bf16.gmra.mrb[160].mxu0 %v23768_v43  ;;  %13370 = vmatmul.mubr.bf16.gmra.mrb[212].mxu1 %v23768_v43  ;;  %v20601_v43 = vld [vmem:[#allocation19] ss:$8 sps:$4 sm:$0xff]  }
 0x926   :  { %13173 = vmatprep.mubr.bf16.mxu0 %v24442_v14  ;;  %13379 = vmatprep.mubr.bf16.mxu1 %v24442_v14 }
 0x927   :  { %13205 = vmatpush1.bf16.msra.mxu0 %v20589_v63  ;;  %13410 = vmatprep.subr.bf16.mxu1 %v20594_v15 }
 0x928   :  { %13411 = vmatpush1.bf16.msra.mxu1 %v20592_v26  ;;  %13206 = vmatprep.subr.bf16.mxu0 %v20597_v0 }
 0x929   :  { %13412 = vmatprep.subr.bf16.mxu1 %v20600_v48 }
 0x92b   :  { %13207 = vmatpush1.bf16.msra.mxu0 %v20595_v47 }
 0x92c   :  { %13413 = vmatpush1.bf16.msra.mxu1 %v20598_v37  ;;  %14171 = vmatprep.subr.bf16.mxu0 %v20603_v55 }
 0x92d   :  { %13174 = vmatmul.mubr.bf16.gmra.mrb[164].mxu0 %v24442_v14  ;;  %13380 = vmatmul.mubr.bf16.gmra.mrb[216].mxu1 %v24442_v14 }
 0x92e   :  { %17236 = vmatprep.mubr.msk.bf16.mxu0 %vm3053_vm2, %v23674_v58  ;;  %17242 = vmatprep.mubr.msk.bf16.mxu1 %vm3053_vm2, %v23674_v58  ;;  %v20612_v58 = vld [vmem:[#allocation19 + $0x34] ss:$8 sps:$4 sm:$0xff]  }
 0x935   :  { %13217 = vmatmul.mubr.bf16.vlgmr.msra.gmra.mrb[140].mxu0 %v23670_v30  ;;  %13423 = vmatmul.mubr.bf16.vlgmr.msra.gmra.mrb[192].mxu1 %v23670_v30  ;;  %v20610_v30 = vld [vmem:[#allocation19 + $0x30] ss:$8 sps:$4 sm:$0xff]  }
 0x936   :  { %17237 = vmatprep.mubr.msk.bf16.mxu0 %vm3053_vm2, %v23694_v17  ;;  %17243 = vmatprep.mubr.msk.bf16.mxu1 %vm3053_vm2, %v23694_v17  ;;  %v20615_v17 = vld [vmem:[#allocation19 + $0x44] ss:$8 sps:$4 sm:$0xff]  }
 0x937   :  { %14172 = vmatpush1.bf16.msra.mxu0 %v20601_v43 }
 0x938   :  { %14173 = vmatprep.subr.bf16.mxu0 %v20606_v27 }
 0x93b   :  { %14174 = vmatpush1.bf16.msra.mxu0 %v20604_v62 }
 0x93c   :  { %14175 = vmatprep.subr.bf16.mxu0 %v20609_v52 }
 0x93d   :  { %13227 = vmatmul.mubr.bf16.gmra.mrb[144].mxu0 %v23690_v50  ;;  %13433 = vmatmul.mubr.bf16.gmra.mrb[196].mxu1 %v23690_v50  ;;  %v20616_v50 = vld [vmem:[#allocation19 + $0x50] ss:$8 sps:$4 sm:$0xff]  }
 0x93e   :  { %17238 = vmatprep.mubr.msk.bf16.mxu0 %vm3053_vm2, %v23714_v40  ;;  %17244 = vmatprep.mubr.msk.bf16.mxu1 %vm3053_vm2, %v23714_v40  ;;  %v20621_v40 = vld [vmem:[#allocation19 + $0x64] ss:$8 sps:$4 sm:$0xff]  }
 0x93f   :  { %14176 = vmatpush1.bf16.msra.mxu0 %v20607_v53 }
 0x940   :  { %14177 = vmatprep.subr.bf16.mxu0 %v20612_v58 }
 0x943   :  { %14178 = vmatpush1.bf16.msra.mxu0 %v20610_v30  ;;  %v20649_v30 = vld [vmem:[#allocation19 + $0x100] ss:$8 sps:$4 sm:$0xff]  }
 0x944   :  { %14179 = vmatprep.subr.bf16.mxu0 %v20615_v17 }
 0x945   :  { %13237 = vmatmul.mubr.bf16.gmra.mrb[148].mxu0 %v23710_v10  ;;  %13443 = vmatmul.mubr.bf16.gmra.mrb[200].mxu1 %v23710_v10  ;;  %v20622_v10 = vld [vmem:[#allocation19 + $0x70] ss:$8 sps:$4 sm:$0xff]  }
 0x946   :  { %17239 = vmatprep.mubr.msk.bf16.mxu0 %vm3053_vm2, %v23734_v28  ;;  %17245 = vmatprep.mubr.msk.bf16.mxu1 %vm3053_vm2, %v23734_v28  ;;  %v20627_v28 = vld [vmem:[#allocation19 + $0x84] ss:$8 sps:$4 sm:$0xff]  }
 0x947   :  { %14180 = vmatpush1.bf16.msra.mxu0 %v20613_v16 }
 0x948   :  { %14181 = vmatprep.subr.bf16.mxu0 %v20618_v38 }
 0x94b   :  { %14182 = vmatpush1.bf16.msra.mxu0 %v20616_v50 }
 0x94c   :  { %14183 = vmatprep.subr.bf16.mxu0 %v20621_v40  ;;  %v20654_v40 = vld [vmem:[#allocation19 + $0x114] ss:$8 sps:$4 sm:$0xff]  }
 0x94d   :  { %13247 = vmatmul.mubr.bf16.gmra.mrb[152].mxu0 %v23730_v4  ;;  %13453 = vmatmul.mubr.bf16.gmra.mrb[204].mxu1 %v23730_v4  ;;  %v20628_v4 = vld [vmem:[#allocation19 + $0x90] ss:$8 sps:$4 sm:$0xff]  }
 0x94e   :  { %17240 = vmatprep.mubr.msk.bf16.mxu0 %vm3053_vm2, %v23754_v41  ;;  %17246 = vmatprep.mubr.msk.bf16.mxu1 %vm3053_vm2, %v23754_v41  ;;  %v20633_v41 = vld [vmem:[#allocation19 + $0xa4] ss:$8 sps:$4 sm:$0xff]  }
 0x94f   :  { %14184 = vmatpush1.bf16.msra.mxu0 %v20619_v35 }
 0x950   :  { %14185 = vmatprep.subr.bf16.mxu0 %v20624_v49 }
 0x953   :  { %14186 = vmatpush1.bf16.msra.mxu0 %v20622_v10 }
 0x954   :  { %14187 = vmatprep.subr.bf16.mxu0 %v20627_v28 }
 0x955   :  { %13257 = vmatmul.mubr.bf16.gmra.mrb[156].mxu0 %v23750_v61  ;;  %13463 = vmatmul.mubr.bf16.gmra.mrb[208].mxu1 %v23750_v61  ;;  %v20634_v61 = vld [vmem:[#allocation19 + $0xb0] ss:$8 sps:$4 sm:$0xff]  }
 0x956   :  { %17241 = vmatprep.mubr.msk.bf16.mxu0 %vm3053_vm2, %v23774_v11  ;;  %17247 = vmatprep.mubr.msk.bf16.mxu1 %vm3053_vm2, %v23774_v11  ;;  %v20639_v11 = vld [vmem:[#allocation19 + $0xc4] ss:$8 sps:$4 sm:$0xff]  }
 0x957   :  { %14188 = vmatpush1.bf16.msra.mxu0 %v20625_v59 }
 0x958   :  { %14189 = vmatprep.subr.bf16.mxu0 %v20630_v32 }
 0x95b   :  { %14190 = vmatpush1.bf16.msra.mxu0 %v20628_v4 }
 0x95c   :  { %14191 = vmatprep.subr.bf16.mxu0 %v20633_v41 }
 0x95d   :  { %13267 = vmatmul.mubr.bf16.gmra.mrb[160].mxu0 %v23770_v34  ;;  %13473 = vmatmul.mubr.bf16.gmra.mrb[212].mxu1 %v23770_v34  ;;  %v20645_v34 = vld [vmem:[#allocation19 + $0xe4] ss:$8 sps:$4 sm:$0xff]  }
 0x95e   :  { %13276 = vmatprep.mubr.bf16.mxu0 %v24442_v14  ;;  %13482 = vmatprep.mubr.bf16.mxu1 %v24442_v14 }
 0x95f   :  { %14192 = vmatpush1.bf16.msra.mxu0 %v20631_v1 }
 0x960   :  { %14193 = vmatprep.subr.bf16.mxu0 %v20636_v33 }
 0x963   :  { %14194 = vmatpush1.bf16.msra.mxu0 %v20634_v61  ;;  %v20652_v61 = vld [vmem:[#allocation19 + $0x110] ss:$8 sps:$4 sm:$0xff]  }
 0x964   :  { %14195 = vmatprep.subr.bf16.mxu0 %v20639_v11 }
 0x965   :  { %13277 = vmatmul.mubr.bf16.gmra.mrb[164].mxu0 %v24442_v14  ;;  %13483 = vmatmul.mubr.bf16.gmra.mrb[216].mxu1 %v24442_v14 }
 0x967   :  { %14196 = vmatpush1.bf16.msra.mxu0 %v20637_v56 }
 0x968   :  { %14197 = vmatprep.subr.bf16.mxu0 %v20642_v21 }
 0x96b   :  { %14198 = vmatpush1.bf16.msra.mxu0 %v20640_v9 }
 0x96c   :  { %14199 = vmatprep.subr.bf16.mxu0 %v20645_v34  ;;  %v20657_v34 = vld [vmem:[#allocation19 + $0x124] ss:$8 sps:$4 sm:$0xff]  }
 0x96f   :  { %14200 = vmatpush1.bf16.msra.mxu0 %v20643_v8 }
 0x970   :  { %14201 = vmatprep.subr.bf16.mxu0 %v20648_v45 }
 0x973   :  { %14202 = vmatpush1.bf16.msra.mxu0 %v20646_v2 }
 0x974   :  { %14244 = vmatprep.subr.bf16.mxu0 %v20651_v23 }
 0xa08   :  { %v13218_v19 = vpop.f32.mrb[140].mxu0  ;;  %v13424_v39 = vpop.f32.mrb[192].mxu1 }
 0xa09   :  { %v13570_v20 = vadd.f32 %v23962_v6, %v13218_v19  ;;  %v13572_v57 = vadd.f32 %v23965_v36, %v13424_v39  ;;  %v13220_v5 = vpop.f32.mrb[141].mxu0  ;;  %v13426_v54 = vpop.f32.mrb[193].mxu1 }
 0xa0a   :  { %v13571_v29 = vadd.f32 %v23968_v22, %v13220_v5  ;;  %v13573_v25 = vadd.f32 %v23971_v7, %v13426_v54  ;;  %v13222_v24 = vpop.f32.mrb[142].mxu0  ;;  %v13428_v46 = vpop.f32.mrb[194].mxu1  ;;  %v20655_v54 = vld [vmem:[#allocation19 + $0x120] ss:$8 sps:$4 sm:$0xff]  }
 0xa0b   :  { %v13574_v31 = vadd.f32 %v23962_v6, %v13222_v24  ;;  %v13576_v42 = vadd.f32 %v23965_v36, %v13428_v46  ;;  %v13224_v60 = vpop.f32.mrb[143].mxu0  ;;  %v13430_v18 = vpop.f32.mrb[195].mxu1  ;;  %v13626_v63 = vmax.f32 %v13570_v20, 0.0  ;;  %v13628_v15 = vmax.f32 %v13572_v57, 0.0 }
 0xa0c   :  { %v13575_v51 = vadd.f32 %v23968_v22, %v13224_v60  ;;  %v13577_v3 = vadd.f32 %v23971_v7, %v13430_v18  ;;  %v13627_v48 = vmax.f32 %v13571_v29, 0.0  ;;  %v13629_v47 = vmax.f32 %v13573_v25, 0.0 }
 0xa0d   :  { %v13630_v26 = vmax.f32 %v13574_v31, 0.0  ;;  %v13632_v0 = vmax.f32 %v13576_v42, 0.0  ;;  %v20660_v31 = vld [vmem:[#allocation19 + $0x134] ss:$8 sps:$4 sm:$0xff]  }
 0xa0e   :  { %v13631_v37 = vmax.f32 %v13575_v51, 0.0  ;;  %v13633_v55 = vmax.f32 %v13577_v3, 0.0 }
 0xa0f   :  { %v13682_v43 = vpack.c.bf16 %v13630_v26, %v13626_v63  ;;  %v23981_v27 = vpack.c.bf16 %v13632_v0, %v13628_v15 }
 0xa10   :  { %v13683_v62 = vpack.c.bf16 %v13631_v37, %v13627_v48  ;;  %v23983_v52 = vpack.c.bf16 %v13633_v55, %v13629_v47  ;;  %v13228_v53 = vpop.f32.mrb[144].mxu0  ;;  %v13434_v58 = vpop.f32.mrb[196].mxu1  ;;  %v20658_v47 = vld [vmem:[#allocation19 + $0x130] ss:$8 sps:$4 sm:$0xff]  }
 0xa11   :  { %v13578_v17 = vadd.f32 %v23962_v6, %v13228_v53  ;;  %v13580_v16 = vadd.f32 %v23965_v36, %v13434_v58  ;;  %v13230_v38 = vpop.f32.mrb[145].mxu0  ;;  %v13436_v50 = vpop.f32.mrb[197].mxu1  ;;  %v20663_v53 = vld [vmem:[#allocation19 + $0x144] ss:$8 sps:$4 sm:$0xff]  }
 0xa12   :  { %v13579_v35 = vadd.f32 %v23968_v22, %v13230_v38  ;;  %v13581_v49 = vadd.f32 %v23971_v7, %v13436_v50  ;;  %v13232_v10 = vpop.f32.mrb[146].mxu0  ;;  %v13438_v28 = vpop.f32.mrb[198].mxu1  ;;  %14203 = vmatprep.mubr.bf16.mxu0 %v13683_v62 }
 0xa13   :  { %v13582_v59 = vadd.f32 %v23962_v6, %v13232_v10  ;;  %v13584_v32 = vadd.f32 %v23965_v36, %v13438_v28  ;;  %v13234_v4 = vpop.f32.mrb[147].mxu0  ;;  %v13440_v41 = vpop.f32.mrb[199].mxu1  ;;  %14204 = vmatmul.mubr.bf16.vlgmr.msra.gmra.mrb[168].mxu0 %v13682_v43  ;;  %v13634_v11 = vmax.f32 %v13578_v17, 0.0  ;;  %v13636_v56 = vmax.f32 %v13580_v16, 0.0  ;;  %v20661_v28 = vld [vmem:[#allocation19 + $0x140] ss:$8 sps:$4 sm:$0xff]  }
 0xa14   :  { %v13583_v1 = vadd.f32 %v23968_v22, %v13234_v4  ;;  %v13585_v33 = vadd.f32 %v23971_v7, %v13440_v41  ;;  %14245 = vmatpush1.bf16.msra.mxu0 %v20649_v30  ;;  %v13635_v8 = vmax.f32 %v13579_v35, 0.0  ;;  %v13637_v45 = vmax.f32 %v13581_v49, 0.0 }
 0xa15   :  { %v13638_v21 = vmax.f32 %v13582_v59, 0.0  ;;  %v13640_v9 = vmax.f32 %v13584_v32, 0.0  ;;  %14246 = vmatprep.subr.bf16.mxu0 %v20654_v40 }
 0xa16   :  { %v13639_v2 = vmax.f32 %v13583_v1, 0.0  ;;  %v13641_v23 = vmax.f32 %v13585_v33, 0.0  ;;  %v20666_v1 = vld [vmem:[#allocation19 + $0x154] ss:$8 sps:$4 sm:$0xff]  }
 0xa17   :  { %v23993_v44 = vpack.c.bf16 %v13638_v21, %v13634_v11  ;;  %v23995_v19 = vpack.c.bf16 %v13640_v9, %v13636_v56 }
 0xa18   :  { %v23997_v39 = vpack.c.bf16 %v13639_v2, %v13635_v8  ;;  %v23999_v20 = vpack.c.bf16 %v13641_v23, %v13637_v45  ;;  %v13238_v57 = vpop.f32.mrb[148].mxu0  ;;  %v13444_v5 = vpop.f32.mrb[200].mxu1  ;;  %14247 = vmatpush1.bf16.msra.mxu0 %v20652_v61  ;;  %v20664_v23 = vld [vmem:[#allocation19 + $0x150] ss:$8 sps:$4 sm:$0xff]  }
 0xa19   :  { %v13586_v29 = vadd.f32 %v23962_v6, %v13238_v57  ;;  %v13588_v25 = vadd.f32 %v23965_v36, %v13444_v5  ;;  %v13240_v24 = vpop.f32.mrb[149].mxu0  ;;  %v13446_v46 = vpop.f32.mrb[201].mxu1  ;;  %14248 = vmatprep.subr.bf16.mxu0 %v20657_v34 }
 0xa1a   :  { %v13587_v42 = vadd.f32 %v23968_v22, %v13240_v24  ;;  %v13589_v60 = vadd.f32 %v23971_v7, %v13446_v46  ;;  %v13242_v18 = vpop.f32.mrb[150].mxu0  ;;  %v13448_v51 = vpop.f32.mrb[202].mxu1 }
 0xa1b   :  { %v13590_v3 = vadd.f32 %v23962_v6, %v13242_v18  ;;  %v13592_v63 = vadd.f32 %v23965_v36, %v13448_v51  ;;  %v13244_v15 = vpop.f32.mrb[151].mxu0  ;;  %v13450_v26 = vpop.f32.mrb[203].mxu1  ;;  %v13642_v37 = vmax.f32 %v13586_v29, 0.0  ;;  %v13644_v55 = vmax.f32 %v13588_v25, 0.0  ;;  %v20669_v25 = vld [vmem:[#allocation19 + $0x164] ss:$8 sps:$4 sm:$0xff]  }
 0xa1c   :  { %v13591_v0 = vadd.f32 %v23968_v22, %v13244_v15  ;;  %v13593_v48 = vadd.f32 %v23971_v7, %v13450_v26  ;;  %14249 = vmatpush1.bf16.msra.mxu0 %v20655_v54  ;;  %v13643_v58 = vmax.f32 %v13587_v42, 0.0  ;;  %v13645_v30 = vmax.f32 %v13589_v60, 0.0  ;;  %v20667_v26 = vld [vmem:[#allocation19 + $0x160] ss:$8 sps:$4 sm:$0xff]  }
 0xa1d   :  { %v13646_v43 = vmax.f32 %v13590_v3, 0.0  ;;  %v13648_v62 = vmax.f32 %v13592_v63, 0.0  ;;  %14250 = vmatprep.subr.bf16.mxu0 %v20660_v31 }
 0xa1e   :  { %v13647_v17 = vmax.f32 %v13591_v0, 0.0  ;;  %v13649_v16 = vmax.f32 %v13593_v48, 0.0 }
 0xa1f   :  { %v13690_v38 = vpack.c.bf16 %v13646_v43, %v13642_v37  ;;  %v24009_v50 = vpack.c.bf16 %v13648_v62, %v13644_v55  ;;  %v20672_v55 = vld [vmem:[#allocation19 + $0x174] ss:$8 sps:$4 sm:$0xff]  }
 0xa20   :  { %v13691_v40 = vpack.c.bf16 %v13647_v17, %v13643_v58  ;;  %v24011_v35 = vpack.c.bf16 %v13649_v16, %v13645_v30  ;;  %v13248_v49 = vpop.f32.mrb[152].mxu0  ;;  %v13454_v10 = vpop.f32.mrb[204].mxu1  ;;  %14251 = vmatpush1.bf16.msra.mxu0 %v20658_v47 }
 0xa21   :  { %v13594_v59 = vadd.f32 %v23962_v6, %v13248_v49  ;;  %v13596_v32 = vadd.f32 %v23965_v36, %v13454_v10  ;;  %v13250_v4 = vpop.f32.mrb[153].mxu0  ;;  %v13456_v41 = vpop.f32.mrb[205].mxu1  ;;  %14252 = vmatprep.subr.bf16.mxu0 %v20663_v53  ;;  %v20670_v10 = vld [vmem:[#allocation19 + $0x170] ss:$8 sps:$4 sm:$0xff]  }
 0xa22   :  { %v13595_v33 = vadd.f32 %v23968_v22, %v13250_v4  ;;  %v13597_v61 = vadd.f32 %v23971_v7, %v13456_v41  ;;  %v13252_v11 = vpop.f32.mrb[154].mxu0  ;;  %v13458_v56 = vpop.f32.mrb[206].mxu1  ;;  %14213 = vmatprep.mubr.bf16.mxu0 %v13691_v40  ;;  %v20675_v41 = vld [vmem:[#allocation19 + $0x184] ss:$8 sps:$4 sm:$0xff]  }
 0xa23   :  { %v13598_v21 = vadd.f32 %v23962_v6, %v13252_v11  ;;  %v13600_v9 = vadd.f32 %v23965_v36, %v13458_v56  ;;  %v13254_v34 = vpop.f32.mrb[155].mxu0  ;;  %v13460_v8 = vpop.f32.mrb[207].mxu1  ;;  %14214 = vmatmul.mubr.bf16.gmra.mrb[172].mxu0 %v13690_v38  ;;  %v13650_v57 = vmax.f32 %v13594_v59, 0.0  ;;  %v13652_v5 = vmax.f32 %v13596_v32, 0.0 }
 0xa24   :  { %v13599_v45 = vadd.f32 %v23968_v22, %v13254_v34  ;;  %v13601_v2 = vadd.f32 %v23971_v7, %v13460_v8  ;;  %14253 = vmatpush1.bf16.msra.mxu0 %v20661_v28  ;;  %v13651_v24 = vmax.f32 %v13595_v33, 0.0  ;;  %v13653_v46 = vmax.f32 %v13597_v61, 0.0 }
 0xa25   :  { %v13654_v54 = vmax.f32 %v13598_v21, 0.0  ;;  %v13656_v29 = vmax.f32 %v13600_v9, 0.0  ;;  %14254 = vmatprep.subr.bf16.mxu0 %v20666_v1 }
 0xa26   :  { %v13655_v31 = vmax.f32 %v13599_v45, 0.0  ;;  %v13657_v42 = vmax.f32 %v13601_v2, 0.0  ;;  %v20673_v2 = vld [vmem:[#allocation19 + $0x180] ss:$8 sps:$4 sm:$0xff]  }
 0xa27   :  { %v24021_v60 = vpack.c.bf16 %v13654_v54, %v13650_v57  ;;  %v24023_v18 = vpack.c.bf16 %v13656_v29, %v13652_v5  ;;  %v20678_v29 = vld [vmem:[#allocation19 + $0x194] ss:$8 sps:$4 sm:$0xff]  }
 0xa28   :  { %v24025_v51 = vpack.c.bf16 %v13655_v31, %v13651_v24  ;;  %v24027_v3 = vpack.c.bf16 %v13657_v42, %v13653_v46  ;;  %v13258_v63 = vpop.f32.mrb[156].mxu0  ;;  %v13464_v15 = vpop.f32.mrb[208].mxu1  ;;  %14255 = vmatpush1.bf16.msra.mxu0 %v20664_v23 }
 0xa29   :  { %v13602_v0 = vadd.f32 %v23962_v6, %v13258_v63  ;;  %v13604_v48 = vadd.f32 %v23965_v36, %v13464_v15  ;;  %v13260_v47 = vpop.f32.mrb[157].mxu0  ;;  %v13466_v37 = vpop.f32.mrb[209].mxu1  ;;  %14256 = vmatprep.subr.bf16.mxu0 %v20669_v25 }
 0xa2a   :  { %v13603_v43 = vadd.f32 %v23968_v22, %v13260_v47  ;;  %v13605_v62 = vadd.f32 %v23971_v7, %v13466_v37  ;;  %v13262_v53 = vpop.f32.mrb[158].mxu0  ;;  %v13468_v58 = vpop.f32.mrb[210].mxu1  ;;  %v20676_v47 = vld [vmem:[#allocation19 + $0x190] ss:$8 sps:$4 sm:$0xff]  }
 0xa2b   :  { %v13606_v30 = vadd.f32 %v23962_v6, %v13262_v53  ;;  %v13608_v17 = vadd.f32 %v23965_v36, %v13468_v58  ;;  %v13264_v16 = vpop.f32.mrb[159].mxu0  ;;  %v13470_v38 = vpop.f32.mrb[211].mxu1  ;;  %v13658_v28 = vmax.f32 %v13602_v0, 0.0  ;;  %v13660_v59 = vmax.f32 %v13604_v48, 0.0  ;;  %v20681_v53 = vld [vmem:[#allocation19 + $0x1a4] ss:$8 sps:$4 sm:$0xff]  }
 0xa2c   :  { %v13607_v40 = vadd.f32 %v23968_v22, %v13264_v16  ;;  %v13609_v49 = vadd.f32 %v23971_v7, %v13470_v38  ;;  %14257 = vmatpush1.bf16.msra.mxu0 %v20667_v26  ;;  %v13659_v1 = vmax.f32 %v13603_v43, 0.0  ;;  %v13661_v33 = vmax.f32 %v13605_v62, 0.0 }
 0xa2d   :  { %v13662_v32 = vmax.f32 %v13606_v30, 0.0  ;;  %v13664_v4 = vmax.f32 %v13608_v17, 0.0  ;;  %14258 = vmatprep.subr.bf16.mxu0 %v20672_v55 }
 0xa2e   :  { %v13663_v61 = vmax.f32 %v13607_v40, 0.0  ;;  %v13665_v11 = vmax.f32 %v13609_v49, 0.0 }
 0xa2f   :  { %v13698_v56 = vpack.c.bf16 %v13662_v32, %v13658_v28  ;;  %v24037_v21 = vpack.c.bf16 %v13664_v4, %v13660_v59  ;;  %v20679_v32 = vld [vmem:[#allocation19 + $0x1a0] ss:$8 sps:$4 sm:$0xff]  }
 0xa30   :  { %v13699_v9 = vpack.c.bf16 %v13663_v61, %v13659_v1  ;;  %v24039_v34 = vpack.c.bf16 %v13665_v11, %v13661_v33  ;;  %v13268_v8 = vpop.f32.mrb[160].mxu0  ;;  %v13474_v45 = vpop.f32.mrb[212].mxu1  ;;  %14259 = vmatpush1.bf16.msra.mxu0 %v20670_v10  ;;  %v20684_v61 = vld [vmem:[#allocation19 + $0x1b4] ss:$8 sps:$4 sm:$0xff]  }
 0xa31   :  { %v13610_v23 = vadd.f32 %v23962_v6, %v13268_v8  ;;  %v13612_v57 = vadd.f32 %v23965_v36, %v13474_v45  ;;  %v13270_v5 = vpop.f32.mrb[161].mxu0  ;;  %v13476_v54 = vpop.f32.mrb[213].mxu1  ;;  %14260 = vmatprep.subr.bf16.mxu0 %v20675_v41 }
 0xa32   :  { %v13611_v25 = vadd.f32 %v23968_v22, %v13270_v5  ;;  %v13613_v24 = vadd.f32 %v23971_v7, %v13476_v54  ;;  %v13272_v46 = vpop.f32.mrb[162].mxu0  ;;  %v13478_v31 = vpop.f32.mrb[214].mxu1  ;;  %14223 = vmatprep.mubr.bf16.mxu0 %v13699_v9 }
 0xa33   :  { %v13614_v42 = vadd.f32 %v23962_v6, %v13272_v46  ;;  %v13616_v63 = vadd.f32 %v23965_v36, %v13478_v31  ;;  %v13274_v15 = vpop.f32.mrb[163].mxu0  ;;  %v13480_v26 = vpop.f32.mrb[215].mxu1  ;;  %14224 = vmatmul.mubr.bf16.gmra.mrb[176].mxu0 %v13698_v56  ;;  %v13666_v37 = vmax.f32 %v13610_v23, 0.0  ;;  %v13668_v55 = vmax.f32 %v13612_v57, 0.0 }
 0xa34   :  { %v13615_v0 = vadd.f32 %v23968_v22, %v13274_v15  ;;  %v13617_v48 = vadd.f32 %v23971_v7, %v13480_v26  ;;  %14261 = vmatpush1.bf16.msra.mxu0 %v20673_v2  ;;  %v13667_v58 = vmax.f32 %v13611_v25, 0.0  ;;  %v13669_v30 = vmax.f32 %v13613_v24, 0.0 }
 0xa35   :  { %v13670_v43 = vmax.f32 %v13614_v42, 0.0  ;;  %v13672_v62 = vmax.f32 %v13616_v63, 0.0  ;;  %14262 = vmatprep.subr.bf16.mxu0 %v20678_v29  ;;  %v20682_v29 = vld [vmem:[#allocation19 + $0x1b0] ss:$8 sps:$4 sm:$0xff]   ;;  %v20687_v42 = vld [vmem:[#allocation18 + $0x4] ss:$8 sps:$4 sm:$0xff]  }
 0xa36   :  { %v13671_v17 = vmax.f32 %v13615_v0, 0.0  ;;  %v13673_v16 = vmax.f32 %v13617_v48, 0.0 }
 0xa37   :  { %v24049_v38 = vpack.c.bf16 %v13670_v43, %v13666_v37  ;;  %v24051_v40 = vpack.c.bf16 %v13672_v62, %v13668_v55  ;;  %v20688_v37 = vld [vmem:[#allocation18 + $0x10] ss:$8 sps:$4 sm:$0xff]   ;;  %v20693_v55 = vld [vmem:[#allocation18 + $0x24] ss:$8 sps:$4 sm:$0xff]   ;;  %v20691_v43 = vld [vmem:[#allocation18 + $0x20] ss:$8 sps:$4 sm:$0xff]  }
 0xa38   :  { %v24053_v49 = vpack.c.bf16 %v13671_v17, %v13667_v58  ;;  %v24055_v10 = vpack.c.bf16 %v13673_v16, %v13669_v30  ;;  %v13278_v28 = vpop.f32.mrb[164].mxu0  ;;  %v13484_v59 = vpop.f32.mrb[216].mxu1  ;;  %14263 = vmatpush1.bf16.msra.mxu0 %v20676_v47  ;;  %v20696_v62 = vld [vmem:[#allocation18 + $0x34] ss:$8 sps:$4 sm:$0xff]   ;;  %v20700_v58 = vld [vmem:[#allocation18 + $0x50] ss:$8 sps:$4 sm:$0xff]  }
 0xa39   :  { %v13618_v4 = vadd.f32 %v23962_v6, %v13278_v28  ;;  %v13620_v41 = vadd.f32 %v23965_v36, %v13484_v59  ;;  %v13280_v1 = vpop.f32.mrb[165].mxu0  ;;  %v13486_v33 = vpop.f32.mrb[217].mxu1  ;;  %14264 = vmatprep.subr.bf16.mxu0 %v20681_v53  ;;  %v20697_v53 = vld [vmem:[#allocation18 + $0x40] ss:$8 sps:$4 sm:$0xff]   ;;  %v20705_v30 = vld [vmem:[#allocation18 + $0x64] ss:$8 sps:$4 sm:$0xff]  }
 0xa3a   :  { %v13619_v11 = vadd.f32 %v23968_v22, %v13280_v1  ;;  %v13621_v56 = vadd.f32 %v23971_v7, %v13486_v33  ;;  %v13282_v9 = vpop.f32.mrb[166].mxu0  ;;  %v13488_v8 = vpop.f32.mrb[218].mxu1  ;;  %v20708_v17 = vld [vmem:[#allocation18 + $0x74] ss:$8 sps:$4 sm:$0xff]   ;;  %v20711_v16 = vld [vmem:[#allocation18 + $0x84] ss:$8 sps:$4 sm:$0xff]  }
 0xa3b   :  { %v13622_v45 = vadd.f32 %v23962_v6, %v13282_v9  ;;  %v13624_v2 = vadd.f32 %v23965_v36, %v13488_v8  ;;  %v13284_v23 = vpop.f32.mrb[167].mxu0  ;;  %v13490_v57 = vpop.f32.mrb[219].mxu1  ;;  %v13674_v25 = vmax.f32 %v13618_v4, 0.0  ;;  %v13676_v24 = vmax.f32 %v13620_v41, 0.0  ;;  %v20709_v28 = vld [vmem:[#allocation18 + $0x80] ss:$8 sps:$4 sm:$0xff]  }
 0xa3c   :  { %v13623_v5 = vadd.f32 %v23968_v22, %v13284_v23  ;;  %v13625_v54 = vadd.f32 %v23971_v7, %v13490_v57  ;;  %14265 = vmatpush1.bf16.msra.mxu0 %v20679_v32  ;;  %v13675_v63 = vmax.f32 %v13619_v11, 0.0  ;;  %v13677_v15 = vmax.f32 %v13621_v56, 0.0  ;;  %v20685_v22 = vld [vmem:[#allocation18] ss:$8 sps:$4 sm:$0xff]   ;;  %v20690_v7 = vld [vmem:[#allocation18 + $0x14] ss:$8 sps:$4 sm:$0xff]  }
 0xa3d   :  { %v13678_v46 = vmax.f32 %v13622_v45, 0.0  ;;  %v13680_v31 = vmax.f32 %v13624_v2, 0.0  ;;  %14266 = vmatprep.subr.bf16.mxu0 %v20684_v61  ;;  %v20712_v59 = vld [vmem:[#allocation18 + $0x90] ss:$8 sps:$4 sm:$0xff]   ;;  %v20717_v32 = vld [vmem:[#allocation18 + $0xa4] ss:$8 sps:$4 sm:$0xff]  }
 0xa3e   :  { %v13679_v26 = vmax.f32 %v13623_v5, 0.0  ;;  %v13681_v6 = vmax.f32 %v13625_v54, 0.0  ;;  %v20715_v4 = vld [vmem:[#allocation18 + $0xa0] ss:$8 sps:$4 sm:$0xff]   ;;  %v20720_v41 = vld [vmem:[#allocation18 + $0xb4] ss:$8 sps:$4 sm:$0xff]  }
 0xa3f   :  { %v13706_v0 = vpack.c.bf16 %v13678_v46, %v13674_v25  ;;  %v13708_v36 = vpack.c.bf16 %v13680_v31, %v13676_v24  ;;  %v20718_v1 = vld [vmem:[#allocation18 + $0xb0] ss:$8 sps:$4 sm:$0xff]   ;;  %v20723_v33 = vld [vmem:[#allocation18 + $0xc4] ss:$8 sps:$4 sm:$0xff]   ;;  %v20721_v61 = vld [vmem:[#allocation18 + $0xc0] ss:$8 sps:$4 sm:$0xff]  }
 0xa40   :  { %v13707_v48 = vpack.c.bf16 %v13679_v26, %v13675_v63  ;;  %v13709_v47 = vpack.c.bf16 %v13681_v6, %v13677_v15  ;;  %14267 = vmatpush1.bf16.msra.mxu0 %v20682_v29  ;;  %v20726_v11 = vld [vmem:[#allocation18 + $0xd4] ss:$8 sps:$4 sm:$0xff]   ;;  %v20724_v56 = vld [vmem:[#allocation18 + $0xd0] ss:$8 sps:$4 sm:$0xff]   ;;  %v20729_v9 = vld [vmem:[#allocation18 + $0xe4] ss:$8 sps:$4 sm:$0xff]  }
 0xa41   :  { %14606 = vmatprep.subr.bf16.mxu0 %v20687_v42  ;;  %v20727_v8 = vld [vmem:[#allocation18 + $0xe0] ss:$8 sps:$4 sm:$0xff]   ;;  %v20732_v45 = vld [vmem:[#allocation18 + $0xf4] ss:$8 sps:$4 sm:$0xff]   ;;  %v20730_v2 = vld [vmem:[#allocation18 + $0xf0] ss:$8 sps:$4 sm:$0xff]  }
 0xa42   :  { %14233 = vmatprep.mubr.bf16.mxu0 %v13707_v48  ;;  %v20735_v23 = vld [vmem:[#allocation18 + $0x104] ss:$8 sps:$4 sm:$0xff]   ;;  %v20733_v57 = vld [vmem:[#allocation18 + $0x100] ss:$8 sps:$4 sm:$0xff]   ;;  %v20738_v5 = vld [vmem:[#allocation18 + $0x114] ss:$8 sps:$4 sm:$0xff]  }
 0xa43   :  { %14234 = vmatmul.mubr.bf16.gmra.mrb[180].mxu0 %v13706_v0  ;;  %v20736_v54 = vld [vmem:[#allocation18 + $0x110] ss:$8 sps:$4 sm:$0xff]   ;;  %v20741_v29 = vld [vmem:[#allocation18 + $0x124] ss:$8 sps:$4 sm:$0xff]   ;;  %v20739_v25 = vld [vmem:[#allocation18 + $0x120] ss:$8 sps:$4 sm:$0xff]  }
 0xa44   :  { %17304 = vmatprep.mubr.msk.bf16.mxu0 %vm3053_vm2, %v23983_v52  ;;  %v20694_v52 = vld [vmem:[#allocation18 + $0x30] ss:$8 sps:$4 sm:$0xff]   ;;  %v20744_v24 = vld [vmem:[#allocation18 + $0x134] ss:$8 sps:$4 sm:$0xff]   ;;  %v20747_v31 = vld [vmem:[#allocation18 + $0x144] ss:$8 sps:$4 sm:$0xff]  }
 0xa45   :  { %v20742_v46 = vld [vmem:[#allocation18 + $0x130] ss:$8 sps:$4 sm:$0xff]   ;;  %v20745_v42 = vld [vmem:[#allocation18 + $0x140] ss:$8 sps:$4 sm:$0xff]   ;;  %v20750_v63 = vld [vmem:[#allocation18 + $0x154] ss:$8 sps:$4 sm:$0xff]  }
 0xa46   :  { %v20748_v15 = vld [vmem:[#allocation18 + $0x150] ss:$8 sps:$4 sm:$0xff]   ;;  %v20753_v26 = vld [vmem:[#allocation18 + $0x164] ss:$8 sps:$4 sm:$0xff]   ;;  %v20751_v6 = vld [vmem:[#allocation18 + $0x160] ss:$8 sps:$4 sm:$0xff]  }
 0xa47   :  { %v20756_v0 = vld [vmem:[#allocation18 + $0x174] ss:$8 sps:$4 sm:$0xff]   ;;  %v20759_v48 = vld [vmem:[#allocation18 + $0x184] ss:$8 sps:$4 sm:$0xff]  }
 0xa4b   :  { %14277 = vmatmul.mubr.bf16.vlgmr.msra.gmra.mrb[168].mxu0 %v23981_v27  ;;  %v20699_v27 = vld [vmem:[#allocation18 + $0x44] ss:$8 sps:$4 sm:$0xff]  }
 0xa4c   :  { %14607 = vmatpush1.bf16.msra.mxu0 %v20685_v22  ;;  %17305 = vmatprep.mubr.msk.bf16.mxu0 %vm3053_vm2, %v24011_v35  ;;  %v20702_v35 = vld [vmem:[#allocation18 + $0x54] ss:$8 sps:$4 sm:$0xff]  }
 0xa4d   :  { %14608 = vmatprep.subr.bf16.mxu0 %v20690_v7  ;;  %v20762_v22 = vld [vmem:[#allocation18 + $0x194] ss:$8 sps:$4 sm:$0xff]   ;;  %v20760_v7 = vld [vmem:[#allocation18 + $0x190] ss:$8 sps:$4 sm:$0xff]  }
 0xa50   :  { %14609 = vmatpush1.bf16.msra.mxu0 %v20688_v37  ;;  %v20765_v37 = vld [vmem:[#allocation18 + $0x1a4] ss:$8 sps:$4 sm:$0xff]  }
 0xa51   :  { %14610 = vmatprep.subr.bf16.mxu0 %v20693_v55  ;;  %v20763_v55 = vld [vmem:[#allocation18 + $0x1a0] ss:$8 sps:$4 sm:$0xff]  }
 0xa53   :  { %14287 = vmatmul.mubr.bf16.gmra.mrb[172].mxu0 %v24009_v50  ;;  %v20703_v50 = vld [vmem:[#allocation18 + $0x60] ss:$8 sps:$4 sm:$0xff]  }
 0xa54   :  { %14611 = vmatpush1.bf16.msra.mxu0 %v20691_v43  ;;  %17306 = vmatprep.mubr.msk.bf16.mxu0 %vm3053_vm2, %v24039_v34  ;;  %v20706_v34 = vld [vmem:[#allocation18 + $0x70] ss:$8 sps:$4 sm:$0xff]   ;;  %v20768_v43 = vld [vmem:[#allocation18 + $0x1b4] ss:$8 sps:$4 sm:$0xff]  }
 0xa55   :  { %14612 = vmatprep.subr.bf16.mxu0 %v20696_v62  ;;  %v20766_v62 = vld [vmem:[#allocation18 + $0x1b0] ss:$8 sps:$4 sm:$0xff]  }
 0xa58   :  { %14613 = vmatpush1.bf16.msra.mxu0 %v20694_v52  ;;  %v20771_v52 = vld [vmem:[#allocation21 + $0x4] ss:$8 sps:$4 sm:$0xff]  }
 0xa59   :  { %14614 = vmatprep.subr.bf16.mxu0 %v20699_v27  ;;  %v20769_v27 = vld [vmem:[#allocation21] ss:$8 sps:$4 sm:$0xff]  }
 0xa5b   :  { %14297 = vmatmul.mubr.bf16.gmra.mrb[176].mxu0 %v24037_v21  ;;  %v20714_v21 = vld [vmem:[#allocation18 + $0x94] ss:$8 sps:$4 sm:$0xff]  }
 0xa5c   :  { %14615 = vmatpush1.bf16.msra.mxu0 %v20697_v53  ;;  %17307 = vmatprep.mubr.msk.bf16.mxu0 %vm3053_vm2, %v13709_v47  ;;  %v20757_v47 = vld [vmem:[#allocation18 + $0x180] ss:$8 sps:$4 sm:$0xff]   ;;  %v20774_v53 = vld [vmem:[#allocation21 + $0x14] ss:$8 sps:$4 sm:$0xff]  }
 0xa5d   :  { %14616 = vmatprep.subr.bf16.mxu0 %v20702_v35  ;;  %v20772_v35 = vld [vmem:[#allocation21 + $0x10] ss:$8 sps:$4 sm:$0xff]  }
 0xa60   :  { %14617 = vmatpush1.bf16.msra.mxu0 %v20700_v58  ;;  %v20777_v58 = vld [vmem:[#allocation21 + $0x24] ss:$8 sps:$4 sm:$0xff]  }
 0xa61   :  { %14618 = vmatprep.subr.bf16.mxu0 %v20705_v30  ;;  %v20775_v30 = vld [vmem:[#allocation21 + $0x20] ss:$8 sps:$4 sm:$0xff]  }
 0xa63   :  { %14307 = vmatmul.mubr.bf16.gmra.mrb[180].mxu0 %v13708_v36  ;;  %v20754_v36 = vld [vmem:[#allocation18 + $0x170] ss:$8 sps:$4 sm:$0xff]  }
 0xa64   :  { %14619 = vmatpush1.bf16.msra.mxu0 %v20703_v50  ;;  %14638 = vmatprep.mubr.bf16.mxu0 %v24442_v14  ;;  %v20780_v50 = vld [vmem:[#allocation21 + $0x34] ss:$8 sps:$4 sm:$0xff]  }
 0xa65   :  { %14620 = vmatprep.subr.bf16.mxu0 %v20708_v17  ;;  %v20853_v17 = vld [vmem:[%s24366_s21 + $0x40] sm:$0xff]  }
 0xa66   :  { %17491 = vmatprep.subr.bf16.mxu1 %v20853_v17  ;;  %v20838_v17 = vld [vmem:[#allocation21 + $0x170] ss:$8 sps:$4 sm:$0xff]  }
 0xa68   :  { %14621 = vmatpush1.bf16.msra.mxu0 %v20706_v34  ;;  %v20854_v34 = vld [vmem:[%s24366_s21] sm:$0xff]  }
 0xa69   :  { %14622 = vmatprep.subr.bf16.mxu0 %v20711_v16  ;;  %v20855_v16 = vld [vmem:[%s24366_s21 + $0x48] sm:$0xff]   ;;  %17492 = vmatpush3.bf16.msra.mxu1 %v20854_v34 }
 0xa6a   :  { %17493 = vmatprep.subr.bf16.mxu1 %v20855_v16  ;;  %v20843_v34 = vld [vmem:[#allocation21 + $0x184] ss:$8 sps:$4 sm:$0xff]   ;;  %v20846_v16 = vld [vmem:[#allocation21 + $0x194] ss:$8 sps:$4 sm:$0xff]  }
 0xa6c   :  { %14623 = vmatpush1.bf16.msra.mxu0 %v20709_v28  ;;  %v20778_v28 = vld [vmem:[#allocation21 + $0x30] ss:$8 sps:$4 sm:$0xff]  }
 0xa6d   :  { %14624 = vmatprep.subr.bf16.mxu0 %v20714_v21  ;;  %v20783_v21 = vld [vmem:[#allocation21 + $0x44] ss:$8 sps:$4 sm:$0xff]  }
 0xa70   :  { %14625 = vmatpush1.bf16.msra.mxu0 %v20712_v59  ;;  %v20856_v59 = vld [vmem:[%s24366_s21 + $0x8] sm:$0xff]  }
 0xa71   :  { %14626 = vmatprep.subr.bf16.mxu0 %v20717_v32  ;;  %v20857_v32 = vld [vmem:[%s24366_s21 + $0x50] sm:$0xff]   ;;  %17494 = vmatpush3.bf16.msra.mxu1 %v20856_v59  ;;  %v20847_v59 = vld [vmem:[#allocation21 + $0x1a0] ss:$8 sps:$4 sm:$0xff]  }
 0xa72   :  { %17495 = vmatprep.subr.bf16.mxu1 %v20857_v32  ;;  %v20852_v32 = vld [vmem:[#allocation21 + $0x1b4] ss:$8 sps:$4 sm:$0xff]  }
 0xa74   :  { %14627 = vmatpush1.bf16.msra.mxu0 %v20715_v4  ;;  %v20781_v4 = vld [vmem:[#allocation21 + $0x40] ss:$8 sps:$4 sm:$0xff]  }
 0xa75   :  { %14628 = vmatprep.subr.bf16.mxu0 %v20720_v41  ;;  %v20786_v41 = vld [vmem:[#allocation21 + $0x54] ss:$8 sps:$4 sm:$0xff]  }
 0xa78   :  { %14629 = vmatpush1.bf16.msra.mxu0 %v20718_v1  ;;  %v20858_v1 = vld [vmem:[%s24366_s21 + $0x10] sm:$0xff]  }
 0xa79   :  { %14630 = vmatprep.subr.bf16.mxu0 %v20723_v33  ;;  %v20859_v33 = vld [vmem:[%s24366_s21 + $0x58] sm:$0xff]   ;;  %17496 = vmatpush3.bf16.msra.mxu1 %v20858_v1 }
 0xa7a   :  { %17497 = vmatprep.subr.bf16.mxu1 %v20859_v33 }
 0xa7c   :  { %14631 = vmatpush1.bf16.msra.mxu0 %v20721_v61  ;;  %v20784_v61 = vld [vmem:[#allocation21 + $0x50] ss:$8 sps:$4 sm:$0xff]  }
 0xa7d   :  { %14632 = vmatprep.subr.bf16.mxu0 %v20726_v11  ;;  %v20789_v11 = vld [vmem:[#allocation21 + $0x64] ss:$8 sps:$4 sm:$0xff]  }
 0xa80   :  { %14633 = vmatpush1.bf16.msra.mxu0 %v20724_v56  ;;  %v20860_v56 = vld [vmem:[%s24366_s21 + $0x18] sm:$0xff]  }
 0xa81   :  { %14634 = vmatprep.subr.bf16.mxu0 %v20729_v9  ;;  %v20861_v9 = vld [vmem:[%s24366_s21 + $0x60] sm:$0xff]   ;;  %17498 = vmatpush3.bf16.msra.mxu1 %v20860_v56 }
 0xa82   :  { %17499 = vmatprep.subr.bf16.mxu1 %v20861_v9 }
 0xa84   :  { %14635 = vmatpush1.bf16.msra.mxu0 %v20727_v8  ;;  %v20787_v8 = vld [vmem:[#allocation21 + $0x60] ss:$8 sps:$4 sm:$0xff]  }
 0xa85   :  { %14636 = vmatprep.subr.bf16.mxu0 %v20732_v45  ;;  %v20792_v45 = vld [vmem:[#allocation21 + $0x74] ss:$8 sps:$4 sm:$0xff]  }
 0xa88   :  { %14637 = vmatpush1.bf16.msra.mxu0 %v20730_v2  ;;  %v20862_v2 = vld [vmem:[%s24366_s21 + $0x20] sm:$0xff]  }
 0xa89   :  { %14679 = vmatprep.subr.bf16.mxu0 %v20735_v23  ;;  %v20863_v23 = vld [vmem:[%s24366_s21 + $0x68] sm:$0xff]   ;;  %17500 = vmatpush3.bf16.msra.mxu1 %v20862_v2 }
 0xa8a   :  { %17501 = vmatprep.subr.bf16.mxu1 %v20863_v23 }
 0xa8b   :  { %14639 = vmatmul.mubr.bf16.vlgmr.msra.gmra.mrb[168].mxu0 %v24442_v14 }
 0xa8c   :  { %14648 = vmatprep.mubr.bf16.mxu0 %v23997_v39  ;;  %14680 = vmatpush1.bf16.msra.mxu0 %v20733_v57  ;;  %v20790_v57 = vld [vmem:[#allocation21 + $0x70] ss:$8 sps:$4 sm:$0xff]  }
 0xa8d   :  { %14681 = vmatprep.subr.bf16.mxu0 %v20738_v5  ;;  %v20795_v5 = vld [vmem:[#allocation21 + $0x84] ss:$8 sps:$4 sm:$0xff]  }
 0xa90   :  { %14682 = vmatpush1.bf16.msra.mxu0 %v20736_v54  ;;  %v20864_v54 = vld [vmem:[%s24366_s21 + $0x28] sm:$0xff]  }
 0xa91   :  { %14683 = vmatprep.subr.bf16.mxu0 %v20741_v29  ;;  %v20865_v29 = vld [vmem:[%s24366_s21 + $0x70] sm:$0xff]   ;;  %17502 = vmatpush3.bf16.msra.mxu1 %v20864_v54 }
 0xa92   :  { %17503 = vmatprep.subr.bf16.mxu1 %v20865_v29 }
 0xa93   :  { %14649 = vmatmul.mubr.bf16.gmra.mrb[172].mxu0 %v23993_v44 }
 0xa94   :  { %14658 = vmatprep.mubr.bf16.mxu0 %v24025_v51  ;;  %14684 = vmatpush1.bf16.msra.mxu0 %v20739_v25  ;;  %v20793_v25 = vld [vmem:[#allocation21 + $0x80] ss:$8 sps:$4 sm:$0xff]  }
 0xa95   :  { %14685 = vmatprep.subr.bf16.mxu0 %v20744_v24  ;;  %v20798_v24 = vld [vmem:[#allocation21 + $0x94] ss:$8 sps:$4 sm:$0xff]  }
 0xa98   :  { %14686 = vmatpush1.bf16.msra.mxu0 %v20742_v46  ;;  %v20796_v46 = vld [vmem:[#allocation21 + $0x90] ss:$8 sps:$4 sm:$0xff]  }
 0xa99   :  { %14687 = vmatprep.subr.bf16.mxu0 %v20747_v31  ;;  %v20801_v31 = vld [vmem:[#allocation21 + $0xa4] ss:$8 sps:$4 sm:$0xff]  }
 0xa9b   :  { %14659 = vmatmul.mubr.bf16.gmra.mrb[176].mxu0 %v24021_v60 }
 0xa9c   :  { %14668 = vmatprep.mubr.bf16.mxu0 %v24053_v49  ;;  %14688 = vmatpush1.bf16.msra.mxu0 %v20745_v42  ;;  %v20799_v42 = vld [vmem:[#allocation21 + $0xa0] ss:$8 sps:$4 sm:$0xff]  }
 0xa9d   :  { %14689 = vmatprep.subr.bf16.mxu0 %v20750_v63  ;;  %v20804_v63 = vld [vmem:[#allocation21 + $0xb4] ss:$8 sps:$4 sm:$0xff]  }
 0xaa0   :  { %14690 = vmatpush1.bf16.msra.mxu0 %v20748_v15  ;;  %v20802_v15 = vld [vmem:[#allocation21 + $0xb0] ss:$8 sps:$4 sm:$0xff]  }
 0xaa1   :  { %14691 = vmatprep.subr.bf16.mxu0 %v20753_v26  ;;  %v20807_v26 = vld [vmem:[#allocation21 + $0xc4] ss:$8 sps:$4 sm:$0xff]  }
 0xaa3   :  { %14669 = vmatmul.mubr.bf16.gmra.mrb[180].mxu0 %v24049_v38 }
 0xaa4   :  { %14692 = vmatpush1.bf16.msra.mxu0 %v20751_v6  ;;  %14711 = vmatprep.mubr.bf16.mxu0 %v24442_v14  ;;  %v20805_v6 = vld [vmem:[#allocation21 + $0xc0] ss:$8 sps:$4 sm:$0xff]  }
 0xaa5   :  { %14693 = vmatprep.subr.bf16.mxu0 %v20756_v0  ;;  %v20810_v0 = vld [vmem:[#allocation21 + $0xd4] ss:$8 sps:$4 sm:$0xff]  }
 0xaa8   :  { %14694 = vmatpush1.bf16.msra.mxu0 %v20754_v36  ;;  %v20808_v36 = vld [vmem:[#allocation21 + $0xd0] ss:$8 sps:$4 sm:$0xff]  }
 0xaa9   :  { %14695 = vmatprep.subr.bf16.mxu0 %v20759_v48  ;;  %v20813_v48 = vld [vmem:[#allocation21 + $0xe4] ss:$8 sps:$4 sm:$0xff]  }
 0xaac   :  { %14696 = vmatpush1.bf16.msra.mxu0 %v20757_v47  ;;  %v20811_v47 = vld [vmem:[#allocation21 + $0xe0] ss:$8 sps:$4 sm:$0xff]  }
 0xaad   :  { %14697 = vmatprep.subr.bf16.mxu0 %v20762_v22  ;;  %v20816_v22 = vld [vmem:[#allocation21 + $0xf4] ss:$8 sps:$4 sm:$0xff]  }
 0xab0   :  { %14698 = vmatpush1.bf16.msra.mxu0 %v20760_v7  ;;  %v20814_v7 = vld [vmem:[#allocation21 + $0xf0] ss:$8 sps:$4 sm:$0xff]  }
 0xab1   :  { %14699 = vmatprep.subr.bf16.mxu0 %v20765_v37  ;;  %v20819_v37 = vld [vmem:[#allocation21 + $0x104] ss:$8 sps:$4 sm:$0xff]  }
 0xab4   :  { %14700 = vmatpush1.bf16.msra.mxu0 %v20763_v55  ;;  %v20817_v55 = vld [vmem:[#allocation21 + $0x100] ss:$8 sps:$4 sm:$0xff]  }
 0xab5   :  { %14701 = vmatprep.subr.bf16.mxu0 %v20768_v43  ;;  %v20822_v43 = vld [vmem:[#allocation21 + $0x114] ss:$8 sps:$4 sm:$0xff]  }
 0xab8   :  { %14702 = vmatpush1.bf16.msra.mxu0 %v20766_v62  ;;  %v20820_v62 = vld [vmem:[#allocation21 + $0x110] ss:$8 sps:$4 sm:$0xff]  }
 0xab9   :  { %15032 = vmatprep.subr.bf16.mxu0 %v20771_v52  ;;  %v20825_v52 = vld [vmem:[#allocation21 + $0x124] ss:$8 sps:$4 sm:$0xff]  }
 0xabb   :  { %14712 = vmatmul.mubr.bf16.vlgmr.msra.gmra.mrb[168].mxu0 %v24442_v14 }
 0xabc   :  { %17364 = vmatprep.mubr.msk.bf16.mxu0 %vm3053_vm2, %v23999_v20  ;;  %15033 = vmatpush1.bf16.msra.mxu0 %v20769_v27  ;;  %v20823_v27 = vld [vmem:[#allocation21 + $0x120] ss:$8 sps:$4 sm:$0xff]  }
 0xabd   :  { %15034 = vmatprep.subr.bf16.mxu0 %v20774_v53  ;;  %v20828_v53 = vld [vmem:[#allocation21 + $0x134] ss:$8 sps:$4 sm:$0xff]  }
 0xac0   :  { %15035 = vmatpush1.bf16.msra.mxu0 %v20772_v35  ;;  %v20826_v35 = vld [vmem:[#allocation21 + $0x130] ss:$8 sps:$4 sm:$0xff]  }
 0xac1   :  { %15036 = vmatprep.subr.bf16.mxu0 %v20777_v58  ;;  %v20831_v58 = vld [vmem:[#allocation21 + $0x144] ss:$8 sps:$4 sm:$0xff]  }
 0xac3   :  { %14722 = vmatmul.mubr.bf16.gmra.mrb[172].mxu0 %v23995_v19 }
 0xac4   :  { %17365 = vmatprep.mubr.msk.bf16.mxu0 %vm3053_vm2, %v24027_v3  ;;  %15037 = vmatpush1.bf16.msra.mxu0 %v20775_v30  ;;  %v20832_v30 = vld [vmem:[#allocation21 + $0x150] ss:$8 sps:$4 sm:$0xff]  }
 0xac5   :  { %15038 = vmatprep.subr.bf16.mxu0 %v20780_v50  ;;  %v20837_v50 = vld [vmem:[#allocation21 + $0x164] ss:$8 sps:$4 sm:$0xff]  }
 0xac8   :  { %15039 = vmatpush1.bf16.msra.mxu0 %v20778_v28  ;;  %v20844_v28 = vld [vmem:[#allocation21 + $0x190] ss:$8 sps:$4 sm:$0xff]  }
 0xac9   :  { %15040 = vmatprep.subr.bf16.mxu0 %v20783_v21  ;;  %v20849_v21 = vld [vmem:[#allocation21 + $0x1a4] ss:$8 sps:$4 sm:$0xff]  }
 0xacb   :  { %14732 = vmatmul.mubr.bf16.gmra.mrb[176].mxu0 %v24023_v18 }
 0xacc   :  { %17366 = vmatprep.mubr.msk.bf16.mxu0 %vm3053_vm2, %v24055_v10  ;;  %15041 = vmatpush1.bf16.msra.mxu0 %v20781_v4  ;;  %v20850_v4 = vld [vmem:[#allocation21 + $0x1b0] ss:$8 sps:$4 sm:$0xff]  }
 0xacd   :  { %15042 = vmatprep.subr.bf16.mxu0 %v20786_v41 }
 0xad0   :  { %15043 = vmatpush1.bf16.msra.mxu0 %v20784_v61 }
 0xad1   :  { %15044 = vmatprep.subr.bf16.mxu0 %v20789_v11 }
 0xad3   :  { %14742 = vmatmul.mubr.bf16.gmra.mrb[180].mxu0 %v24051_v40 }
 0xad4   :  { %15045 = vmatpush1.bf16.msra.mxu0 %v20787_v8  ;;  %15064 = vmatprep.mubr.bf16.mxu0 %v23997_v39  ;;  %v20866_v39 = vld [vmem:[%s24366_s21 + $0x30] sm:$0xff]  }
 0xad5   :  { %15046 = vmatprep.subr.bf16.mxu0 %v20792_v45  ;;  %17504 = vmatpush3.bf16.msra.mxu1 %v20866_v39 }
 0xad8   :  { %15047 = vmatpush1.bf16.msra.mxu0 %v20790_v57 }
 0xad9   :  { %15048 = vmatprep.subr.bf16.mxu0 %v20795_v5  ;;  %v20870_v5 = vld [vmem:[%s24366_s21 + $0x80] sm:$0xff]  }
 0xadc   :  { %15049 = vmatpush1.bf16.msra.mxu0 %v20793_v25  ;;  %v20871_v25 = vld [vmem:[%s24366_s21 + $0xc8] sm:$0xff]  }
 0xadd   :  { %15050 = vmatprep.subr.bf16.mxu0 %v20798_v24 }
 0xae0   :  { %15051 = vmatpush1.bf16.msra.mxu0 %v20796_v46 }
 0xae1   :  { %15052 = vmatprep.subr.bf16.mxu0 %v20801_v31 }
 0xae4   :  { %15053 = vmatpush1.bf16.msra.mxu0 %v20799_v42 }
 0xae5   :  { %15054 = vmatprep.subr.bf16.mxu0 %v20804_v63  ;;  %v20872_v63 = vld [vmem:[%s24366_s21 + $0x88] sm:$0xff]  }
 0xae8   :  { %15055 = vmatpush1.bf16.msra.mxu0 %v20802_v15 }
 0xae9   :  { %15056 = vmatprep.subr.bf16.mxu0 %v20807_v26 }
 0xaec   :  { %15057 = vmatpush1.bf16.msra.mxu0 %v20805_v6  ;;  %v20873_v6 = vld [vmem:[%s24366_s21 + $0xd0] sm:$0xff]  }
 0xaed   :  { %15058 = vmatprep.subr.bf16.mxu0 %v20810_v0 }
 0xaf0   :  { %15059 = vmatpush1.bf16.msra.mxu0 %v20808_v36 }
 0xaf1   :  { %15060 = vmatprep.subr.bf16.mxu0 %v20813_v48 }
 0xaf4   :  { %15061 = vmatpush1.bf16.msra.mxu0 %v20811_v47 }
 0xaf5   :  { %15062 = vmatprep.subr.bf16.mxu0 %v20816_v22 }
 0xaf8   :  { %15063 = vmatpush1.bf16.msra.mxu0 %v20814_v7  ;;  %v20874_v7 = vld [vmem:[%s24366_s21 + $0x90] sm:$0xff]  }
 0xaf9   :  { %15105 = vmatprep.subr.bf16.mxu0 %v20819_v37 }
 0xafb   :  { %15065 = vmatmul.mubr.bf16.vlgmr.msra.gmra.mrb[168].mxu0 %v23993_v44  ;;  %v20829_v44 = vld [vmem:[#allocation21 + $0x140] ss:$8 sps:$4 sm:$0xff]  }
 0xafc   :  { %15074 = vmatprep.mubr.bf16.mxu0 %v24025_v51  ;;  %15106 = vmatpush1.bf16.msra.mxu0 %v20817_v55  ;;  %v20834_v51 = vld [vmem:[#allocation21 + $0x154] ss:$8 sps:$4 sm:$0xff]  }
 0xafd   :  { %15107 = vmatprep.subr.bf16.mxu0 %v20822_v43  ;;  %v20875_v43 = vld [vmem:[%s24366_s21 + $0xd8] sm:$0xff]  }
 0xb00   :  { %15108 = vmatpush1.bf16.msra.mxu0 %v20820_v62 }
 0xb01   :  { %15109 = vmatprep.subr.bf16.mxu0 %v20825_v52 }
 0xb03   :  { %15075 = vmatmul.mubr.bf16.gmra.mrb[172].mxu0 %v24021_v60  ;;  %v20835_v60 = vld [vmem:[#allocation21 + $0x160] ss:$8 sps:$4 sm:$0xff]  }
 0xb04   :  { %15084 = vmatprep.mubr.bf16.mxu0 %v24053_v49  ;;  %15110 = vmatpush1.bf16.msra.mxu0 %v20823_v27  ;;  %v20840_v49 = vld [vmem:[#allocation21 + $0x174] ss:$8 sps:$4 sm:$0xff]  }
 0xb05   :  { %15111 = vmatprep.subr.bf16.mxu0 %v20828_v53 }
 0xb08   :  { %15112 = vmatpush1.bf16.msra.mxu0 %v20826_v35 }
 0xb09   :  { %15113 = vmatprep.subr.bf16.mxu0 %v20831_v58  ;;  %v20876_v58 = vld [vmem:[%s24366_s21 + $0x98] sm:$0xff]  }
 0xb0b   :  { %15085 = vmatmul.mubr.bf16.gmra.mrb[176].mxu0 %v24049_v38  ;;  %v20841_v38 = vld [vmem:[#allocation21 + $0x180] ss:$8 sps:$4 sm:$0xff]  }
 0xb0c   :  { %15114 = vmatpush1.bf16.msra.mxu0 %v20829_v44  ;;  %15094 = vmatprep.mubr.bf16.mxu0 %v24442_v14 }
 0xb0d   :  { %15115 = vmatprep.subr.bf16.mxu0 %v20834_v51 }
 0xb10   :  { %15116 = vmatpush1.bf16.msra.mxu0 %v20832_v30  ;;  %v20877_v30 = vld [vmem:[%s24366_s21 + $0xe0] sm:$0xff]  }
 0xb11   :  { %15117 = vmatprep.subr.bf16.mxu0 %v20837_v50 }
 0xb13   :  { %15095 = vmatmul.mubr.bf16.gmra.mrb[180].mxu0 %v24442_v14 }
 0xb14   :  { %15118 = vmatpush1.bf16.msra.mxu0 %v20835_v60  ;;  %17423 = vmatprep.mubr.msk.bf16.mxu0 %vm3053_vm2, %v23999_v20  ;;  %v20867_v20 = vld [vmem:[%s24366_s21 + $0x78] sm:$0xff]  }
 0xb15   :  { %15119 = vmatprep.subr.bf16.mxu0 %v20840_v49  ;;  %17505 = vmatprep.subr.bf16.mxu1 %v20867_v20 }
 0xb18   :  { %15120 = vmatpush1.bf16.msra.mxu0 %v20838_v17 }
 0xb19   :  { %15121 = vmatprep.subr.bf16.mxu0 %v20843_v34 }
 0xb1c   :  { %15122 = vmatpush1.bf16.msra.mxu0 %v20841_v38  ;;  %v20878_v38 = vld [vmem:[%s24366_s21 + $0xa0] sm:$0xff]  }
 0xb1d   :  { %15123 = vmatprep.subr.bf16.mxu0 %v20846_v16 }
 0xb20   :  { %15124 = vmatpush1.bf16.msra.mxu0 %v20844_v28 }
 0xb21   :  { %15125 = vmatprep.subr.bf16.mxu0 %v20849_v21  ;;  %v20879_v21 = vld [vmem:[%s24366_s21 + $0xe8] sm:$0xff]  }
 0xb24   :  { %15126 = vmatpush1.bf16.msra.mxu0 %v20847_v59 }
 0xb25   :  { %15127 = vmatprep.subr.bf16.mxu0 %v20852_v32 }
 0xb28   :  { %15128 = vmatpush1.bf16.msra.mxu0 %v20850_v4 }
 0xb2b   :  { %15138 = vmatmul.mubr.bf16.vlgmr.msra.gmra.mrb[168].mxu0 %v23995_v19  ;;  %v20868_v19 = vld [vmem:[%s24366_s21 + $0x38] sm:$0xff]  }
 0xb2c   :  { %17424 = vmatprep.mubr.msk.bf16.mxu0 %vm3053_vm2, %v24027_v3  ;;  %17506 = vmatpush3.bf16.msra.mxu1 %v20868_v19  ;;  %v13878_v3 = vld [vmem:[%s24365_s20] sm:$0x3] }
 0xb33   :  { %15148 = vmatmul.mubr.bf16.gmra.mrb[172].mxu0 %v24023_v18  ;;  %v20869_v18 = vld [vmem:[%s24366_s21 + $0xc0] sm:$0xff]  }
 0xb34   :  { %17425 = vmatprep.mubr.msk.bf16.mxu0 %vm3053_vm2, %v24055_v10  ;;  %17513 = vmatprep.subr.bf16.mxu1 %v20869_v18  ;;  %v20880_v18 = vld [vmem:[%s24366_s21 + $0xa8] sm:$0xff]  }
 0xb3b   :  { %15158 = vmatmul.mubr.bf16.gmra.mrb[176].mxu0 %v24051_v40  ;;  %v24171_v40 = vrot.slane %v13878_v3, %v24483_v13 }
 0xb3c   :  { %15167 = vmatprep.mubr.bf16.mxu0 %v24442_v14 }
 0xb43   :  { %15168 = vmatmul.mubr.bf16.gmra.mrb[180].mxu0 %v24442_v14  ;;  %v24168_v14 = vrot.slane %v13878_v3, %v24481_v12 }
 0xbfe   :  { %v15139_v10 = vpop.f32.mrb[168].mxu0 }
 0xbff   :  { %v15205_v41 = vadd.f32 %v24168_v14, %v15139_v10  ;;  %v15141_v1 = vpop.f32.mrb[169].mxu0 }
 0xc00   :  { %v15206_v33 = vadd.f32 %v24171_v40, %v15141_v1  ;;  %v15143_v61 = vpop.f32.mrb[170].mxu0 }
 0xc01   :  { %v15207_v11 = vadd.f32 %v24168_v14, %v15143_v61  ;;  %v15145_v56 = vpop.f32.mrb[171].mxu0  ;;  %v15221_v8 = vmax.f32 %v15205_v41, 0.0  ;;  %v20881_v41 = vld [vmem:[%s24366_s21 + $0xf0] sm:$0xff]  }
 0xc02   :  { %v15208_v9 = vadd.f32 %v24171_v40, %v15145_v56  ;;  %v15222_v2 = vmax.f32 %v15206_v33, 0.0  ;;  %v20884_v56 = vld [vmem:[%s24366_s21 + $0xb8] sm:$0xff]  }
 0xc03   :  { %v15223_v45 = vmax.f32 %v15207_v11, 0.0  ;;  %v20883_v11 = vld [vmem:[%s24366_s21 + $0xf8] sm:$0xff]  }
 0xc04   :  { %v15224_v12 = vmax.f32 %v15208_v9, 0.0  ;;  %v20885_v9 = vld [vmem:[%s24366_s21 + $0x140] sm:$0xff]  }
 0xc05   :  { %v15237_v23 = vpack.c.bf16 %v15223_v45, %v15221_v8  ;;  %v20886_v8 = vld [vmem:[%s24366_s21 + $0x100] sm:$0xff]   ;;  %v20887_v45 = vld [vmem:[%s24366_s21 + $0x148] sm:$0xff]  }
 0xc06   :  { %v15238_v57 = vpack.c.bf16 %v15224_v12, %v15222_v2  ;;  %v15149_v13 = vpop.f32.mrb[172].mxu0  ;;  %v20888_v2 = vld [vmem:[%s24366_s21 + $0x108] sm:$0xff]   ;;  %v20889_v12 = vld [vmem:[%s24366_s21 + $0x150] sm:$0xff]  }
 0xc07   :  { %v15209_v54 = vadd.f32 %v24168_v14, %v15149_v13  ;;  %v15151_v29 = vpop.f32.mrb[173].mxu0  ;;  %v20892_v13 = vld [vmem:[%s24366_s21 + $0x118] sm:$0xff]  }
 0xc08   :  { %v15210_v24 = vadd.f32 %v24171_v40, %v15151_v29  ;;  %v15153_v39 = vpop.f32.mrb[174].mxu0  ;;  %15796 = vmatprep.mubr.bf16.mxu1 %v15238_v57  ;;  %v20891_v57 = vld [vmem:[%s24366_s21 + $0x158] sm:$0xff]   ;;  %v20895_v29 = vld [vmem:[%s24366_s21 + $0x168] sm:$0xff]  }
 0xc09   :  { %v15211_v46 = vadd.f32 %v24168_v14, %v15153_v39  ;;  %v15155_v31 = vpop.f32.mrb[175].mxu0  ;;  %15797 = vmatmul.mubr.bf16.vlgmr.msra.gmra.mrb[220].mxu1 %v15237_v23  ;;  %v15225_v15 = vmax.f32 %v15209_v54, 0.0  ;;  %v20890_v23 = vld [vmem:[%s24366_s21 + $0x110] sm:$0xff]   ;;  %v20894_v54 = vld [vmem:[%s24366_s21 + $0x120] sm:$0xff]  }
 0xc0a   :  { %v15212_v42 = vadd.f32 %v24171_v40, %v15155_v31  ;;  %17514 = vmatpush3.bf16.msra.mxu1 %v20870_v5  ;;  %v15226_v0 = vmax.f32 %v15210_v24, 0.0  ;;  %v20893_v5 = vld [vmem:[%s24366_s21 + $0x160] sm:$0xff]   ;;  %v20897_v24 = vld [vmem:[%s24366_s21 + $0x170] sm:$0xff]   ;;  %v20900_v31 = vld [vmem:[%s24366_s21 + $0x138] sm:$0xff]  }
 0xc0b   :  { %v15227_v26 = vmax.f32 %v15211_v46, 0.0  ;;  %17515 = vmatprep.subr.bf16.mxu1 %v20871_v25  ;;  %v20896_v25 = vld [vmem:[%s24366_s21 + $0x128] sm:$0xff]   ;;  %v20898_v39 = vld [vmem:[%s24366_s21 + $0x130] sm:$0xff]   ;;  %v20899_v46 = vld [vmem:[%s24366_s21 + $0x178] sm:$0xff]  }
 0xc0c   :  { %v15228_v36 = vmax.f32 %v15212_v42, 0.0  ;;  %v20901_v42 = vld [vmem:[%s24366_s21 + $0x1c0] sm:$0xff]  }
 0xc0d   :  { %v15239_v48 = vpack.c.bf16 %v15227_v26, %v15225_v15  ;;  %v20903_v15 = vld [vmem:[%s24366_s21 + $0x1c8] sm:$0xff]  }
 0xc0e   :  { %v15240_v47 = vpack.c.bf16 %v15228_v36, %v15226_v0  ;;  %17516 = vmatpush3.bf16.msra.mxu1 %v20872_v63  ;;  %v15159_v22 = vpop.f32.mrb[176].mxu0  ;;  %v20902_v63 = vld [vmem:[%s24366_s21 + $0x180] sm:$0xff]   ;;  %v20904_v26 = vld [vmem:[%s24366_s21 + $0x188] sm:$0xff]   ;;  %v20906_v0 = vld [vmem:[%s24366_s21 + $0x190] sm:$0xff]  }
 0xc0f   :  { %v15213_v37 = vadd.f32 %v24168_v14, %v15159_v22  ;;  %v15161_v55 = vpop.f32.mrb[177].mxu0  ;;  %17517 = vmatprep.subr.bf16.mxu1 %v20873_v6  ;;  %v20905_v6 = vld [vmem:[%s24366_s21 + $0x1d0] sm:$0xff]   ;;  %v20907_v36 = vld [vmem:[%s24366_s21 + $0x1d8] sm:$0xff]   ;;  %v20910_v22 = vld [vmem:[%s24366_s21 + $0x1a0] sm:$0xff]  }
 0xc10   :  { %v15214_v62 = vadd.f32 %v24171_v40, %v15161_v55  ;;  %v15163_v52 = vpop.f32.mrb[178].mxu0  ;;  %15837 = vmatprep.mubr.bf16.mxu1 %v15240_v47  ;;  %v20909_v47 = vld [vmem:[%s24366_s21 + $0x1e0] sm:$0xff]   ;;  %v20913_v55 = vld [vmem:[%s24366_s21 + $0x1f0] sm:$0xff]  }
 0xc11   :  { %v15215_v27 = vadd.f32 %v24168_v14, %v15163_v52  ;;  %v15165_v53 = vpop.f32.mrb[179].mxu0  ;;  %v15229_v44 = vmax.f32 %v15213_v37, 0.0  ;;  %v20912_v37 = vld [vmem:[%s24366_s21 + $0x1a8] sm:$0xff]   ;;  %v20916_v52 = vld [vmem:[%s24366_s21 + $0x1b8] sm:$0xff]  }
 0xc12   :  { %v15216_v35 = vadd.f32 %v24171_v40, %v15165_v53  ;;  %17518 = vmatpush3.bf16.msra.mxu1 %v20874_v7  ;;  %v15230_v50 = vmax.f32 %v15214_v62, 0.0  ;;  %v20911_v7 = vld [vmem:[%s24366_s21 + $0x1e8] sm:$0xff]   ;;  %v20915_v62 = vld [vmem:[%s24366_s21 + $0x1f8] sm:$0xff]  }
 0xc13   :  { %v15231_v51 = vmax.f32 %v15215_v27, 0.0  ;;  %17519 = vmatprep.subr.bf16.mxu1 %v20875_v43  ;;  %v20914_v43 = vld [vmem:[%s24366_s21 + $0x1b0] sm:$0xff]  }
 0xc14   :  { %v15232_v60 = vmax.f32 %v15216_v35, 0.0 }
 0xc15   :  { %v24209_v49 = vpack.c.bf16 %v15231_v51, %v15229_v44 }
 0xc16   :  { %v15242_v17 = vpack.c.bf16 %v15232_v60, %v15230_v50  ;;  %17520 = vmatpush3.bf16.msra.mxu1 %v20876_v58  ;;  %v15169_v34 = vpop.f32.mrb[180].mxu0 }
 0xc17   :  { %v15217_v16 = vadd.f32 %v24168_v14, %v15169_v34  ;;  %v15171_v28 = vpop.f32.mrb[181].mxu0  ;;  %17521 = vmatprep.subr.bf16.mxu1 %v20877_v30  ;;  %v17426_v30 = vld [vmem:[%s24485_s13] ss:$0 sm:$0xff] }
 0xc18   :  { %v15218_v59 = vadd.f32 %v24171_v40, %v15171_v28  ;;  %v15173_v32 = vpop.f32.mrb[182].mxu0 }
 0xc19   :  { %v15219_v4 = vadd.f32 %v24168_v14, %v15173_v32  ;;  %v15175_v20 = vpop.f32.mrb[183].mxu0  ;;  %v15233_v3 = vmax.f32 %v15217_v16, 0.0 }
 0xc1a   :  { %v15220_v19 = vadd.f32 %v24171_v40, %v15175_v20  ;;  %17522 = vmatpush3.bf16.msra.mxu1 %v20878_v38  ;;  %v15234_v1 = vmax.f32 %v15218_v59, 0.0  ;;  %v20882_v40 = vld [vmem:[%s24366_s21 + $0xb0] sm:$0xff]  }
 0xc1b   :  { %v15235_v10 = vmax.f32 %v15219_v4, 0.0  ;;  %17523 = vmatprep.subr.bf16.mxu1 %v20879_v21 }
 0xc1c   :  { %v15236_v33 = vmax.f32 %v15220_v19, 0.0 }
 0xc1d   :  { %v24227_v61 = vpack.c.bf16 %v15235_v10, %v15233_v3 }
 0xc1e   :  { %v15244_v14 = vpack.c.bf16 %v15236_v33, %v15234_v1  ;;  %17524 = vmatpush3.bf16.msra.mxu1 %v20880_v18 }
 0xc1f   :  { %17525 = vmatprep.subr.bf16.mxu1 %v20881_v41 }
 0xc22   :  { %17526 = vmatpush3.bf16.msra.mxu1 %v20882_v40 }
 0xc23   :  { %17527 = vmatprep.subr.bf16.mxu1 %v20883_v11 }
 0xc26   :  { %17528 = vmatpush3.bf16.msra.mxu1 %v20884_v56 }
 0xc27   :  { %17535 = vmatprep.subr.bf16.mxu1 %v20885_v9 }
 0xc29   :  { %15838 = vmatmul.mubr.bf16.vlgmr.msra.gmra.mrb[224].mxu1 %v15239_v48  ;;  %v20908_v48 = vld [vmem:[%s24366_s21 + $0x198] sm:$0xff]  }
 0xc2a   :  { %17536 = vmatpush3.bf16.msra.mxu1 %v20886_v8  ;;  %15878 = vmatprep.mubr.bf16.mxu1 %v15242_v17 }
 0xc2b   :  { %17537 = vmatprep.subr.bf16.mxu1 %v20887_v45 }
 0xc2e   :  { %17538 = vmatpush3.bf16.msra.mxu1 %v20888_v2 }
 0xc2f   :  { %17539 = vmatprep.subr.bf16.mxu1 %v20889_v12 }
 0xc32   :  { %17540 = vmatpush3.bf16.msra.mxu1 %v20890_v23 }
 0xc33   :  { %17541 = vmatprep.subr.bf16.mxu1 %v20891_v57 }
 0xc36   :  { %17542 = vmatpush3.bf16.msra.mxu1 %v20892_v13 }
 0xc37   :  { %17543 = vmatprep.subr.bf16.mxu1 %v20893_v5 }
 0xc3a   :  { %17544 = vmatpush3.bf16.msra.mxu1 %v20894_v54 }
 0xc3b   :  { %17545 = vmatprep.subr.bf16.mxu1 %v20895_v29 }
 0xc3e   :  { %17546 = vmatpush3.bf16.msra.mxu1 %v20896_v25 }
 0xc3f   :  { %17547 = vmatprep.subr.bf16.mxu1 %v20897_v24 }
 0xc42   :  { %17548 = vmatpush3.bf16.msra.mxu1 %v20898_v39 }
 0xc43   :  { %17549 = vmatprep.subr.bf16.mxu1 %v20899_v46 }
 0xc46   :  { %17550 = vmatpush3.bf16.msra.mxu1 %v20900_v31 }
 0xc47   :  { %17557 = vmatprep.subr.bf16.mxu1 %v20901_v42 }
 0xc49   :  { %15879 = vmatmul.mubr.bf16.vlgmr.msra.gmra.mrb[228].mxu1 %v24209_v49 }
 0xc4a   :  { %17558 = vmatpush3.bf16.msra.mxu1 %v20902_v63  ;;  %15919 = vmatprep.mubr.bf16.mxu1 %v15244_v14 }
 0xc4b   :  { %17559 = vmatprep.subr.bf16.mxu1 %v20903_v15 }
 0xc4e   :  { %17560 = vmatpush3.bf16.msra.mxu1 %v20904_v26 }
 0xc4f   :  { %17561 = vmatprep.subr.bf16.mxu1 %v20905_v6 }
 0xc52   :  { %17562 = vmatpush3.bf16.msra.mxu1 %v20906_v0 }
 0xc53   :  { %17563 = vmatprep.subr.bf16.mxu1 %v20907_v36 }
 0xc56   :  { %17564 = vmatpush3.bf16.msra.mxu1 %v20908_v48 }
 0xc57   :  { %17565 = vmatprep.subr.bf16.mxu1 %v20909_v47 }
 0xc5a   :  { %17566 = vmatpush3.bf16.msra.mxu1 %v20910_v22 }
 0xc5b   :  { %17567 = vmatprep.subr.bf16.mxu1 %v20911_v7 }
 0xc5e   :  { %17568 = vmatpush3.bf16.msra.mxu1 %v20912_v37 }
 0xc5f   :  { %17569 = vmatprep.subr.bf16.mxu1 %v20913_v55 }
 0xc62   :  { %17570 = vmatpush3.bf16.msra.mxu1 %v20914_v43 }
 0xc63   :  { %17571 = vmatprep.subr.bf16.mxu1 %v20915_v62 }
 0xc66   :  { %17572 = vmatpush3.bf16.msra.mxu1 %v20916_v52 }
 0xc69   :  { %15920 = vmatmul.mubr.bf16.vlgmr.msra.gmra.mrb[232].mxu1 %v24227_v61 }
 0xcdc   :  { %v17507_v27 = vpop.f32.mrb[220].mxu1 }
 0xcdd   :  { %v17508_v53 = vpop.f32.mrb[221].mxu1 }
 0xcde   :  { %v17509_v35 = vadd.f32 %v17508_v53, %v17507_v27  ;;  %v17510_v58 = vpop.f32.mrb[222].mxu1 }
 0xcdf   :  { %v17511_v44 = vpop.f32.mrb[223].mxu1 }
 0xce0   :  { %v17512_v51 = vadd.f32 %v17511_v44, %v17510_v58  ;;  %v15799_v49 = vadd.f32 %v17509_v35, %v17426_v30 }
 0xce2   :  { %v15802_v16 = vadd.f32 %v17512_v51, %v17426_v30 }
 0xcfc   :  { %v17529_v50 = vpop.f32.mrb[224].mxu1 }
 0xcfd   :  { %v17530_v60 = vpop.f32.mrb[225].mxu1 }
 0xcfe   :  { %v17531_v17 = vadd.f32 %v17530_v60, %v17529_v50  ;;  %v17532_v34 = vpop.f32.mrb[226].mxu1 }
 0xcff   :  { %v17533_v38 = vpop.f32.mrb[227].mxu1 }
 0xd00   :  { %v15840_v28 = vadd.f32 %v17531_v17, %v15799_v49  ;;  %v17534_v21 = vadd.f32 %v17533_v38, %v17532_v34 }
 0xd02   :  { %v15843_v59 = vadd.f32 %v17534_v21, %v15802_v16 }
 0xd1c   :  { %v17551_v32 = vpop.f32.mrb[228].mxu1 }
 0xd1d   :  { %v17552_v4 = vpop.f32.mrb[229].mxu1 }
 0xd1e   :  { %v17553_v20 = vadd.f32 %v17552_v4, %v17551_v32  ;;  %v17554_v19 = vpop.f32.mrb[230].mxu1 }
 0xd1f   :  { %v17555_v18 = vpop.f32.mrb[231].mxu1 }
 0xd20   :  { %v15881_v3 = vadd.f32 %v17553_v20, %v15840_v28  ;;  %v17556_v10 = vadd.f32 %v17555_v18, %v17554_v19 }
 0xd22   :  { %v15884_v41 = vadd.f32 %v17556_v10, %v15843_v59 }
 0xd3c   :  { %v17573_v1 = vpop.f32.mrb[232].mxu1 }
 0xd3d   :  { %v17574_v33 = vpop.f32.mrb[233].mxu1 }
 0xd3e   :  { %v17575_v61 = vadd.f32 %v17574_v33, %v17573_v1  ;;  %v17576_v14 = vpop.f32.mrb[234].mxu1 }
 0xd3f   :  { %v17577_v40 = vpop.f32.mrb[235].mxu1 }
 0xd40   :  { %v15922_v11 = vadd.f32 %v17575_v61, %v15881_v3  ;;  %v17578_v56 = vadd.f32 %v17577_v40, %v17576_v14 }
 0xd42   :  { %15929 = vst.msk [vmem:[%s24486_s24] sm:$0xff] %vm15928_vm3, %v15922_v11  ;;  %v15925_v9 = vadd.f32 %v17578_v56, %v15884_v41 }
 0xd44   :  { %15930 = vst.msk [vmem:[%s24486_s24 + $0x8] sm:$0xff] %vm15928_vm3, %v15925_v9 }
 0xd45   :  { %15935 = vsyncpa [#allocation3], 1 }
 0xd46   :  { %15936 = vsyncpa [#allocation5], 1 }
 0xd47   :  { %15937 = vsyncpa [#allocation8], 1 }
 0xd48   :  { %15938 = vsyncpa [#allocation11], 1 }
 0xd49   :  { %15939 = vsyncpa [#allocation14], 1 }
 0xd4a   :  { %15940 = vsyncpa [#allocation17], 1 }
 0xd4b   :  { %15941 = vsyncpa [#allocation20], 1 }

</bundles_post_ra>
